<compile_context>
chip_gen: v7x
topology: tpu7x:2x2x1
jax: 0.10.0
libtpu: 0.0.40
codegen_flags: <defaults>
</compile_context>

<pallas_src>
import math
import numpy as np
import jax
import jax.numpy as jnp
from jax.experimental import pallas as pl
from jax.experimental.pallas import tpu as pltpu

HIDDEN = 1024          # the module hard-codes nn.Linear(1024, 1024)
C1 = 512               # conv1/conv2 output channels (hard-coded in the module)

_VMEM_LIMIT_CACHE = None


def _vmem_limit():
    """~75% of the chip's VMEM (96 MiB on v5e/v6e, 48 MiB on v7x); safe fallback."""
    global _VMEM_LIMIT_CACHE
    if _VMEM_LIMIT_CACHE is None:
        try:
            cap = pltpu.get_tpu_info().vmem_capacity_bytes
            _VMEM_LIMIT_CACHE = int(cap * 3 // 4)
        except Exception:
            _VMEM_LIMIT_CACHE = 48 * 1024 * 1024
    return _VMEM_LIMIT_CACHE


# ----------------------------------------------------------------------------
# gen_grid_up (pure glue, mirrors the torch implementation)
# ----------------------------------------------------------------------------
def gen_grid_up(up_ratio, grid_size=0.2):
    sqrted = int(math.sqrt(up_ratio)) + 1
    num_x = num_y = 1
    for i in reversed(range(1, sqrted + 1)):
        if up_ratio % i == 0:
            num_x = i
            num_y = up_ratio // i
            break
    grid_x = np.linspace(-grid_size, grid_size, num_x)
    grid_y = np.linspace(-grid_size, grid_size, num_y)
    x, y = np.meshgrid(grid_x, grid_y, indexing="ij")       # torch.meshgrid default 'ij'
    grid = np.stack([x, y], axis=-1).reshape(-1, 2).T        # (2, up_ratio)
    return jnp.asarray(grid, dtype=jnp.float32)


# ----------------------------------------------------------------------------
# deterministic parameter init (synthetic; linear/conv weights stored as (in, out))
# ----------------------------------------------------------------------------
def init_params(key, num_coarse, cat_feature_num):
    ks = jax.random.split(key, 16)

    def w_mat(k, fan_in, fan_out):
        bound = 1.0 / math.sqrt(fan_in)
        return jax.random.uniform(k, (fan_in, fan_out), jnp.float32, -bound, bound)

    def b_vec(k, fan_in, fan_out):
        bound = 1.0 / math.sqrt(fan_in)
        return jax.random.uniform(k, (1, fan_out), jnp.float32, -bound, bound)

    p = {}
    p["fc1_w"] = w_mat(ks[0], HIDDEN, HIDDEN);             p["fc1_b"] = b_vec(ks[1], HIDDEN, HIDDEN)
    p["fc2_w"] = w_mat(ks[2], HIDDEN, HIDDEN);             p["fc2_b"] = b_vec(ks[3], HIDDEN, HIDDEN)
    p["fc3_w"] = w_mat(ks[4], HIDDEN, num_coarse * 3);     p["fc3_b"] = b_vec(ks[5], HIDDEN, num_coarse * 3)
    # KRA layers (Linear(channel, channel, bias=False) x2)
    p["kra1_a"] = w_mat(ks[6], HIDDEN, HIDDEN);            p["kra1_b"] = w_mat(ks[7], HIDDEN, HIDDEN)
    p["kra2_a"] = w_mat(ks[8], HIDDEN, HIDDEN);            p["kra2_b"] = w_mat(ks[9], HIDDEN, HIDDEN)
    # 1x1 Conv1d weights stored as (C_in, C_out); channel order = [grid(2), point(3), global(1024)]
    p["conv1_w"] = w_mat(ks[10], cat_feature_num, C1);     p["conv1_b"] = b_vec(ks[11], cat_feature_num, C1)
    p["conv2_w"] = w_mat(ks[12], C1, C1);                  p["conv2_b"] = b_vec(ks[13], C1, C1)
    p["conv3_w"] = w_mat(ks[14], C1, 3);                   p["conv3_b"] = b_vec(ks[15], C1, 3)
    return p


def prepare_kernel_params(p, num_coarse):
    """Casts / pads / reorients the f32 parameters for the Pallas kernels."""
    bf = jnp.bfloat16
    kp = {}
    # FC stage (activations (B, F), weights (in, out)) — big weights in bf16, biases f32.
    kp["fc1_w"] = p["fc1_w"].astype(bf);  kp["fc1_b"] = p["fc1_b"]
    kp["fc2_w"] = p["fc2_w"].astype(bf);  kp["fc2_b"] = p["fc2_b"]
    n3 = num_coarse * 3
    npad = ((n3 + 127) // 128) * 128                 # lane-dense fc3 output
    kp["fc3p_w"] = jnp.pad(p["fc3_w"], ((0, 0), (0, npad - n3))).astype(bf)
    kp["fc3p_b"] = jnp.pad(p["fc3_b"], ((0, 0), (0, npad - n3)))
    kp["kra1_a"] = p["kra1_a"].astype(bf);  kp["kra1_b"] = p["kra1_b"].astype(bf)
    kp["kra2_a"] = p["kra2_a"].astype(bf);  kp["kra2_b"] = p["kra2_b"].astype(bf)
    # conv1 split: channels [0:2]=grid, [2:5]=center, [5:]=global.
    kp["conv1_grid_w"] = p["conv1_w"][0:2, :].T              # (512, 2)   f32 (tiny)
    kp["conv1_cent_w"] = p["conv1_w"][2:5, :].T              # (512, 3)   f32 (tiny)
    kp["conv1_glob_w"] = p["conv1_w"][5:, :].astype(bf)      # (1024, 512) bf16, used in MLP kernel
    kp["conv1_glob_b"] = p["conv1_b"]                        # (1, 512)   f32, folded into glob
    # conv2/conv3 in channels-first orientation (C_out, C_in) with column biases.
    kp["conv2_w_t"] = p["conv2_w"].T.astype(bf)              # (512, 512) bf16
    kp["conv2_b_col"] = p["conv2_b"].T                       # (512, 1)   f32
    kp["conv3_w_t"] = p["conv3_w"].T                         # (3, 512)   f32 (tiny)
    kp["conv3_b_col"] = p["conv3_b"].T                       # (3, 1)     f32
    return kp


# ----------------------------------------------------------------------------
# Pallas kernels
# ----------------------------------------------------------------------------
def _kra_step(h, a_ref, b_ref):
    t = jnp.maximum(jnp.dot(h.astype(jnp.bfloat16), a_ref[...],
                            preferred_element_type=jnp.float32), 0.0)
    return jnp.dot(t.astype(jnp.bfloat16), b_ref[...], preferred_element_type=jnp.float32)


def _mlp_source_kernel(x_ref, w1, b1, w2, b2, w3, b3, wx, bx,
                       lat1_ref, lat2_ref, coarse_ref, glob_ref):
    x = x_ref[...]
    xb = x.astype(jnp.bfloat16)
    h1 = jnp.maximum(jnp.dot(xb, w1[...], preferred_element_type=jnp.float32) + b1[...], 0.0)
    lat1_ref[...] = h1
    h2 = jnp.maximum(jnp.dot(h1.astype(jnp.bfloat16), w2[...],
                             preferred_element_type=jnp.float32) + b2[...], 0.0)
    lat2_ref[...] = h2
    coarse_ref[...] = jnp.dot(h2.astype(jnp.bfloat16), w3[...],
                              preferred_element_type=jnp.float32) + b3[...]
    # conv1 global contribution (per batch row, broadcast over fine points later)
    glob_ref[...] = jnp.dot(xb, wx[...], preferred_element_type=jnp.float32) + bx[...]


def _mlp_target_kernel(x_ref, w1, b1, w2, b2, w3, b3, k1a, k1b, k2a, k2b, wx, bx,
                       lat1_ref, lat2_ref, coarse_ref, glob_ref):
    x = x_ref[...]
    xb = x.astype(jnp.bfloat16)
    h1 = jnp.dot(xb, w1[...], preferred_element_type=jnp.float32) + b1[...]
    h1 = jnp.maximum(_kra_step(h1, k1a, k1b) + h1, 0.0)
    lat1_ref[...] = h1
    h2 = jnp.dot(h1.astype(jnp.bfloat16), w2[...], preferred_element_type=jnp.float32) + b2[...]
    h2 = jnp.maximum(_kra_step(h2, k2a, k2b) + h2, 0.0)
    lat2_ref[...] = h2
    coarse_ref[...] = jnp.dot(h2.astype(jnp.bfloat16), w3[...],
                              preferred_element_type=jnp.float32) + b3[...]
    glob_ref[...] = jnp.dot(xb, wx[...], preferred_element_type=jnp.float32) + bx[...]


def _conv_kernel(grid_ref, center_ref, glob_ref,
                 wg_ref, wc_ref, w2_ref, b2_ref, w3_ref, b3_ref, out_ref):
    # Channels-first: C on sublanes, N (fine points) on lanes → lane-dense output.
    g = grid_ref[...]                      # (2, TN)  f32
    c = center_ref[0]                      # (3, TN)  f32
    glob = glob_ref[...]                   # (512, 1) f32 — (x @ W_global + b1) column
    h1 = jnp.dot(wg_ref[...], g, preferred_element_type=jnp.float32)       # (512, TN)
    h1 = h1 + jnp.dot(wc_ref[...], c, preferred_element_type=jnp.float32)
    h1 = jnp.maximum(h1 + glob, 0.0)
    h2 = jnp.dot(w2_ref[...], h1.astype(jnp.bfloat16),
                 preferred_element_type=jnp.float32)
    h2 = jnp.maximum(h2 + b2_ref[...], 0.0)                                 # (512, TN)
    o = jnp.dot(w3_ref[...], h2, preferred_element_type=jnp.float32)        # (3, TN)
    out_ref[0] = o + b3_ref[...] + c


# ----------------------------------------------------------------------------
# pallas_call wrappers
# ----------------------------------------------------------------------------
def run_mlp(kp, x, phase):
    B = x.shape[0]
    npad = kp["fc3p_w"].shape[1]
    vmem = pl.BlockSpec(memory_space=pltpu.MemorySpace.VMEM)
    if phase == "source":
        kernel = _mlp_source_kernel
        args = (x, kp["fc1_w"], kp["fc1_b"], kp["fc2_w"], kp["fc2_b"],
                kp["fc3p_w"], kp["fc3p_b"], kp["conv1_glob_w"], kp["conv1_glob_b"])
    elif phase == "target":
        kernel = _mlp_target_kernel
        args = (x, kp["fc1_w"], kp["fc1_b"], kp["fc2_w"], kp["fc2_b"],
                kp["fc3p_w"], kp["fc3p_b"],
                kp["kra1_a"], kp["kra1_b"], kp["kra2_a"], kp["kra2_b"],
                kp["conv1_glob_w"], kp["conv1_glob_b"])
    else:
        raise ValueError(phase)
    out_shape = (jax.ShapeDtypeStruct((B, HIDDEN), jnp.float32),
                 jax.ShapeDtypeStruct((B, HIDDEN), jnp.float32),
                 jax.ShapeDtypeStruct((B, npad), jnp.float32),
                 jax.ShapeDtypeStruct((B, C1), jnp.float32))
    return pl.pallas_call(
        kernel,
        out_shape=out_shape,
        in_specs=[vmem] * len(args),
        out_specs=(vmem, vmem, vmem, vmem),
        compiler_params=pltpu.CompilerParams(vmem_limit_bytes=_vmem_limit()),
    )(*args)


def _pick_tile_n(num_fine, max_tile=2048):
    if num_fine <= max_tile:
        return num_fine
    t = (max_tile // 128) * 128
    while t >= 128:
        if num_fine % t == 0:
            return t
        t -= 128
    return num_fine            # fallback: full extent (always legal)


def run_conv(kp, grid_cn, center_cn, glob_col, num_fine):
    B = center_cn.shape[0]
    tile_n = _pick_tile_n(num_fine)
    n_tiles = num_fine // tile_n
    vmem = pl.BlockSpec(memory_space=pltpu.MemorySpace.VMEM)   # constants: no double-buffering
    return pl.pallas_call(
        _conv_kernel,
        out_shape=jax.ShapeDtypeStruct((B, 3, num_fine), jnp.float32),
        grid=(B, n_tiles),
        in_specs=[
            pl.BlockSpec((2, tile_n), lambda b, n: (0, n)),        # tiled grid offsets
            pl.BlockSpec((1, 3, tile_n), lambda b, n: (b, 0, n)),  # center (coarse repeated)
            pl.BlockSpec((C1, 1), lambda b, n: (b, 0)),            # per-batch global column
            vmem,   # conv1_grid_w  (512, 2)
            vmem,   # conv1_cent_w  (512, 3)
            vmem,   # conv2_w_t     (512, 512) bf16
            vmem,   # conv2_b_col   (512, 1)
            vmem,   # conv3_w_t     (3, 512)
            vmem,   # conv3_b_col   (3, 1)
        ],
        out_specs=pl.BlockSpec((1, 3, tile_n), lambda b, n: (b, 0, n)),  # lane-dense NCW output
        compiler_params=pltpu.CompilerParams(
            dimension_semantics=("parallel", "parallel"),
            vmem_limit_bytes=_vmem_limit()),
    )(grid_cn, center_cn, glob_col,
      kp["conv1_grid_w"], kp["conv1_cent_w"],
      kp["conv2_w_t"], kp["conv2_b_col"],
      kp["conv3_w_t"], kp["conv3_b_col"])


# ----------------------------------------------------------------------------
# forward pass (glue: only tiny tile/repeat/reshape ops in plain JAX)
# ----------------------------------------------------------------------------
def kt_decoder_forward(kp, x, grid, num_coarse, num_fine, scale, phase="source"):
    B = x.shape[0]
    lat1, lat2, coarse_pad, glob = run_mlp(kp, x, phase)
    coarse = coarse_pad[:, : num_coarse * 3].reshape(B, 3, num_coarse)     # .view(-1, 3, num_coarse)
    center_cn = jnp.repeat(coarse, scale, axis=2)                          # (B, 3, num_fine)
    grid_cn = jnp.tile(grid, (1, num_coarse))                              # (2, num_fine)
    glob_col = glob.reshape(B * C1, 1)                                     # per-batch 512-columns
    fine = run_conv(kp, grid_cn, center_cn, glob_col, num_fine)            # (B, 3, num_fine) NCW
    return coarse, fine, [lat1, lat2]


# ----------------------------------------------------------------------------
# pure-JAX reference (mirrors the original module structure; same bf16 weight
# precision / f32 accumulation as the kernels)
# ----------------------------------------------------------------------------
def reference_forward(params, x, grid, num_coarse, num_fine, scale, phase):
    B = x.shape[0]
    bf = jnp.bfloat16

    def lin(h, w, b=None):
        out = jnp.dot(h.astype(bf), w.astype(bf), preferred_element_type=jnp.float32)
        return out if b is None else out + b

    def kra(h, a, b):
        return lin(jnp.maximum(lin(h, a), 0.0), b)

    if phase == "source":
        h1 = jax.nn.relu(lin(x, params["fc1_w"], params["fc1_b"]))
        h2 = jax.nn.relu(lin(h1, params["fc2_w"], params["fc2_b"]))
    else:
        h1 = lin(x, params["fc1_w"], params["fc1_b"])
        h1 = jax.nn.relu(kra(h1, params["kra1_a"], params["kra1_b"]) + h1)
        h2 = lin(h1, params["fc2_w"], params["fc2_b"])
        h2 = jax.nn.relu(kra(h2, params["kra2_a"], params["kra2_b"]) + h2)
    coarse = lin(h2, params["fc3_w"], params["fc3_b"]).reshape(B, 3, num_coarse)

    grid_feat_t = jnp.tile(grid.T, (num_coarse, 1))                        # (num_fine, 2)
    grid_feat_t = jnp.broadcast_to(grid_feat_t[None], (B, num_fine, 2))
    center_t = jnp.repeat(jnp.transpose(coarse, (0, 2, 1)), scale, axis=1) # (B, num_fine, 3)
    global_t = jnp.broadcast_to(x[:, None, :], (B, num_fine, x.shape[1]))
    feat_t = jnp.concatenate([grid_feat_t, center_t, global_t], axis=-1)

    h = jax.nn.relu(lin(feat_t, params["conv1_w"], params["conv1_b"]))
    h = jax.nn.relu(lin(h, params["conv2_w"], params["conv2_b"]))
    fine_t = lin(h, params["conv3_w"], params["conv3_b"]) + center_t
    fine = jnp.transpose(fine_t, (0, 2, 1))                                # (B, 3, num_fine)
    return coarse, fine, [h1, h2]


# ----------------------------------------------------------------------------
if __name__ == "__main__":
    B = 2
    num_coarse = 32
    scale = 4
    num_fine = num_coarse * scale            # 128
    cat_feature_num = 2 + 3 + HIDDEN         # 1029 (grid + point + global features)

    key = jax.random.PRNGKey(0)
    kparam_key, kx = jax.random.split(key)
    params = init_params(kparam_key, num_coarse, cat_feature_num)
    kparams = prepare_kernel_params(params, num_coarse)
    grid = gen_grid_up(2 ** int(math.log2(scale)), 0.05)
    x = jax.random.normal(kx, (B, HIDDEN), jnp.float32)

    for phase in ("source", "target"):
        coarse, fine, latent = kt_decoder_forward(kparams, x, grid, num_coarse, num_fine, scale, phase)
        jax.block_until_ready((coarse, fine, latent))
        assert coarse.shape == (B, 3, num_coarse)
        assert fine.shape == (B, 3, num_fine)
        assert latent[0].shape == (B, HIDDEN) and latent[1].shape == (B, HIDDEN)

        rc, rf, rl = reference_forward(params, x, grid, num_coarse, num_fine, scale, phase)
        for got, ref, name in ((coarse, rc, "coarse"), (fine, rf, "fine"),
                               (latent[0], rl[0], "latent0"), (latent[1], rl[1], "latent1")):
            if not jnp.allclose(got, ref, atol=1e-2, rtol=1e-2):
                err = float(jnp.max(jnp.abs(got - ref)))
                raise AssertionError(f"mismatch in {name} (phase={phase}), max abs err {err}")

    print("KERNEL_OK")
</pallas_src>

<mosaic_0001>
module attributes {stable_mosaic.version = 11 : i64} {
  func.func @_mlp_source_kernel(%arg0: memref<2x1024xf32, #tpu.memory_space<vmem>>, %arg1: memref<1024x1024xbf16, #tpu.memory_space<vmem>>, %arg2: memref<1x1024xf32, #tpu.memory_space<vmem>>, %arg3: memref<1024x1024xbf16, #tpu.memory_space<vmem>>, %arg4: memref<1x1024xf32, #tpu.memory_space<vmem>>, %arg5: memref<1024x128xbf16, #tpu.memory_space<vmem>>, %arg6: memref<1x128xf32, #tpu.memory_space<vmem>>, %arg7: memref<1024x512xbf16, #tpu.memory_space<vmem>>, %arg8: memref<1x512xf32, #tpu.memory_space<vmem>>, %arg9: memref<2x1024xf32, #tpu.memory_space<vmem>>, %arg10: memref<2x1024xf32, #tpu.memory_space<vmem>>, %arg11: memref<2x128xf32, #tpu.memory_space<vmem>>, %arg12: memref<2x512xf32, #tpu.memory_space<vmem>>) attributes {dimension_semantics = [], scalar_prefetch = 0 : i64, scratch_operands = 0 : i64, tpu.core_type = #tpu.core_type<tc>} {
    %c0 = arith.constant 0 : index
    %c0_0 = arith.constant 0 : index
    %0 = vector.load %arg0[%c0, %c0_0] : memref<2x1024xf32, #tpu.memory_space<vmem>>, vector<2x1024xf32>
    %1 = arith.truncf %0 : vector<2x1024xf32> to vector<2x1024xbf16>
    %c0_1 = arith.constant 0 : index
    %c0_2 = arith.constant 0 : index
    %2 = vector.load %arg1[%c0_1, %c0_2] : memref<1024x1024xbf16, #tpu.memory_space<vmem>>, vector<1024x1024xbf16>
    %cst = arith.constant dense<0.000000e+00> : vector<2x1024xf32>
    %3 = tpu.matmul %1, %2, %cst {dimension_numbers = #tpu.dot_dimension_numbers<[1], [0], [0], [1], [0, 0, 1, 1], [], []>} : vector<2x1024xbf16>, vector<1024x1024xbf16>, vector<2x1024xf32> -> vector<2x1024xf32>
    %c0_3 = arith.constant 0 : index
    %c0_4 = arith.constant 0 : index
    %4 = vector.load %arg2[%c0_3, %c0_4] : memref<1x1024xf32, #tpu.memory_space<vmem>>, vector<1x1024xf32>
    %5 = vector.broadcast %4 : vector<1x1024xf32> to vector<2x1024xf32>
    %6 = arith.addf %3, %5 : vector<2x1024xf32>
    %cst_5 = arith.constant 0.000000e+00 : f32
    %7 = vector.broadcast %cst_5 : f32 to vector<2x1024xf32>
    %8 = arith.maximumf %6, %7 : vector<2x1024xf32>
    %c0_6 = arith.constant 0 : index
    %c0_7 = arith.constant 0 : index
    %9 = vector.load %arg9[%c0_6, %c0_7] : memref<2x1024xf32, #tpu.memory_space<vmem>>, vector<2x1024xf32>
    tpu.vector_store %arg9[%c0_6, %c0_7], %8 {strides = array<i32>} : memref<2x1024xf32, #tpu.memory_space<vmem>>, vector<2x1024xf32>,
    %10 = arith.truncf %8 : vector<2x1024xf32> to vector<2x1024xbf16>
    %c0_8 = arith.constant 0 : index
    %c0_9 = arith.constant 0 : index
    %11 = vector.load %arg3[%c0_8, %c0_9] : memref<1024x1024xbf16, #tpu.memory_space<vmem>>, vector<1024x1024xbf16>
    %cst_10 = arith.constant dense<0.000000e+00> : vector<2x1024xf32>
    %12 = tpu.matmul %10, %11, %cst_10 {dimension_numbers = #tpu.dot_dimension_numbers<[1], [0], [0], [1], [0, 0, 1, 1], [], []>} : vector<2x1024xbf16>, vector<1024x1024xbf16>, vector<2x1024xf32> -> vector<2x1024xf32>
    %c0_11 = arith.constant 0 : index
    %c0_12 = arith.constant 0 : index
    %13 = vector.load %arg4[%c0_11, %c0_12] : memref<1x1024xf32, #tpu.memory_space<vmem>>, vector<1x1024xf32>
    %14 = vector.broadcast %13 : vector<1x1024xf32> to vector<2x1024xf32>
    %15 = arith.addf %12, %14 : vector<2x1024xf32>
    %cst_13 = arith.constant 0.000000e+00 : f32
    %16 = vector.broadcast %cst_13 : f32 to vector<2x1024xf32>
    %17 = arith.maximumf %15, %16 : vector<2x1024xf32>
    %c0_14 = arith.constant 0 : index
    %c0_15 = arith.constant 0 : index
    %18 = vector.load %arg10[%c0_14, %c0_15] : memref<2x1024xf32, #tpu.memory_space<vmem>>, vector<2x1024xf32>
    tpu.vector_store %arg10[%c0_14, %c0_15], %17 {strides = array<i32>} : memref<2x1024xf32, #tpu.memory_space<vmem>>, vector<2x1024xf32>,
    %19 = arith.truncf %17 : vector<2x1024xf32> to vector<2x1024xbf16>
    %c0_16 = arith.constant 0 : index
    %c0_17 = arith.constant 0 : index
    %20 = vector.load %arg5[%c0_16, %c0_17] : memref<1024x128xbf16, #tpu.memory_space<vmem>>, vector<1024x128xbf16>
    %cst_18 = arith.constant dense<0.000000e+00> : vector<2x128xf32>
    %21 = tpu.matmul %19, %20, %cst_18 {dimension_numbers = #tpu.dot_dimension_numbers<[1], [0], [0], [1], [0, 0, 1, 1], [], []>} : vector<2x1024xbf16>, vector<1024x128xbf16>, vector<2x128xf32> -> vector<2x128xf32>
    %c0_19 = arith.constant 0 : index
    %c0_20 = arith.constant 0 : index
    %22 = vector.load %arg6[%c0_19, %c0_20] : memref<1x128xf32, #tpu.memory_space<vmem>>, vector<1x128xf32>
    %23 = vector.broadcast %22 : vector<1x128xf32> to vector<2x128xf32>
    %24 = arith.addf %21, %23 : vector<2x128xf32>
    %c0_21 = arith.constant 0 : index
    %c0_22 = arith.constant 0 : index
    %25 = vector.load %arg11[%c0_21, %c0_22] : memref<2x128xf32, #tpu.memory_space<vmem>>, vector<2x128xf32>
    tpu.vector_store %arg11[%c0_21, %c0_22], %24 {strides = array<i32>} : memref<2x128xf32, #tpu.memory_space<vmem>>, vector<2x128xf32>,
    %c0_23 = arith.constant 0 : index
    %c0_24 = arith.constant 0 : index
    %26 = vector.load %arg7[%c0_23, %c0_24] : memref<1024x512xbf16, #tpu.memory_space<vmem>>, vector<1024x512xbf16>
    %cst_25 = arith.constant dense<0.000000e+00> : vector<2x512xf32>
    %27 = tpu.matmul %1, %26, %cst_25 {dimension_numbers = #tpu.dot_dimension_numbers<[1], [0], [0], [1], [0, 0, 1, 1], [], []>} : vector<2x1024xbf16>, vector<1024x512xbf16>, vector<2x512xf32> -> vector<2x512xf32>
    %c0_26 = arith.constant 0 : index
    %c0_27 = arith.constant 0 : index
    %28 = vector.load %arg8[%c0_26, %c0_27] : memref<1x512xf32, #tpu.memory_space<vmem>>, vector<1x512xf32>
    %29 = vector.broadcast %28 : vector<1x512xf32> to vector<2x512xf32>
    %30 = arith.addf %27, %29 : vector<2x512xf32>
    %c0_28 = arith.constant 0 : index
    %c0_29 = arith.constant 0 : index
    %31 = vector.load %arg12[%c0_28, %c0_29] : memref<2x512xf32, #tpu.memory_space<vmem>>, vector<2x512xf32>
    tpu.vector_store %arg12[%c0_28, %c0_29], %30 {strides = array<i32>} : memref<2x512xf32, #tpu.memory_space<vmem>>, vector<2x512xf32>,
    return
  }
}

</mosaic_0001>

<bundles_post_ra>
// kernel: tpu_custom_call.1
= control target key start
LH: loop header
LB: loop body
LE: loop exit
PB: predicated region body
PF: predicated region fallthrough
CT: control target
= control target key end

     0   :  { %18 = vsyncpa [#allocation3], 0  ;;  %s13385_s0 = inlined_call_operand.hbm [shape: f32[2,1024], index: 0, kind: input, shape index: {}]   ;;  %s13386_s1 = inlined_call_operand.hbm [shape: bf16[1024,1024], index: 1, kind: input, shape index: {}]   ;;  %s13387_s2 = inlined_call_operand.hbm [shape: f32[1,1024], index: 2, kind: input, shape index: {}]   ;;  %s13388_s3 = inlined_call_operand.hbm [shape: bf16[1024,1024], index: 3, kind: input, shape index: {}]   ;;  %s13389_s4 = inlined_call_operand.hbm [shape: f32[1,1024], index: 4, kind: input, shape index: {}]   ;;  %s13390_s5 = inlined_call_operand.hbm [shape: bf16[1024,128], index: 5, kind: input, shape index: {}]   ;;  %s13391_s6 = inlined_call_operand.hbm [shape: f32[1,128], index: 6, kind: input, shape index: {}]   ;;  %s13392_s7 = inlined_call_operand.hbm [shape: bf16[1024,512], index: 7, kind: input, shape index: {}]   ;;  %s13393_s8 = inlined_call_operand.hbm [shape: f32[1,512], index: 8, kind: input, shape index: {}]   ;;  %s13394_s9 = inlined_call_operand.hbm [shape: f32[2,1024], index: 9, kind: output, shape index: {0}]   ;;  %s13395_s10 = inlined_call_operand.hbm [shape: f32[2,1024], index: 10, kind: output, shape index: {1}]   ;;  %s13396_s11 = inlined_call_operand.hbm [shape: f32[2,128], index: 11, kind: output, shape index: {2}]   ;;  %s13397_s12 = inlined_call_operand.hbm [shape: f32[2,512], index: 12, kind: output, shape index: {3}]  }
   0x1   :  { %19 = vsyncpa [#allocation6], 0 }
   0x2   :  { %20 = vsyncpa [#allocation9], 0 }
   0x3   :  { %21 = vsyncpa [#allocation12], 0 }
   0x4   :  { %22 = vsyncpa [#allocation15], 0 }
   0x5   :  { %23 = vsyncpa [#allocation4], 0 }
   0x6   :  { %24 = vsyncpa [#allocation19], 0 }
   0x7   :  { %25 = vsyncpa [#allocation22], 0  ;;  %s12865_s21 = smov [#allocation5]   ;;  %s12563_s25 = scalar_lea.hbm %s13386_s1, 65536 }
   0x8   :  { %s41_s22 = sshll.u32 %s12865_s21, 4  ;;  %p12564_p0 = scmp.ne.s32.totalorder %s13386_s1, %s12563_s25  ;;  %s42_s22 = int_to_ptr.vmem [resolvable:$true] %s41_s22 }
   0x9   :  { %p12567_p1 = scmp.lt.u32.totalorder %s12563_s25, %s13386_s1 }
   0xb   :  { %p12569_p2 = pnand %p12567_p1, %p12564_p0 }
   0xd   :  { %12572 = shalt.err (!%p12569_p2)
}
   0xe   :  { %s12573_s30 = scalar_lea.vmem %s42_s22, 65536  ;;  %p12578_p4 = scmp.lt.s32.totalorder %s42_s22, %s42_s22 }
   0xf   :  { %p12574_p3 = scmp.ne.s32.totalorder %s42_s22, %s12573_s30  ;;  %p12579_p5 = scmp.lt.s32.totalorder %s12573_s30, %s12573_s30 }
  0x11   :  { %p12580_p6 = por %p12579_p5, %p12578_p4 }
  0x13   :  { %p12581_p7 = pnand %p12580_p6, %p12574_p3 }
  0x15   :  { %12584 = shalt.err (!%p12581_p7)
}
  0x16   :  { %s12866_s13 = smov 512   ;;  %s12867_s14 = smov 32  }
  0x17   :  { %47 = dma.hbm_to_vmem [thread:$0]  %s13386_s1, 65536, %s42_s22, [#allocation6], %s12866_s13, %s12866_s13, %s12867_s14  }
  0x18   :  { %s12868_s17 = smov [#allocation8]   ;;  %s12869_s19 = smov [#allocation11]  }
  0x19   :  { %s63_s18 = sshll.u32 %s12868_s17, 4  ;;  %s85_s20 = sshll.u32 %s12869_s19, 4  ;;  %s64_s18 = int_to_ptr.vmem [resolvable:$true] %s63_s18  ;;  %s86_s20 = int_to_ptr.vmem [resolvable:$true] %s85_s20 }
  0x1a   :  { %s12585_s24 = scalar_lea.hbm %s13388_s3, 65536 }
  0x1b   :  { %p12586_p8 = scmp.ne.s32.totalorder %s13388_s3, %s12585_s24  ;;  %p12589_p9 = scmp.lt.u32.totalorder %s12585_s24, %s13388_s3 }
  0x1d   :  { %p12591_p10 = pnand %p12589_p9, %p12586_p8 }
  0x1f   :  { %12594 = shalt.err (!%p12591_p10)
}
  0x20   :  { %s12595_s1 = scalar_lea.vmem %s64_s18, 65536  ;;  %p12600_p12 = scmp.lt.s32.totalorder %s64_s18, %s64_s18 }
  0x21   :  { %p12596_p11 = scmp.ne.s32.totalorder %s64_s18, %s12595_s1  ;;  %p12601_p13 = scmp.lt.s32.totalorder %s12595_s1, %s12595_s1 }
  0x23   :  { %p12602_p0 = por %p12601_p13, %p12600_p12 }
  0x25   :  { %p12603_p1 = pnand %p12602_p0, %p12596_p11 }
  0x27   :  { %12606 = shalt.err (!%p12603_p1)
}
  0x28   :  { %69 = dma.hbm_to_vmem [thread:$0]  %s13388_s3, 65536, %s64_s18, [#allocation9], %s12866_s13, %s12866_s13, %s12867_s14  }
  0x29   :  { %s12607_s16 = scalar_lea.hbm %s13390_s5, 8192 }
  0x2a   :  { %p12608_p2 = scmp.ne.s32.totalorder %s13390_s5, %s12607_s16  ;;  %p12611_p3 = scmp.lt.u32.totalorder %s12607_s16, %s13390_s5 }
  0x2c   :  { %p12613_p4 = pnand %p12611_p3, %p12608_p2 }
  0x2e   :  { %12616 = shalt.err (!%p12613_p4)
}
  0x2f   :  { %s12617_s24 = scalar_lea.vmem %s86_s20, 8192  ;;  %p12622_p6 = scmp.lt.s32.totalorder %s86_s20, %s86_s20 }
  0x30   :  { %p12618_p5 = scmp.ne.s32.totalorder %s86_s20, %s12617_s24  ;;  %p12623_p7 = scmp.lt.s32.totalorder %s12617_s24, %s12617_s24 }
  0x32   :  { %p12624_p8 = por %p12623_p7, %p12622_p6 }
  0x34   :  { %p12625_p9 = pnand %p12624_p8, %p12618_p5 }
  0x36   :  { %12628 = shalt.err (!%p12625_p9)
}
  0x37   :  { %s12870_s3 = smov 64   ;;  %s12871_s13 = smov 4  }
  0x38   :  { %91 = dma.hbm_to_vmem [thread:$0]  %s13390_s5, 8192, %s86_s20, [#allocation12], %s12870_s3, %s12870_s3, %s12871_s13  }
  0x39   :  { %s12872_s25 = smov [#allocation14]   ;;  %s12629_s1 = scalar_lea.hbm %s13392_s7, 32768 }
  0x3a   :  { %s107_s26 = sshll.u32 %s12872_s25, 4  ;;  %p12630_p10 = scmp.ne.s32.totalorder %s13392_s7, %s12629_s1  ;;  %s108_s26 = int_to_ptr.vmem [resolvable:$true] %s107_s26 }
  0x3b   :  { %p12633_p11 = scmp.lt.u32.totalorder %s12629_s1, %s13392_s7 }
  0x3d   :  { %p12635_p12 = pnand %p12633_p11, %p12630_p10 }
  0x3f   :  { %12638 = shalt.err (!%p12635_p12)
}
  0x40   :  { %s12639_s16 = scalar_lea.vmem %s108_s26, 32768  ;;  %p12644_p0 = scmp.lt.s32.totalorder %s108_s26, %s108_s26 }
  0x41   :  { %p12640_p13 = scmp.ne.s32.totalorder %s108_s26, %s12639_s16  ;;  %p12645_p1 = scmp.lt.s32.totalorder %s12639_s16, %s12639_s16 }
  0x43   :  { %p12646_p2 = por %p12645_p1, %p12644_p0 }
  0x45   :  { %p12647_p3 = pnand %p12646_p2, %p12640_p13 }
  0x47   :  { %12650 = shalt.err (!%p12647_p3)
}
  0x48   :  { %s12873_s5 = smov 256   ;;  %s12874_s20 = smov 16  }
  0x49   :  { %113 = dma.hbm_to_vmem [thread:$0]  %s13392_s7, 32768, %s108_s26, [#allocation15], %s12873_s5, %s12873_s5, %s12874_s20  }
  0x4a   :  { %s12875_s21 = smov [#allocation2]   ;;  %s12876_s24 = smov [#allocation7]  }
  0x4b   :  { %s32_s23 = sshll.u32 %s12875_s21, 4  ;;  %s54_s3 = sshll.u32 %s12876_s24, 4  ;;  %s33_s23 = int_to_ptr.vmem [resolvable:$true] %s32_s23  ;;  %s55_s3 = int_to_ptr.vmem [resolvable:$true] %s54_s3 }
  0x4c   :  { %s12651_s18 = scalar_lea.hbm %s13385_s0, 256 }
  0x4d   :  { %p12652_p4 = scmp.ne.s32.totalorder %s13385_s0, %s12651_s18  ;;  %p12655_p5 = scmp.lt.u32.totalorder %s12651_s18, %s13385_s0 }
  0x4f   :  { %p12657_p6 = pnand %p12655_p5, %p12652_p4 }
  0x51   :  { %12660 = shalt.err (!%p12657_p6)
}
  0x52   :  { %s12661_s7 = scalar_lea.vmem %s33_s23, 256  ;;  %p12666_p8 = scmp.lt.s32.totalorder %s33_s23, %s33_s23 }
  0x53   :  { %p12662_p7 = scmp.ne.s32.totalorder %s33_s23, %s12661_s7  ;;  %p12667_p9 = scmp.lt.s32.totalorder %s12661_s7, %s12661_s7 }
  0x55   :  { %p12668_p10 = por %p12667_p9, %p12666_p8 }
  0x57   :  { %p12669_p11 = pnand %p12668_p10, %p12662_p7 }
  0x59   :  { %12672 = shalt.err (!%p12669_p11)
}
  0x5a   :  { %35 = dma.hbm_to_vmem [thread:$0]  %s13385_s0, 256, %s33_s23, [#allocation3]  }
  0x5b   :  { %s12673_s15 = scalar_lea.hbm %s13387_s2, 128 }
  0x5c   :  { %p12674_p12 = scmp.ne.s32.totalorder %s13387_s2, %s12673_s15  ;;  %p12677_p13 = scmp.lt.u32.totalorder %s12673_s15, %s13387_s2 }
  0x5e   :  { %p12679_p0 = pnand %p12677_p13, %p12674_p12 }
  0x60   :  { %12682 = shalt.err (!%p12679_p0)
}
  0x61   :  { %s12683_s19 = scalar_lea.vmem %s55_s3, 128  ;;  %p12688_p2 = scmp.lt.s32.totalorder %s55_s3, %s55_s3 }
  0x62   :  { %p12684_p1 = scmp.ne.s32.totalorder %s55_s3, %s12683_s19  ;;  %p12689_p3 = scmp.lt.s32.totalorder %s12683_s19, %s12683_s19 }
  0x64   :  { %p12690_p4 = por %p12689_p3, %p12688_p2 }
  0x66   :  { %p12691_p5 = pnand %p12690_p4, %p12684_p1 }
  0x68   :  { %12694 = shalt.err (!%p12691_p5)
}
  0x69   :  { %57 = dma.hbm_to_vmem [thread:$0]  %s13387_s2, 128, %s55_s3, [#allocation6]  }
  0x6a   :  { %s12877_s23 = smov [#allocation10]   ;;  %s12878_s13 = smov [#allocation13]  }
  0x6b   :  { %s76_s24 = sshll.u32 %s12877_s23, 4  ;;  %s98_s14 = sshll.u32 %s12878_s13, 4  ;;  %s77_s24 = int_to_ptr.vmem [resolvable:$true] %s76_s24  ;;  %s99_s14 = int_to_ptr.vmem [resolvable:$true] %s98_s14 }
  0x6c   :  { %s12695_s27 = scalar_lea.hbm %s13389_s4, 128 }
  0x6d   :  { %p12696_p6 = scmp.ne.s32.totalorder %s13389_s4, %s12695_s27  ;;  %p12699_p7 = scmp.lt.u32.totalorder %s12695_s27, %s13389_s4 }
  0x6f   :  { %p12701_p8 = pnand %p12699_p7, %p12696_p6 }
  0x71   :  { %12704 = shalt.err (!%p12701_p8)
}
  0x72   :  { %s12705_s2 = scalar_lea.vmem %s77_s24, 128  ;;  %p12710_p10 = scmp.lt.s32.totalorder %s77_s24, %s77_s24 }
  0x73   :  { %p12706_p9 = scmp.ne.s32.totalorder %s77_s24, %s12705_s2  ;;  %p12711_p11 = scmp.lt.s32.totalorder %s12705_s2, %s12705_s2 }
  0x75   :  { %p12712_p12 = por %p12711_p11, %p12710_p10 }
  0x77   :  { %p12713_p13 = pnand %p12712_p12, %p12706_p9 }
  0x79   :  { %12716 = shalt.err (!%p12713_p13)
}
  0x7a   :  { %79 = dma.hbm_to_vmem [thread:$0]  %s13389_s4, 128, %s77_s24, [#allocation9]  }
  0x7b   :  { %s12717_s15 = scalar_lea.hbm %s13391_s6, 16 }
  0x7c   :  { %p12718_p0 = scmp.ne.s32.totalorder %s13391_s6, %s12717_s15  ;;  %p12721_p1 = scmp.lt.u32.totalorder %s12717_s15, %s13391_s6 }
  0x7e   :  { %p12723_p2 = pnand %p12721_p1, %p12718_p0 }
  0x80   :  { %12726 = shalt.err (!%p12723_p2)
}
  0x81   :  { %s12727_s19 = scalar_lea.vmem %s99_s14, 16  ;;  %s12731_s0 = scalar_lea.vmem %s99_s14, 32 }
  0x82   :  { %p12728_p3 = scmp.ne.s32.totalorder %s99_s14, %s12727_s19  ;;  %p12732_p4 = scmp.lt.s32.totalorder %s99_s14, %s99_s14 }
  0x83   :  { %p12733_p5 = scmp.lt.s32.totalorder %s12731_s0, %s12727_s19 }
  0x85   :  { %p12734_p6 = por %p12733_p5, %p12732_p4 }
  0x87   :  { %p12735_p7 = pnand %p12734_p6, %p12728_p3 }
  0x89   :  { %12738 = shalt.err (!%p12735_p7)
}
  0x8a   :  { %101 = dma.hbm_to_vmem [thread:$0]  %s13391_s6, 16, %s99_s14, [#allocation12]  }
  0x8b   :  { %s12879_s23 = smov [#allocation16]   ;;  %s12739_s25 = scalar_lea.hbm %s13393_s8, 64 }
  0x8c   :  { %s120_s24 = sshll.u32 %s12879_s23, 4  ;;  %p12740_p8 = scmp.ne.s32.totalorder %s13393_s8, %s12739_s25  ;;  %s121_s24 = int_to_ptr.vmem [resolvable:$true] %s120_s24 }
  0x8d   :  { %p12743_p9 = scmp.lt.u32.totalorder %s12739_s25, %s13393_s8 }
  0x8f   :  { %p12745_p10 = pnand %p12743_p9, %p12740_p8 }
  0x91   :  { %12748 = shalt.err (!%p12745_p10)
}
  0x92   :  { %s12749_s26 = scalar_lea.vmem %s121_s24, 64  ;;  %p12754_p12 = scmp.lt.s32.totalorder %s121_s24, %s121_s24 }
  0x93   :  { %p12750_p11 = scmp.ne.s32.totalorder %s121_s24, %s12749_s26  ;;  %p12755_p13 = scmp.lt.s32.totalorder %s12749_s26, %s12749_s26 }
  0x95   :  { %p12756_p0 = por %p12755_p13, %p12754_p12 }
  0x97   :  { %p12757_p1 = pnand %p12756_p0, %p12750_p11 }
  0x99   :  { %12760 = shalt.err (!%p12757_p1)
}
  0x9a   :  { %123 = dma.hbm_to_vmem [thread:$0]  %s13393_s8, 64, %s121_s24, [#allocation15]  }
  0x9b   :  { %12849 = dma.done.wait [#allocation3], 256  }
  0x9c   :  { %12850 = vsyncadd [#allocation3], 4294967040 }
  0x9d   :  { %12851 = dma.done.wait [#allocation6], 65664  }
  0x9e   :  { %12852 = vsyncadd [#allocation6], 4294901632 }
  0x9f   :  { %12853 = dma.done.wait [#allocation9], 65664  }
  0xa0   :  { %12854 = vsyncadd [#allocation9], 4294901632 }
  0xa1   :  { %12855 = dma.done.wait [#allocation12], 8208  }
  0xa2   :  { %12856 = vsyncadd [#allocation12], 4294959088 }
  0xa3   :  { %12857 = dma.done.wait [#allocation15], 32832  }
  0xa4   :  { %12858 = vsyncadd [#allocation15], 4294934464  ;;  %v206_v0 = vld [vmem:[#allocation5] sm:$0xff]  ;;  %v207_v2 = vld [vmem:[#allocation5 + $0x8] sm:$0xff]  ;;  %v12880_v32 = vmov 1983009808   ;;  %v160_v34 = vlaneseq }
  0xa5   :  { %v210_v1 = vld [vmem:[#allocation5 + $0x20] sm:$0xff]  ;;  %v211_v4 = vld [vmem:[#allocation5 + $0x28] sm:$0xff]  ;;  %v158_v33 = vunpack.c.l.s4 %v12880_v32  ;;  %v13063_v59 = vld [vmem:[#allocation2] sm:$0xff]  ;;  %s12881_s8 = smov [#allocation18]   ;;  %s12882_s3 = smov [#allocation17]  }
  0xa6   :  { %v10520_v3 = vcombine.high %v206_v0, %v210_v1  ;;  %v10519_v5 = vcombine.low %v206_v0, %v210_v1  ;;  %v214_v6 = vld [vmem:[#allocation5 + $0x40] sm:$0xff]  ;;  %v10522_v8 = vcombine.high %v207_v2, %v211_v4  ;;  %v10521_v9 = vcombine.low %v207_v2, %v211_v4  ;;  %v215_v11 = vld [vmem:[#allocation5 + $0x48] sm:$0xff]  ;;  %s10475_s2 = sshll.u32 %s12881_s8, 4  ;;  %s10465_s22 = sshll.u32 %s12882_s3, 4  ;;  %s10476_s2 = int_to_ptr.vmem [resolvable:$true] %s10475_s2  ;;  %s10466_s22 = int_to_ptr.vmem [resolvable:$true] %s10465_s22 }
  0xa7   :  { %v218_v7 = vld [vmem:[#allocation5 + $0x60] sm:$0xff]  ;;  %v219_v12 = vld [vmem:[#allocation5 + $0x68] sm:$0xff]  ;;  %v159_v43 = vunpack.c.0.s8 %v158_v33  ;;  %v13058_v44 = vshrl.u32 %v160_v34, 7  ;;  %s12761_s29 = scalar_lea.vmem %s10476_s2, 256  ;;  %p12766_p3 = scmp.lt.s32.totalorder %s10476_s2, %s10476_s2 }
  0xa8   :  { %v10528_v10 = vcombine.high %v214_v6, %v218_v7  ;;  %v222_v13 = vld [vmem:[#allocation5 + $0x80] sm:$0xff]  ;;  %3320 = vmatprep.subr.bf16.mxu0 %v10520_v3  ;;  %v10530_v14 = vcombine.high %v215_v11, %v219_v12  ;;  %v223_v16 = vld [vmem:[#allocation5 + $0x88] sm:$0xff]  ;;  %3484 = vmatprep.subr.bf16.mxu1 %v10522_v8  ;;  %v10527_v18 = vcombine.low %v214_v6, %v218_v7  ;;  %p12762_p2 = scmp.ne.s32.totalorder %s10476_s2, %s12761_s29  ;;  %p12767_p4 = scmp.lt.s32.totalorder %s12761_s29, %s12761_s29 }
  0xa9   :  { %v226_v15 = vld [vmem:[#allocation5 + $0xa0] sm:$0xff]  ;;  %v227_v17 = vld [vmem:[#allocation5 + $0xa8] sm:$0xff]  ;;  %3321 = vmatpush1.bf16.msra.mxu0 %v10519_v5  ;;  %3485 = vmatpush1.bf16.msra.mxu1 %v10521_v9  ;;  %v10529_v19 = vcombine.low %v215_v11, %v219_v12  ;;  %v13061_v53 = vsub.s32 %v159_v43, %v13058_v44 }
  0xaa   :  { %3322 = vmatprep.subr.bf16.mxu0 %v10528_v10  ;;  %v10536_v20 = vcombine.high %v222_v13, %v226_v15  ;;  %3486 = vmatprep.subr.bf16.mxu1 %v10530_v14  ;;  %v10538_v21 = vcombine.high %v223_v16, %v227_v17  ;;  %v230_v22 = vld [vmem:[#allocation5 + $0xc0] sm:$0xff]  ;;  %v231_v24 = vld [vmem:[#allocation5 + $0xc8] sm:$0xff]  ;;  %v10535_v26 = vcombine.low %v222_v13, %v226_v15  ;;  %p12768_p5 = por %p12767_p4, %p12766_p3 }
  0xab   :  { %v234_v23 = vld [vmem:[#allocation5 + $0xe0] sm:$0xff]  ;;  %v235_v25 = vld [vmem:[#allocation5 + $0xe8] sm:$0xff]  ;;  %v10537_v27 = vcombine.low %v223_v16, %v227_v17  ;;  %v13067_v63 = vrot.slane %v13063_v59, %v13061_v53 }
  0xac   :  { %v10544_v28 = vcombine.high %v230_v22, %v234_v23  ;;  %v10546_v29 = vcombine.high %v231_v24, %v235_v25  ;;  %v238_v30 = vld [vmem:[#allocation5 + $0x100] sm:$0xff]  ;;  %v239_v35 = vld [vmem:[#allocation5 + $0x108] sm:$0xff]  ;;  %v10543_v37 = vcombine.low %v230_v22, %v234_v23  ;;  %v10545_v38 = vcombine.low %v231_v24, %v235_v25  ;;  %p12769_p6 = pnand %p12768_p5, %p12762_p2 }
  0xad   :  { %3323 = vmatpush1.bf16.msra.mxu0 %v10527_v18  ;;  %3487 = vmatpush1.bf16.msra.mxu1 %v10529_v19  ;;  %v242_v31 = vld [vmem:[#allocation5 + $0x120] sm:$0xff]  ;;  %v243_v36 = vld [vmem:[#allocation5 + $0x128] sm:$0xff]  ;;  %v171_v3 = vcombine.high %v13067_v63, %v13067_v63 }
  0xae   :  { %3324 = vmatprep.subr.bf16.mxu0 %v10536_v20  ;;  %3488 = vmatprep.subr.bf16.mxu1 %v10538_v21  ;;  %v10552_v39 = vcombine.high %v238_v30, %v242_v31  ;;  %v10554_v40 = vcombine.high %v239_v35, %v243_v36  ;;  %v246_v41 = vld [vmem:[#allocation5 + $0x140] sm:$0xff]  ;;  %v247_v45 = vld [vmem:[#allocation5 + $0x148] sm:$0xff]  ;;  %v10551_v47 = vcombine.low %v238_v30, %v242_v31 }
  0xaf   :  { %v250_v42 = vld [vmem:[#allocation5 + $0x160] sm:$0xff]  ;;  %v251_v46 = vld [vmem:[#allocation5 + $0x168] sm:$0xff]  ;;  %v10553_v48 = vcombine.low %v239_v35, %v243_v36  ;;  %v13071_v9 = vpack.c.bf16 %v171_v3, %v171_v3 }
  0xb0   :  { %v10560_v49 = vcombine.high %v246_v41, %v250_v42  ;;  %v10562_v50 = vcombine.high %v247_v45, %v251_v46  ;;  %v254_v51 = vld [vmem:[#allocation5 + $0x180] sm:$0xff]  ;;  %v255_v54 = vld [vmem:[#allocation5 + $0x188] sm:$0xff]  ;;  %v10559_v56 = vcombine.low %v246_v41, %v250_v42  ;;  %v10561_v57 = vcombine.low %v247_v45, %v251_v46 }
  0xb1   :  { %3325 = vmatpush1.bf16.msra.mxu0 %v10535_v26  ;;  %3489 = vmatpush1.bf16.msra.mxu1 %v10537_v27  ;;  %v258_v52 = vld [vmem:[#allocation5 + $0x1a0] sm:$0xff]  ;;  %v259_v55 = vld [vmem:[#allocation5 + $0x1a8] sm:$0xff] }
  0xb2   :  { %3326 = vmatprep.subr.bf16.mxu0 %v10544_v28  ;;  %3490 = vmatprep.subr.bf16.mxu1 %v10546_v29  ;;  %v10568_v58 = vcombine.high %v254_v51, %v258_v52  ;;  %v10570_v60 = vcombine.high %v255_v54, %v259_v55  ;;  %v262_v61 = vld [vmem:[#allocation5 + $0x1c0] sm:$0xff]  ;;  %v263_v0 = vld [vmem:[#allocation5 + $0x1c8] sm:$0xff]  ;;  %v10567_v2 = vcombine.low %v254_v51, %v258_v52 }
  0xb3   :  { %v266_v62 = vld [vmem:[#allocation5 + $0x1e0] sm:$0xff]  ;;  %v267_v1 = vld [vmem:[#allocation5 + $0x1e8] sm:$0xff]  ;;  %v10569_v4 = vcombine.low %v255_v54, %v259_v55  ;;  %3352 = vmatprep.mubr.bf16.mxu0 %v13071_v9  ;;  %3516 = vmatprep.mubr.bf16.mxu1 %v13071_v9 }
  0xb4   :  { %v10576_v5 = vcombine.high %v262_v61, %v266_v62  ;;  %v10578_v6 = vcombine.high %v263_v0, %v267_v1  ;;  %v270_v7 = vld [vmem:[#allocation5 + $0x200] sm:$0xff]  ;;  %v271_v10 = vld [vmem:[#allocation5 + $0x208] sm:$0xff]  ;;  %v10575_v12 = vcombine.low %v262_v61, %v266_v62  ;;  %v10577_v13 = vcombine.low %v263_v0, %v267_v1 }
  0xb5   :  { %3327 = vmatpush1.bf16.msra.mxu0 %v10543_v37  ;;  %3491 = vmatpush1.bf16.msra.mxu1 %v10545_v38  ;;  %v274_v8 = vld [vmem:[#allocation5 + $0x220] sm:$0xff]  ;;  %v275_v11 = vld [vmem:[#allocation5 + $0x228] sm:$0xff] }
  0xb6   :  { %3328 = vmatprep.subr.bf16.mxu0 %v10552_v39  ;;  %3492 = vmatprep.subr.bf16.mxu1 %v10554_v40  ;;  %v10584_v14 = vcombine.high %v270_v7, %v274_v8  ;;  %v10586_v15 = vcombine.high %v271_v10, %v275_v11  ;;  %v278_v16 = vld [vmem:[#allocation5 + $0x240] sm:$0xff]  ;;  %v279_v18 = vld [vmem:[#allocation5 + $0x248] sm:$0xff]  ;;  %v10583_v20 = vcombine.low %v270_v7, %v274_v8 }
  0xb7   :  { %v282_v17 = vld [vmem:[#allocation5 + $0x260] sm:$0xff]  ;;  %v283_v19 = vld [vmem:[#allocation5 + $0x268] sm:$0xff]  ;;  %v10585_v21 = vcombine.low %v271_v10, %v275_v11 }
  0xb8   :  { %v10592_v22 = vcombine.high %v278_v16, %v282_v17  ;;  %v10594_v23 = vcombine.high %v279_v18, %v283_v19  ;;  %v286_v24 = vld [vmem:[#allocation5 + $0x280] sm:$0xff]  ;;  %v287_v26 = vld [vmem:[#allocation5 + $0x288] sm:$0xff]  ;;  %v10591_v28 = vcombine.low %v278_v16, %v282_v17  ;;  %v10593_v29 = vcombine.low %v279_v18, %v283_v19 }
  0xb9   :  { %3329 = vmatpush1.bf16.msra.mxu0 %v10551_v47  ;;  %3493 = vmatpush1.bf16.msra.mxu1 %v10553_v48  ;;  %v290_v25 = vld [vmem:[#allocation5 + $0x2a0] sm:$0xff]  ;;  %v291_v27 = vld [vmem:[#allocation5 + $0x2a8] sm:$0xff] }
  0xba   :  { %3330 = vmatprep.subr.bf16.mxu0 %v10560_v49  ;;  %3494 = vmatprep.subr.bf16.mxu1 %v10562_v50  ;;  %v10600_v30 = vcombine.high %v286_v24, %v290_v25  ;;  %v10602_v31 = vcombine.high %v287_v26, %v291_v27  ;;  %v294_v32 = vld [vmem:[#allocation5 + $0x2c0] sm:$0xff]  ;;  %v295_v34 = vld [vmem:[#allocation5 + $0x2c8] sm:$0xff]  ;;  %v10599_v36 = vcombine.low %v286_v24, %v290_v25 }
  0xbb   :  { %v298_v33 = vld [vmem:[#allocation5 + $0x2e0] sm:$0xff]  ;;  %v299_v35 = vld [vmem:[#allocation5 + $0x2e8] sm:$0xff]  ;;  %v10601_v37 = vcombine.low %v287_v26, %v291_v27  ;;  %v13084_v25 = vpack.c.bf16 %v13067_v63, %v13067_v63 }
  0xbc   :  { %v10608_v38 = vcombine.high %v294_v32, %v298_v33  ;;  %v10610_v39 = vcombine.high %v295_v34, %v299_v35  ;;  %v302_v40 = vld [vmem:[#allocation5 + $0x300] sm:$0xff]  ;;  %v303_v42 = vld [vmem:[#allocation5 + $0x308] sm:$0xff]  ;;  %v10607_v45 = vcombine.low %v294_v32, %v298_v33  ;;  %v10609_v46 = vcombine.low %v295_v34, %v299_v35 }
  0xbd   :  { %3331 = vmatpush1.bf16.msra.mxu0 %v10559_v56  ;;  %3495 = vmatpush1.bf16.msra.mxu1 %v10561_v57  ;;  %v306_v41 = vld [vmem:[#allocation5 + $0x320] sm:$0xff]  ;;  %v307_v43 = vld [vmem:[#allocation5 + $0x328] sm:$0xff] }
  0xbe   :  { %3332 = vmatprep.subr.bf16.mxu0 %v10568_v58  ;;  %3496 = vmatprep.subr.bf16.mxu1 %v10570_v60  ;;  %v10616_v47 = vcombine.high %v302_v40, %v306_v41  ;;  %v10618_v48 = vcombine.high %v303_v42, %v307_v43  ;;  %v310_v49 = vld [vmem:[#allocation5 + $0x340] sm:$0xff]  ;;  %v311_v51 = vld [vmem:[#allocation5 + $0x348] sm:$0xff]  ;;  %v10615_v54 = vcombine.low %v302_v40, %v306_v41 }
  0xbf   :  { %v314_v50 = vld [vmem:[#allocation5 + $0x360] sm:$0xff]  ;;  %v315_v52 = vld [vmem:[#allocation5 + $0x368] sm:$0xff]  ;;  %v10617_v55 = vcombine.low %v303_v42, %v307_v43 }
  0xc0   :  { %v10624_v56 = vcombine.high %v310_v49, %v314_v50  ;;  %v10626_v57 = vcombine.high %v311_v51, %v315_v52  ;;  %v318_v58 = vld [vmem:[#allocation5 + $0x380] sm:$0xff]  ;;  %v319_v61 = vld [vmem:[#allocation5 + $0x388] sm:$0xff]  ;;  %v10623_v0 = vcombine.low %v310_v49, %v314_v50  ;;  %v10625_v1 = vcombine.low %v311_v51, %v315_v52 }
  0xc1   :  { %3333 = vmatpush1.bf16.msra.mxu0 %v10567_v2  ;;  %3497 = vmatpush1.bf16.msra.mxu1 %v10569_v4  ;;  %v322_v60 = vld [vmem:[#allocation5 + $0x3a0] sm:$0xff]  ;;  %v323_v62 = vld [vmem:[#allocation5 + $0x3a8] sm:$0xff] }
  0xc2   :  { %3334 = vmatprep.subr.bf16.mxu0 %v10576_v5  ;;  %3498 = vmatprep.subr.bf16.mxu1 %v10578_v6  ;;  %v10632_v2 = vcombine.high %v318_v58, %v322_v60  ;;  %v10634_v3 = vcombine.high %v319_v61, %v323_v62  ;;  %v326_v4 = vld [vmem:[#allocation5 + $0x3c0] sm:$0xff]  ;;  %v156_v6 = vcombine.high %v13063_v59, %v13063_v59  ;;  %v327_v7 = vld [vmem:[#allocation5 + $0x3c8] sm:$0xff] }
  0xc3   :  { %v330_v5 = vld [vmem:[#allocation5 + $0x3e0] sm:$0xff]  ;;  %v331_v8 = vld [vmem:[#allocation5 + $0x3e8] sm:$0xff]  ;;  %v10631_v10 = vcombine.low %v318_v58, %v322_v60  ;;  %v10633_v11 = vcombine.low %v319_v61, %v323_v62 }
  0xc4   :  { %v13078_v16 = vrot.slane %v156_v6, %v13061_v53  ;;  %v335_v17 = vld [vmem:[#allocation5 + $0x408] sm:$0xff]  ;;  %v10639_v19 = vcombine.low %v326_v4, %v330_v5  ;;  %v10641_v59 = vcombine.low %v327_v7, %v331_v8  ;;  %v354_v32 = vld [vmem:[#allocation5 + $0x4a0] sm:$0xff] }
  0xc5   :  { %3335 = vmatpush1.bf16.msra.mxu0 %v10575_v12  ;;  %3499 = vmatpush1.bf16.msra.mxu1 %v10577_v13  ;;  %v10640_v12 = vcombine.high %v326_v4, %v330_v5  ;;  %v10642_v13 = vcombine.high %v327_v7, %v331_v8  ;;  %v339_v18 = vld [vmem:[#allocation5 + $0x428] sm:$0xff]  ;;  %v362_v40 = vld [vmem:[#allocation5 + $0x4e0] sm:$0xff] }
  0xc6   :  { %3336 = vmatprep.subr.bf16.mxu0 %v10584_v14  ;;  %3500 = vmatprep.subr.bf16.mxu1 %v10586_v15  ;;  %v334_v14 = vld [vmem:[#allocation5 + $0x400] sm:$0xff]  ;;  %v172_v24 = vcombine.high %v13078_v16, %v13078_v16  ;;  %v343_v26 = vld [vmem:[#allocation5 + $0x448] sm:$0xff] }
  0xc7   :  { %v338_v15 = vld [vmem:[#allocation5 + $0x420] sm:$0xff]  ;;  %v347_v27 = vld [vmem:[#allocation5 + $0x468] sm:$0xff] }
  0xc8   :  { %v351_v33 = vld [vmem:[#allocation5 + $0x488] sm:$0xff]  ;;  %v10658_v34 = vcombine.high %v343_v26, %v347_v27  ;;  %v370_v49 = vld [vmem:[#allocation5 + $0x520] sm:$0xff] }
  0xc9   :  { %3337 = vmatpush1.bf16.msra.mxu0 %v10583_v20  ;;  %3501 = vmatpush1.bf16.msra.mxu1 %v10585_v21  ;;  %v10648_v20 = vcombine.high %v334_v14, %v338_v15  ;;  %v10650_v21 = vcombine.high %v335_v17, %v339_v18  ;;  %v355_v35 = vld [vmem:[#allocation5 + $0x4a8] sm:$0xff]  ;;  %v378_v58 = vld [vmem:[#allocation5 + $0x560] sm:$0xff] }
  0xca   :  { %3338 = vmatprep.subr.bf16.mxu0 %v10592_v22  ;;  %3502 = vmatprep.subr.bf16.mxu1 %v10594_v23  ;;  %v342_v22 = vld [vmem:[#allocation5 + $0x440] sm:$0xff]  ;;  %v359_v41 = vld [vmem:[#allocation5 + $0x4c8] sm:$0xff]  ;;  %v10666_v42 = vcombine.high %v351_v33, %v355_v35 }
  0xcb   :  { %v346_v23 = vld [vmem:[#allocation5 + $0x460] sm:$0xff]  ;;  %v363_v43 = vld [vmem:[#allocation5 + $0x4e8] sm:$0xff] }
  0xcc   :  { %v10655_v63 = vcombine.low %v342_v22, %v346_v23  ;;  %v367_v50 = vld [vmem:[#allocation5 + $0x508] sm:$0xff]  ;;  %v10674_v51 = vcombine.high %v359_v41, %v363_v43  ;;  %v386_v4 = vld [vmem:[#allocation5 + $0x5a0] sm:$0xff] }
  0xcd   :  { %3339 = vmatpush1.bf16.msra.mxu0 %v10591_v28  ;;  %3503 = vmatpush1.bf16.msra.mxu1 %v10593_v29  ;;  %v10647_v28 = vcombine.low %v334_v14, %v338_v15  ;;  %v10649_v29 = vcombine.low %v335_v17, %v339_v18  ;;  %v371_v52 = vld [vmem:[#allocation5 + $0x528] sm:$0xff] }
  0xce   :  { %3340 = vmatprep.subr.bf16.mxu0 %v10600_v30  ;;  %3504 = vmatprep.subr.bf16.mxu1 %v10602_v31  ;;  %v10656_v30 = vcombine.high %v342_v22, %v346_v23  ;;  %v350_v31 = vld [vmem:[#allocation5 + $0x480] sm:$0xff]  ;;  %v375_v60 = vld [vmem:[#allocation5 + $0x548] sm:$0xff]  ;;  %v10682_v61 = vcombine.high %v367_v50, %v371_v52 }
  0xcf   :  { %v379_v62 = vld [vmem:[#allocation5 + $0x568] sm:$0xff] }
  0xd0   :  { %v383_v5 = vld [vmem:[#allocation5 + $0x588] sm:$0xff]  ;;  %v10690_v6 = vcombine.high %v375_v60, %v379_v62 }
  0xd1   :  { %3341 = vmatpush1.bf16.msra.mxu0 %v10599_v36  ;;  %3505 = vmatpush1.bf16.msra.mxu1 %v10601_v37  ;;  %v13086_v36 = vpack.c.bf16 %v172_v24, %v172_v24  ;;  %v10657_v37 = vcombine.low %v343_v26, %v347_v27  ;;  %v387_v7 = vld [vmem:[#allocation5 + $0x5a8] sm:$0xff] }
  0xd2   :  { %3342 = vmatprep.subr.bf16.mxu0 %v10608_v38  ;;  %3506 = vmatprep.subr.bf16.mxu1 %v10610_v39  ;;  %v10664_v38 = vcombine.high %v350_v31, %v354_v32  ;;  %v358_v39 = vld [vmem:[#allocation5 + $0x4c0] sm:$0xff]  ;;  %v391_v14 = vld [vmem:[#allocation5 + $0x5c8] sm:$0xff]  ;;  %v10698_v15 = vcombine.high %v383_v5, %v387_v7 }
  0xd3   :  { %v395_v17 = vld [vmem:[#allocation5 + $0x5e8] sm:$0xff] }
  0xd4   :  { %v399_v22 = vld [vmem:[#allocation5 + $0x608] sm:$0xff]  ;;  %v10706_v23 = vcombine.high %v391_v14, %v395_v17  ;;  %v10705_v27 = vcombine.low %v391_v14, %v395_v17  ;;  %v454_v17 = vld [vmem:[#allocation5 + $0x7c0] sm:$0xff] }
  0xd5   :  { %3343 = vmatpush1.bf16.msra.mxu0 %v10607_v45  ;;  %3507 = vmatpush1.bf16.msra.mxu1 %v10609_v46  ;;  %v10663_v45 = vcombine.low %v350_v31, %v354_v32  ;;  %v10665_v46 = vcombine.low %v351_v33, %v355_v35  ;;  %v403_v24 = vld [vmem:[#allocation5 + $0x628] sm:$0xff] }
  0xd6   :  { %3344 = vmatprep.subr.bf16.mxu0 %v10616_v47  ;;  %3508 = vmatprep.subr.bf16.mxu1 %v10618_v48  ;;  %v10672_v47 = vcombine.high %v358_v39, %v362_v40  ;;  %v366_v48 = vld [vmem:[#allocation5 + $0x500] sm:$0xff]  ;;  %v407_v31 = vld [vmem:[#allocation5 + $0x648] sm:$0xff]  ;;  %v10714_v32 = vcombine.high %v399_v22, %v403_v24  ;;  %v10713_v35 = vcombine.low %v399_v22, %v403_v24 }
  0xd7   :  { %v411_v33 = vld [vmem:[#allocation5 + $0x668] sm:$0xff] }
  0xd8   :  { %v451_v14 = vld [vmem:[#allocation5 + $0x7a8] sm:$0xff] }
  0xd9   :  { %3345 = vmatpush1.bf16.msra.mxu0 %v10615_v54  ;;  %3509 = vmatpush1.bf16.msra.mxu1 %v10617_v55  ;;  %v10671_v54 = vcombine.low %v358_v39, %v362_v40  ;;  %v10673_v55 = vcombine.low %v359_v41, %v363_v43  ;;  %v415_v39 = vld [vmem:[#allocation5 + $0x688] sm:$0xff]  ;;  %v10722_v40 = vcombine.high %v407_v31, %v411_v33 }
  0xda   :  { %3346 = vmatprep.subr.bf16.mxu0 %v10624_v56  ;;  %3510 = vmatprep.subr.bf16.mxu1 %v10626_v57  ;;  %v10680_v56 = vcombine.high %v366_v48, %v370_v49  ;;  %v374_v57 = vld [vmem:[#allocation5 + $0x540] sm:$0xff]  ;;  %v419_v41 = vld [vmem:[#allocation5 + $0x6a8] sm:$0xff]  ;;  %v10721_v43 = vcombine.low %v407_v31, %v411_v33 }
  0xdb   :  { %v10687_v8 = vcombine.low %v374_v57, %v378_v58 }
  0xdd   :  { %3347 = vmatpush1.bf16.msra.mxu0 %v10623_v0  ;;  %3511 = vmatpush1.bf16.msra.mxu1 %v10625_v1  ;;  %v10679_v0 = vcombine.low %v366_v48, %v370_v49  ;;  %v10681_v1 = vcombine.low %v367_v50, %v371_v52  ;;  %v423_v48 = vld [vmem:[#allocation5 + $0x6c8] sm:$0xff]  ;;  %v10730_v49 = vcombine.high %v415_v39, %v419_v41 }
  0xde   :  { %3348 = vmatprep.subr.bf16.mxu0 %v10632_v2  ;;  %3512 = vmatprep.subr.bf16.mxu1 %v10634_v3  ;;  %v10688_v2 = vcombine.high %v374_v57, %v378_v58  ;;  %v382_v3 = vld [vmem:[#allocation5 + $0x580] sm:$0xff]  ;;  %v427_v50 = vld [vmem:[#allocation5 + $0x6e8] sm:$0xff]  ;;  %v10729_v52 = vcombine.low %v415_v39, %v419_v41 }
  0xdf   :  { %v10695_v18 = vcombine.low %v382_v3, %v386_v4  ;;  %v431_v57 = vld [vmem:[#allocation5 + $0x708] sm:$0xff]  ;;  %v10738_v58 = vcombine.high %v423_v48, %v427_v50 }
  0xe0   :  { %v471_v39 = vld [vmem:[#allocation5 + $0x848] sm:$0xff] }
  0xe1   :  { %3349 = vmatpush1.bf16.msra.mxu0 %v10631_v10  ;;  %3513 = vmatpush1.bf16.msra.mxu1 %v10633_v11  ;;  %v10689_v10 = vcombine.low %v375_v60, %v379_v62  ;;  %v10696_v11 = vcombine.high %v382_v3, %v386_v4  ;;  %v435_v60 = vld [vmem:[#allocation5 + $0x728] sm:$0xff]  ;;  %v10737_v62 = vcombine.low %v423_v48, %v427_v50  ;;  %v478_v48 = vld [vmem:[#allocation5 + $0x880] sm:$0xff] }
  0xe2   :  { %3350 = vmatprep.subr.bf16.mxu0 %v10640_v12  ;;  %3514 = vmatprep.subr.bf16.mxu1 %v10642_v13  ;;  %v390_v12 = vld [vmem:[#allocation5 + $0x5c0] sm:$0xff]  ;;  %v439_v3 = vld [vmem:[#allocation5 + $0x748] sm:$0xff]  ;;  %v10746_v4 = vcombine.high %v431_v57, %v435_v60 }
  0xe3   :  { %v394_v13 = vld [vmem:[#allocation5 + $0x5e0] sm:$0xff]  ;;  %v475_v41 = vld [vmem:[#allocation5 + $0x868] sm:$0xff] }
  0xe4   :  { %v10703_v26 = vcombine.low %v390_v12, %v394_v13  ;;  %v479_v50 = vld [vmem:[#allocation5 + $0x888] sm:$0xff] }
  0xe5   :  { %3351 = vmatpush1.bf16.msra.mxu0 %v10639_v19  ;;  %3515 = vmatpush1.bf16.msra.mxu1 %v10641_v59  ;;  %v10697_v19 = vcombine.low %v383_v5, %v387_v7  ;;  %v10704_v59 = vcombine.high %v390_v12, %v394_v13  ;;  %v443_v5 = vld [vmem:[#allocation5 + $0x768] sm:$0xff]  ;;  %v10745_v7 = vcombine.low %v431_v57, %v435_v60  ;;  %v486_v57 = vld [vmem:[#allocation5 + $0x8c0] sm:$0xff] }
  0xe6   :  { %3361 = vmatprep.subr.bf16.mxu0 %v10648_v20  ;;  %3525 = vmatprep.subr.bf16.mxu1 %v10650_v21  ;;  %v398_v20 = vld [vmem:[#allocation5 + $0x600] sm:$0xff]  ;;  %v447_v12 = vld [vmem:[#allocation5 + $0x788] sm:$0xff]  ;;  %v10754_v13 = vcombine.high %v439_v3, %v443_v5 }
  0xe7   :  { %v402_v21 = vld [vmem:[#allocation5 + $0x620] sm:$0xff]  ;;  %v10762_v22 = vcombine.high %v447_v12, %v451_v14  ;;  %v487_v60 = vld [vmem:[#allocation5 + $0x8c8] sm:$0xff] }
  0xe8   :  { %3353 = vmatmul.mubr.bf16.vlgmr.msra.gmra.mrb[0].mxu0 %v13084_v25  ;;  %3517 = vmatmul.mubr.bf16.vlgmr.msra.gmra.mrb[0].mxu1 %v13084_v25 }
  0xe9   :  { %3362 = vmatpush1.bf16.msra.mxu0 %v10647_v28  ;;  %3526 = vmatpush1.bf16.msra.mxu1 %v10649_v29  ;;  %v10712_v28 = vcombine.high %v398_v20, %v402_v21  ;;  %v406_v29 = vld [vmem:[#allocation5 + $0x640] sm:$0xff] }
  0xea   :  { %3363 = vmatprep.subr.bf16.mxu0 %v10656_v30  ;;  %3527 = vmatprep.subr.bf16.mxu1 %v10658_v34  ;;  %v410_v30 = vld [vmem:[#allocation5 + $0x660] sm:$0xff]  ;;  %v10711_v34 = vcombine.low %v398_v20, %v402_v21  ;;  %v455_v20 = vld [vmem:[#allocation5 + $0x7c8] sm:$0xff] }
  0xeb   :  { %3393 = vmatprep.mubr.bf16.mxu0 %v13086_v36  ;;  %3557 = vmatprep.mubr.bf16.mxu1 %v13086_v36  ;;  %v459_v21 = vld [vmem:[#allocation5 + $0x7e8] sm:$0xff] }
  0xec   :  { %v10770_v31 = vcombine.high %v455_v20, %v459_v21 }
  0xed   :  { %3364 = vmatpush1.bf16.msra.mxu0 %v10655_v63  ;;  %3528 = vmatpush1.bf16.msra.mxu1 %v10657_v37  ;;  %v10720_v63 = vcombine.high %v406_v29, %v410_v30  ;;  %v414_v37 = vld [vmem:[#allocation5 + $0x680] sm:$0xff] }
  0xee   :  { %3365 = vmatprep.subr.bf16.mxu0 %v10664_v38  ;;  %3529 = vmatprep.subr.bf16.mxu1 %v10666_v42  ;;  %v418_v38 = vld [vmem:[#allocation5 + $0x6a0] sm:$0xff]  ;;  %v10719_v42 = vcombine.low %v406_v29, %v410_v30  ;;  %v463_v30 = vld [vmem:[#allocation5 + $0x808] sm:$0xff] }
  0xef   :  { %v466_v29 = vld [vmem:[#allocation5 + $0x820] sm:$0xff] }
  0xf1   :  { %3366 = vmatpush1.bf16.msra.mxu0 %v10663_v45  ;;  %3530 = vmatpush1.bf16.msra.mxu1 %v10665_v46  ;;  %v10728_v45 = vcombine.high %v414_v37, %v418_v38  ;;  %v422_v46 = vld [vmem:[#allocation5 + $0x6c0] sm:$0xff] }
  0xf2   :  { %3367 = vmatprep.subr.bf16.mxu0 %v10672_v47  ;;  %3531 = vmatprep.subr.bf16.mxu1 %v10674_v51  ;;  %v426_v47 = vld [vmem:[#allocation5 + $0x6e0] sm:$0xff]  ;;  %v10727_v51 = vcombine.low %v414_v37, %v418_v38 }
  0xf3   :  { %v470_v37 = vld [vmem:[#allocation5 + $0x840] sm:$0xff] }
  0xf4   :  { %v474_v38 = vld [vmem:[#allocation5 + $0x860] sm:$0xff] }
  0xf5   :  { %3368 = vmatpush1.bf16.msra.mxu0 %v10671_v54  ;;  %3532 = vmatpush1.bf16.msra.mxu1 %v10673_v55  ;;  %v10736_v54 = vcombine.high %v422_v46, %v426_v47  ;;  %v430_v55 = vld [vmem:[#allocation5 + $0x700] sm:$0xff] }
  0xf6   :  { %3369 = vmatprep.subr.bf16.mxu0 %v10680_v56  ;;  %3533 = vmatprep.subr.bf16.mxu1 %v10682_v61  ;;  %v434_v56 = vld [vmem:[#allocation5 + $0x720] sm:$0xff]  ;;  %v10735_v61 = vcombine.low %v422_v46, %v426_v47  ;;  %v10784_v47 = vcombine.high %v470_v37, %v474_v38 }
  0xf9   :  { %3370 = vmatpush1.bf16.msra.mxu0 %v10679_v0  ;;  %3534 = vmatpush1.bf16.msra.mxu1 %v10681_v1  ;;  %v10744_v0 = vcombine.high %v430_v55, %v434_v56  ;;  %v438_v1 = vld [vmem:[#allocation5 + $0x740] sm:$0xff] }
  0xfa   :  { %3371 = vmatprep.subr.bf16.mxu0 %v10688_v2  ;;  %3535 = vmatprep.subr.bf16.mxu1 %v10690_v6  ;;  %v442_v2 = vld [vmem:[#allocation5 + $0x760] sm:$0xff]  ;;  %v10743_v6 = vcombine.low %v430_v55, %v434_v56  ;;  %v10785_v55 = vcombine.low %v471_v39, %v475_v41 }
  0xfd   :  { %3372 = vmatpush1.bf16.msra.mxu0 %v10687_v8  ;;  %3536 = vmatpush1.bf16.msra.mxu1 %v10689_v10  ;;  %v10752_v8 = vcombine.high %v438_v1, %v442_v2  ;;  %v446_v10 = vld [vmem:[#allocation5 + $0x780] sm:$0xff] }
  0xfe   :  { %3373 = vmatprep.subr.bf16.mxu0 %v10696_v11  ;;  %3537 = vmatprep.subr.bf16.mxu1 %v10698_v15  ;;  %v450_v11 = vld [vmem:[#allocation5 + $0x7a0] sm:$0xff]  ;;  %v10751_v15 = vcombine.low %v438_v1, %v442_v2 }
  0xff   :  { %v10759_v24 = vcombine.low %v446_v10, %v450_v11 }
 0x101   :  { %3374 = vmatpush1.bf16.msra.mxu0 %v10695_v18  ;;  %3538 = vmatpush1.bf16.msra.mxu1 %v10697_v19  ;;  %v10753_v18 = vcombine.low %v439_v3, %v443_v5  ;;  %v10760_v19 = vcombine.high %v446_v10, %v450_v11  ;;  %v494_v3 = vld [vmem:[#allocation5 + $0x900] sm:$0xff]  ;;  %v495_v5 = vld [vmem:[#allocation5 + $0x908] sm:$0xff] }
 0x102   :  { %3375 = vmatprep.subr.bf16.mxu0 %v10704_v59  ;;  %3539 = vmatprep.subr.bf16.mxu1 %v10706_v23  ;;  %v458_v59 = vld [vmem:[#allocation5 + $0x7e0] sm:$0xff]  ;;  %v13092_v23 = vld [vmem:[#allocation2 + $0x8] sm:$0xff] }
 0x103   :  { %v13096_v33 = vrot.slane %v13092_v23, %v13061_v53 }
 0x105   :  { %3376 = vmatpush1.bf16.msra.mxu0 %v10703_v26  ;;  %3540 = vmatpush1.bf16.msra.mxu1 %v10705_v27  ;;  %v10761_v26 = vcombine.low %v447_v12, %v451_v14  ;;  %v10768_v27 = vcombine.high %v454_v17, %v458_v59  ;;  %v502_v12 = vld [vmem:[#allocation5 + $0x940] sm:$0xff]  ;;  %v503_v14 = vld [vmem:[#allocation5 + $0x948] sm:$0xff] }
 0x106   :  { %3377 = vmatprep.subr.bf16.mxu0 %v10712_v28  ;;  %3541 = vmatprep.subr.bf16.mxu1 %v10714_v32  ;;  %v462_v28 = vld [vmem:[#allocation5 + $0x800] sm:$0xff]  ;;  %v467_v32 = vld [vmem:[#allocation5 + $0x828] sm:$0xff] }
 0x107   :  { %v10777_v46 = vcombine.low %v463_v30, %v467_v32 }
 0x109   :  { %3378 = vmatpush1.bf16.msra.mxu0 %v10711_v34  ;;  %3542 = vmatpush1.bf16.msra.mxu1 %v10713_v35  ;;  %v10767_v34 = vcombine.low %v454_v17, %v458_v59  ;;  %v10769_v35 = vcombine.low %v455_v20, %v459_v21  ;;  %v507_v17 = vld [vmem:[#allocation5 + $0x968] sm:$0xff]  ;;  %v510_v20 = vld [vmem:[#allocation5 + $0x980] sm:$0xff] }
 0x10a   :  { %3379 = vmatprep.subr.bf16.mxu0 %v10720_v63  ;;  %3543 = vmatprep.subr.bf16.mxu1 %v10722_v40  ;;  %v10776_v63 = vcombine.high %v462_v28, %v466_v29  ;;  %v10778_v40 = vcombine.high %v463_v30, %v467_v32  ;;  %v514_v21 = vld [vmem:[#allocation5 + $0x9a0] sm:$0xff]  ;;  %v519_v32 = vld [vmem:[#allocation5 + $0x9c8] sm:$0xff] }
 0x10b   :  { %v518_v30 = vld [vmem:[#allocation5 + $0x9c0] sm:$0xff] }
 0x10d   :  { %3380 = vmatpush1.bf16.msra.mxu0 %v10719_v42  ;;  %3544 = vmatpush1.bf16.msra.mxu1 %v10721_v43  ;;  %v188_v42 = vcombine.high %v13096_v33, %v13096_v33  ;;  %v13102_v43 = vpack.c.bf16 %v13078_v16, %v13078_v16  ;;  %v10783_v16 = vcombine.low %v470_v37, %v474_v38 }
 0x10e   :  { %3381 = vmatprep.subr.bf16.mxu0 %v10728_v45  ;;  %3545 = vmatprep.subr.bf16.mxu1 %v10730_v49  ;;  %v10775_v45 = vcombine.low %v462_v28, %v466_v29  ;;  %v482_v49 = vld [vmem:[#allocation5 + $0x8a0] sm:$0xff]  ;;  %v10817_v28 = vcombine.low %v503_v14, %v507_v17  ;;  %v10824_v29 = vcombine.high %v510_v20, %v514_v21 }
 0x10f   :  { %v10792_v56 = vcombine.high %v478_v48, %v482_v49 }
 0x111   :  { %3382 = vmatpush1.bf16.msra.mxu0 %v10727_v51  ;;  %3546 = vmatpush1.bf16.msra.mxu1 %v10729_v52  ;;  %v10786_v51 = vcombine.high %v471_v39, %v475_v41  ;;  %v483_v52 = vld [vmem:[#allocation5 + $0x8a8] sm:$0xff]  ;;  %v526_v39 = vld [vmem:[#allocation5 + $0xa00] sm:$0xff] }
 0x112   :  { %3383 = vmatprep.subr.bf16.mxu0 %v10736_v54  ;;  %3547 = vmatprep.subr.bf16.mxu1 %v10738_v58  ;;  %v13104_v54 = vpack.c.bf16 %v188_v42, %v188_v42  ;;  %v490_v58 = vld [vmem:[#allocation5 + $0x8e0] sm:$0xff]  ;;  %v10793_v1 = vcombine.low %v479_v50, %v483_v52  ;;  %v527_v41 = vld [vmem:[#allocation5 + $0xa08] sm:$0xff] }
 0x113   :  { %v10800_v2 = vcombine.high %v486_v57, %v490_v58 }
 0x115   :  { %3384 = vmatpush1.bf16.msra.mxu0 %v10735_v61  ;;  %3548 = vmatpush1.bf16.msra.mxu1 %v10737_v62  ;;  %v10794_v61 = vcombine.high %v479_v50, %v483_v52  ;;  %v491_v62 = vld [vmem:[#allocation5 + $0x8e8] sm:$0xff]  ;;  %v538_v50 = vld [vmem:[#allocation5 + $0xa60] sm:$0xff] }
 0x116   :  { %3385 = vmatprep.subr.bf16.mxu0 %v10744_v0  ;;  %3549 = vmatprep.subr.bf16.mxu1 %v10746_v4  ;;  %v10791_v0 = vcombine.low %v478_v48, %v482_v49  ;;  %v498_v4 = vld [vmem:[#allocation5 + $0x920] sm:$0xff]  ;;  %v10801_v10 = vcombine.low %v487_v60, %v491_v62 }
 0x117   :  { %v10808_v11 = vcombine.high %v494_v3, %v498_v4  ;;  %v534_v49 = vld [vmem:[#allocation5 + $0xa40] sm:$0xff] }
 0x119   :  { %3386 = vmatpush1.bf16.msra.mxu0 %v10743_v6  ;;  %3550 = vmatpush1.bf16.msra.mxu1 %v10745_v7  ;;  %v10802_v6 = vcombine.high %v487_v60, %v491_v62  ;;  %v499_v7 = vld [vmem:[#allocation5 + $0x928] sm:$0xff]  ;;  %v546_v60 = vld [vmem:[#allocation5 + $0xaa0] sm:$0xff] }
 0x11a   :  { %3387 = vmatprep.subr.bf16.mxu0 %v10752_v8  ;;  %3551 = vmatprep.subr.bf16.mxu1 %v10754_v13  ;;  %v10799_v8 = vcombine.low %v486_v57, %v490_v58  ;;  %v506_v13 = vld [vmem:[#allocation5 + $0x960] sm:$0xff]  ;;  %v10848_v57 = vcombine.high %v534_v49, %v538_v50 }
 0x11b   :  { %v10816_v59 = vcombine.high %v502_v12, %v506_v13  ;;  %v542_v58 = vld [vmem:[#allocation5 + $0xa80] sm:$0xff] }
 0x11d   :  { %3388 = vmatpush1.bf16.msra.mxu0 %v10751_v15  ;;  %3552 = vmatpush1.bf16.msra.mxu1 %v10753_v18  ;;  %v10810_v15 = vcombine.high %v495_v5, %v499_v7  ;;  %v10807_v18 = vcombine.low %v494_v3, %v498_v4  ;;  %v10856_v3 = vcombine.high %v542_v58, %v546_v60  ;;  %v550_v4 = vld [vmem:[#allocation5 + $0xac0] sm:$0xff] }
 0x11e   :  { %3389 = vmatprep.subr.bf16.mxu0 %v10760_v19  ;;  %3553 = vmatprep.subr.bf16.mxu1 %v10762_v22  ;;  %v10809_v19 = vcombine.low %v495_v5, %v499_v7  ;;  %v511_v22 = vld [vmem:[#allocation5 + $0x988] sm:$0xff]  ;;  %v554_v5 = vld [vmem:[#allocation5 + $0xae0] sm:$0xff] }
 0x121   :  { %3390 = vmatpush1.bf16.msra.mxu0 %v10759_v24  ;;  %3554 = vmatpush1.bf16.msra.mxu1 %v10761_v26  ;;  %v10818_v24 = vcombine.high %v503_v14, %v507_v17  ;;  %v515_v26 = vld [vmem:[#allocation5 + $0x9a8] sm:$0xff]  ;;  %v562_v14 = vld [vmem:[#allocation5 + $0xb20] sm:$0xff] }
 0x122   :  { %3391 = vmatprep.subr.bf16.mxu0 %v10768_v27  ;;  %3555 = vmatprep.subr.bf16.mxu1 %v10770_v31  ;;  %v10815_v27 = vcombine.low %v502_v12, %v506_v13  ;;  %v522_v31 = vld [vmem:[#allocation5 + $0x9e0] sm:$0xff]  ;;  %v10825_v37 = vcombine.low %v511_v22, %v515_v26  ;;  %v10864_v12 = vcombine.high %v550_v4, %v554_v5 }
 0x123   :  { %v10832_v38 = vcombine.high %v518_v30, %v522_v31  ;;  %v558_v13 = vld [vmem:[#allocation5 + $0xb00] sm:$0xff] }
 0x125   :  { %3392 = vmatpush1.bf16.msra.mxu0 %v10767_v34  ;;  %3556 = vmatpush1.bf16.msra.mxu1 %v10769_v35  ;;  %v10826_v34 = vcombine.high %v511_v22, %v515_v26  ;;  %v523_v35 = vld [vmem:[#allocation5 + $0x9e8] sm:$0xff]  ;;  %v570_v22 = vld [vmem:[#allocation5 + $0xb60] sm:$0xff] }
 0x126   :  { %3402 = vmatprep.subr.bf16.mxu0 %v10776_v63  ;;  %3566 = vmatprep.subr.bf16.mxu1 %v10778_v40  ;;  %v10823_v63 = vcombine.low %v510_v20, %v514_v21  ;;  %v530_v40 = vld [vmem:[#allocation5 + $0xa20] sm:$0xff]  ;;  %v10834_v42 = vcombine.high %v519_v32, %v523_v35  ;;  %v10872_v20 = vcombine.high %v558_v13, %v562_v14 }
 0x127   :  { %v10840_v48 = vcombine.high %v526_v39, %v530_v40  ;;  %v566_v21 = vld [vmem:[#allocation5 + $0xb40] sm:$0xff] }
 0x128   :  { %3394 = vmatmul.mubr.bf16.vlgmr.msra.gmra.mrb[0].mxu0 %v13102_v43  ;;  %3558 = vmatmul.mubr.bf16.vlgmr.msra.gmra.mrb[0].mxu1 %v13102_v43 }
 0x129   :  { %3403 = vmatpush1.bf16.msra.mxu0 %v10775_v45  ;;  %3567 = vmatpush1.bf16.msra.mxu1 %v10777_v46  ;;  %v531_v45 = vld [vmem:[#allocation5 + $0xa28] sm:$0xff]  ;;  %v10831_v46 = vcombine.low %v518_v30, %v522_v31  ;;  %v10880_v30 = vcombine.high %v566_v21, %v570_v22  ;;  %v574_v31 = vld [vmem:[#allocation5 + $0xb80] sm:$0xff] }
 0x12a   :  { %3404 = vmatprep.subr.bf16.mxu0 %v10784_v47  ;;  %3568 = vmatprep.subr.bf16.mxu1 %v10786_v51  ;;  %v10833_v47 = vcombine.low %v519_v32, %v523_v35  ;;  %v535_v51 = vld [vmem:[#allocation5 + $0xa48] sm:$0xff]  ;;  %v10842_v52 = vcombine.high %v527_v41, %v531_v45  ;;  %v578_v32 = vld [vmem:[#allocation5 + $0xba0] sm:$0xff] }
 0x12b   :  { %3434 = vmatprep.mubr.bf16.mxu0 %v13104_v54  ;;  %3598 = vmatprep.mubr.bf16.mxu1 %v13104_v54 }
 0x12d   :  { %3405 = vmatpush1.bf16.msra.mxu0 %v10783_v16  ;;  %3569 = vmatpush1.bf16.msra.mxu1 %v10785_v55  ;;  %v539_v16 = vld [vmem:[#allocation5 + $0xa68] sm:$0xff]  ;;  %v10839_v55 = vcombine.low %v526_v39, %v530_v40  ;;  %v10888_v39 = vcombine.high %v574_v31, %v578_v32  ;;  %v582_v40 = vld [vmem:[#allocation5 + $0xbc0] sm:$0xff] }
 0x12e   :  { %3406 = vmatprep.subr.bf16.mxu0 %v10792_v56  ;;  %3570 = vmatprep.subr.bf16.mxu1 %v10794_v61  ;;  %v10841_v56 = vcombine.low %v527_v41, %v531_v45  ;;  %v543_v61 = vld [vmem:[#allocation5 + $0xa88] sm:$0xff]  ;;  %v10850_v62 = vcombine.high %v535_v51, %v539_v16  ;;  %v586_v41 = vld [vmem:[#allocation5 + $0xbe0] sm:$0xff] }
 0x131   :  { %3407 = vmatpush1.bf16.msra.mxu0 %v10791_v0  ;;  %3571 = vmatpush1.bf16.msra.mxu1 %v10793_v1  ;;  %v547_v0 = vld [vmem:[#allocation5 + $0xaa8] sm:$0xff]  ;;  %v10847_v1 = vcombine.low %v534_v49, %v538_v50  ;;  %v10896_v50 = vcombine.high %v582_v40, %v586_v41 }
 0x132   :  { %3408 = vmatprep.subr.bf16.mxu0 %v10800_v2  ;;  %3572 = vmatprep.subr.bf16.mxu1 %v10802_v6  ;;  %v10849_v2 = vcombine.low %v535_v51, %v539_v16  ;;  %v551_v6 = vld [vmem:[#allocation5 + $0xac8] sm:$0xff]  ;;  %v10858_v7 = vcombine.high %v543_v61, %v547_v0  ;;  %v590_v51 = vld [vmem:[#allocation5 + $0xc00] sm:$0xff] }
 0x133   :  { %v591_v16 = vld [vmem:[#allocation5 + $0xc08] sm:$0xff] }
 0x135   :  { %3409 = vmatpush1.bf16.msra.mxu0 %v10799_v8  ;;  %3573 = vmatpush1.bf16.msra.mxu1 %v10801_v10  ;;  %v555_v8 = vld [vmem:[#allocation5 + $0xae8] sm:$0xff]  ;;  %v10855_v10 = vcombine.low %v542_v58, %v546_v60  ;;  %v10895_v58 = vcombine.low %v582_v40, %v586_v41 }
 0x136   :  { %3410 = vmatprep.subr.bf16.mxu0 %v10808_v11  ;;  %3574 = vmatprep.subr.bf16.mxu1 %v10810_v15  ;;  %v10857_v11 = vcombine.low %v543_v61, %v547_v0  ;;  %v559_v15 = vld [vmem:[#allocation5 + $0xb08] sm:$0xff]  ;;  %v10866_v17 = vcombine.high %v551_v6, %v555_v8  ;;  %v598_v61 = vld [vmem:[#allocation5 + $0xc40] sm:$0xff] }
 0x137   :  { %v599_v0 = vld [vmem:[#allocation5 + $0xc48] sm:$0xff] }
 0x138   :  { %v635_v40 = vld [vmem:[#allocation5 + $0xd68] sm:$0xff] }
 0x139   :  { %3411 = vmatpush1.bf16.msra.mxu0 %v10807_v18  ;;  %3575 = vmatpush1.bf16.msra.mxu1 %v10809_v19  ;;  %v563_v18 = vld [vmem:[#allocation5 + $0xb28] sm:$0xff]  ;;  %v10863_v19 = vcombine.low %v550_v4, %v554_v5  ;;  %v13119_v4 = vpack.c.bf16 %v13096_v33, %v13096_v33 }
 0x13a   :  { %3412 = vmatprep.subr.bf16.mxu0 %v10816_v59  ;;  %3576 = vmatprep.subr.bf16.mxu1 %v10818_v24  ;;  %v10865_v59 = vcombine.low %v551_v6, %v555_v8  ;;  %v567_v24 = vld [vmem:[#allocation5 + $0xb48] sm:$0xff]  ;;  %v10874_v26 = vcombine.high %v559_v15, %v563_v18  ;;  %v606_v8 = vld [vmem:[#allocation5 + $0xc80] sm:$0xff] }
 0x13d   :  { %3413 = vmatpush1.bf16.msra.mxu0 %v10815_v27  ;;  %3577 = vmatpush1.bf16.msra.mxu1 %v10817_v28  ;;  %v571_v27 = vld [vmem:[#allocation5 + $0xb68] sm:$0xff]  ;;  %v10871_v28 = vcombine.low %v558_v13, %v562_v14 }
 0x13e   :  { %3414 = vmatprep.subr.bf16.mxu0 %v10824_v29  ;;  %3578 = vmatprep.subr.bf16.mxu1 %v10826_v34  ;;  %v10873_v29 = vcombine.low %v559_v15, %v563_v18  ;;  %v575_v34 = vld [vmem:[#allocation5 + $0xb88] sm:$0xff]  ;;  %v10882_v35 = vcombine.high %v567_v24, %v571_v27  ;;  %v614_v18 = vld [vmem:[#allocation5 + $0xcc0] sm:$0xff] }
 0x13f   :  { %v611_v13 = vld [vmem:[#allocation5 + $0xca8] sm:$0xff] }
 0x141   :  { %3415 = vmatpush1.bf16.msra.mxu0 %v10823_v63  ;;  %3579 = vmatpush1.bf16.msra.mxu1 %v10825_v37  ;;  %v579_v63 = vld [vmem:[#allocation5 + $0xba8] sm:$0xff]  ;;  %v10879_v37 = vcombine.low %v566_v21, %v570_v22 }
 0x142   :  { %3416 = vmatprep.subr.bf16.mxu0 %v10832_v38  ;;  %3580 = vmatprep.subr.bf16.mxu1 %v10834_v42  ;;  %v10881_v38 = vcombine.low %v567_v24, %v571_v27  ;;  %v583_v42 = vld [vmem:[#allocation5 + $0xbc8] sm:$0xff]  ;;  %v10890_v45 = vcombine.high %v575_v34, %v579_v63  ;;  %v10889_v49 = vcombine.low %v575_v34, %v579_v63  ;;  %v622_v27 = vld [vmem:[#allocation5 + $0xd00] sm:$0xff] }
 0x143   :  { %v619_v21 = vld [vmem:[#allocation5 + $0xce8] sm:$0xff]  ;;  %v630_v63 = vld [vmem:[#allocation5 + $0xd40] sm:$0xff] }
 0x145   :  { %3417 = vmatpush1.bf16.msra.mxu0 %v10831_v46  ;;  %3581 = vmatpush1.bf16.msra.mxu1 %v10833_v47  ;;  %v587_v46 = vld [vmem:[#allocation5 + $0xbe8] sm:$0xff]  ;;  %v173_v47 = vcombine.high %v13092_v23, %v13092_v23 }
 0x146   :  { %3418 = vmatprep.subr.bf16.mxu0 %v10840_v48  ;;  %3582 = vmatprep.subr.bf16.mxu1 %v10842_v52  ;;  %v10887_v48 = vcombine.low %v574_v31, %v578_v32  ;;  %v594_v52 = vld [vmem:[#allocation5 + $0xc20] sm:$0xff]  ;;  %v10897_v23 = vcombine.low %v583_v42, %v587_v46  ;;  %v627_v31 = vld [vmem:[#allocation5 + $0xd28] sm:$0xff] }
 0x147   :  { %v10904_v60 = vcombine.high %v590_v51, %v594_v52  ;;  %v10903_v5 = vcombine.low %v590_v51, %v594_v52 }
 0x149   :  { %3419 = vmatpush1.bf16.msra.mxu0 %v10839_v55  ;;  %3583 = vmatpush1.bf16.msra.mxu1 %v10841_v56  ;;  %v10898_v55 = vcombine.high %v583_v42, %v587_v46  ;;  %v595_v56 = vld [vmem:[#allocation5 + $0xc28] sm:$0xff]  ;;  %v638_v46 = vld [vmem:[#allocation5 + $0xd80] sm:$0xff] }
 0x14a   :  { %3420 = vmatprep.subr.bf16.mxu0 %v10848_v57  ;;  %3584 = vmatprep.subr.bf16.mxu1 %v10850_v62  ;;  %v13113_v57 = vrot.slane %v173_v47, %v13061_v53  ;;  %v602_v62 = vld [vmem:[#allocation5 + $0xc60] sm:$0xff]  ;;  %v10905_v6 = vcombine.low %v591_v16, %v595_v56 }
 0x14b   :  { %v10911_v33 = vcombine.low %v598_v61, %v602_v62  ;;  %v642_v47 = vld [vmem:[#allocation5 + $0xda0] sm:$0xff] }
 0x14d   :  { %3421 = vmatpush1.bf16.msra.mxu0 %v10847_v1  ;;  %3585 = vmatpush1.bf16.msra.mxu1 %v10849_v2  ;;  %v10906_v1 = vcombine.high %v591_v16, %v595_v56  ;;  %v603_v2 = vld [vmem:[#allocation5 + $0xc68] sm:$0xff]  ;;  %v10952_v16 = vcombine.high %v638_v46, %v642_v47  ;;  %v650_v56 = vld [vmem:[#allocation5 + $0xde0] sm:$0xff] }
 0x14e   :  { %3422 = vmatprep.subr.bf16.mxu0 %v10856_v3  ;;  %3586 = vmatprep.subr.bf16.mxu1 %v10858_v7  ;;  %v189_v3 = vcombine.high %v13113_v57, %v13113_v57  ;;  %v10912_v7 = vcombine.high %v598_v61, %v602_v62  ;;  %v10913_v15 = vcombine.low %v599_v0, %v603_v2 }
 0x14f   :  { %v10951_v61 = vcombine.low %v638_v46, %v642_v47 }
 0x150   :  { %v13121_v14 = vpack.c.bf16 %v189_v3, %v189_v3  ;;  %v655_v3 = vld [vmem:[#allocation5 + $0xe08] sm:$0xff] }
 0x151   :  { %3423 = vmatpush1.bf16.msra.mxu0 %v10855_v10  ;;  %3587 = vmatpush1.bf16.msra.mxu1 %v10857_v11  ;;  %v610_v10 = vld [vmem:[#allocation5 + $0xca0] sm:$0xff]  ;;  %v607_v11 = vld [vmem:[#allocation5 + $0xc88] sm:$0xff] }
 0x152   :  { %3424 = vmatprep.subr.bf16.mxu0 %v10864_v12  ;;  %3588 = vmatprep.subr.bf16.mxu1 %v10866_v17  ;;  %v10914_v12 = vcombine.high %v599_v0, %v603_v2  ;;  %v10920_v17 = vcombine.high %v606_v8, %v610_v10  ;;  %v10919_v22 = vcombine.low %v606_v8, %v610_v10  ;;  %v658_v2 = vld [vmem:[#allocation5 + $0xe20] sm:$0xff] }
 0x153   :  { %v10921_v24 = vcombine.low %v607_v11, %v611_v13 }
 0x155   :  { %3425 = vmatpush1.bf16.msra.mxu0 %v10863_v19  ;;  %3589 = vmatpush1.bf16.msra.mxu1 %v10865_v59  ;;  %v618_v19 = vld [vmem:[#allocation5 + $0xce0] sm:$0xff]  ;;  %v615_v59 = vld [vmem:[#allocation5 + $0xcc8] sm:$0xff] }
 0x156   :  { %3426 = vmatprep.subr.bf16.mxu0 %v10872_v20  ;;  %3590 = vmatprep.subr.bf16.mxu1 %v10874_v26  ;;  %v10922_v20 = vcombine.high %v607_v11, %v611_v13  ;;  %v10928_v26 = vcombine.high %v614_v18, %v618_v19  ;;  %v10927_v32 = vcombine.low %v614_v18, %v618_v19  ;;  %v662_v11 = vld [vmem:[#allocation5 + $0xe40] sm:$0xff]  ;;  %v663_v13 = vld [vmem:[#allocation5 + $0xe48] sm:$0xff] }
 0x157   :  { %v10929_v34 = vcombine.low %v615_v59, %v619_v21 }
 0x159   :  { %3427 = vmatpush1.bf16.msra.mxu0 %v10871_v28  ;;  %3591 = vmatpush1.bf16.msra.mxu1 %v10873_v29  ;;  %v626_v28 = vld [vmem:[#allocation5 + $0xd20] sm:$0xff]  ;;  %v623_v29 = vld [vmem:[#allocation5 + $0xd08] sm:$0xff] }
 0x15a   :  { %3428 = vmatprep.subr.bf16.mxu0 %v10880_v30  ;;  %3592 = vmatprep.subr.bf16.mxu1 %v10882_v35  ;;  %v10930_v30 = vcombine.high %v615_v59, %v619_v21  ;;  %v10936_v35 = vcombine.high %v622_v27, %v626_v28  ;;  %v10935_v41 = vcombine.low %v622_v27, %v626_v28  ;;  %v670_v59 = vld [vmem:[#allocation5 + $0xe80] sm:$0xff]  ;;  %v671_v21 = vld [vmem:[#allocation5 + $0xe88] sm:$0xff] }
 0x15b   :  { %v10937_v42 = vcombine.low %v623_v29, %v627_v31 }
 0x15d   :  { %3429 = vmatpush1.bf16.msra.mxu0 %v10879_v37  ;;  %3593 = vmatpush1.bf16.msra.mxu1 %v10881_v38  ;;  %v634_v37 = vld [vmem:[#allocation5 + $0xd60] sm:$0xff]  ;;  %v631_v38 = vld [vmem:[#allocation5 + $0xd48] sm:$0xff] }
 0x15e   :  { %3430 = vmatprep.subr.bf16.mxu0 %v10888_v39  ;;  %3594 = vmatprep.subr.bf16.mxu1 %v10890_v45  ;;  %v10938_v39 = vcombine.high %v623_v29, %v627_v31  ;;  %v10944_v45 = vcombine.high %v630_v63, %v634_v37  ;;  %v10943_v51 = vcombine.low %v630_v63, %v634_v37  ;;  %v678_v29 = vld [vmem:[#allocation5 + $0xec0] sm:$0xff]  ;;  %v679_v31 = vld [vmem:[#allocation5 + $0xec8] sm:$0xff] }
 0x15f   :  { %v10945_v52 = vcombine.low %v631_v38, %v635_v40 }
 0x161   :  { %3431 = vmatpush1.bf16.msra.mxu0 %v10887_v48  ;;  %3595 = vmatpush1.bf16.msra.mxu1 %v10889_v49  ;;  %v639_v48 = vld [vmem:[#allocation5 + $0xd88] sm:$0xff]  ;;  %v10946_v49 = vcombine.high %v631_v38, %v635_v40  ;;  %v686_v38 = vld [vmem:[#allocation5 + $0xf00] sm:$0xff] }
 0x162   :  { %3432 = vmatprep.subr.bf16.mxu0 %v10896_v50  ;;  %3596 = vmatprep.subr.bf16.mxu1 %v10898_v55  ;;  %v643_v50 = vld [vmem:[#allocation5 + $0xda8] sm:$0xff]  ;;  %v646_v55 = vld [vmem:[#allocation5 + $0xdc0] sm:$0xff] }
 0x163   :  { %v10953_v62 = vcombine.low %v639_v48, %v643_v50  ;;  %v10960_v0 = vcombine.high %v646_v55, %v650_v56  ;;  %v687_v40 = vld [vmem:[#allocation5 + $0xf08] sm:$0xff] }
 0x165   :  { %3433 = vmatpush1.bf16.msra.mxu0 %v10895_v58  ;;  %3597 = vmatpush1.bf16.msra.mxu1 %v10897_v23  ;;  %v647_v58 = vld [vmem:[#allocation5 + $0xdc8] sm:$0xff]  ;;  %v10954_v23 = vcombine.high %v639_v48, %v643_v50  ;;  %v694_v48 = vld [vmem:[#allocation5 + $0xf40] sm:$0xff] }
 0x166   :  { %3443 = vmatprep.subr.bf16.mxu0 %v10904_v60  ;;  %3607 = vmatprep.subr.bf16.mxu1 %v10906_v1  ;;  %v651_v60 = vld [vmem:[#allocation5 + $0xde8] sm:$0xff]  ;;  %v654_v1 = vld [vmem:[#allocation5 + $0xe00] sm:$0xff] }
 0x167   :  { %v10961_v8 = vcombine.low %v647_v58, %v651_v60  ;;  %v10968_v10 = vcombine.high %v654_v1, %v658_v2  ;;  %v695_v50 = vld [vmem:[#allocation5 + $0xf48] sm:$0xff] }
 0x168   :  { %3435 = vmatmul.mubr.bf16.vlgmr.msra.gmra.mrb[0].mxu0 %v13119_v4  ;;  %3599 = vmatmul.mubr.bf16.vlgmr.msra.gmra.mrb[0].mxu1 %v13119_v4 }
 0x169   :  { %3444 = vmatpush1.bf16.msra.mxu0 %v10903_v5  ;;  %3608 = vmatpush1.bf16.msra.mxu1 %v10905_v6  ;;  %v10962_v5 = vcombine.high %v647_v58, %v651_v60  ;;  %v659_v6 = vld [vmem:[#allocation5 + $0xe28] sm:$0xff]  ;;  %v702_v58 = vld [vmem:[#allocation5 + $0xf80] sm:$0xff] }
 0x16a   :  { %3445 = vmatprep.subr.bf16.mxu0 %v10912_v7  ;;  %3609 = vmatprep.subr.bf16.mxu1 %v10914_v12  ;;  %v10959_v7 = vcombine.low %v646_v55, %v650_v56  ;;  %v666_v12 = vld [vmem:[#allocation5 + $0xe60] sm:$0xff]  ;;  %v10969_v18 = vcombine.low %v655_v3, %v659_v6  ;;  %v703_v60 = vld [vmem:[#allocation5 + $0xf88] sm:$0xff] }
 0x16b   :  { %3475 = vmatprep.mubr.bf16.mxu0 %v13121_v14  ;;  %3639 = vmatprep.mubr.bf16.mxu1 %v13121_v14  ;;  %v10976_v19 = vcombine.high %v662_v11, %v666_v12 }
 0x16d   :  { %3446 = vmatpush1.bf16.msra.mxu0 %v10911_v33  ;;  %3610 = vmatpush1.bf16.msra.mxu1 %v10913_v15  ;;  %v10970_v33 = vcombine.high %v655_v3, %v659_v6  ;;  %v667_v15 = vld [vmem:[#allocation5 + $0xe68] sm:$0xff]  ;;  %v710_v3 = vld [vmem:[#allocation5 + $0xfc0] sm:$0xff] }
 0x16e   :  { %3447 = vmatprep.subr.bf16.mxu0 %v10920_v17  ;;  %3611 = vmatprep.subr.bf16.mxu1 %v10922_v20  ;;  %v10967_v17 = vcombine.low %v654_v1, %v658_v2  ;;  %v674_v20 = vld [vmem:[#allocation5 + $0xea0] sm:$0xff]  ;;  %v10977_v27 = vcombine.low %v663_v13, %v667_v15  ;;  %v711_v6 = vld [vmem:[#allocation5 + $0xfc8] sm:$0xff] }
 0x16f   :  { %v10984_v28 = vcombine.high %v670_v59, %v674_v20 }
 0x171   :  { %3448 = vmatpush1.bf16.msra.mxu0 %v10919_v22  ;;  %3612 = vmatpush1.bf16.msra.mxu1 %v10921_v24  ;;  %v10978_v22 = vcombine.high %v663_v13, %v667_v15  ;;  %v675_v24 = vld [vmem:[#allocation5 + $0xea8] sm:$0xff]  ;;  %v208_v13 = vld [vmem:[#allocation5 + $0x10] sm:$0xff]  ;;  %v209_v15 = vld [vmem:[#allocation5 + $0x18] sm:$0xff] }
 0x172   :  { %3449 = vmatprep.subr.bf16.mxu0 %v10928_v26  ;;  %3613 = vmatprep.subr.bf16.mxu1 %v10930_v30  ;;  %v10975_v26 = vcombine.low %v662_v11, %v666_v12  ;;  %v682_v30 = vld [vmem:[#allocation5 + $0xee0] sm:$0xff]  ;;  %v10985_v63 = vcombine.low %v671_v21, %v675_v24 }
 0x173   :  { %v10992_v37 = vcombine.high %v678_v29, %v682_v30 }
 0x175   :  { %3450 = vmatpush1.bf16.msra.mxu0 %v10927_v32  ;;  %3614 = vmatpush1.bf16.msra.mxu1 %v10929_v34  ;;  %v10986_v32 = vcombine.high %v671_v21, %v675_v24  ;;  %v683_v34 = vld [vmem:[#allocation5 + $0xee8] sm:$0xff]  ;;  %v216_v21 = vld [vmem:[#allocation5 + $0x50] sm:$0xff]  ;;  %v217_v24 = vld [vmem:[#allocation5 + $0x58] sm:$0xff] }
 0x176   :  { %3451 = vmatprep.subr.bf16.mxu0 %v10936_v35  ;;  %3615 = vmatprep.subr.bf16.mxu1 %v10938_v39  ;;  %v10983_v35 = vcombine.low %v670_v59, %v674_v20  ;;  %v690_v39 = vld [vmem:[#allocation5 + $0xf20] sm:$0xff]  ;;  %v10993_v46 = vcombine.low %v679_v31, %v683_v34 }
 0x177   :  { %v11000_v47 = vcombine.high %v686_v38, %v690_v39 }
 0x179   :  { %3452 = vmatpush1.bf16.msra.mxu0 %v10935_v41  ;;  %3616 = vmatpush1.bf16.msra.mxu1 %v10937_v42  ;;  %v10994_v41 = vcombine.high %v679_v31, %v683_v34  ;;  %v691_v42 = vld [vmem:[#allocation5 + $0xf28] sm:$0xff]  ;;  %v224_v34 = vld [vmem:[#allocation5 + $0x90] sm:$0xff] }
 0x17a   :  { %3453 = vmatprep.subr.bf16.mxu0 %v10944_v45  ;;  %3617 = vmatprep.subr.bf16.mxu1 %v10946_v49  ;;  %v10991_v45 = vcombine.low %v678_v29, %v682_v30  ;;  %v698_v49 = vld [vmem:[#allocation5 + $0xf60] sm:$0xff]  ;;  %v11001_v55 = vcombine.low %v687_v40, %v691_v42 }
 0x17b   :  { %v11008_v56 = vcombine.high %v694_v48, %v698_v49 }
 0x17d   :  { %3454 = vmatpush1.bf16.msra.mxu0 %v10943_v51  ;;  %3618 = vmatpush1.bf16.msra.mxu1 %v10945_v52  ;;  %v11002_v51 = vcombine.high %v687_v40, %v691_v42  ;;  %v699_v52 = vld [vmem:[#allocation5 + $0xf68] sm:$0xff]  ;;  %v236_v42 = vld [vmem:[#allocation5 + $0xf0] sm:$0xff] }
 0x17e   :  { %3455 = vmatprep.subr.bf16.mxu0 %v10952_v16  ;;  %3619 = vmatprep.subr.bf16.mxu1 %v10954_v23  ;;  %v10999_v16 = vcombine.low %v686_v38, %v690_v39  ;;  %v706_v23 = vld [vmem:[#allocation5 + $0xfa0] sm:$0xff]  ;;  %v11009_v1 = vcombine.low %v695_v50, %v699_v52 }
 0x17f   :  { %v11016_v2 = vcombine.high %v702_v58, %v706_v23 }
 0x181   :  { %3456 = vmatpush1.bf16.msra.mxu0 %v10951_v61  ;;  %3620 = vmatpush1.bf16.msra.mxu1 %v10953_v62  ;;  %v11010_v61 = vcombine.high %v695_v50, %v699_v52  ;;  %v707_v62 = vld [vmem:[#allocation5 + $0xfa8] sm:$0xff]  ;;  %v244_v52 = vld [vmem:[#allocation5 + $0x130] sm:$0xff] }
 0x182   :  { %3457 = vmatprep.subr.bf16.mxu0 %v10960_v0  ;;  %3621 = vmatprep.subr.bf16.mxu1 %v10962_v5  ;;  %v11007_v0 = vcombine.low %v694_v48, %v698_v49  ;;  %v714_v5 = vld [vmem:[#allocation5 + $0xfe0] sm:$0xff]  ;;  %v11017_v11 = vcombine.low %v703_v60, %v707_v62 }
 0x183   :  { %v11024_v12 = vcombine.high %v710_v3, %v714_v5 }
 0x185   :  { %3458 = vmatpush1.bf16.msra.mxu0 %v10959_v7  ;;  %3622 = vmatpush1.bf16.msra.mxu1 %v10961_v8  ;;  %v11018_v7 = vcombine.high %v703_v60, %v707_v62  ;;  %v715_v8 = vld [vmem:[#allocation5 + $0xfe8] sm:$0xff]  ;;  %v252_v62 = vld [vmem:[#allocation5 + $0x170] sm:$0xff] }
 0x186   :  { %3459 = vmatprep.subr.bf16.mxu0 %v10968_v10  ;;  %3623 = vmatprep.subr.bf16.mxu1 %v10970_v33  ;;  %v11015_v10 = vcombine.low %v702_v58, %v706_v23  ;;  %v212_v33 = vld [vmem:[#allocation5 + $0x30] sm:$0xff]  ;;  %v11025_v59 = vcombine.low %v711_v6, %v715_v8 }
 0x187   :  { %v10524_v20 = vcombine.high %v208_v13, %v212_v33  ;;  %v10523_v29 = vcombine.low %v208_v13, %v212_v33 }
 0x189   :  { %3460 = vmatpush1.bf16.msra.mxu0 %v10967_v17  ;;  %3624 = vmatpush1.bf16.msra.mxu1 %v10969_v18  ;;  %v11026_v17 = vcombine.high %v711_v6, %v715_v8  ;;  %v213_v18 = vld [vmem:[#allocation5 + $0x38] sm:$0xff]  ;;  %v260_v8 = vld [vmem:[#allocation5 + $0x1b0] sm:$0xff] }
 0x18a   :  { %3461 = vmatprep.subr.bf16.mxu0 %v10976_v19  ;;  %3625 = vmatprep.subr.bf16.mxu1 %v10978_v22  ;;  %v11023_v19 = vcombine.low %v710_v3, %v714_v5  ;;  %v220_v22 = vld [vmem:[#allocation5 + $0x70] sm:$0xff]  ;;  %v10525_v30 = vcombine.low %v209_v15, %v213_v18 }
 0x18b   :  { %v10532_v31 = vcombine.high %v216_v21, %v220_v22  ;;  %v10531_v38 = vcombine.low %v216_v21, %v220_v22 }
 0x18d   :  { %3462 = vmatpush1.bf16.msra.mxu0 %v10975_v26  ;;  %3626 = vmatpush1.bf16.msra.mxu1 %v10977_v27  ;;  %v10526_v26 = vcombine.high %v209_v15, %v213_v18  ;;  %v221_v27 = vld [vmem:[#allocation5 + $0x78] sm:$0xff]  ;;  %v268_v18 = vld [vmem:[#allocation5 + $0x1f0] sm:$0xff] }
 0x18e   :  { %3463 = vmatprep.subr.bf16.mxu0 %v10984_v28  ;;  %3627 = vmatprep.subr.bf16.mxu1 %v10986_v32  ;;  %v13129_v28 = vpack.c.bf16 %v13113_v57, %v13113_v57  ;;  %v10534_v32 = vcombine.high %v217_v24, %v221_v27  ;;  %v10533_v57 = vcombine.low %v217_v24, %v221_v27  ;;  %v276_v27 = vld [vmem:[#allocation5 + $0x230] sm:$0xff] }
 0x191   :  { %3464 = vmatpush1.bf16.msra.mxu0 %v10983_v35  ;;  %3628 = vmatpush1.bf16.msra.mxu1 %v10985_v63  ;;  %v228_v35 = vld [vmem:[#allocation5 + $0xb0] sm:$0xff]  ;;  %v225_v63 = vld [vmem:[#allocation5 + $0x98] sm:$0xff] }
 0x192   :  { %3465 = vmatprep.subr.bf16.mxu0 %v10992_v37  ;;  %3629 = vmatprep.subr.bf16.mxu1 %v10994_v41  ;;  %v229_v37 = vld [vmem:[#allocation5 + $0xb8] sm:$0xff]  ;;  %v10540_v39 = vcombine.high %v224_v34, %v228_v35  ;;  %v232_v41 = vld [vmem:[#allocation5 + $0xd0] sm:$0xff] }
 0x193   :  { %v10542_v40 = vcombine.high %v225_v63, %v229_v37  ;;  %v10541_v48 = vcombine.low %v225_v63, %v229_v37  ;;  %v10548_v49 = vcombine.high %v232_v41, %v236_v42  ;;  %v280_v63 = vld [vmem:[#allocation5 + $0x250] sm:$0xff] }
 0x194   :  { %v284_v37 = vld [vmem:[#allocation5 + $0x270] sm:$0xff] }
 0x195   :  { %3466 = vmatpush1.bf16.msra.mxu0 %v10991_v45  ;;  %3630 = vmatpush1.bf16.msra.mxu1 %v10993_v46  ;;  %v233_v45 = vld [vmem:[#allocation5 + $0xd8] sm:$0xff] }
 0x196   :  { %3467 = vmatprep.subr.bf16.mxu0 %v11000_v47  ;;  %3631 = vmatprep.subr.bf16.mxu1 %v11002_v51  ;;  %v237_v46 = vld [vmem:[#allocation5 + $0xf8] sm:$0xff]  ;;  %v10539_v47 = vcombine.low %v224_v34, %v228_v35  ;;  %v240_v51 = vld [vmem:[#allocation5 + $0x110] sm:$0xff] }
 0x197   :  { %v10550_v50 = vcombine.high %v233_v45, %v237_v46  ;;  %v10549_v58 = vcombine.low %v233_v45, %v237_v46  ;;  %v10556_v23 = vcombine.high %v240_v51, %v244_v52  ;;  %v288_v45 = vld [vmem:[#allocation5 + $0x290] sm:$0xff] }
 0x198   :  { %v292_v46 = vld [vmem:[#allocation5 + $0x2b0] sm:$0xff] }
 0x199   :  { %3468 = vmatpush1.bf16.msra.mxu0 %v10999_v16  ;;  %3632 = vmatpush1.bf16.msra.mxu1 %v11001_v55  ;;  %v241_v16 = vld [vmem:[#allocation5 + $0x118] sm:$0xff] }
 0x19a   :  { %3469 = vmatprep.subr.bf16.mxu0 %v11008_v56  ;;  %3633 = vmatprep.subr.bf16.mxu1 %v11010_v61  ;;  %v245_v55 = vld [vmem:[#allocation5 + $0x138] sm:$0xff]  ;;  %v10547_v56 = vcombine.low %v232_v41, %v236_v42  ;;  %v248_v61 = vld [vmem:[#allocation5 + $0x150] sm:$0xff]  ;;  %v10596_v41 = vcombine.high %v280_v63, %v284_v37 }
 0x19b   :  { %v10558_v60 = vcombine.high %v241_v16, %v245_v55  ;;  %v10557_v3 = vcombine.low %v241_v16, %v245_v55  ;;  %v10564_v5 = vcombine.high %v248_v61, %v252_v62  ;;  %v296_v16 = vld [vmem:[#allocation5 + $0x2d0] sm:$0xff] }
 0x19c   :  { %v300_v55 = vld [vmem:[#allocation5 + $0x2f0] sm:$0xff] }
 0x19d   :  { %3470 = vmatpush1.bf16.msra.mxu0 %v11007_v0  ;;  %3634 = vmatpush1.bf16.msra.mxu1 %v11009_v1  ;;  %v249_v0 = vld [vmem:[#allocation5 + $0x158] sm:$0xff] }
 0x19e   :  { %3471 = vmatprep.subr.bf16.mxu0 %v11016_v2  ;;  %3635 = vmatprep.subr.bf16.mxu1 %v11018_v7  ;;  %v253_v1 = vld [vmem:[#allocation5 + $0x178] sm:$0xff]  ;;  %v10555_v2 = vcombine.low %v240_v51, %v244_v52  ;;  %v256_v7 = vld [vmem:[#allocation5 + $0x190] sm:$0xff]  ;;  %v10604_v51 = vcombine.high %v288_v45, %v292_v46 }
 0x19f   :  { %v10566_v6 = vcombine.high %v249_v0, %v253_v1  ;;  %v10565_v13 = vcombine.low %v249_v0, %v253_v1  ;;  %v10572_v33 = vcombine.high %v256_v7, %v260_v8  ;;  %v304_v0 = vld [vmem:[#allocation5 + $0x310] sm:$0xff] }
 0x1a0   :  { %v308_v1 = vld [vmem:[#allocation5 + $0x330] sm:$0xff] }
 0x1a1   :  { %3472 = vmatpush1.bf16.msra.mxu0 %v11015_v10  ;;  %3636 = vmatpush1.bf16.msra.mxu1 %v11017_v11  ;;  %v257_v10 = vld [vmem:[#allocation5 + $0x198] sm:$0xff] }
 0x1a2   :  { %3473 = vmatprep.subr.bf16.mxu0 %v11024_v12  ;;  %3637 = vmatprep.subr.bf16.mxu1 %v11026_v17  ;;  %v261_v11 = vld [vmem:[#allocation5 + $0x1b8] sm:$0xff]  ;;  %v10563_v12 = vcombine.low %v248_v61, %v252_v62  ;;  %v264_v17 = vld [vmem:[#allocation5 + $0x1d0] sm:$0xff]  ;;  %v10612_v61 = vcombine.high %v296_v16, %v300_v55 }
 0x1a3   :  { %v10574_v15 = vcombine.high %v257_v10, %v261_v11  ;;  %v10573_v21 = vcombine.low %v257_v10, %v261_v11  ;;  %v10580_v22 = vcombine.high %v264_v17, %v268_v18  ;;  %v312_v10 = vld [vmem:[#allocation5 + $0x350] sm:$0xff] }
 0x1a4   :  { %v316_v11 = vld [vmem:[#allocation5 + $0x370] sm:$0xff] }
 0x1a5   :  { %3474 = vmatpush1.bf16.msra.mxu0 %v11023_v19  ;;  %3638 = vmatpush1.bf16.msra.mxu1 %v11025_v59  ;;  %v265_v19 = vld [vmem:[#allocation5 + $0x1d8] sm:$0xff] }
 0x1a6   :  { %3648 = vmatprep.subr.bf16.mxu0 %v10524_v20  ;;  %3812 = vmatprep.subr.bf16.mxu1 %v10526_v26  ;;  %v269_v59 = vld [vmem:[#allocation5 + $0x1f8] sm:$0xff]  ;;  %v10571_v20 = vcombine.low %v256_v7, %v260_v8  ;;  %v272_v26 = vld [vmem:[#allocation5 + $0x210] sm:$0xff]  ;;  %v10620_v7 = vcombine.high %v304_v0, %v308_v1 }
 0x1a7   :  { %v10582_v24 = vcombine.high %v265_v19, %v269_v59  ;;  %v10588_v34 = vcombine.high %v272_v26, %v276_v27 }
 0x1a8   :  { %3476 = vmatmul.mubr.bf16.vlgmr.msra.gmra.mrb[0].mxu0 %v13129_v28  ;;  %3640 = vmatmul.mubr.bf16.vlgmr.msra.gmra.mrb[0].mxu1 %v13129_v28 }
 0x1a9   :  { %3649 = vmatpush1.bf16.msra.mxu0 %v10523_v29  ;;  %3813 = vmatpush1.bf16.msra.mxu1 %v10525_v30  ;;  %v273_v29 = vld [vmem:[#allocation5 + $0x218] sm:$0xff] }
 0x1aa   :  { %3650 = vmatprep.subr.bf16.mxu0 %v10532_v31  ;;  %3814 = vmatprep.subr.bf16.mxu1 %v10534_v32  ;;  %v277_v30 = vld [vmem:[#allocation5 + $0x238] sm:$0xff]  ;;  %v10579_v31 = vcombine.low %v264_v17, %v268_v18  ;;  %v10581_v32 = vcombine.low %v265_v19, %v269_v59  ;;  %v10628_v17 = vcombine.high %v312_v10, %v316_v11  ;;  %v320_v19 = vld [vmem:[#allocation5 + $0x390] sm:$0xff] }
 0x1ab   :  { %3680 = vmatprep.mubr.bf16.mxu0 %v13071_v9  ;;  %3844 = vmatprep.mubr.bf16.mxu1 %v13071_v9  ;;  %v10590_v35 = vcombine.high %v273_v29, %v277_v30  ;;  %v324_v59 = vld [vmem:[#allocation5 + $0x3b0] sm:$0xff] }
 0x1ad   :  { %3651 = vmatpush1.bf16.msra.mxu0 %v10531_v38  ;;  %3815 = vmatpush1.bf16.msra.mxu1 %v10533_v57  ;;  %v281_v38 = vld [vmem:[#allocation5 + $0x258] sm:$0xff] }
 0x1ae   :  { %3652 = vmatprep.subr.bf16.mxu0 %v10540_v39  ;;  %3816 = vmatprep.subr.bf16.mxu1 %v10542_v40  ;;  %v285_v57 = vld [vmem:[#allocation5 + $0x278] sm:$0xff]  ;;  %v10587_v39 = vcombine.low %v272_v26, %v276_v27  ;;  %v10589_v40 = vcombine.low %v273_v29, %v277_v30  ;;  %v10636_v26 = vcombine.high %v320_v19, %v324_v59  ;;  %v328_v29 = vld [vmem:[#allocation5 + $0x3d0] sm:$0xff] }
 0x1af   :  { %v10598_v42 = vcombine.high %v281_v38, %v285_v57  ;;  %v332_v30 = vld [vmem:[#allocation5 + $0x3f0] sm:$0xff] }
 0x1b1   :  { %3653 = vmatpush1.bf16.msra.mxu0 %v10539_v47  ;;  %3817 = vmatpush1.bf16.msra.mxu1 %v10541_v48  ;;  %v289_v47 = vld [vmem:[#allocation5 + $0x298] sm:$0xff] }
 0x1b2   :  { %3654 = vmatprep.subr.bf16.mxu0 %v10548_v49  ;;  %3818 = vmatprep.subr.bf16.mxu1 %v10550_v50  ;;  %v293_v48 = vld [vmem:[#allocation5 + $0x2b8] sm:$0xff]  ;;  %v10595_v49 = vcombine.low %v280_v63, %v284_v37  ;;  %v10597_v50 = vcombine.low %v281_v38, %v285_v57  ;;  %v10644_v63 = vcombine.high %v328_v29, %v332_v30  ;;  %v336_v38 = vld [vmem:[#allocation5 + $0x410] sm:$0xff] }
 0x1b3   :  { %v10606_v52 = vcombine.high %v289_v47, %v293_v48  ;;  %v340_v57 = vld [vmem:[#allocation5 + $0x430] sm:$0xff] }
 0x1b5   :  { %3655 = vmatpush1.bf16.msra.mxu0 %v10547_v56  ;;  %3819 = vmatpush1.bf16.msra.mxu1 %v10549_v58  ;;  %v297_v56 = vld [vmem:[#allocation5 + $0x2d8] sm:$0xff] }
 0x1b6   :  { %3656 = vmatprep.subr.bf16.mxu0 %v10556_v23  ;;  %3820 = vmatprep.subr.bf16.mxu1 %v10558_v60  ;;  %v301_v58 = vld [vmem:[#allocation5 + $0x2f8] sm:$0xff]  ;;  %v10603_v23 = vcombine.low %v288_v45, %v292_v46  ;;  %v10605_v60 = vcombine.low %v289_v47, %v293_v48  ;;  %v10652_v45 = vcombine.high %v336_v38, %v340_v57  ;;  %v344_v47 = vld [vmem:[#allocation5 + $0x450] sm:$0xff] }
 0x1b7   :  { %v10614_v62 = vcombine.high %v297_v56, %v301_v58  ;;  %v348_v48 = vld [vmem:[#allocation5 + $0x470] sm:$0xff] }
 0x1b9   :  { %3657 = vmatpush1.bf16.msra.mxu0 %v10555_v2  ;;  %3821 = vmatpush1.bf16.msra.mxu1 %v10557_v3  ;;  %v305_v2 = vld [vmem:[#allocation5 + $0x318] sm:$0xff] }
 0x1ba   :  { %3658 = vmatprep.subr.bf16.mxu0 %v10564_v5  ;;  %3822 = vmatprep.subr.bf16.mxu1 %v10566_v6  ;;  %v309_v3 = vld [vmem:[#allocation5 + $0x338] sm:$0xff]  ;;  %v10611_v5 = vcombine.low %v296_v16, %v300_v55  ;;  %v10613_v6 = vcombine.low %v297_v56, %v301_v58  ;;  %v10660_v16 = vcombine.high %v344_v47, %v348_v48  ;;  %v352_v56 = vld [vmem:[#allocation5 + $0x490] sm:$0xff] }
 0x1bb   :  { %v10622_v8 = vcombine.high %v305_v2, %v309_v3  ;;  %v356_v58 = vld [vmem:[#allocation5 + $0x4b0] sm:$0xff] }
 0x1bd   :  { %3659 = vmatpush1.bf16.msra.mxu0 %v10563_v12  ;;  %3823 = vmatpush1.bf16.msra.mxu1 %v10565_v13  ;;  %v313_v12 = vld [vmem:[#allocation5 + $0x358] sm:$0xff] }
 0x1be   :  { %3660 = vmatprep.subr.bf16.mxu0 %v10572_v33  ;;  %3824 = vmatprep.subr.bf16.mxu1 %v10574_v15  ;;  %v317_v13 = vld [vmem:[#allocation5 + $0x378] sm:$0xff]  ;;  %v10619_v33 = vcombine.low %v304_v0, %v308_v1  ;;  %v10621_v15 = vcombine.low %v305_v2, %v309_v3  ;;  %v10668_v0 = vcombine.high %v352_v56, %v356_v58  ;;  %v360_v2 = vld [vmem:[#allocation5 + $0x4d0] sm:$0xff] }
 0x1bf   :  { %v10630_v18 = vcombine.high %v313_v12, %v317_v13  ;;  %v364_v3 = vld [vmem:[#allocation5 + $0x4f0] sm:$0xff] }
 0x1c1   :  { %3661 = vmatpush1.bf16.msra.mxu0 %v10571_v20  ;;  %3825 = vmatpush1.bf16.msra.mxu1 %v10573_v21  ;;  %v321_v20 = vld [vmem:[#allocation5 + $0x398] sm:$0xff] }
 0x1c2   :  { %3662 = vmatprep.subr.bf16.mxu0 %v10580_v22  ;;  %3826 = vmatprep.subr.bf16.mxu1 %v10582_v24  ;;  %v325_v21 = vld [vmem:[#allocation5 + $0x3b8] sm:$0xff]  ;;  %v10627_v22 = vcombine.low %v312_v10, %v316_v11  ;;  %v10629_v24 = vcombine.low %v313_v12, %v317_v13  ;;  %v10676_v10 = vcombine.high %v360_v2, %v364_v3  ;;  %v368_v12 = vld [vmem:[#allocation5 + $0x510] sm:$0xff] }
 0x1c3   :  { %v10638_v27 = vcombine.high %v321_v20, %v325_v21  ;;  %v372_v13 = vld [vmem:[#allocation5 + $0x530] sm:$0xff] }
 0x1c5   :  { %3663 = vmatpush1.bf16.msra.mxu0 %v10579_v31  ;;  %3827 = vmatpush1.bf16.msra.mxu1 %v10581_v32  ;;  %v329_v31 = vld [vmem:[#allocation5 + $0x3d8] sm:$0xff] }
 0x1c6   :  { %3664 = vmatprep.subr.bf16.mxu0 %v10588_v34  ;;  %3828 = vmatprep.subr.bf16.mxu1 %v10590_v35  ;;  %v333_v32 = vld [vmem:[#allocation5 + $0x3f8] sm:$0xff]  ;;  %v10635_v34 = vcombine.low %v320_v19, %v324_v59  ;;  %v10637_v35 = vcombine.low %v321_v20, %v325_v21  ;;  %v10684_v19 = vcombine.high %v368_v12, %v372_v13  ;;  %v376_v20 = vld [vmem:[#allocation5 + $0x550] sm:$0xff] }
 0x1c7   :  { %v10646_v37 = vcombine.high %v329_v31, %v333_v32  ;;  %v380_v21 = vld [vmem:[#allocation5 + $0x570] sm:$0xff] }
 0x1c9   :  { %3665 = vmatpush1.bf16.msra.mxu0 %v10587_v39  ;;  %3829 = vmatpush1.bf16.msra.mxu1 %v10589_v40  ;;  %v337_v39 = vld [vmem:[#allocation5 + $0x418] sm:$0xff] }
 0x1ca   :  { %3666 = vmatprep.subr.bf16.mxu0 %v10596_v41  ;;  %3830 = vmatprep.subr.bf16.mxu1 %v10598_v42  ;;  %v341_v40 = vld [vmem:[#allocation5 + $0x438] sm:$0xff]  ;;  %v10643_v41 = vcombine.low %v328_v29, %v332_v30  ;;  %v10645_v42 = vcombine.low %v329_v31, %v333_v32  ;;  %v10692_v29 = vcombine.high %v376_v20, %v380_v21  ;;  %v384_v31 = vld [vmem:[#allocation5 + $0x590] sm:$0xff] }
 0x1cb   :  { %v10654_v46 = vcombine.high %v337_v39, %v341_v40  ;;  %v388_v32 = vld [vmem:[#allocation5 + $0x5b0] sm:$0xff] }
 0x1cd   :  { %3667 = vmatpush1.bf16.msra.mxu0 %v10595_v49  ;;  %3831 = vmatpush1.bf16.msra.mxu1 %v10597_v50  ;;  %v345_v49 = vld [vmem:[#allocation5 + $0x458] sm:$0xff] }
 0x1ce   :  { %3668 = vmatprep.subr.bf16.mxu0 %v10604_v51  ;;  %3832 = vmatprep.subr.bf16.mxu1 %v10606_v52  ;;  %v349_v50 = vld [vmem:[#allocation5 + $0x478] sm:$0xff]  ;;  %v10651_v51 = vcombine.low %v336_v38, %v340_v57  ;;  %v10653_v52 = vcombine.low %v337_v39, %v341_v40  ;;  %v10700_v38 = vcombine.high %v384_v31, %v388_v32  ;;  %v392_v39 = vld [vmem:[#allocation5 + $0x5d0] sm:$0xff] }
 0x1cf   :  { %v10662_v55 = vcombine.high %v345_v49, %v349_v50  ;;  %v396_v40 = vld [vmem:[#allocation5 + $0x5f0] sm:$0xff] }
 0x1d1   :  { %3669 = vmatpush1.bf16.msra.mxu0 %v10603_v23  ;;  %3833 = vmatpush1.bf16.msra.mxu1 %v10605_v60  ;;  %v353_v23 = vld [vmem:[#allocation5 + $0x498] sm:$0xff] }
 0x1d2   :  { %3670 = vmatprep.subr.bf16.mxu0 %v10612_v61  ;;  %3834 = vmatprep.subr.bf16.mxu1 %v10614_v62  ;;  %v357_v60 = vld [vmem:[#allocation5 + $0x4b8] sm:$0xff]  ;;  %v10659_v61 = vcombine.low %v344_v47, %v348_v48  ;;  %v10661_v62 = vcombine.low %v345_v49, %v349_v50  ;;  %v10708_v47 = vcombine.high %v392_v39, %v396_v40  ;;  %v400_v49 = vld [vmem:[#allocation5 + $0x610] sm:$0xff] }
 0x1d3   :  { %v10670_v1 = vcombine.high %v353_v23, %v357_v60  ;;  %v404_v50 = vld [vmem:[#allocation5 + $0x630] sm:$0xff] }
 0x1d5   :  { %3671 = vmatpush1.bf16.msra.mxu0 %v10611_v5  ;;  %3835 = vmatpush1.bf16.msra.mxu1 %v10613_v6  ;;  %v361_v5 = vld [vmem:[#allocation5 + $0x4d8] sm:$0xff] }
 0x1d6   :  { %3672 = vmatprep.subr.bf16.mxu0 %v10620_v7  ;;  %3836 = vmatprep.subr.bf16.mxu1 %v10622_v8  ;;  %v365_v6 = vld [vmem:[#allocation5 + $0x4f8] sm:$0xff]  ;;  %v10667_v7 = vcombine.low %v352_v56, %v356_v58  ;;  %v10669_v8 = vcombine.low %v353_v23, %v357_v60  ;;  %v10716_v56 = vcombine.high %v400_v49, %v404_v50  ;;  %v408_v23 = vld [vmem:[#allocation5 + $0x650] sm:$0xff] }
 0x1d7   :  { %v10678_v11 = vcombine.high %v361_v5, %v365_v6  ;;  %v412_v60 = vld [vmem:[#allocation5 + $0x670] sm:$0xff] }
 0x1d9   :  { %3673 = vmatpush1.bf16.msra.mxu0 %v10619_v33  ;;  %3837 = vmatpush1.bf16.msra.mxu1 %v10621_v15  ;;  %v369_v33 = vld [vmem:[#allocation5 + $0x518] sm:$0xff] }
 0x1da   :  { %3674 = vmatprep.subr.bf16.mxu0 %v10628_v17  ;;  %3838 = vmatprep.subr.bf16.mxu1 %v10630_v18  ;;  %v373_v15 = vld [vmem:[#allocation5 + $0x538] sm:$0xff]  ;;  %v10675_v17 = vcombine.low %v360_v2, %v364_v3  ;;  %v10677_v18 = vcombine.low %v361_v5, %v365_v6  ;;  %v10724_v2 = vcombine.high %v408_v23, %v412_v60  ;;  %v416_v5 = vld [vmem:[#allocation5 + $0x690] sm:$0xff] }
 0x1db   :  { %v10686_v59 = vcombine.high %v369_v33, %v373_v15  ;;  %v420_v6 = vld [vmem:[#allocation5 + $0x6b0] sm:$0xff] }
 0x1dd   :  { %3675 = vmatpush1.bf16.msra.mxu0 %v10627_v22  ;;  %3839 = vmatpush1.bf16.msra.mxu1 %v10629_v24  ;;  %v377_v22 = vld [vmem:[#allocation5 + $0x558] sm:$0xff] }
 0x1de   :  { %3676 = vmatprep.subr.bf16.mxu0 %v10636_v26  ;;  %3840 = vmatprep.subr.bf16.mxu1 %v10638_v27  ;;  %v381_v24 = vld [vmem:[#allocation5 + $0x578] sm:$0xff]  ;;  %v10683_v26 = vcombine.low %v368_v12, %v372_v13  ;;  %v10685_v27 = vcombine.low %v369_v33, %v373_v15  ;;  %v10732_v12 = vcombine.high %v416_v5, %v420_v6  ;;  %v424_v33 = vld [vmem:[#allocation5 + $0x6d0] sm:$0xff] }
 0x1df   :  { %v10694_v30 = vcombine.high %v377_v22, %v381_v24  ;;  %v428_v15 = vld [vmem:[#allocation5 + $0x6f0] sm:$0xff] }
 0x1e1   :  { %3677 = vmatpush1.bf16.msra.mxu0 %v10635_v34  ;;  %3841 = vmatpush1.bf16.msra.mxu1 %v10637_v35  ;;  %v385_v34 = vld [vmem:[#allocation5 + $0x598] sm:$0xff] }
 0x1e2   :  { %3678 = vmatprep.subr.bf16.mxu0 %v10644_v63  ;;  %3842 = vmatprep.subr.bf16.mxu1 %v10646_v37  ;;  %v389_v35 = vld [vmem:[#allocation5 + $0x5b8] sm:$0xff]  ;;  %v10691_v63 = vcombine.low %v376_v20, %v380_v21  ;;  %v10693_v37 = vcombine.low %v377_v22, %v381_v24  ;;  %v10740_v20 = vcombine.high %v424_v33, %v428_v15  ;;  %v432_v22 = vld [vmem:[#allocation5 + $0x710] sm:$0xff] }
 0x1e3   :  { %v10702_v57 = vcombine.high %v385_v34, %v389_v35  ;;  %v436_v24 = vld [vmem:[#allocation5 + $0x730] sm:$0xff] }
 0x1e5   :  { %3679 = vmatpush1.bf16.msra.mxu0 %v10643_v41  ;;  %3843 = vmatpush1.bf16.msra.mxu1 %v10645_v42  ;;  %v393_v41 = vld [vmem:[#allocation5 + $0x5d8] sm:$0xff] }
 0x1e6   :  { %3689 = vmatprep.subr.bf16.mxu0 %v10652_v45  ;;  %3853 = vmatprep.subr.bf16.mxu1 %v10654_v46  ;;  %v397_v42 = vld [vmem:[#allocation5 + $0x5f8] sm:$0xff]  ;;  %v10699_v45 = vcombine.low %v384_v31, %v388_v32  ;;  %v10701_v46 = vcombine.low %v385_v34, %v389_v35  ;;  %v10748_v31 = vcombine.high %v432_v22, %v436_v24  ;;  %v440_v34 = vld [vmem:[#allocation5 + $0x750] sm:$0xff] }
 0x1e7   :  { %v10710_v48 = vcombine.high %v393_v41, %v397_v42  ;;  %v444_v35 = vld [vmem:[#allocation5 + $0x770] sm:$0xff] }
 0x1e8   :  { %3681 = vmatmul.mubr.bf16.vlgmr.msra.gmra.mrb[4].mxu0 %v13084_v25  ;;  %3845 = vmatmul.mubr.bf16.vlgmr.msra.gmra.mrb[4].mxu1 %v13084_v25 }
 0x1e9   :  { %3690 = vmatpush1.bf16.msra.mxu0 %v10651_v51  ;;  %3854 = vmatpush1.bf16.msra.mxu1 %v10653_v52  ;;  %v401_v51 = vld [vmem:[#allocation5 + $0x618] sm:$0xff] }
 0x1ea   :  { %3691 = vmatprep.subr.bf16.mxu0 %v10660_v16  ;;  %3855 = vmatprep.subr.bf16.mxu1 %v10662_v55  ;;  %v405_v52 = vld [vmem:[#allocation5 + $0x638] sm:$0xff]  ;;  %v10707_v16 = vcombine.low %v392_v39, %v396_v40  ;;  %v10709_v55 = vcombine.low %v393_v41, %v397_v42  ;;  %v10756_v39 = vcombine.high %v440_v34, %v444_v35  ;;  %v448_v41 = vld [vmem:[#allocation5 + $0x790] sm:$0xff] }
 0x1eb   :  { %3721 = vmatprep.mubr.bf16.mxu0 %v13086_v36  ;;  %3885 = vmatprep.mubr.bf16.mxu1 %v13086_v36  ;;  %v10718_v58 = vcombine.high %v401_v51, %v405_v52  ;;  %v452_v42 = vld [vmem:[#allocation5 + $0x7b0] sm:$0xff] }
 0x1ed   :  { %3692 = vmatpush1.bf16.msra.mxu0 %v10659_v61  ;;  %3856 = vmatpush1.bf16.msra.mxu1 %v10661_v62  ;;  %v409_v61 = vld [vmem:[#allocation5 + $0x658] sm:$0xff] }
 0x1ee   :  { %3693 = vmatprep.subr.bf16.mxu0 %v10668_v0  ;;  %3857 = vmatprep.subr.bf16.mxu1 %v10670_v1  ;;  %v413_v62 = vld [vmem:[#allocation5 + $0x678] sm:$0xff]  ;;  %v10715_v0 = vcombine.low %v400_v49, %v404_v50  ;;  %v10717_v1 = vcombine.low %v401_v51, %v405_v52  ;;  %v10764_v49 = vcombine.high %v448_v41, %v452_v42  ;;  %v456_v51 = vld [vmem:[#allocation5 + $0x7d0] sm:$0xff] }
 0x1ef   :  { %v10726_v3 = vcombine.high %v409_v61, %v413_v62  ;;  %v460_v52 = vld [vmem:[#allocation5 + $0x7f0] sm:$0xff] }
 0x1f1   :  { %3694 = vmatpush1.bf16.msra.mxu0 %v10667_v7  ;;  %3858 = vmatpush1.bf16.msra.mxu1 %v10669_v8  ;;  %v417_v7 = vld [vmem:[#allocation5 + $0x698] sm:$0xff] }
 0x1f2   :  { %3695 = vmatprep.subr.bf16.mxu0 %v10676_v10  ;;  %3859 = vmatprep.subr.bf16.mxu1 %v10678_v11  ;;  %v421_v8 = vld [vmem:[#allocation5 + $0x6b8] sm:$0xff]  ;;  %v10723_v10 = vcombine.low %v408_v23, %v412_v60  ;;  %v10725_v11 = vcombine.low %v409_v61, %v413_v62  ;;  %v10772_v23 = vcombine.high %v456_v51, %v460_v52  ;;  %v464_v61 = vld [vmem:[#allocation5 + $0x810] sm:$0xff] }
 0x1f3   :  { %v10734_v13 = vcombine.high %v417_v7, %v421_v8  ;;  %v468_v62 = vld [vmem:[#allocation5 + $0x830] sm:$0xff] }
 0x1f5   :  { %3696 = vmatpush1.bf16.msra.mxu0 %v10675_v17  ;;  %3860 = vmatpush1.bf16.msra.mxu1 %v10677_v18  ;;  %v425_v17 = vld [vmem:[#allocation5 + $0x6d8] sm:$0xff] }
 0x1f6   :  { %3697 = vmatprep.subr.bf16.mxu0 %v10684_v19  ;;  %3861 = vmatprep.subr.bf16.mxu1 %v10686_v59  ;;  %v429_v18 = vld [vmem:[#allocation5 + $0x6f8] sm:$0xff]  ;;  %v10731_v19 = vcombine.low %v416_v5, %v420_v6  ;;  %v10733_v59 = vcombine.low %v417_v7, %v421_v8  ;;  %v10780_v5 = vcombine.high %v464_v61, %v468_v62  ;;  %v472_v7 = vld [vmem:[#allocation5 + $0x850] sm:$0xff] }
 0x1f7   :  { %v10742_v21 = vcombine.high %v425_v17, %v429_v18  ;;  %v476_v8 = vld [vmem:[#allocation5 + $0x870] sm:$0xff] }
 0x1f9   :  { %3698 = vmatpush1.bf16.msra.mxu0 %v10683_v26  ;;  %3862 = vmatpush1.bf16.msra.mxu1 %v10685_v27  ;;  %v433_v26 = vld [vmem:[#allocation5 + $0x718] sm:$0xff] }
 0x1fa   :  { %3699 = vmatprep.subr.bf16.mxu0 %v10692_v29  ;;  %3863 = vmatprep.subr.bf16.mxu1 %v10694_v30  ;;  %v437_v27 = vld [vmem:[#allocation5 + $0x738] sm:$0xff]  ;;  %v10739_v29 = vcombine.low %v424_v33, %v428_v15  ;;  %v10741_v30 = vcombine.low %v425_v17, %v429_v18  ;;  %v10788_v33 = vcombine.high %v472_v7, %v476_v8  ;;  %v480_v17 = vld [vmem:[#allocation5 + $0x890] sm:$0xff] }
 0x1fb   :  { %v10750_v32 = vcombine.high %v433_v26, %v437_v27  ;;  %v484_v18 = vld [vmem:[#allocation5 + $0x8b0] sm:$0xff] }
 0x1fd   :  { %3700 = vmatpush1.bf16.msra.mxu0 %v10691_v63  ;;  %3864 = vmatpush1.bf16.msra.mxu1 %v10693_v37  ;;  %v441_v63 = vld [vmem:[#allocation5 + $0x758] sm:$0xff] }
 0x1fe   :  { %3701 = vmatprep.subr.bf16.mxu0 %v10700_v38  ;;  %3865 = vmatprep.subr.bf16.mxu1 %v10702_v57  ;;  %v445_v37 = vld [vmem:[#allocation5 + $0x778] sm:$0xff]  ;;  %v10747_v38 = vcombine.low %v432_v22, %v436_v24  ;;  %v10749_v57 = vcombine.low %v433_v26, %v437_v27  ;;  %v10796_v22 = vcombine.high %v480_v17, %v484_v18  ;;  %v488_v26 = vld [vmem:[#allocation5 + $0x8d0] sm:$0xff] }
 0x1ff   :  { %v10758_v40 = vcombine.high %v441_v63, %v445_v37  ;;  %v492_v27 = vld [vmem:[#allocation5 + $0x8f0] sm:$0xff] }
 0x201   :  { %3702 = vmatpush1.bf16.msra.mxu0 %v10699_v45  ;;  %3866 = vmatpush1.bf16.msra.mxu1 %v10701_v46  ;;  %v449_v45 = vld [vmem:[#allocation5 + $0x798] sm:$0xff] }
 0x202   :  { %3703 = vmatprep.subr.bf16.mxu0 %v10708_v47  ;;  %3867 = vmatprep.subr.bf16.mxu1 %v10710_v48  ;;  %v453_v46 = vld [vmem:[#allocation5 + $0x7b8] sm:$0xff]  ;;  %v10755_v47 = vcombine.low %v440_v34, %v444_v35  ;;  %v10757_v48 = vcombine.low %v441_v63, %v445_v37  ;;  %v10804_v34 = vcombine.high %v488_v26, %v492_v27  ;;  %v496_v63 = vld [vmem:[#allocation5 + $0x910] sm:$0xff] }
 0x203   :  { %v10766_v50 = vcombine.high %v449_v45, %v453_v46  ;;  %v500_v37 = vld [vmem:[#allocation5 + $0x930] sm:$0xff] }
 0x205   :  { %3704 = vmatpush1.bf16.msra.mxu0 %v10707_v16  ;;  %3868 = vmatpush1.bf16.msra.mxu1 %v10709_v55  ;;  %v457_v16 = vld [vmem:[#allocation5 + $0x7d8] sm:$0xff] }
 0x206   :  { %3705 = vmatprep.subr.bf16.mxu0 %v10716_v56  ;;  %3869 = vmatprep.subr.bf16.mxu1 %v10718_v58  ;;  %v461_v55 = vld [vmem:[#allocation5 + $0x7f8] sm:$0xff]  ;;  %v10763_v56 = vcombine.low %v448_v41, %v452_v42  ;;  %v10765_v58 = vcombine.low %v449_v45, %v453_v46  ;;  %v10812_v41 = vcombine.high %v496_v63, %v500_v37  ;;  %v504_v45 = vld [vmem:[#allocation5 + $0x950] sm:$0xff] }
 0x207   :  { %v10774_v60 = vcombine.high %v457_v16, %v461_v55  ;;  %v508_v46 = vld [vmem:[#allocation5 + $0x970] sm:$0xff] }
 0x209   :  { %3706 = vmatpush1.bf16.msra.mxu0 %v10715_v0  ;;  %3870 = vmatpush1.bf16.msra.mxu1 %v10717_v1  ;;  %v465_v0 = vld [vmem:[#allocation5 + $0x818] sm:$0xff] }
 0x20a   :  { %3707 = vmatprep.subr.bf16.mxu0 %v10724_v2  ;;  %3871 = vmatprep.subr.bf16.mxu1 %v10726_v3  ;;  %v469_v1 = vld [vmem:[#allocation5 + $0x838] sm:$0xff]  ;;  %v10771_v2 = vcombine.low %v456_v51, %v460_v52  ;;  %v10773_v3 = vcombine.low %v457_v16, %v461_v55  ;;  %v10820_v51 = vcombine.high %v504_v45, %v508_v46  ;;  %v512_v16 = vld [vmem:[#allocation5 + $0x990] sm:$0xff] }
 0x20b   :  { %v10782_v6 = vcombine.high %v465_v0, %v469_v1  ;;  %v516_v55 = vld [vmem:[#allocation5 + $0x9b0] sm:$0xff] }
 0x20d   :  { %3708 = vmatpush1.bf16.msra.mxu0 %v10723_v10  ;;  %3872 = vmatpush1.bf16.msra.mxu1 %v10725_v11  ;;  %v473_v10 = vld [vmem:[#allocation5 + $0x858] sm:$0xff] }
 0x20e   :  { %3709 = vmatprep.subr.bf16.mxu0 %v10732_v12  ;;  %3873 = vmatprep.subr.bf16.mxu1 %v10734_v13  ;;  %v477_v11 = vld [vmem:[#allocation5 + $0x878] sm:$0xff]  ;;  %v10779_v12 = vcombine.low %v464_v61, %v468_v62  ;;  %v10781_v13 = vcombine.low %v465_v0, %v469_v1  ;;  %v10828_v61 = vcombine.high %v512_v16, %v516_v55  ;;  %v520_v0 = vld [vmem:[#allocation5 + $0x9d0] sm:$0xff] }
 0x20f   :  { %v10790_v15 = vcombine.high %v473_v10, %v477_v11  ;;  %v524_v1 = vld [vmem:[#allocation5 + $0x9f0] sm:$0xff] }
 0x211   :  { %3710 = vmatpush1.bf16.msra.mxu0 %v10731_v19  ;;  %3874 = vmatpush1.bf16.msra.mxu1 %v10733_v59  ;;  %v481_v19 = vld [vmem:[#allocation5 + $0x898] sm:$0xff] }
 0x212   :  { %3711 = vmatprep.subr.bf16.mxu0 %v10740_v20  ;;  %3875 = vmatprep.subr.bf16.mxu1 %v10742_v21  ;;  %v485_v59 = vld [vmem:[#allocation5 + $0x8b8] sm:$0xff]  ;;  %v10787_v20 = vcombine.low %v472_v7, %v476_v8  ;;  %v10789_v21 = vcombine.low %v473_v10, %v477_v11  ;;  %v10836_v7 = vcombine.high %v520_v0, %v524_v1  ;;  %v528_v10 = vld [vmem:[#allocation5 + $0xa10] sm:$0xff] }
 0x213   :  { %v10798_v24 = vcombine.high %v481_v19, %v485_v59  ;;  %v532_v11 = vld [vmem:[#allocation5 + $0xa30] sm:$0xff] }
 0x215   :  { %3712 = vmatpush1.bf16.msra.mxu0 %v10739_v29  ;;  %3876 = vmatpush1.bf16.msra.mxu1 %v10741_v30  ;;  %v489_v29 = vld [vmem:[#allocation5 + $0x8d8] sm:$0xff] }
 0x216   :  { %3713 = vmatprep.subr.bf16.mxu0 %v10748_v31  ;;  %3877 = vmatprep.subr.bf16.mxu1 %v10750_v32  ;;  %v493_v30 = vld [vmem:[#allocation5 + $0x8f8] sm:$0xff]  ;;  %v10795_v31 = vcombine.low %v480_v17, %v484_v18  ;;  %v10797_v32 = vcombine.low %v481_v19, %v485_v59  ;;  %v10844_v17 = vcombine.high %v528_v10, %v532_v11  ;;  %v536_v19 = vld [vmem:[#allocation5 + $0xa50] sm:$0xff] }
 0x217   :  { %v10806_v35 = vcombine.high %v489_v29, %v493_v30  ;;  %v540_v59 = vld [vmem:[#allocation5 + $0xa70] sm:$0xff] }
 0x219   :  { %3714 = vmatpush1.bf16.msra.mxu0 %v10747_v38  ;;  %3878 = vmatpush1.bf16.msra.mxu1 %v10749_v57  ;;  %v497_v38 = vld [vmem:[#allocation5 + $0x918] sm:$0xff] }
 0x21a   :  { %3715 = vmatprep.subr.bf16.mxu0 %v10756_v39  ;;  %3879 = vmatprep.subr.bf16.mxu1 %v10758_v40  ;;  %v501_v57 = vld [vmem:[#allocation5 + $0x938] sm:$0xff]  ;;  %v10803_v39 = vcombine.low %v488_v26, %v492_v27  ;;  %v10805_v40 = vcombine.low %v489_v29, %v493_v30  ;;  %v10852_v26 = vcombine.high %v536_v19, %v540_v59  ;;  %v544_v29 = vld [vmem:[#allocation5 + $0xa90] sm:$0xff] }
 0x21b   :  { %v10814_v42 = vcombine.high %v497_v38, %v501_v57  ;;  %v548_v30 = vld [vmem:[#allocation5 + $0xab0] sm:$0xff] }
 0x21d   :  { %3716 = vmatpush1.bf16.msra.mxu0 %v10755_v47  ;;  %3880 = vmatpush1.bf16.msra.mxu1 %v10757_v48  ;;  %v505_v47 = vld [vmem:[#allocation5 + $0x958] sm:$0xff] }
 0x21e   :  { %3717 = vmatprep.subr.bf16.mxu0 %v10764_v49  ;;  %3881 = vmatprep.subr.bf16.mxu1 %v10766_v50  ;;  %v509_v48 = vld [vmem:[#allocation5 + $0x978] sm:$0xff]  ;;  %v10811_v49 = vcombine.low %v496_v63, %v500_v37  ;;  %v10813_v50 = vcombine.low %v497_v38, %v501_v57  ;;  %v10860_v63 = vcombine.high %v544_v29, %v548_v30  ;;  %v552_v38 = vld [vmem:[#allocation5 + $0xad0] sm:$0xff] }
 0x21f   :  { %v10822_v52 = vcombine.high %v505_v47, %v509_v48  ;;  %v556_v57 = vld [vmem:[#allocation5 + $0xaf0] sm:$0xff] }
 0x221   :  { %3718 = vmatpush1.bf16.msra.mxu0 %v10763_v56  ;;  %3882 = vmatpush1.bf16.msra.mxu1 %v10765_v58  ;;  %v513_v56 = vld [vmem:[#allocation5 + $0x998] sm:$0xff] }
 0x222   :  { %3719 = vmatprep.subr.bf16.mxu0 %v10772_v23  ;;  %3883 = vmatprep.subr.bf16.mxu1 %v10774_v60  ;;  %v517_v58 = vld [vmem:[#allocation5 + $0x9b8] sm:$0xff]  ;;  %v10819_v23 = vcombine.low %v504_v45, %v508_v46  ;;  %v10821_v60 = vcombine.low %v505_v47, %v509_v48  ;;  %v10868_v45 = vcombine.high %v552_v38, %v556_v57  ;;  %v560_v47 = vld [vmem:[#allocation5 + $0xb10] sm:$0xff] }
 0x223   :  { %v10830_v62 = vcombine.high %v513_v56, %v517_v58  ;;  %v564_v48 = vld [vmem:[#allocation5 + $0xb30] sm:$0xff] }
 0x225   :  { %3720 = vmatpush1.bf16.msra.mxu0 %v10771_v2  ;;  %3884 = vmatpush1.bf16.msra.mxu1 %v10773_v3  ;;  %v521_v2 = vld [vmem:[#allocation5 + $0x9d8] sm:$0xff] }
 0x226   :  { %3730 = vmatprep.subr.bf16.mxu0 %v10780_v5  ;;  %3894 = vmatprep.subr.bf16.mxu1 %v10782_v6  ;;  %v525_v3 = vld [vmem:[#allocation5 + $0x9f8] sm:$0xff]  ;;  %v10827_v5 = vcombine.low %v512_v16, %v516_v55  ;;  %v10829_v6 = vcombine.low %v513_v56, %v517_v58  ;;  %v10876_v16 = vcombine.high %v560_v47, %v564_v48  ;;  %v568_v56 = vld [vmem:[#allocation5 + $0xb50] sm:$0xff] }
 0x227   :  { %v10838_v8 = vcombine.high %v521_v2, %v525_v3  ;;  %v572_v58 = vld [vmem:[#allocation5 + $0xb70] sm:$0xff] }
 0x228   :  { %3722 = vmatmul.mubr.bf16.vlgmr.msra.gmra.mrb[4].mxu0 %v13102_v43  ;;  %3886 = vmatmul.mubr.bf16.vlgmr.msra.gmra.mrb[4].mxu1 %v13102_v43 }
 0x229   :  { %3731 = vmatpush1.bf16.msra.mxu0 %v10779_v12  ;;  %3895 = vmatpush1.bf16.msra.mxu1 %v10781_v13  ;;  %v529_v12 = vld [vmem:[#allocation5 + $0xa18] sm:$0xff] }
 0x22a   :  { %3732 = vmatprep.subr.bf16.mxu0 %v10788_v33  ;;  %3896 = vmatprep.subr.bf16.mxu1 %v10790_v15  ;;  %v533_v13 = vld [vmem:[#allocation5 + $0xa38] sm:$0xff]  ;;  %v10835_v33 = vcombine.low %v520_v0, %v524_v1  ;;  %v10837_v15 = vcombine.low %v521_v2, %v525_v3  ;;  %v10884_v0 = vcombine.high %v568_v56, %v572_v58  ;;  %v576_v2 = vld [vmem:[#allocation5 + $0xb90] sm:$0xff] }
 0x22b   :  { %3762 = vmatprep.mubr.bf16.mxu0 %v13104_v54  ;;  %3926 = vmatprep.mubr.bf16.mxu1 %v13104_v54  ;;  %v10846_v18 = vcombine.high %v529_v12, %v533_v13  ;;  %v580_v3 = vld [vmem:[#allocation5 + $0xbb0] sm:$0xff] }
 0x22d   :  { %3733 = vmatpush1.bf16.msra.mxu0 %v10787_v20  ;;  %3897 = vmatpush1.bf16.msra.mxu1 %v10789_v21  ;;  %v537_v20 = vld [vmem:[#allocation5 + $0xa58] sm:$0xff] }
 0x22e   :  { %3734 = vmatprep.subr.bf16.mxu0 %v10796_v22  ;;  %3898 = vmatprep.subr.bf16.mxu1 %v10798_v24  ;;  %v541_v21 = vld [vmem:[#allocation5 + $0xa78] sm:$0xff]  ;;  %v10843_v22 = vcombine.low %v528_v10, %v532_v11  ;;  %v10845_v24 = vcombine.low %v529_v12, %v533_v13  ;;  %v10892_v10 = vcombine.high %v576_v2, %v580_v3  ;;  %v584_v12 = vld [vmem:[#allocation5 + $0xbd0] sm:$0xff] }
 0x22f   :  { %v10854_v27 = vcombine.high %v537_v20, %v541_v21  ;;  %v588_v13 = vld [vmem:[#allocation5 + $0xbf0] sm:$0xff] }
 0x231   :  { %3735 = vmatpush1.bf16.msra.mxu0 %v10795_v31  ;;  %3899 = vmatpush1.bf16.msra.mxu1 %v10797_v32  ;;  %v545_v31 = vld [vmem:[#allocation5 + $0xa98] sm:$0xff] }
 0x232   :  { %3736 = vmatprep.subr.bf16.mxu0 %v10804_v34  ;;  %3900 = vmatprep.subr.bf16.mxu1 %v10806_v35  ;;  %v549_v32 = vld [vmem:[#allocation5 + $0xab8] sm:$0xff]  ;;  %v10851_v34 = vcombine.low %v536_v19, %v540_v59  ;;  %v10853_v35 = vcombine.low %v537_v20, %v541_v21  ;;  %v10900_v19 = vcombine.high %v584_v12, %v588_v13  ;;  %v592_v20 = vld [vmem:[#allocation5 + $0xc10] sm:$0xff] }
 0x233   :  { %v10862_v37 = vcombine.high %v545_v31, %v549_v32  ;;  %v596_v21 = vld [vmem:[#allocation5 + $0xc30] sm:$0xff] }
 0x235   :  { %3737 = vmatpush1.bf16.msra.mxu0 %v10803_v39  ;;  %3901 = vmatpush1.bf16.msra.mxu1 %v10805_v40  ;;  %v553_v39 = vld [vmem:[#allocation5 + $0xad8] sm:$0xff] }
 0x236   :  { %3738 = vmatprep.subr.bf16.mxu0 %v10812_v41  ;;  %3902 = vmatprep.subr.bf16.mxu1 %v10814_v42  ;;  %v557_v40 = vld [vmem:[#allocation5 + $0xaf8] sm:$0xff]  ;;  %v10859_v41 = vcombine.low %v544_v29, %v548_v30  ;;  %v10861_v42 = vcombine.low %v545_v31, %v549_v32  ;;  %v10908_v29 = vcombine.high %v592_v20, %v596_v21  ;;  %v600_v31 = vld [vmem:[#allocation5 + $0xc50] sm:$0xff] }
 0x237   :  { %v10870_v46 = vcombine.high %v553_v39, %v557_v40  ;;  %v604_v32 = vld [vmem:[#allocation5 + $0xc70] sm:$0xff] }
 0x239   :  { %3739 = vmatpush1.bf16.msra.mxu0 %v10811_v49  ;;  %3903 = vmatpush1.bf16.msra.mxu1 %v10813_v50  ;;  %v561_v49 = vld [vmem:[#allocation5 + $0xb18] sm:$0xff] }
 0x23a   :  { %3740 = vmatprep.subr.bf16.mxu0 %v10820_v51  ;;  %3904 = vmatprep.subr.bf16.mxu1 %v10822_v52  ;;  %v565_v50 = vld [vmem:[#allocation5 + $0xb38] sm:$0xff]  ;;  %v10867_v51 = vcombine.low %v552_v38, %v556_v57  ;;  %v10869_v52 = vcombine.low %v553_v39, %v557_v40  ;;  %v10916_v38 = vcombine.high %v600_v31, %v604_v32  ;;  %v608_v39 = vld [vmem:[#allocation5 + $0xc90] sm:$0xff] }
 0x23b   :  { %v10878_v55 = vcombine.high %v561_v49, %v565_v50  ;;  %v612_v40 = vld [vmem:[#allocation5 + $0xcb0] sm:$0xff] }
 0x23d   :  { %3741 = vmatpush1.bf16.msra.mxu0 %v10819_v23  ;;  %3905 = vmatpush1.bf16.msra.mxu1 %v10821_v60  ;;  %v569_v23 = vld [vmem:[#allocation5 + $0xb58] sm:$0xff] }
 0x23e   :  { %3742 = vmatprep.subr.bf16.mxu0 %v10828_v61  ;;  %3906 = vmatprep.subr.bf16.mxu1 %v10830_v62  ;;  %v573_v60 = vld [vmem:[#allocation5 + $0xb78] sm:$0xff]  ;;  %v10875_v61 = vcombine.low %v560_v47, %v564_v48  ;;  %v10877_v62 = vcombine.low %v561_v49, %v565_v50  ;;  %v10924_v47 = vcombine.high %v608_v39, %v612_v40  ;;  %v616_v49 = vld [vmem:[#allocation5 + $0xcd0] sm:$0xff] }
 0x23f   :  { %v10886_v1 = vcombine.high %v569_v23, %v573_v60  ;;  %v620_v50 = vld [vmem:[#allocation5 + $0xcf0] sm:$0xff] }
 0x241   :  { %3743 = vmatpush1.bf16.msra.mxu0 %v10827_v5  ;;  %3907 = vmatpush1.bf16.msra.mxu1 %v10829_v6  ;;  %v577_v5 = vld [vmem:[#allocation5 + $0xb98] sm:$0xff] }
 0x242   :  { %3744 = vmatprep.subr.bf16.mxu0 %v10836_v7  ;;  %3908 = vmatprep.subr.bf16.mxu1 %v10838_v8  ;;  %v581_v6 = vld [vmem:[#allocation5 + $0xbb8] sm:$0xff]  ;;  %v10883_v7 = vcombine.low %v568_v56, %v572_v58  ;;  %v10885_v8 = vcombine.low %v569_v23, %v573_v60  ;;  %v10932_v56 = vcombine.high %v616_v49, %v620_v50  ;;  %v624_v23 = vld [vmem:[#allocation5 + $0xd10] sm:$0xff] }
 0x243   :  { %v10894_v11 = vcombine.high %v577_v5, %v581_v6  ;;  %v628_v60 = vld [vmem:[#allocation5 + $0xd30] sm:$0xff] }
 0x245   :  { %3745 = vmatpush1.bf16.msra.mxu0 %v10835_v33  ;;  %3909 = vmatpush1.bf16.msra.mxu1 %v10837_v15  ;;  %v585_v33 = vld [vmem:[#allocation5 + $0xbd8] sm:$0xff] }
 0x246   :  { %3746 = vmatprep.subr.bf16.mxu0 %v10844_v17  ;;  %3910 = vmatprep.subr.bf16.mxu1 %v10846_v18  ;;  %v589_v15 = vld [vmem:[#allocation5 + $0xbf8] sm:$0xff]  ;;  %v10891_v17 = vcombine.low %v576_v2, %v580_v3  ;;  %v10893_v18 = vcombine.low %v577_v5, %v581_v6  ;;  %v10940_v2 = vcombine.high %v624_v23, %v628_v60  ;;  %v632_v5 = vld [vmem:[#allocation5 + $0xd50] sm:$0xff] }
 0x247   :  { %v10902_v59 = vcombine.high %v585_v33, %v589_v15  ;;  %v636_v6 = vld [vmem:[#allocation5 + $0xd70] sm:$0xff] }
 0x249   :  { %3747 = vmatpush1.bf16.msra.mxu0 %v10843_v22  ;;  %3911 = vmatpush1.bf16.msra.mxu1 %v10845_v24  ;;  %v593_v22 = vld [vmem:[#allocation5 + $0xc18] sm:$0xff] }
 0x24a   :  { %3748 = vmatprep.subr.bf16.mxu0 %v10852_v26  ;;  %3912 = vmatprep.subr.bf16.mxu1 %v10854_v27  ;;  %v597_v24 = vld [vmem:[#allocation5 + $0xc38] sm:$0xff]  ;;  %v10899_v26 = vcombine.low %v584_v12, %v588_v13  ;;  %v10901_v27 = vcombine.low %v585_v33, %v589_v15  ;;  %v718_v12 = vld [vmem:[#allocation7] sm:$0xff]  ;;  %v13151_v13 = vsub.s32 2, %v13058_v44  ;;  %v13154_v33 = vsub.s32 1, %v13058_v44 }
 0x24b   :  { %v10910_v30 = vcombine.high %v593_v22, %v597_v24 }
 0x24d   :  { %3749 = vmatpush1.bf16.msra.mxu0 %v10851_v34  ;;  %3913 = vmatpush1.bf16.msra.mxu1 %v10853_v35  ;;  %v601_v34 = vld [vmem:[#allocation5 + $0xc58] sm:$0xff] }
 0x24e   :  { %3750 = vmatprep.subr.bf16.mxu0 %v10860_v63  ;;  %3914 = vmatprep.subr.bf16.mxu1 %v10862_v37  ;;  %v605_v35 = vld [vmem:[#allocation5 + $0xc78] sm:$0xff]  ;;  %v10907_v63 = vcombine.low %v592_v20, %v596_v21  ;;  %v10909_v37 = vcombine.low %v593_v22, %v597_v24  ;;  %v644_v20 = vld [vmem:[#allocation5 + $0xdb0] sm:$0xff] }
 0x24f   :  { %v10918_v57 = vcombine.high %v601_v34, %v605_v35  ;;  %v641_v22 = vld [vmem:[#allocation5 + $0xd98] sm:$0xff] }
 0x250   :  { %v645_v24 = vld [vmem:[#allocation5 + $0xdb8] sm:$0xff] }
 0x251   :  { %3751 = vmatpush1.bf16.msra.mxu0 %v10859_v41  ;;  %3915 = vmatpush1.bf16.msra.mxu1 %v10861_v42  ;;  %v609_v41 = vld [vmem:[#allocation5 + $0xc98] sm:$0xff] }
 0x252   :  { %3752 = vmatprep.subr.bf16.mxu0 %v10868_v45  ;;  %3916 = vmatprep.subr.bf16.mxu1 %v10870_v46  ;;  %v613_v42 = vld [vmem:[#allocation5 + $0xcb8] sm:$0xff]  ;;  %v10915_v45 = vcombine.low %v600_v31, %v604_v32  ;;  %v10917_v46 = vcombine.low %v601_v34, %v605_v35  ;;  %v10958_v35 = vcombine.high %v641_v22, %v645_v24 }
 0x253   :  { %v10926_v48 = vcombine.high %v609_v41, %v613_v42 }
 0x255   :  { %3753 = vmatpush1.bf16.msra.mxu0 %v10867_v51  ;;  %3917 = vmatpush1.bf16.msra.mxu1 %v10869_v52  ;;  %v617_v51 = vld [vmem:[#allocation5 + $0xcd8] sm:$0xff] }
 0x256   :  { %3754 = vmatprep.subr.bf16.mxu0 %v10876_v16  ;;  %3918 = vmatprep.subr.bf16.mxu1 %v10878_v55  ;;  %v621_v52 = vld [vmem:[#allocation5 + $0xcf8] sm:$0xff]  ;;  %v10923_v16 = vcombine.low %v608_v39, %v612_v40  ;;  %v10925_v55 = vcombine.low %v609_v41, %v613_v42 }
 0x257   :  { %v10934_v58 = vcombine.high %v617_v51, %v621_v52  ;;  %v649_v40 = vld [vmem:[#allocation5 + $0xdd8] sm:$0xff] }
 0x258   :  { %v653_v41 = vld [vmem:[#allocation5 + $0xdf8] sm:$0xff] }
 0x259   :  { %3755 = vmatpush1.bf16.msra.mxu0 %v10875_v61  ;;  %3919 = vmatpush1.bf16.msra.mxu1 %v10877_v62  ;;  %v625_v61 = vld [vmem:[#allocation5 + $0xd18] sm:$0xff] }
 0x25a   :  { %3756 = vmatprep.subr.bf16.mxu0 %v10884_v0  ;;  %3920 = vmatprep.subr.bf16.mxu1 %v10886_v1  ;;  %v629_v62 = vld [vmem:[#allocation5 + $0xd38] sm:$0xff]  ;;  %v10931_v0 = vcombine.low %v616_v49, %v620_v50  ;;  %v10933_v1 = vcombine.low %v617_v51, %v621_v52 }
 0x25b   :  { %v10942_v3 = vcombine.high %v625_v61, %v629_v62  ;;  %v10941_v15 = vcombine.low %v625_v61, %v629_v62  ;;  %v656_v61 = vld [vmem:[#allocation5 + $0xe10] sm:$0xff] }
 0x25c   :  { %v660_v62 = vld [vmem:[#allocation5 + $0xe30] sm:$0xff] }
 0x25d   :  { %3757 = vmatpush1.bf16.msra.mxu0 %v10883_v7  ;;  %3921 = vmatpush1.bf16.msra.mxu1 %v10885_v8  ;;  %v13148_v7 = vsub.s32 0, %v13058_v44  ;;  %v633_v8 = vld [vmem:[#allocation5 + $0xd58] sm:$0xff] }
 0x25e   :  { %3758 = vmatprep.subr.bf16.mxu0 %v10892_v10  ;;  %3922 = vmatprep.subr.bf16.mxu1 %v10894_v11  ;;  %v637_v10 = vld [vmem:[#allocation5 + $0xd78] sm:$0xff]  ;;  %v10939_v11 = vcombine.low %v624_v23, %v628_v60  ;;  %v10966_v60 = vcombine.high %v649_v40, %v653_v41 }
 0x25f   :  { %v723_v21 = vrot.slane %v718_v12, %v13148_v7  ;;  %v10949_v31 = vcombine.low %v633_v8, %v637_v10 }
 0x261   :  { %3759 = vmatpush1.bf16.msra.mxu0 %v10891_v17  ;;  %3923 = vmatpush1.bf16.msra.mxu1 %v10893_v18  ;;  %v13157_v17 = vsub.s32 3, %v13058_v44  ;;  %v10948_v18 = vcombine.high %v632_v5, %v636_v6 }
 0x262   :  { %3760 = vmatprep.subr.bf16.mxu0 %v10900_v19  ;;  %3924 = vmatprep.subr.bf16.mxu1 %v10902_v59  ;;  %v10950_v19 = vcombine.high %v633_v8, %v637_v10  ;;  %v640_v59 = vld [vmem:[#allocation5 + $0xd90] sm:$0xff]  ;;  %v10965_v8 = vcombine.low %v649_v40, %v653_v41  ;;  %v10972_v10 = vcombine.high %v656_v61, %v660_v62  ;;  %v685_v40 = vld [vmem:[#allocation5 + $0xef8] sm:$0xff] }
 0x263   :  { %v10956_v32 = vcombine.high %v640_v59, %v644_v20 }
 0x265   :  { %3761 = vmatpush1.bf16.msra.mxu0 %v10899_v26  ;;  %3925 = vmatpush1.bf16.msra.mxu1 %v10901_v27  ;;  %v731_v26 = vrot.slane %v718_v12, %v13151_v13  ;;  %v727_v27 = vrot.slane %v718_v12, %v13154_v33 }
 0x266   :  { %3771 = vmatprep.subr.bf16.mxu0 %v10908_v29  ;;  %3935 = vmatprep.subr.bf16.mxu1 %v10910_v30  ;;  %v10947_v29 = vcombine.low %v632_v5, %v636_v6  ;;  %v735_v30 = vrot.slane %v718_v12, %v13157_v17 }
 0x268   :  { %3763 = vmatmul.mubr.bf16.vlgmr.msra.gmra.mrb[4].mxu0 %v13119_v4  ;;  %3927 = vmatmul.mubr.bf16.vlgmr.msra.gmra.mrb[4].mxu1 %v13119_v4 }
 0x269   :  { %3772 = vmatpush1.bf16.msra.mxu0 %v10907_v63  ;;  %3936 = vmatpush1.bf16.msra.mxu1 %v10909_v37  ;;  %v648_v63 = vld [vmem:[#allocation5 + $0xdd0] sm:$0xff] }
 0x26a   :  { %3773 = vmatprep.subr.bf16.mxu0 %v10916_v38  ;;  %3937 = vmatprep.subr.bf16.mxu1 %v10918_v57  ;;  %v652_v37 = vld [vmem:[#allocation5 + $0xdf0] sm:$0xff] }
 0x26b   :  { %3803 = vmatprep.mubr.bf16.mxu0 %v13121_v14  ;;  %3967 = vmatprep.mubr.bf16.mxu1 %v13121_v14  ;;  %v10963_v5 = vcombine.low %v648_v63, %v652_v37 }
 0x26d   :  { %3774 = vmatpush1.bf16.msra.mxu0 %v10915_v45  ;;  %3938 = vmatpush1.bf16.msra.mxu1 %v10917_v46 }
 0x26e   :  { %3775 = vmatprep.subr.bf16.mxu0 %v10924_v47  ;;  %3939 = vmatprep.subr.bf16.mxu1 %v10926_v48  ;;  %v10955_v48 = vcombine.low %v640_v59, %v644_v20  ;;  %v665_v59 = vld [vmem:[#allocation5 + $0xe58] sm:$0xff] }
 0x26f   :  { %v669_v20 = vld [vmem:[#allocation5 + $0xe78] sm:$0xff] }
 0x271   :  { %3776 = vmatpush1.bf16.msra.mxu0 %v10923_v16  ;;  %3940 = vmatpush1.bf16.msra.mxu1 %v10925_v55  ;;  %v10957_v16 = vcombine.low %v641_v22, %v645_v24  ;;  %v10964_v55 = vcombine.high %v648_v63, %v652_v37 }
 0x272   :  { %3777 = vmatprep.subr.bf16.mxu0 %v10932_v56  ;;  %3941 = vmatprep.subr.bf16.mxu1 %v10934_v58 }
 0x275   :  { %3778 = vmatpush1.bf16.msra.mxu0 %v10931_v0  ;;  %3942 = vmatpush1.bf16.msra.mxu1 %v10933_v1  ;;  %v657_v1 = vld [vmem:[#allocation5 + $0xe18] sm:$0xff] }
 0x276   :  { %3779 = vmatprep.subr.bf16.mxu0 %v10940_v2  ;;  %3943 = vmatprep.subr.bf16.mxu1 %v10942_v3  ;;  %v661_v2 = vld [vmem:[#allocation5 + $0xe38] sm:$0xff] }
 0x277   :  { %v10974_v12 = vcombine.high %v657_v1, %v661_v2  ;;  %v10973_v22 = vcombine.low %v657_v1, %v661_v2  ;;  %v701_v1 = vld [vmem:[#allocation5 + $0xf78] sm:$0xff] }
 0x279   :  { %3780 = vmatpush1.bf16.msra.mxu0 %v10939_v11  ;;  %3944 = vmatpush1.bf16.msra.mxu1 %v10941_v15  ;;  %v664_v15 = vld [vmem:[#allocation5 + $0xe50] sm:$0xff] }
 0x27a   :  { %3781 = vmatprep.subr.bf16.mxu0 %v10948_v18  ;;  %3945 = vmatprep.subr.bf16.mxu1 %v10950_v19  ;;  %v668_v18 = vld [vmem:[#allocation5 + $0xe70] sm:$0xff] }
 0x27b   :  { %v3477_v34 = vpop.f32.mrb[0].mxu0  ;;  %v3641_v57 = vpop.f32.mrb[0].mxu1  ;;  %v10980_v24 = vcombine.high %v664_v15, %v668_v18 }
 0x27c   :  { %v11952_v38 = vadd.f32 %v3477_v34, %v723_v21  ;;  %v3479_v39 = vpop.f32.mrb[1].mxu0  ;;  %v11954_v42 = vadd.f32 %v3641_v57, %v731_v26  ;;  %v3643_v46 = vpop.f32.mrb[1].mxu1  ;;  %v10971_v21 = vcombine.low %v656_v61, %v660_v62  ;;  %v10979_v34 = vcombine.low %v664_v15, %v668_v18  ;;  %v684_v57 = vld [vmem:[#allocation5 + $0xef0] sm:$0xff]  ;;  %v697_v62 = vld [vmem:[#allocation5 + $0xf58] sm:$0xff] }
 0x27d   :  { %v11953_v45 = vadd.f32 %v3479_v39, %v727_v27  ;;  %v3481_v47 = vpop.f32.mrb[2].mxu0  ;;  %3782 = vmatpush1.bf16.msra.mxu0 %v10947_v29  ;;  %v11955_v50 = vadd.f32 %v3643_v46, %v735_v30  ;;  %v3645_v51 = vpop.f32.mrb[2].mxu1  ;;  %3946 = vmatpush1.bf16.msra.mxu1 %v10949_v31  ;;  %v10982_v27 = vcombine.high %v665_v59, %v669_v20  ;;  %v672_v29 = vld [vmem:[#allocation5 + $0xe90] sm:$0xff]  ;;  %v673_v31 = vld [vmem:[#allocation5 + $0xe98] sm:$0xff] }
 0x27e   :  { %v13163_v49 = vmax.f32 %v11952_v38, 0.0  ;;  %v3482_v52 = vpop.f32.mrb[3].mxu0  ;;  %3783 = vmatprep.subr.bf16.mxu0 %v10956_v32  ;;  %v13165_v56 = vmax.f32 %v11954_v42, 0.0  ;;  %v3646_v23 = vpop.f32.mrb[3].mxu1  ;;  %3947 = vmatprep.subr.bf16.mxu1 %v10958_v35  ;;  %v676_v30 = vld [vmem:[#allocation5 + $0xeb0] sm:$0xff]  ;;  %v677_v32 = vld [vmem:[#allocation5 + $0xeb8] sm:$0xff]  ;;  %v10981_v35 = vcombine.low %v665_v59, %v669_v20  ;;  %v11013_v18 = vcombine.low %v697_v62, %v701_v1 }
 0x27f   :  { %v13167_v58 = vmax.f32 %v11953_v45, 0.0  ;;  %v13169_v0 = vmax.f32 %v11955_v50, 0.0  ;;  %v10988_v63 = vcombine.high %v672_v29, %v676_v30  ;;  %v10990_v37 = vcombine.high %v673_v31, %v677_v32  ;;  %v680_v38 = vld [vmem:[#allocation5 + $0xed0] sm:$0xff]  ;;  %v681_v39 = vld [vmem:[#allocation5 + $0xed8] sm:$0xff] }
 0x280   :  { %v10987_v41 = vcombine.low %v672_v29, %v676_v30  ;;  %v10989_v42 = vcombine.low %v673_v31, %v677_v32  ;;  %v10996_v45 = vcombine.high %v680_v38, %v684_v57  ;;  %v10998_v46 = vcombine.high %v681_v39, %v685_v40  ;;  %v688_v47 = vld [vmem:[#allocation5 + $0xf10] sm:$0xff]  ;;  %v689_v50 = vld [vmem:[#allocation5 + $0xf18] sm:$0xff]  ;;  %v4038_v31 = vld [vmem:[#allocation8] sm:$0xff] }
 0x281   :  { %v3992_v3 = vcombine.low %v13163_v49, %v13167_v58  ;;  %3784 = vmatpush1.bf16.msra.mxu0 %v10955_v48  ;;  %v3993_v6 = vcombine.low %v13165_v56, %v13169_v0  ;;  %3948 = vmatpush1.bf16.msra.mxu1 %v10957_v16  ;;  %v692_v48 = vld [vmem:[#allocation5 + $0xf30] sm:$0xff]  ;;  %v693_v51 = vld [vmem:[#allocation5 + $0xf38] sm:$0xff]  ;;  %v10995_v52 = vcombine.low %v680_v38, %v684_v57  ;;  %v4042_v32 = vld [vmem:[#allocation8 + $0x20] sm:$0xff] }
 0x282   :  { %3785 = vmatprep.subr.bf16.mxu0 %v10964_v55  ;;  %3949 = vmatprep.subr.bf16.mxu1 %v10966_v60  ;;  %v10997_v16 = vcombine.low %v681_v39, %v685_v40  ;;  %v11004_v55 = vcombine.high %v688_v47, %v692_v48  ;;  %v11006_v23 = vcombine.high %v689_v50, %v693_v51  ;;  %v696_v60 = vld [vmem:[#allocation5 + $0xf50] sm:$0xff]  ;;  %v4046_v39 = vld [vmem:[#allocation8 + $0x40] sm:$0xff] }
 0x283   :  { %v4000_v11 = vrot.slane %v3992_v3, %v13061_v53  ;;  %v4007_v19 = vrot.slane %v3993_v6, %v13061_v53  ;;  %v700_v61 = vld [vmem:[#allocation5 + $0xf70] sm:$0xff]  ;;  %v11003_v2 = vcombine.low %v688_v47, %v692_v48  ;;  %v11005_v3 = vcombine.low %v689_v50, %v693_v51  ;;  %v4050_v40 = vld [vmem:[#allocation8 + $0x60] sm:$0xff] }
 0x284   :  { %v11014_v6 = vcombine.high %v697_v62, %v701_v1  ;;  %v11011_v15 = vcombine.low %v696_v60, %v700_v61  ;;  %v712_v20 = vld [vmem:[#allocation5 + $0xfd0] sm:$0xff]  ;;  %v11032_v38 = vcombine.high %v4038_v31, %v4042_v32  ;;  %v11040_v47 = vcombine.high %v4046_v39, %v4050_v40  ;;  %v4054_v48 = vld [vmem:[#allocation8 + $0x80] sm:$0xff] }
 0x285   :  { %3786 = vmatpush1.bf16.msra.mxu0 %v10963_v5  ;;  %3950 = vmatpush1.bf16.msra.mxu1 %v10965_v8  ;;  %v4008_v26 = vcombine.low %v4000_v11, %v4007_v19  ;;  %v11012_v5 = vcombine.high %v696_v60, %v700_v61  ;;  %v704_v8 = vld [vmem:[#allocation5 + $0xf90] sm:$0xff]  ;;  %v705_v11 = vld [vmem:[#allocation5 + $0xf98] sm:$0xff]  ;;  %v4058_v50 = vld [vmem:[#allocation8 + $0xa0] sm:$0xff]  ;;  %v13179_v51 = vpack.c.bf16 %v13167_v58, %v13167_v58 }
 0x286   :  { %3787 = vmatprep.subr.bf16.mxu0 %v10972_v10  ;;  %3951 = vmatprep.subr.bf16.mxu1 %v10974_v12  ;;  %v708_v10 = vld [vmem:[#allocation5 + $0xfb0] sm:$0xff]  ;;  %v709_v12 = vld [vmem:[#allocation5 + $0xfb8] sm:$0xff]  ;;  %v11048_v61 = vcombine.high %v4054_v48, %v4058_v50  ;;  %v4062_v58 = vld [vmem:[#allocation8 + $0xc0] sm:$0xff] }
 0x287   :  { %4028 = vst [vmem:[#allocation17] sm:$0xff] %v4008_v26  ;;  %v11020_v19 = vcombine.high %v704_v8, %v708_v10  ;;  %v11022_v59 = vcombine.high %v705_v11, %v709_v12  ;;  %v11019_v26 = vcombine.low %v704_v8, %v708_v10  ;;  %v4066_v1 = vld [vmem:[#allocation8 + $0xe0] sm:$0xff] }
 0x288   :  { %v11056_v8 = vcombine.high %v4062_v58, %v4066_v1 }
 0x289   :  { %3788 = vmatpush1.bf16.msra.mxu0 %v10971_v21  ;;  %3952 = vmatpush1.bf16.msra.mxu1 %v10973_v22  ;;  %v716_v21 = vld [vmem:[#allocation5 + $0xff0] sm:$0xff]  ;;  %v713_v22 = vld [vmem:[#allocation5 + $0xfd8] sm:$0xff] }
 0x28a   :  { %3789 = vmatprep.subr.bf16.mxu0 %v10980_v24  ;;  %3953 = vmatprep.subr.bf16.mxu1 %v10982_v27  ;;  %v717_v24 = vld [vmem:[#allocation5 + $0xff8] sm:$0xff]  ;;  %v11021_v27 = vcombine.low %v705_v11, %v709_v12  ;;  %v11028_v29 = vcombine.high %v712_v20, %v716_v21  ;;  %v4070_v11 = vld [vmem:[#allocation8 + $0x100] sm:$0xff] }
 0x28b   :  { %v11030_v30 = vcombine.high %v713_v22, %v717_v24  ;;  %v4074_v12 = vld [vmem:[#allocation8 + $0x120] sm:$0xff] }
 0x28d   :  { %3790 = vmatpush1.bf16.msra.mxu0 %v10979_v34  ;;  %3954 = vmatpush1.bf16.msra.mxu1 %v10981_v35  ;;  %v4039_v34 = vld [vmem:[#allocation8 + $0x8] sm:$0xff] }
 0x28e   :  { %3791 = vmatprep.subr.bf16.mxu0 %v10988_v63  ;;  %3955 = vmatprep.subr.bf16.mxu1 %v10990_v37  ;;  %v4043_v35 = vld [vmem:[#allocation8 + $0x28] sm:$0xff]  ;;  %v11027_v63 = vcombine.low %v712_v20, %v716_v21  ;;  %v11029_v37 = vcombine.low %v713_v22, %v717_v24  ;;  %v11064_v20 = vcombine.high %v4070_v11, %v4074_v12  ;;  %v4078_v22 = vld [vmem:[#allocation8 + $0x140] sm:$0xff] }
 0x28f   :  { %v11034_v57 = vcombine.high %v4039_v34, %v4043_v35  ;;  %v4082_v24 = vld [vmem:[#allocation8 + $0x160] sm:$0xff] }
 0x291   :  { %3792 = vmatpush1.bf16.msra.mxu0 %v10987_v41  ;;  %3956 = vmatpush1.bf16.msra.mxu1 %v10989_v42  ;;  %v11031_v41 = vcombine.low %v4038_v31, %v4042_v32  ;;  %v4047_v42 = vld [vmem:[#allocation8 + $0x48] sm:$0xff]  ;;  %v11072_v31 = vcombine.high %v4078_v22, %v4082_v24 }
 0x292   :  { %3793 = vmatprep.subr.bf16.mxu0 %v10996_v45  ;;  %3957 = vmatprep.subr.bf16.mxu1 %v10998_v46  ;;  %v4051_v45 = vld [vmem:[#allocation8 + $0x68] sm:$0xff]  ;;  %v11033_v46 = vcombine.low %v4039_v34, %v4043_v35  ;;  %v4086_v34 = vld [vmem:[#allocation8 + $0x180] sm:$0xff] }
 0x293   :  { %v11041_v60 = vcombine.low %v4047_v42, %v4051_v45  ;;  %v4090_v35 = vld [vmem:[#allocation8 + $0x1a0] sm:$0xff] }
 0x295   :  { %3794 = vmatpush1.bf16.msra.mxu0 %v10995_v52  ;;  %3958 = vmatpush1.bf16.msra.mxu1 %v10997_v16  ;;  %v11042_v52 = vcombine.high %v4047_v42, %v4051_v45  ;;  %v4055_v16 = vld [vmem:[#allocation8 + $0x88] sm:$0xff]  ;;  %v4098_v42 = vld [vmem:[#allocation8 + $0x1e0] sm:$0xff] }
 0x296   :  { %3795 = vmatprep.subr.bf16.mxu0 %v11004_v55  ;;  %3959 = vmatprep.subr.bf16.mxu1 %v11006_v23  ;;  %v4059_v55 = vld [vmem:[#allocation8 + $0xa8] sm:$0xff]  ;;  %v11039_v23 = vcombine.low %v4046_v39, %v4050_v40  ;;  %v11080_v39 = vcombine.high %v4086_v34, %v4090_v35 }
 0x297   :  { %v11050_v62 = vcombine.high %v4055_v16, %v4059_v55  ;;  %v4095_v45 = vld [vmem:[#allocation8 + $0x1c8] sm:$0xff] }
 0x299   :  { %3796 = vmatpush1.bf16.msra.mxu0 %v11003_v2  ;;  %3960 = vmatpush1.bf16.msra.mxu1 %v11005_v3  ;;  %v4063_v2 = vld [vmem:[#allocation8 + $0xc8] sm:$0xff] }
 0x29a   :  { %3797 = vmatprep.subr.bf16.mxu0 %v11012_v5  ;;  %3961 = vmatprep.subr.bf16.mxu1 %v11014_v6  ;;  %v4067_v3 = vld [vmem:[#allocation8 + $0xe8] sm:$0xff]  ;;  %v11047_v5 = vcombine.low %v4054_v48, %v4058_v50  ;;  %v11049_v6 = vcombine.low %v4055_v16, %v4059_v55  ;;  %v4102_v16 = vld [vmem:[#allocation8 + $0x200] sm:$0xff] }
 0x29b   :  { %v11058_v10 = vcombine.high %v4063_v2, %v4067_v3  ;;  %v4106_v55 = vld [vmem:[#allocation8 + $0x220] sm:$0xff] }
 0x29d   :  { %3798 = vmatpush1.bf16.msra.mxu0 %v11011_v15  ;;  %3962 = vmatpush1.bf16.msra.mxu1 %v11013_v18  ;;  %v4071_v15 = vld [vmem:[#allocation8 + $0x108] sm:$0xff] }
 0x29e   :  { %3799 = vmatprep.subr.bf16.mxu0 %v11020_v19  ;;  %3963 = vmatprep.subr.bf16.mxu1 %v11022_v59  ;;  %v4075_v18 = vld [vmem:[#allocation8 + $0x128] sm:$0xff]  ;;  %v11055_v19 = vcombine.low %v4062_v58, %v4066_v1  ;;  %v11057_v59 = vcombine.low %v4063_v2, %v4067_v3  ;;  %v11096_v58 = vcombine.high %v4102_v16, %v4106_v55  ;;  %v4110_v2 = vld [vmem:[#allocation8 + $0x240] sm:$0xff] }
 0x29f   :  { %v11066_v21 = vcombine.high %v4071_v15, %v4075_v18  ;;  %v4114_v3 = vld [vmem:[#allocation8 + $0x260] sm:$0xff] }
 0x2a1   :  { %3800 = vmatpush1.bf16.msra.mxu0 %v11019_v26  ;;  %3964 = vmatpush1.bf16.msra.mxu1 %v11021_v27  ;;  %v4079_v26 = vld [vmem:[#allocation8 + $0x148] sm:$0xff] }
 0x2a2   :  { %3801 = vmatprep.subr.bf16.mxu0 %v11028_v29  ;;  %3965 = vmatprep.subr.bf16.mxu1 %v11030_v30  ;;  %v4083_v27 = vld [vmem:[#allocation8 + $0x168] sm:$0xff]  ;;  %v11063_v29 = vcombine.low %v4070_v11, %v4074_v12  ;;  %v11065_v30 = vcombine.low %v4071_v15, %v4075_v18  ;;  %v11104_v11 = vcombine.high %v4110_v2, %v4114_v3  ;;  %v4118_v15 = vld [vmem:[#allocation8 + $0x280] sm:$0xff] }
 0x2a3   :  { %v11074_v32 = vcombine.high %v4079_v26, %v4083_v27  ;;  %v4122_v18 = vld [vmem:[#allocation8 + $0x2a0] sm:$0xff] }
 0x2a5   :  { %3802 = vmatpush1.bf16.msra.mxu0 %v11027_v63  ;;  %3966 = vmatpush1.bf16.msra.mxu1 %v11029_v37  ;;  %v4087_v63 = vld [vmem:[#allocation8 + $0x188] sm:$0xff] }
 0x2a6   :  { %7152 = vmatprep.subr.bf16.mxu0 %v11032_v38  ;;  %7316 = vmatprep.subr.bf16.mxu1 %v11034_v57  ;;  %v4091_v37 = vld [vmem:[#allocation8 + $0x1a8] sm:$0xff]  ;;  %v11071_v38 = vcombine.low %v4078_v22, %v4082_v24  ;;  %v11073_v57 = vcombine.low %v4079_v26, %v4083_v27  ;;  %v11112_v22 = vcombine.high %v4118_v15, %v4122_v18  ;;  %v4126_v26 = vld [vmem:[#allocation8 + $0x2c0] sm:$0xff] }
 0x2a7   :  { %v11082_v40 = vcombine.high %v4087_v63, %v4091_v37  ;;  %v11081_v48 = vcombine.low %v4087_v63, %v4091_v37  ;;  %v4130_v27 = vld [vmem:[#allocation8 + $0x2e0] sm:$0xff] }
 0x2a8   :  { %3804 = vmatmul.mubr.bf16.vlgmr.msra.gmra.mrb[4].mxu0 %v13129_v28  ;;  %3968 = vmatmul.mubr.bf16.vlgmr.msra.gmra.mrb[4].mxu1 %v13129_v28  ;;  %v4134_v63 = vld [vmem:[#allocation8 + $0x300] sm:$0xff] }
 0x2a9   :  { %7153 = vmatpush1.bf16.msra.mxu0 %v11031_v41  ;;  %7184 = vmatprep.mubr.bf16.mxu0 %v13179_v51  ;;  %v4094_v41 = vld [vmem:[#allocation8 + $0x1c0] sm:$0xff] }
 0x2aa   :  { %7317 = vmatpush1.bf16.msra.mxu1 %v11033_v46  ;;  %7348 = vmatprep.mubr.bf16.mxu1 %v13179_v51  ;;  %v4099_v46 = vld [vmem:[#allocation8 + $0x1e8] sm:$0xff]  ;;  %v11088_v50 = vcombine.high %v4094_v41, %v4098_v42  ;;  %v4138_v37 = vld [vmem:[#allocation8 + $0x320] sm:$0xff] }
 0x2ab   :  { %7154 = vmatprep.subr.bf16.mxu0 %v11040_v47  ;;  %7318 = vmatprep.subr.bf16.mxu1 %v11042_v52  ;;  %v11079_v47 = vcombine.low %v4086_v34, %v4090_v35  ;;  %v11090_v52 = vcombine.high %v4095_v45, %v4099_v46  ;;  %v11120_v34 = vcombine.high %v4126_v26, %v4130_v27 }
 0x2ad   :  { %7155 = vmatpush1.bf16.msra.mxu0 %v11039_v23  ;;  %v4103_v23 = vld [vmem:[#allocation8 + $0x208] sm:$0xff] }
 0x2ae   :  { %7319 = vmatpush1.bf16.msra.mxu1 %v11041_v60  ;;  %7156 = vmatprep.subr.bf16.mxu0 %v11048_v61  ;;  %v4107_v60 = vld [vmem:[#allocation8 + $0x228] sm:$0xff]  ;;  %v11087_v61 = vcombine.low %v4094_v41, %v4098_v42  ;;  %v11128_v41 = vcombine.high %v4134_v63, %v4138_v37 }
 0x2af   :  { %7320 = vmatprep.subr.bf16.mxu1 %v11050_v62  ;;  %v11089_v62 = vcombine.low %v4095_v45, %v4099_v46  ;;  %v11098_v1 = vcombine.high %v4103_v23, %v4107_v60  ;;  %v4142_v45 = vld [vmem:[#allocation8 + $0x340] sm:$0xff] }
 0x2b0   :  { %v4146_v46 = vld [vmem:[#allocation8 + $0x360] sm:$0xff] }
 0x2b1   :  { %7157 = vmatpush1.bf16.msra.mxu0 %v11047_v5  ;;  %v4111_v5 = vld [vmem:[#allocation8 + $0x248] sm:$0xff] }
 0x2b2   :  { %7321 = vmatpush1.bf16.msra.mxu1 %v11049_v6  ;;  %7158 = vmatprep.subr.bf16.mxu0 %v11056_v8  ;;  %v4115_v6 = vld [vmem:[#allocation8 + $0x268] sm:$0xff]  ;;  %v11095_v8 = vcombine.low %v4102_v16, %v4106_v55  ;;  %v11136_v16 = vcombine.high %v4142_v45, %v4146_v46 }
 0x2b3   :  { %7322 = vmatprep.subr.bf16.mxu1 %v11058_v10  ;;  %v11097_v10 = vcombine.low %v4103_v23, %v4107_v60  ;;  %v11106_v12 = vcombine.high %v4111_v5, %v4115_v6  ;;  %v4150_v23 = vld [vmem:[#allocation8 + $0x380] sm:$0xff] }
 0x2b4   :  { %v4154_v60 = vld [vmem:[#allocation8 + $0x3a0] sm:$0xff] }
 0x2b5   :  { %7159 = vmatpush1.bf16.msra.mxu0 %v11055_v19  ;;  %v4119_v19 = vld [vmem:[#allocation8 + $0x288] sm:$0xff] }
 0x2b6   :  { %7323 = vmatpush1.bf16.msra.mxu1 %v11057_v59  ;;  %7160 = vmatprep.subr.bf16.mxu0 %v11064_v20  ;;  %v4123_v59 = vld [vmem:[#allocation8 + $0x2a8] sm:$0xff]  ;;  %v11103_v20 = vcombine.low %v4110_v2, %v4114_v3  ;;  %v11144_v2 = vcombine.high %v4150_v23, %v4154_v60 }
 0x2b7   :  { %7324 = vmatprep.subr.bf16.mxu1 %v11066_v21  ;;  %v11105_v21 = vcombine.low %v4111_v5, %v4115_v6  ;;  %v11114_v24 = vcombine.high %v4119_v19, %v4123_v59  ;;  %v4158_v5 = vld [vmem:[#allocation8 + $0x3c0] sm:$0xff] }
 0x2b8   :  { %v4162_v6 = vld [vmem:[#allocation8 + $0x3e0] sm:$0xff] }
 0x2b9   :  { %7161 = vmatpush1.bf16.msra.mxu0 %v11063_v29  ;;  %v4127_v29 = vld [vmem:[#allocation8 + $0x2c8] sm:$0xff] }
 0x2ba   :  { %7325 = vmatpush1.bf16.msra.mxu1 %v11065_v30  ;;  %7162 = vmatprep.subr.bf16.mxu0 %v11072_v31  ;;  %v4131_v30 = vld [vmem:[#allocation8 + $0x2e8] sm:$0xff]  ;;  %v11111_v31 = vcombine.low %v4118_v15, %v4122_v18  ;;  %v11152_v15 = vcombine.high %v4158_v5, %v4162_v6 }
 0x2bb   :  { %7326 = vmatprep.subr.bf16.mxu1 %v11074_v32  ;;  %v11113_v32 = vcombine.low %v4119_v19, %v4123_v59  ;;  %v11122_v35 = vcombine.high %v4127_v29, %v4131_v30  ;;  %v4166_v19 = vld [vmem:[#allocation8 + $0x400] sm:$0xff] }
 0x2bc   :  { %v4170_v59 = vld [vmem:[#allocation8 + $0x420] sm:$0xff] }
 0x2bd   :  { %7163 = vmatpush1.bf16.msra.mxu0 %v11071_v38  ;;  %v4135_v38 = vld [vmem:[#allocation8 + $0x308] sm:$0xff] }
 0x2be   :  { %7327 = vmatpush1.bf16.msra.mxu1 %v11073_v57  ;;  %7164 = vmatprep.subr.bf16.mxu0 %v11080_v39  ;;  %v4139_v57 = vld [vmem:[#allocation8 + $0x328] sm:$0xff]  ;;  %v11119_v39 = vcombine.low %v4126_v26, %v4130_v27  ;;  %v11160_v26 = vcombine.high %v4166_v19, %v4170_v59 }
 0x2bf   :  { %7328 = vmatprep.subr.bf16.mxu1 %v11082_v40  ;;  %v11121_v40 = vcombine.low %v4127_v29, %v4131_v30  ;;  %v11130_v42 = vcombine.high %v4135_v38, %v4139_v57  ;;  %v4174_v29 = vld [vmem:[#allocation8 + $0x440] sm:$0xff] }
 0x2c0   :  { %v4178_v30 = vld [vmem:[#allocation8 + $0x460] sm:$0xff] }
 0x2c1   :  { %7165 = vmatpush1.bf16.msra.mxu0 %v11079_v47  ;;  %v4143_v47 = vld [vmem:[#allocation8 + $0x348] sm:$0xff] }
 0x2c2   :  { %7329 = vmatpush1.bf16.msra.mxu1 %v11081_v48  ;;  %7166 = vmatprep.subr.bf16.mxu0 %v11088_v50  ;;  %v4147_v48 = vld [vmem:[#allocation8 + $0x368] sm:$0xff]  ;;  %v11127_v50 = vcombine.low %v4134_v63, %v4138_v37  ;;  %v11168_v37 = vcombine.high %v4174_v29, %v4178_v30 }
 0x2c3   :  { %7330 = vmatprep.subr.bf16.mxu1 %v11090_v52  ;;  %v11129_v52 = vcombine.low %v4135_v38, %v4139_v57  ;;  %v11138_v55 = vcombine.high %v4143_v47, %v4147_v48  ;;  %v4182_v38 = vld [vmem:[#allocation8 + $0x480] sm:$0xff] }
 0x2c4   :  { %v4186_v57 = vld [vmem:[#allocation8 + $0x4a0] sm:$0xff] }
 0x2c5   :  { %7167 = vmatpush1.bf16.msra.mxu0 %v11087_v61  ;;  %v4151_v61 = vld [vmem:[#allocation8 + $0x388] sm:$0xff] }
 0x2c6   :  { %7331 = vmatpush1.bf16.msra.mxu1 %v11089_v62  ;;  %7168 = vmatprep.subr.bf16.mxu0 %v11096_v58  ;;  %v4155_v62 = vld [vmem:[#allocation8 + $0x3a8] sm:$0xff]  ;;  %v11135_v58 = vcombine.low %v4142_v45, %v4146_v46  ;;  %v11176_v46 = vcombine.high %v4182_v38, %v4186_v57 }
 0x2c7   :  { %7332 = vmatprep.subr.bf16.mxu1 %v11098_v1  ;;  %v11137_v1 = vcombine.low %v4143_v47, %v4147_v48  ;;  %v11146_v3 = vcombine.high %v4151_v61, %v4155_v62  ;;  %v4194_v48 = vld [vmem:[#allocation8 + $0x4e0] sm:$0xff] }
 0x2c9   :  { %7169 = vmatpush1.bf16.msra.mxu0 %v11095_v8  ;;  %v4159_v8 = vld [vmem:[#allocation8 + $0x3c8] sm:$0xff] }
 0x2ca   :  { %7333 = vmatpush1.bf16.msra.mxu1 %v11097_v10  ;;  %7170 = vmatprep.subr.bf16.mxu0 %v11104_v11  ;;  %v4163_v10 = vld [vmem:[#allocation8 + $0x3e8] sm:$0xff]  ;;  %v11143_v11 = vcombine.low %v4150_v23, %v4154_v60 }
 0x2cb   :  { %7334 = vmatprep.subr.bf16.mxu1 %v11106_v12  ;;  %v11145_v12 = vcombine.low %v4151_v61, %v4155_v62  ;;  %v11154_v18 = vcombine.high %v4159_v8, %v4163_v10  ;;  %v4198_v61 = vld [vmem:[#allocation8 + $0x500] sm:$0xff] }
 0x2cc   :  { %v4202_v62 = vld [vmem:[#allocation8 + $0x520] sm:$0xff] }
 0x2cd   :  { %7171 = vmatpush1.bf16.msra.mxu0 %v11103_v20  ;;  %v4167_v20 = vld [vmem:[#allocation8 + $0x408] sm:$0xff] }
 0x2ce   :  { %7335 = vmatpush1.bf16.msra.mxu1 %v11105_v21  ;;  %7172 = vmatprep.subr.bf16.mxu0 %v11112_v22  ;;  %v4171_v21 = vld [vmem:[#allocation8 + $0x428] sm:$0xff]  ;;  %v11151_v22 = vcombine.low %v4158_v5, %v4162_v6  ;;  %v11192_v5 = vcombine.high %v4198_v61, %v4202_v62 }
 0x2cf   :  { %7336 = vmatprep.subr.bf16.mxu1 %v11114_v24  ;;  %v11153_v24 = vcombine.low %v4159_v8, %v4163_v10  ;;  %v11162_v27 = vcombine.high %v4167_v20, %v4171_v21  ;;  %v11161_v63 = vcombine.low %v4167_v20, %v4171_v21  ;;  %v4206_v8 = vld [vmem:[#allocation8 + $0x540] sm:$0xff] }
 0x2d0   :  { %v4210_v10 = vld [vmem:[#allocation8 + $0x560] sm:$0xff] }
 0x2d1   :  { %7173 = vmatpush1.bf16.msra.mxu0 %v11111_v31  ;;  %v11159_v31 = vcombine.low %v4166_v19, %v4170_v59  ;;  %v11200_v19 = vcombine.high %v4206_v8, %v4210_v10  ;;  %v4214_v20 = vld [vmem:[#allocation8 + $0x580] sm:$0xff] }
 0x2d2   :  { %7337 = vmatpush1.bf16.msra.mxu1 %v11113_v32  ;;  %7174 = vmatprep.subr.bf16.mxu0 %v11120_v34  ;;  %v4175_v32 = vld [vmem:[#allocation8 + $0x448] sm:$0xff]  ;;  %v4218_v21 = vld [vmem:[#allocation8 + $0x5a0] sm:$0xff] }
 0x2d3   :  { %7338 = vmatprep.subr.bf16.mxu1 %v11122_v35  ;;  %v4179_v34 = vld [vmem:[#allocation8 + $0x468] sm:$0xff]  ;;  %v13187_v35 = vpack.c.bf16 %v13163_v49, %v13163_v49  ;;  %v11167_v49 = vcombine.low %v4174_v29, %v4178_v30  ;;  %v11208_v29 = vcombine.high %v4214_v20, %v4218_v21 }
 0x2d4   :  { %v11169_v45 = vcombine.low %v4175_v32, %v4179_v34 }
 0x2d5   :  { %7175 = vmatpush1.bf16.msra.mxu0 %v11119_v39  ;;  %v13191_v39 = vpack.c.bf16 %v13169_v0, %v13169_v0  ;;  %v4190_v0 = vld [vmem:[#allocation8 + $0x4c0] sm:$0xff] }
 0x2d6   :  { %7339 = vmatpush1.bf16.msra.mxu1 %v11121_v40  ;;  %7176 = vmatprep.subr.bf16.mxu0 %v11128_v41  ;;  %v11170_v40 = vcombine.high %v4175_v32, %v4179_v34  ;;  %v4183_v41 = vld [vmem:[#allocation8 + $0x488] sm:$0xff]  ;;  %v11184_v23 = vcombine.high %v4190_v0, %v4194_v48  ;;  %v4226_v32 = vld [vmem:[#allocation8 + $0x5e0] sm:$0xff] }
 0x2d7   :  { %7340 = vmatprep.subr.bf16.mxu1 %v11130_v42  ;;  %v4187_v42 = vld [vmem:[#allocation8 + $0x4a8] sm:$0xff] }
 0x2d8   :  { %v11178_v47 = vcombine.high %v4183_v41, %v4187_v42  ;;  %v4223_v34 = vld [vmem:[#allocation8 + $0x5c8] sm:$0xff] }
 0x2d9   :  { %7177 = vmatpush1.bf16.msra.mxu0 %v11127_v50  ;;  %v4191_v50 = vld [vmem:[#allocation8 + $0x4c8] sm:$0xff] }
 0x2da   :  { %7341 = vmatpush1.bf16.msra.mxu1 %v11129_v52  ;;  %7178 = vmatprep.subr.bf16.mxu0 %v11136_v16  ;;  %v4195_v52 = vld [vmem:[#allocation8 + $0x4e8] sm:$0xff]  ;;  %v11175_v16 = vcombine.low %v4182_v38, %v4186_v57 }
 0x2db   :  { %7342 = vmatprep.subr.bf16.mxu1 %v11138_v55  ;;  %v11177_v55 = vcombine.low %v4183_v41, %v4187_v42  ;;  %v11186_v60 = vcombine.high %v4191_v50, %v4195_v52  ;;  %v4230_v41 = vld [vmem:[#allocation8 + $0x600] sm:$0xff] }
 0x2dc   :  { %v4234_v42 = vld [vmem:[#allocation8 + $0x620] sm:$0xff] }
 0x2dd   :  { %7179 = vmatpush1.bf16.msra.mxu0 %v11135_v58  ;;  %v4199_v58 = vld [vmem:[#allocation8 + $0x508] sm:$0xff] }
 0x2de   :  { %7343 = vmatpush1.bf16.msra.mxu1 %v11137_v1  ;;  %7180 = vmatprep.subr.bf16.mxu0 %v11144_v2  ;;  %v4203_v1 = vld [vmem:[#allocation8 + $0x528] sm:$0xff]  ;;  %v11183_v2 = vcombine.low %v4190_v0, %v4194_v48  ;;  %v11224_v0 = vcombine.high %v4230_v41, %v4234_v42 }
 0x2df   :  { %7344 = vmatprep.subr.bf16.mxu1 %v11146_v3  ;;  %v11185_v3 = vcombine.low %v4191_v50, %v4195_v52  ;;  %v11194_v6 = vcombine.high %v4199_v58, %v4203_v1  ;;  %v4238_v50 = vld [vmem:[#allocation8 + $0x640] sm:$0xff] }
 0x2e0   :  { %v4242_v52 = vld [vmem:[#allocation8 + $0x660] sm:$0xff] }
 0x2e1   :  { %7181 = vmatpush1.bf16.msra.mxu0 %v11143_v11  ;;  %v4207_v11 = vld [vmem:[#allocation8 + $0x548] sm:$0xff] }
 0x2e2   :  { %7345 = vmatpush1.bf16.msra.mxu1 %v11145_v12  ;;  %7182 = vmatprep.subr.bf16.mxu0 %v11152_v15  ;;  %v4211_v12 = vld [vmem:[#allocation8 + $0x568] sm:$0xff]  ;;  %v11191_v15 = vcombine.low %v4198_v61, %v4202_v62  ;;  %v11232_v61 = vcombine.high %v4238_v50, %v4242_v52 }
 0x2e3   :  { %7346 = vmatprep.subr.bf16.mxu1 %v11154_v18  ;;  %v11193_v18 = vcombine.low %v4199_v58, %v4203_v1  ;;  %v11202_v59 = vcombine.high %v4207_v11, %v4211_v12  ;;  %v4246_v58 = vld [vmem:[#allocation8 + $0x680] sm:$0xff] }
 0x2e4   :  { %v4250_v1 = vld [vmem:[#allocation8 + $0x6a0] sm:$0xff] }
 0x2e5   :  { %7183 = vmatpush1.bf16.msra.mxu0 %v11151_v22  ;;  %v4215_v22 = vld [vmem:[#allocation8 + $0x588] sm:$0xff] }
 0x2e6   :  { %7347 = vmatpush1.bf16.msra.mxu1 %v11153_v24  ;;  %7193 = vmatprep.subr.bf16.mxu0 %v11160_v26  ;;  %v4219_v24 = vld [vmem:[#allocation8 + $0x5a8] sm:$0xff]  ;;  %v11199_v26 = vcombine.low %v4206_v8, %v4210_v10  ;;  %v11240_v8 = vcombine.high %v4246_v58, %v4250_v1 }
 0x2e7   :  { %7357 = vmatprep.subr.bf16.mxu1 %v11162_v27  ;;  %v11201_v27 = vcombine.low %v4207_v11, %v4211_v12  ;;  %v11210_v30 = vcombine.high %v4215_v22, %v4219_v24  ;;  %v11209_v38 = vcombine.low %v4215_v22, %v4219_v24  ;;  %v4254_v11 = vld [vmem:[#allocation8 + $0x6c0] sm:$0xff] }
 0x2e8   :  { %7185 = vmatmul.mubr.bf16.vlgmr.msra.gmra.mrb[8].mxu0 %v13187_v35  ;;  %v4258_v12 = vld [vmem:[#allocation8 + $0x6e0] sm:$0xff] }
 0x2e9   :  { %7349 = vmatmul.mubr.bf16.vlgmr.msra.gmra.mrb[8].mxu1 %v13187_v35  ;;  %7194 = vmatpush1.bf16.msra.mxu0 %v11159_v31  ;;  %v4222_v31 = vld [vmem:[#allocation8 + $0x5c0] sm:$0xff] }
 0x2ea   :  { %7225 = vmatprep.mubr.bf16.mxu0 %v13191_v39  ;;  %7358 = vmatpush1.bf16.msra.mxu1 %v11161_v63  ;;  %v4227_v63 = vld [vmem:[#allocation8 + $0x5e8] sm:$0xff]  ;;  %v11216_v57 = vcombine.high %v4222_v31, %v4226_v32  ;;  %v4262_v22 = vld [vmem:[#allocation8 + $0x700] sm:$0xff] }
 0x2eb   :  { %7389 = vmatprep.mubr.bf16.mxu1 %v13191_v39  ;;  %7195 = vmatprep.subr.bf16.mxu0 %v11168_v37  ;;  %v11207_v37 = vcombine.low %v4214_v20, %v4218_v21  ;;  %v11248_v20 = vcombine.high %v4254_v11, %v4258_v12  ;;  %v4266_v24 = vld [vmem:[#allocation8 + $0x720] sm:$0xff] }
 0x2ec   :  { %7359 = vmatprep.subr.bf16.mxu1 %v11170_v40  ;;  %v11218_v40 = vcombine.high %v4223_v34, %v4227_v63 }
 0x2ed   :  { %7196 = vmatpush1.bf16.msra.mxu0 %v11167_v49  ;;  %v4231_v49 = vld [vmem:[#allocation8 + $0x608] sm:$0xff] }
 0x2ee   :  { %7360 = vmatpush1.bf16.msra.mxu1 %v11169_v45  ;;  %7197 = vmatprep.subr.bf16.mxu0 %v11176_v46  ;;  %v4235_v45 = vld [vmem:[#allocation8 + $0x628] sm:$0xff]  ;;  %v11215_v46 = vcombine.low %v4222_v31, %v4226_v32  ;;  %v11256_v31 = vcombine.high %v4262_v22, %v4266_v24 }
 0x2ef   :  { %7361 = vmatprep.subr.bf16.mxu1 %v11178_v47  ;;  %v11217_v47 = vcombine.low %v4223_v34, %v4227_v63  ;;  %v11226_v48 = vcombine.high %v4231_v49, %v4235_v45  ;;  %v4270_v34 = vld [vmem:[#allocation8 + $0x740] sm:$0xff] }
 0x2f0   :  { %v4274_v63 = vld [vmem:[#allocation8 + $0x760] sm:$0xff] }
 0x2f1   :  { %7198 = vmatpush1.bf16.msra.mxu0 %v11175_v16  ;;  %v4239_v16 = vld [vmem:[#allocation8 + $0x648] sm:$0xff] }
 0x2f2   :  { %7362 = vmatpush1.bf16.msra.mxu1 %v11177_v55  ;;  %7199 = vmatprep.subr.bf16.mxu0 %v11184_v23  ;;  %v4243_v55 = vld [vmem:[#allocation8 + $0x668] sm:$0xff]  ;;  %v11223_v23 = vcombine.low %v4230_v41, %v4234_v42  ;;  %v11264_v41 = vcombine.high %v4270_v34, %v4274_v63 }
 0x2f3   :  { %7363 = vmatprep.subr.bf16.mxu1 %v11186_v60  ;;  %v11225_v60 = vcombine.low %v4231_v49, %v4235_v45  ;;  %v11234_v62 = vcombine.high %v4239_v16, %v4243_v55  ;;  %v4278_v49 = vld [vmem:[#allocation8 + $0x780] sm:$0xff] }
 0x2f4   :  { %v4282_v45 = vld [vmem:[#allocation8 + $0x7a0] sm:$0xff] }
 0x2f5   :  { %7200 = vmatpush1.bf16.msra.mxu0 %v11183_v2  ;;  %v4247_v2 = vld [vmem:[#allocation8 + $0x688] sm:$0xff] }
 0x2f6   :  { %7364 = vmatpush1.bf16.msra.mxu1 %v11185_v3  ;;  %7201 = vmatprep.subr.bf16.mxu0 %v11192_v5  ;;  %v4251_v3 = vld [vmem:[#allocation8 + $0x6a8] sm:$0xff]  ;;  %v11231_v5 = vcombine.low %v4238_v50, %v4242_v52  ;;  %v11272_v50 = vcombine.high %v4278_v49, %v4282_v45 }
 0x2f7   :  { %7365 = vmatprep.subr.bf16.mxu1 %v11194_v6  ;;  %v11233_v6 = vcombine.low %v4239_v16, %v4243_v55  ;;  %v11242_v10 = vcombine.high %v4247_v2, %v4251_v3  ;;  %v4286_v16 = vld [vmem:[#allocation8 + $0x7c0] sm:$0xff] }
 0x2f8   :  { %v4290_v55 = vld [vmem:[#allocation8 + $0x7e0] sm:$0xff] }
 0x2f9   :  { %7202 = vmatpush1.bf16.msra.mxu0 %v11191_v15  ;;  %v4255_v15 = vld [vmem:[#allocation8 + $0x6c8] sm:$0xff] }
 0x2fa   :  { %7366 = vmatpush1.bf16.msra.mxu1 %v11193_v18  ;;  %7203 = vmatprep.subr.bf16.mxu0 %v11200_v19  ;;  %v4259_v18 = vld [vmem:[#allocation8 + $0x6e8] sm:$0xff]  ;;  %v11239_v19 = vcombine.low %v4246_v58, %v4250_v1  ;;  %v11280_v58 = vcombine.high %v4286_v16, %v4290_v55 }
 0x2fb   :  { %7367 = vmatprep.subr.bf16.mxu1 %v11202_v59  ;;  %v11241_v59 = vcombine.low %v4247_v2, %v4251_v3  ;;  %v11250_v21 = vcombine.high %v4255_v15, %v4259_v18  ;;  %v4294_v2 = vld [vmem:[#allocation8 + $0x800] sm:$0xff] }
 0x2fc   :  { %v4298_v3 = vld [vmem:[#allocation8 + $0x820] sm:$0xff] }
 0x2fd   :  { %7204 = vmatpush1.bf16.msra.mxu0 %v11199_v26  ;;  %v4263_v26 = vld [vmem:[#allocation8 + $0x708] sm:$0xff] }
 0x2fe   :  { %7368 = vmatpush1.bf16.msra.mxu1 %v11201_v27  ;;  %7205 = vmatprep.subr.bf16.mxu0 %v11208_v29  ;;  %v4267_v27 = vld [vmem:[#allocation8 + $0x728] sm:$0xff]  ;;  %v11247_v29 = vcombine.low %v4254_v11, %v4258_v12  ;;  %v11288_v11 = vcombine.high %v4294_v2, %v4298_v3 }
 0x2ff   :  { %7369 = vmatprep.subr.bf16.mxu1 %v11210_v30  ;;  %v11249_v30 = vcombine.low %v4255_v15, %v4259_v18  ;;  %v11258_v32 = vcombine.high %v4263_v26, %v4267_v27  ;;  %v4302_v15 = vld [vmem:[#allocation8 + $0x840] sm:$0xff] }
 0x300   :  { %v4306_v18 = vld [vmem:[#allocation8 + $0x860] sm:$0xff] }
 0x301   :  { %7206 = vmatpush1.bf16.msra.mxu0 %v11207_v37  ;;  %v4271_v37 = vld [vmem:[#allocation8 + $0x748] sm:$0xff] }
 0x302   :  { %7370 = vmatpush1.bf16.msra.mxu1 %v11209_v38  ;;  %7207 = vmatprep.subr.bf16.mxu0 %v11216_v57  ;;  %v4275_v38 = vld [vmem:[#allocation8 + $0x768] sm:$0xff]  ;;  %v11255_v57 = vcombine.low %v4262_v22, %v4266_v24  ;;  %v11296_v24 = vcombine.high %v4302_v15, %v4306_v18 }
 0x303   :  { %7371 = vmatprep.subr.bf16.mxu1 %v11218_v40  ;;  %v11257_v40 = vcombine.low %v4263_v26, %v4267_v27  ;;  %v11266_v42 = vcombine.high %v4271_v37, %v4275_v38  ;;  %v4310_v27 = vld [vmem:[#allocation8 + $0x880] sm:$0xff] }
 0x305   :  { %7208 = vmatpush1.bf16.msra.mxu0 %v11215_v46  ;;  %v4279_v46 = vld [vmem:[#allocation8 + $0x788] sm:$0xff] }
 0x306   :  { %7372 = vmatpush1.bf16.msra.mxu1 %v11217_v47  ;;  %7209 = vmatprep.subr.bf16.mxu0 %v11224_v0  ;;  %v4283_v47 = vld [vmem:[#allocation8 + $0x7a8] sm:$0xff]  ;;  %v11263_v0 = vcombine.low %v4270_v34, %v4274_v63 }
 0x307   :  { %7373 = vmatprep.subr.bf16.mxu1 %v11226_v48  ;;  %v11265_v48 = vcombine.low %v4271_v37, %v4275_v38  ;;  %v11274_v52 = vcombine.high %v4279_v46, %v4283_v47  ;;  %v4318_v37 = vld [vmem:[#allocation8 + $0x8c0] sm:$0xff] }
 0x308   :  { %v4322_v38 = vld [vmem:[#allocation8 + $0x8e0] sm:$0xff] }
 0x309   :  { %7210 = vmatpush1.bf16.msra.mxu0 %v11223_v23  ;;  %v4287_v23 = vld [vmem:[#allocation8 + $0x7c8] sm:$0xff] }
 0x30a   :  { %7374 = vmatpush1.bf16.msra.mxu1 %v11225_v60  ;;  %7211 = vmatprep.subr.bf16.mxu0 %v11232_v61  ;;  %v4291_v60 = vld [vmem:[#allocation8 + $0x7e8] sm:$0xff]  ;;  %v11271_v61 = vcombine.low %v4278_v49, %v4282_v45  ;;  %v11312_v49 = vcombine.high %v4318_v37, %v4322_v38 }
 0x30b   :  { %7375 = vmatprep.subr.bf16.mxu1 %v11234_v62  ;;  %v11273_v62 = vcombine.low %v4279_v46, %v4283_v47  ;;  %v11282_v1 = vcombine.high %v4287_v23, %v4291_v60  ;;  %v4326_v46 = vld [vmem:[#allocation8 + $0x900] sm:$0xff] }
 0x30c   :  { %v4330_v47 = vld [vmem:[#allocation8 + $0x920] sm:$0xff] }
 0x30d   :  { %7212 = vmatpush1.bf16.msra.mxu0 %v11231_v5  ;;  %v4295_v5 = vld [vmem:[#allocation8 + $0x808] sm:$0xff] }
 0x30e   :  { %7376 = vmatpush1.bf16.msra.mxu1 %v11233_v6  ;;  %7213 = vmatprep.subr.bf16.mxu0 %v11240_v8  ;;  %v4299_v6 = vld [vmem:[#allocation8 + $0x828] sm:$0xff]  ;;  %v11279_v8 = vcombine.low %v4286_v16, %v4290_v55  ;;  %v11320_v16 = vcombine.high %v4326_v46, %v4330_v47 }
 0x30f   :  { %7377 = vmatprep.subr.bf16.mxu1 %v11242_v10  ;;  %v11281_v10 = vcombine.low %v4287_v23, %v4291_v60  ;;  %v11290_v12 = vcombine.high %v4295_v5, %v4299_v6  ;;  %v11289_v22 = vcombine.low %v4295_v5, %v4299_v6  ;;  %v4334_v23 = vld [vmem:[#allocation8 + $0x940] sm:$0xff] }
 0x310   :  { %v4338_v60 = vld [vmem:[#allocation8 + $0x960] sm:$0xff] }
 0x311   :  { %7214 = vmatpush1.bf16.msra.mxu0 %v11239_v19  ;;  %v4303_v19 = vld [vmem:[#allocation8 + $0x848] sm:$0xff]  ;;  %v4342_v5 = vld [vmem:[#allocation8 + $0x980] sm:$0xff] }
 0x312   :  { %7378 = vmatpush1.bf16.msra.mxu1 %v11241_v59  ;;  %7215 = vmatprep.subr.bf16.mxu0 %v11248_v20  ;;  %v4307_v59 = vld [vmem:[#allocation8 + $0x868] sm:$0xff]  ;;  %v11287_v20 = vcombine.low %v4294_v2, %v4298_v3  ;;  %v11328_v2 = vcombine.high %v4334_v23, %v4338_v60  ;;  %v4346_v6 = vld [vmem:[#allocation8 + $0x9a0] sm:$0xff] }
 0x313   :  { %7379 = vmatprep.subr.bf16.mxu1 %v11250_v21  ;;  %v13199_v21 = vpack.c.bf16 %v13165_v56, %v13165_v56  ;;  %v11298_v26 = vcombine.high %v4303_v19, %v4307_v59  ;;  %v11297_v56 = vcombine.low %v4303_v19, %v4307_v59  ;;  %v4350_v19 = vld [vmem:[#allocation8 + $0x9c0] sm:$0xff] }
 0x314   :  { %v4354_v59 = vld [vmem:[#allocation8 + $0x9e0] sm:$0xff] }
 0x315   :  { %7216 = vmatpush1.bf16.msra.mxu0 %v11247_v29  ;;  %v4314_v29 = vld [vmem:[#allocation8 + $0x8a0] sm:$0xff] }
 0x316   :  { %7380 = vmatpush1.bf16.msra.mxu1 %v11249_v30  ;;  %7217 = vmatprep.subr.bf16.mxu0 %v11256_v31  ;;  %v4311_v30 = vld [vmem:[#allocation8 + $0x888] sm:$0xff]  ;;  %v11304_v34 = vcombine.high %v4310_v27, %v4314_v29 }
 0x317   :  { %7381 = vmatprep.subr.bf16.mxu1 %v11258_v32  ;;  %v4315_v31 = vld [vmem:[#allocation8 + $0x8a8] sm:$0xff]  ;;  %v11295_v32 = vcombine.low %v4302_v15, %v4306_v18  ;;  %v11336_v15 = vcombine.high %v4342_v5, %v4346_v6 }
 0x318   :  { %v11306_v63 = vcombine.high %v4311_v30, %v4315_v31 }
 0x319   :  { %7218 = vmatpush1.bf16.msra.mxu0 %v11255_v57  ;;  %v4319_v57 = vld [vmem:[#allocation8 + $0x8c8] sm:$0xff] }
 0x31a   :  { %7382 = vmatpush1.bf16.msra.mxu1 %v11257_v40  ;;  %7219 = vmatprep.subr.bf16.mxu0 %v11264_v41  ;;  %v4323_v40 = vld [vmem:[#allocation8 + $0x8e8] sm:$0xff]  ;;  %v11303_v41 = vcombine.low %v4310_v27, %v4314_v29  ;;  %v11344_v27 = vcombine.high %v4350_v19, %v4354_v59 }
 0x31b   :  { %7383 = vmatprep.subr.bf16.mxu1 %v11266_v42  ;;  %v11305_v42 = vcombine.low %v4311_v30, %v4315_v31  ;;  %v11314_v45 = vcombine.high %v4319_v57, %v4323_v40  ;;  %v4358_v30 = vld [vmem:[#allocation8 + $0xa00] sm:$0xff] }
 0x31c   :  { %v4362_v31 = vld [vmem:[#allocation8 + $0xa20] sm:$0xff] }
 0x31d   :  { %7220 = vmatpush1.bf16.msra.mxu0 %v11263_v0  ;;  %v4327_v0 = vld [vmem:[#allocation8 + $0x908] sm:$0xff] }
 0x31e   :  { %7384 = vmatpush1.bf16.msra.mxu1 %v11265_v48  ;;  %7221 = vmatprep.subr.bf16.mxu0 %v11272_v50  ;;  %v4331_v48 = vld [vmem:[#allocation8 + $0x928] sm:$0xff]  ;;  %v11311_v50 = vcombine.low %v4318_v37, %v4322_v38  ;;  %v11352_v37 = vcombine.high %v4358_v30, %v4362_v31 }
 0x31f   :  { %7385 = vmatprep.subr.bf16.mxu1 %v11274_v52  ;;  %v11313_v52 = vcombine.low %v4319_v57, %v4323_v40  ;;  %v11322_v55 = vcombine.high %v4327_v0, %v4331_v48  ;;  %v4366_v57 = vld [vmem:[#allocation8 + $0xa40] sm:$0xff] }
 0x320   :  { %v4370_v40 = vld [vmem:[#allocation8 + $0xa60] sm:$0xff] }
 0x321   :  { %7222 = vmatpush1.bf16.msra.mxu0 %v11271_v61  ;;  %v4335_v61 = vld [vmem:[#allocation8 + $0x948] sm:$0xff] }
 0x322   :  { %7386 = vmatpush1.bf16.msra.mxu1 %v11273_v62  ;;  %7223 = vmatprep.subr.bf16.mxu0 %v11280_v58  ;;  %v4339_v62 = vld [vmem:[#allocation8 + $0x968] sm:$0xff]  ;;  %v11319_v58 = vcombine.low %v4326_v46, %v4330_v47  ;;  %v11360_v46 = vcombine.high %v4366_v57, %v4370_v40 }
 0x323   :  { %7387 = vmatprep.subr.bf16.mxu1 %v11282_v1  ;;  %v11321_v1 = vcombine.low %v4327_v0, %v4331_v48  ;;  %v11330_v3 = vcombine.high %v4335_v61, %v4339_v62  ;;  %v4374_v0 = vld [vmem:[#allocation8 + $0xa80] sm:$0xff] }
 0x324   :  { %v4378_v48 = vld [vmem:[#allocation8 + $0xaa0] sm:$0xff] }
 0x325   :  { %7224 = vmatpush1.bf16.msra.mxu0 %v11279_v8  ;;  %v4343_v8 = vld [vmem:[#allocation8 + $0x988] sm:$0xff] }
 0x326   :  { %7388 = vmatpush1.bf16.msra.mxu1 %v11281_v10  ;;  %7234 = vmatprep.subr.bf16.mxu0 %v11288_v11  ;;  %v4347_v10 = vld [vmem:[#allocation8 + $0x9a8] sm:$0xff]  ;;  %v11327_v11 = vcombine.low %v4334_v23, %v4338_v60  ;;  %v11368_v23 = vcombine.high %v4374_v0, %v4378_v48 }
 0x327   :  { %7398 = vmatprep.subr.bf16.mxu1 %v11290_v12  ;;  %v11329_v12 = vcombine.low %v4335_v61, %v4339_v62  ;;  %v11338_v18 = vcombine.high %v4343_v8, %v4347_v10  ;;  %v4382_v61 = vld [vmem:[#allocation8 + $0xac0] sm:$0xff] }
 0x328   :  { %7226 = vmatmul.mubr.bf16.vlgmr.msra.gmra.mrb[8].mxu0 %v13199_v21  ;;  %v4386_v62 = vld [vmem:[#allocation8 + $0xae0] sm:$0xff] }
 0x329   :  { %7390 = vmatmul.mubr.bf16.vlgmr.msra.gmra.mrb[8].mxu1 %v13199_v21  ;;  %7235 = vmatpush1.bf16.msra.mxu0 %v11287_v20  ;;  %v4351_v20 = vld [vmem:[#allocation8 + $0x9c8] sm:$0xff] }
 0x32a   :  { %7399 = vmatpush1.bf16.msra.mxu1 %v11289_v22  ;;  %7236 = vmatprep.subr.bf16.mxu0 %v11296_v24  ;;  %v4355_v22 = vld [vmem:[#allocation8 + $0x9e8] sm:$0xff]  ;;  %v11335_v24 = vcombine.low %v4342_v5, %v4346_v6  ;;  %v11376_v5 = vcombine.high %v4382_v61, %v4386_v62 }
 0x32b   :  { %7400 = vmatprep.subr.bf16.mxu1 %v11298_v26  ;;  %v11337_v26 = vcombine.low %v4343_v8, %v4347_v10  ;;  %v11346_v29 = vcombine.high %v4351_v20, %v4355_v22  ;;  %v4390_v8 = vld [vmem:[#allocation8 + $0xb00] sm:$0xff] }
 0x32c   :  { %v4394_v10 = vld [vmem:[#allocation8 + $0xb20] sm:$0xff] }
 0x32d   :  { %7237 = vmatpush1.bf16.msra.mxu0 %v11295_v32  ;;  %v4359_v32 = vld [vmem:[#allocation8 + $0xa08] sm:$0xff] }
 0x32e   :  { %7401 = vmatpush1.bf16.msra.mxu1 %v11297_v56  ;;  %7238 = vmatprep.subr.bf16.mxu0 %v11304_v34  ;;  %v4363_v56 = vld [vmem:[#allocation8 + $0xa28] sm:$0xff]  ;;  %v11343_v34 = vcombine.low %v4350_v19, %v4354_v59  ;;  %v11384_v19 = vcombine.high %v4390_v8, %v4394_v10 }
 0x32f   :  { %7402 = vmatprep.subr.bf16.mxu1 %v11306_v63  ;;  %v11345_v63 = vcombine.low %v4351_v20, %v4355_v22  ;;  %v11354_v38 = vcombine.high %v4359_v32, %v4363_v56  ;;  %v4398_v20 = vld [vmem:[#allocation8 + $0xb40] sm:$0xff] }
 0x330   :  { %v4402_v22 = vld [vmem:[#allocation8 + $0xb60] sm:$0xff] }
 0x331   :  { %7239 = vmatpush1.bf16.msra.mxu0 %v11303_v41  ;;  %v4367_v41 = vld [vmem:[#allocation8 + $0xa48] sm:$0xff] }
 0x332   :  { %7403 = vmatpush1.bf16.msra.mxu1 %v11305_v42  ;;  %7240 = vmatprep.subr.bf16.mxu0 %v11312_v49  ;;  %v4371_v42 = vld [vmem:[#allocation8 + $0xa68] sm:$0xff]  ;;  %v11351_v49 = vcombine.low %v4358_v30, %v4362_v31  ;;  %v11392_v30 = vcombine.high %v4398_v20, %v4402_v22 }
 0x333   :  { %7404 = vmatprep.subr.bf16.mxu1 %v11314_v45  ;;  %v11353_v45 = vcombine.low %v4359_v32, %v4363_v56  ;;  %v11362_v47 = vcombine.high %v4367_v41, %v4371_v42  ;;  %v4406_v32 = vld [vmem:[#allocation8 + $0xb80] sm:$0xff] }
 0x334   :  { %v4410_v56 = vld [vmem:[#allocation8 + $0xba0] sm:$0xff] }
 0x335   :  { %7241 = vmatpush1.bf16.msra.mxu0 %v11311_v50  ;;  %v4375_v50 = vld [vmem:[#allocation8 + $0xa88] sm:$0xff] }
 0x336   :  { %7405 = vmatpush1.bf16.msra.mxu1 %v11313_v52  ;;  %7242 = vmatprep.subr.bf16.mxu0 %v11320_v16  ;;  %v4379_v52 = vld [vmem:[#allocation8 + $0xaa8] sm:$0xff]  ;;  %v11359_v16 = vcombine.low %v4366_v57, %v4370_v40  ;;  %v11400_v57 = vcombine.high %v4406_v32, %v4410_v56 }
 0x337   :  { %7406 = vmatprep.subr.bf16.mxu1 %v11322_v55  ;;  %v11361_v55 = vcombine.low %v4367_v41, %v4371_v42  ;;  %v11370_v60 = vcombine.high %v4375_v50, %v4379_v52  ;;  %v4414_v41 = vld [vmem:[#allocation8 + $0xbc0] sm:$0xff] }
 0x338   :  { %v4418_v42 = vld [vmem:[#allocation8 + $0xbe0] sm:$0xff] }
 0x339   :  { %7243 = vmatpush1.bf16.msra.mxu0 %v11319_v58  ;;  %v4383_v58 = vld [vmem:[#allocation8 + $0xac8] sm:$0xff] }
 0x33a   :  { %7407 = vmatpush1.bf16.msra.mxu1 %v11321_v1  ;;  %7244 = vmatprep.subr.bf16.mxu0 %v11328_v2  ;;  %v4387_v1 = vld [vmem:[#allocation8 + $0xae8] sm:$0xff]  ;;  %v11367_v2 = vcombine.low %v4374_v0, %v4378_v48  ;;  %v11408_v0 = vcombine.high %v4414_v41, %v4418_v42 }
 0x33b   :  { %7408 = vmatprep.subr.bf16.mxu1 %v11330_v3  ;;  %v11369_v3 = vcombine.low %v4375_v50, %v4379_v52  ;;  %v11378_v6 = vcombine.high %v4383_v58, %v4387_v1  ;;  %v13203_v50 = vld [vmem:[#allocation8 + $0xc00] sm:$0xff] }
 0x33c   :  { %v13205_v52 = vld [vmem:[#allocation8 + $0xc20] sm:$0xff] }
 0x33d   :  { %7245 = vmatpush1.bf16.msra.mxu0 %v11327_v11  ;;  %v4391_v11 = vld [vmem:[#allocation8 + $0xb08] sm:$0xff] }
 0x33e   :  { %7409 = vmatpush1.bf16.msra.mxu1 %v11329_v12  ;;  %7246 = vmatprep.subr.bf16.mxu0 %v11336_v15  ;;  %v4395_v12 = vld [vmem:[#allocation8 + $0xb28] sm:$0xff]  ;;  %v11375_v15 = vcombine.low %v4382_v61, %v4386_v62  ;;  %v11416_v61 = vcombine.high %v13203_v50, %v13205_v52 }
 0x33f   :  { %7410 = vmatprep.subr.bf16.mxu1 %v11338_v18  ;;  %v11377_v18 = vcombine.low %v4383_v58, %v4387_v1  ;;  %v11386_v59 = vcombine.high %v4391_v11, %v4395_v12  ;;  %v738_v58 = vsub.s32 4, %v13058_v44  ;;  %v746_v1 = vsub.s32 6, %v13058_v44 }
 0x341   :  { %7247 = vmatpush1.bf16.msra.mxu0 %v11335_v24  ;;  %v4399_v24 = vld [vmem:[#allocation8 + $0xb48] sm:$0xff] }
 0x342   :  { %7411 = vmatpush1.bf16.msra.mxu1 %v11337_v26  ;;  %7248 = vmatprep.subr.bf16.mxu0 %v11344_v27  ;;  %v4403_v26 = vld [vmem:[#allocation8 + $0xb68] sm:$0xff]  ;;  %v11383_v27 = vcombine.low %v4390_v8, %v4394_v10 }
 0x343   :  { %7412 = vmatprep.subr.bf16.mxu1 %v11346_v29  ;;  %v11385_v29 = vcombine.low %v4391_v11, %v4395_v12  ;;  %v11394_v31 = vcombine.high %v4399_v24, %v4403_v26 }
 0x345   :  { %7249 = vmatpush1.bf16.msra.mxu0 %v11343_v34  ;;  %v4407_v34 = vld [vmem:[#allocation8 + $0xb88] sm:$0xff] }
 0x346   :  { %7413 = vmatpush1.bf16.msra.mxu1 %v11345_v63  ;;  %7250 = vmatprep.subr.bf16.mxu0 %v11352_v37  ;;  %v4411_v63 = vld [vmem:[#allocation8 + $0xba8] sm:$0xff]  ;;  %v11391_v37 = vcombine.low %v4398_v20, %v4402_v22 }
 0x347   :  { %7414 = vmatprep.subr.bf16.mxu1 %v11354_v38  ;;  %v11393_v38 = vcombine.low %v4399_v24, %v4403_v26  ;;  %v11402_v40 = vcombine.high %v4407_v34, %v4411_v63 }
 0x349   :  { %7251 = vmatpush1.bf16.msra.mxu0 %v11351_v49  ;;  %v4415_v49 = vld [vmem:[#allocation8 + $0xbc8] sm:$0xff] }
 0x34a   :  { %7415 = vmatpush1.bf16.msra.mxu1 %v11353_v45  ;;  %7252 = vmatprep.subr.bf16.mxu0 %v11360_v46  ;;  %v4419_v45 = vld [vmem:[#allocation8 + $0xbe8] sm:$0xff]  ;;  %v11399_v46 = vcombine.low %v4406_v32, %v4410_v56 }
 0x34b   :  { %7416 = vmatprep.subr.bf16.mxu1 %v11362_v47  ;;  %v11401_v47 = vcombine.low %v4407_v34, %v4411_v63  ;;  %v11410_v48 = vcombine.high %v4415_v49, %v4419_v45  ;;  %v4430_v34 = vld [vmem:[#allocation8 + $0xc40] sm:$0xff] }
 0x34d   :  { %7253 = vmatpush1.bf16.msra.mxu0 %v11359_v16  ;;  %v13207_v16 = vld [vmem:[#allocation8 + $0xc08] sm:$0xff] }
 0x34e   :  { %7417 = vmatpush1.bf16.msra.mxu1 %v11361_v55  ;;  %7254 = vmatprep.subr.bf16.mxu0 %v11368_v23  ;;  %v4427_v55 = vld [vmem:[#allocation8 + $0xc28] sm:$0xff]  ;;  %v11407_v23 = vcombine.low %v4414_v41, %v4418_v42  ;;  %v11415_v42 = vcombine.low %v13203_v50, %v13205_v52 }
 0x34f   :  { %7418 = vmatprep.subr.bf16.mxu1 %v11370_v60  ;;  %v11409_v60 = vcombine.low %v4415_v49, %v4419_v45  ;;  %v11418_v62 = vcombine.high %v13207_v16, %v4427_v55  ;;  %v11417_v49 = vcombine.low %v13207_v16, %v4427_v55 }
 0x351   :  { %7255 = vmatpush1.bf16.msra.mxu0 %v11367_v2  ;;  %v742_v2 = vsub.s32 5, %v13058_v44 }
 0x352   :  { %7419 = vmatpush1.bf16.msra.mxu1 %v11369_v3  ;;  %7256 = vmatprep.subr.bf16.mxu0 %v11376_v5  ;;  %v750_v3 = vsub.s32 7, %v13058_v44  ;;  %v12562_v5 = vld [vmem:[#allocation7] sm:$0xff] }
 0x353   :  { %7420 = vmatprep.subr.bf16.mxu1 %v11378_v6  ;;  %v739_v6 = vrot.slane %v12562_v5, %v738_v58  ;;  %v747_v8 = vrot.slane %v12562_v5, %v746_v1  ;;  %v743_v10 = vrot.slane %v12562_v5, %v742_v2 }
 0x354   :  { %v751_v11 = vrot.slane %v12562_v5, %v750_v3 }
 0x355   :  { %7257 = vmatpush1.bf16.msra.mxu0 %v11375_v15 }
 0x356   :  { %7421 = vmatpush1.bf16.msra.mxu1 %v11377_v18  ;;  %7258 = vmatprep.subr.bf16.mxu0 %v11384_v19 }
 0x357   :  { %7422 = vmatprep.subr.bf16.mxu1 %v11386_v59 }
 0x359   :  { %7259 = vmatpush1.bf16.msra.mxu0 %v11383_v27 }
 0x35a   :  { %7423 = vmatpush1.bf16.msra.mxu1 %v11385_v29  ;;  %7260 = vmatprep.subr.bf16.mxu0 %v11392_v30 }
 0x35b   :  { %7424 = vmatprep.subr.bf16.mxu1 %v11394_v31 }
 0x35d   :  { %7261 = vmatpush1.bf16.msra.mxu0 %v11391_v37  ;;  %v4434_v37 = vld [vmem:[#allocation8 + $0xc60] sm:$0xff] }
 0x35e   :  { %7425 = vmatpush1.bf16.msra.mxu1 %v11393_v38  ;;  %7262 = vmatprep.subr.bf16.mxu0 %v11400_v57  ;;  %v4431_v38 = vld [vmem:[#allocation8 + $0xc48] sm:$0xff]  ;;  %v11423_v16 = vcombine.low %v4430_v34, %v4434_v37 }
 0x35f   :  { %7426 = vmatprep.subr.bf16.mxu1 %v11402_v40  ;;  %v4435_v57 = vld [vmem:[#allocation8 + $0xc68] sm:$0xff] }
 0x360   :  { %v11425_v55 = vcombine.low %v4431_v38, %v4435_v57 }
 0x361   :  { %7263 = vmatpush1.bf16.msra.mxu0 %v11399_v46 }
 0x362   :  { %7427 = vmatpush1.bf16.msra.mxu1 %v11401_v47  ;;  %7264 = vmatprep.subr.bf16.mxu0 %v11408_v0  ;;  %v4438_v47 = vld [vmem:[#allocation8 + $0xc80] sm:$0xff] }
 0x363   :  { %7428 = vmatprep.subr.bf16.mxu1 %v11410_v48  ;;  %v11424_v48 = vcombine.high %v4430_v34, %v4434_v37  ;;  %v4462_v34 = vld [vmem:[#allocation8 + $0xd40] sm:$0xff]  ;;  %v4463_v37 = vld [vmem:[#allocation8 + $0xd48] sm:$0xff] }
 0x365   :  { %7265 = vmatpush1.bf16.msra.mxu0 %v11407_v23  ;;  %v11426_v23 = vcombine.high %v4431_v38, %v4435_v57  ;;  %v4467_v38 = vld [vmem:[#allocation8 + $0xd68] sm:$0xff] }
 0x366   :  { %7429 = vmatpush1.bf16.msra.mxu1 %v11409_v60  ;;  %7275 = vmatprep.subr.bf16.mxu0 %v11416_v61  ;;  %v4442_v60 = vld [vmem:[#allocation8 + $0xca0] sm:$0xff]  ;;  %v4439_v61 = vld [vmem:[#allocation8 + $0xc88] sm:$0xff] }
 0x367   :  { %7439 = vmatprep.subr.bf16.mxu1 %v11418_v62  ;;  %v4443_v62 = vld [vmem:[#allocation8 + $0xca8] sm:$0xff]  ;;  %v11432_v5 = vcombine.high %v4438_v47, %v4442_v60 }
 0x37b   :  { %v3805_v12 = vpop.f32.mrb[4].mxu0  ;;  %v3969_v18 = vpop.f32.mrb[4].mxu1 }
 0x37c   :  { %v11956_v15 = vadd.f32 %v3805_v12, %v739_v6  ;;  %v3807_v19 = vpop.f32.mrb[5].mxu0  ;;  %v11958_v59 = vadd.f32 %v3969_v18, %v747_v8  ;;  %v3971_v22 = vpop.f32.mrb[5].mxu1  ;;  %v11434_v6 = vcombine.high %v4439_v61, %v4443_v62  ;;  %v4446_v8 = vld [vmem:[#allocation8 + $0xcc0] sm:$0xff]  ;;  %v4447_v12 = vld [vmem:[#allocation8 + $0xcc8] sm:$0xff]  ;;  %v11431_v18 = vcombine.low %v4438_v47, %v4442_v60 }
 0x37d   :  { %v11957_v20 = vadd.f32 %v3807_v19, %v743_v10  ;;  %v3809_v24 = vpop.f32.mrb[6].mxu0  ;;  %v11959_v27 = vadd.f32 %v3971_v22, %v751_v11  ;;  %v3973_v29 = vpop.f32.mrb[6].mxu1  ;;  %v4450_v11 = vld [vmem:[#allocation8 + $0xce0] sm:$0xff]  ;;  %v11433_v19 = vcombine.low %v4439_v61, %v4443_v62  ;;  %v11457_v60 = vcombine.low %v4463_v37, %v4467_v38 }
 0x37e   :  { %v3980_v26 = vmax.f32 %v11956_v15, 0.0  ;;  %v3810_v30 = vpop.f32.mrb[7].mxu0  ;;  %v13224_v31 = vmax.f32 %v11958_v59, 0.0  ;;  %v3974_v56 = vpop.f32.mrb[7].mxu1  ;;  %v4451_v15 = vld [vmem:[#allocation8 + $0xce8] sm:$0xff]  ;;  %v11440_v59 = vcombine.high %v4446_v8, %v4450_v11  ;;  %v4454_v22 = vld [vmem:[#allocation8 + $0xd00] sm:$0xff]  ;;  %v11439_v29 = vcombine.low %v4446_v8, %v4450_v11 }
 0x37f   :  { %v3981_v32 = vmax.f32 %v11957_v20, 0.0  ;;  %v3983_v63 = vmax.f32 %v11959_v27, 0.0  ;;  %v11442_v20 = vcombine.high %v4447_v12, %v4451_v15  ;;  %v4458_v24 = vld [vmem:[#allocation8 + $0xd20] sm:$0xff]  ;;  %v4459_v27 = vld [vmem:[#allocation8 + $0xd28] sm:$0xff]  ;;  %v11441_v30 = vcombine.low %v4447_v12, %v4451_v15 }
 0x380   :  { %v13231_v45 = vpack.c.bf16 %v3980_v26, %v3980_v26  ;;  %v11447_v57 = vcombine.low %v4454_v22, %v4458_v24  ;;  %v4474_v47 = vld [vmem:[#allocation8 + $0xda0] sm:$0xff] }
 0x381   :  { %v4009_v40 = vcombine.low %v3980_v26, %v3981_v32  ;;  %v13226_v41 = vpack.c.bf16 %v3981_v32, %v3981_v32  ;;  %v4010_v46 = vcombine.low %v13224_v31, %v3983_v63  ;;  %v13238_v52 = vpack.c.bf16 %v3983_v63, %v3983_v63  ;;  %v4455_v26 = vld [vmem:[#allocation8 + $0xd08] sm:$0xff]  ;;  %v4466_v63 = vld [vmem:[#allocation8 + $0xd60] sm:$0xff] }
 0x382   :  { %v11448_v32 = vcombine.high %v4454_v22, %v4458_v24  ;;  %v11450_v56 = vcombine.high %v4455_v26, %v4459_v27  ;;  %v4486_v12 = vld [vmem:[#allocation8 + $0xe00] sm:$0xff] }
 0x383   :  { %v4017_v0 = vrot.slane %v4009_v40, %v13061_v53  ;;  %7266 = vmatprep.mubr.bf16.mxu0 %v13226_v41  ;;  %7430 = vmatprep.mubr.bf16.mxu1 %v13226_v41  ;;  %v4024_v50 = vrot.slane %v4010_v46, %v13061_v53  ;;  %v11449_v40 = vcombine.low %v4455_v26, %v4459_v27  ;;  %v4470_v46 = vld [vmem:[#allocation8 + $0xd80] sm:$0xff] }
 0x384   :  { %7267 = vmatmul.mubr.bf16.vlgmr.msra.gmra.mrb[8].mxu0 %v13231_v45  ;;  %7431 = vmatmul.mubr.bf16.vlgmr.msra.gmra.mrb[8].mxu1 %v13231_v45  ;;  %v11464_v61 = vcombine.high %v4470_v46, %v4474_v47  ;;  %v4490_v15 = vld [vmem:[#allocation8 + $0xe20] sm:$0xff] }
 0x385   :  { %7276 = vmatpush1.bf16.msra.mxu0 %v11415_v42  ;;  %7440 = vmatpush1.bf16.msra.mxu1 %v11417_v49  ;;  %v4025_v10 = vcombine.low %v4017_v0, %v4024_v50  ;;  %v11456_v42 = vcombine.high %v4462_v34, %v4466_v63  ;;  %v11458_v49 = vcombine.high %v4463_v37, %v4467_v38  ;;  %v4471_v0 = vld [vmem:[#allocation8 + $0xd88] sm:$0xff]  ;;  %v4478_v50 = vld [vmem:[#allocation8 + $0xdc0] sm:$0xff] }
 0x386   :  { %7307 = vmatprep.mubr.bf16.mxu0 %v13238_v52  ;;  %7471 = vmatprep.mubr.bf16.mxu1 %v13238_v52  ;;  %v11480_v22 = vcombine.high %v4486_v12, %v4490_v15  ;;  %v4494_v26 = vld [vmem:[#allocation8 + $0xe40] sm:$0xff] }
 0x387   :  { %7277 = vmatprep.subr.bf16.mxu0 %v11424_v48  ;;  %7441 = vmatprep.subr.bf16.mxu1 %v11426_v23  ;;  %4029 = vst [vmem:[#allocation17 + $0x8] sm:$0xff] %v4025_v10  ;;  %v4475_v48 = vld [vmem:[#allocation8 + $0xda8] sm:$0xff]  ;;  %v11455_v23 = vcombine.low %v4462_v34, %v4466_v63  ;;  %v4498_v27 = vld [vmem:[#allocation8 + $0xe60] sm:$0xff] }
 0x388   :  { %v11466_v62 = vcombine.high %v4471_v0, %v4475_v48  ;;  %v11465_v8 = vcombine.low %v4471_v0, %v4475_v48  ;;  %v11488_v34 = vcombine.high %v4494_v26, %v4498_v27  ;;  %v4502_v37 = vld [vmem:[#allocation8 + $0xe80] sm:$0xff] }
 0x389   :  { %7278 = vmatpush1.bf16.msra.mxu0 %v11423_v16  ;;  %7442 = vmatpush1.bf16.msra.mxu1 %v11425_v55  ;;  %v4482_v16 = vld [vmem:[#allocation8 + $0xde0] sm:$0xff]  ;;  %v4479_v55 = vld [vmem:[#allocation8 + $0xdc8] sm:$0xff] }
 0x38a   :  { %7279 = vmatprep.subr.bf16.mxu0 %v11432_v5  ;;  %7443 = vmatprep.subr.bf16.mxu1 %v11434_v6  ;;  %v4483_v5 = vld [vmem:[#allocation8 + $0xde8] sm:$0xff]  ;;  %v11463_v6 = vcombine.low %v4470_v46, %v4474_v47  ;;  %v11472_v10 = vcombine.high %v4478_v50, %v4482_v16  ;;  %v4506_v38 = vld [vmem:[#allocation8 + $0xea0] sm:$0xff] }
 0x38b   :  { %v11474_v11 = vcombine.high %v4479_v55, %v4483_v5  ;;  %v11496_v46 = vcombine.high %v4502_v37, %v4506_v38  ;;  %v4510_v0 = vld [vmem:[#allocation8 + $0xec0] sm:$0xff] }
 0x38c   :  { %v4514_v48 = vld [vmem:[#allocation8 + $0xee0] sm:$0xff] }
 0x38d   :  { %7280 = vmatpush1.bf16.msra.mxu0 %v11431_v18  ;;  %7444 = vmatpush1.bf16.msra.mxu1 %v11433_v19  ;;  %v4487_v18 = vld [vmem:[#allocation8 + $0xe08] sm:$0xff] }
 0x38e   :  { %7281 = vmatprep.subr.bf16.mxu0 %v11440_v59  ;;  %7445 = vmatprep.subr.bf16.mxu1 %v11442_v20  ;;  %v4491_v19 = vld [vmem:[#allocation8 + $0xe28] sm:$0xff]  ;;  %v11471_v59 = vcombine.low %v4478_v50, %v4482_v16  ;;  %v11473_v20 = vcombine.low %v4479_v55, %v4483_v5  ;;  %v11504_v50 = vcombine.high %v4510_v0, %v4514_v48  ;;  %v4518_v55 = vld [vmem:[#allocation8 + $0xf00] sm:$0xff] }
 0x38f   :  { %v11482_v24 = vcombine.high %v4487_v18, %v4491_v19  ;;  %v4522_v5 = vld [vmem:[#allocation8 + $0xf20] sm:$0xff] }
 0x391   :  { %7282 = vmatpush1.bf16.msra.mxu0 %v11439_v29  ;;  %7446 = vmatpush1.bf16.msra.mxu1 %v11441_v30  ;;  %v4495_v29 = vld [vmem:[#allocation8 + $0xe48] sm:$0xff] }
 0x392   :  { %7283 = vmatprep.subr.bf16.mxu0 %v11448_v32  ;;  %7447 = vmatprep.subr.bf16.mxu1 %v11450_v56  ;;  %v4499_v30 = vld [vmem:[#allocation8 + $0xe68] sm:$0xff]  ;;  %v11479_v32 = vcombine.low %v4486_v12, %v4490_v15  ;;  %v11481_v56 = vcombine.low %v4487_v18, %v4491_v19  ;;  %v11512_v12 = vcombine.high %v4518_v55, %v4522_v5  ;;  %v4526_v18 = vld [vmem:[#allocation8 + $0xf40] sm:$0xff] }
 0x393   :  { %v11490_v63 = vcombine.high %v4495_v29, %v4499_v30  ;;  %v4530_v19 = vld [vmem:[#allocation8 + $0xf60] sm:$0xff] }
 0x395   :  { %7284 = vmatpush1.bf16.msra.mxu0 %v11447_v57  ;;  %7448 = vmatpush1.bf16.msra.mxu1 %v11449_v40  ;;  %v4503_v57 = vld [vmem:[#allocation8 + $0xe88] sm:$0xff] }
 0x396   :  { %7285 = vmatprep.subr.bf16.mxu0 %v11456_v42  ;;  %7449 = vmatprep.subr.bf16.mxu1 %v11458_v49  ;;  %v4507_v40 = vld [vmem:[#allocation8 + $0xea8] sm:$0xff]  ;;  %v11487_v42 = vcombine.low %v4494_v26, %v4498_v27  ;;  %v11489_v49 = vcombine.low %v4495_v29, %v4499_v30  ;;  %v11520_v26 = vcombine.high %v4526_v18, %v4530_v19  ;;  %v4534_v29 = vld [vmem:[#allocation8 + $0xf80] sm:$0xff] }
 0x397   :  { %v11498_v47 = vcombine.high %v4503_v57, %v4507_v40  ;;  %v4538_v30 = vld [vmem:[#allocation8 + $0xfa0] sm:$0xff] }
 0x399   :  { %7286 = vmatpush1.bf16.msra.mxu0 %v11455_v23  ;;  %7450 = vmatpush1.bf16.msra.mxu1 %v11457_v60  ;;  %v4511_v23 = vld [vmem:[#allocation8 + $0xec8] sm:$0xff] }
 0x39a   :  { %7287 = vmatprep.subr.bf16.mxu0 %v11464_v61  ;;  %7451 = vmatprep.subr.bf16.mxu1 %v11466_v62  ;;  %v4515_v60 = vld [vmem:[#allocation8 + $0xee8] sm:$0xff]  ;;  %v11495_v61 = vcombine.low %v4502_v37, %v4506_v38  ;;  %v11497_v62 = vcombine.low %v4503_v57, %v4507_v40  ;;  %v11528_v37 = vcombine.high %v4534_v29, %v4538_v30  ;;  %v4542_v57 = vld [vmem:[#allocation8 + $0xfc0] sm:$0xff] }
 0x39b   :  { %v11506_v16 = vcombine.high %v4511_v23, %v4515_v60  ;;  %v4546_v40 = vld [vmem:[#allocation8 + $0xfe0] sm:$0xff] }
 0x39d   :  { %7288 = vmatpush1.bf16.msra.mxu0 %v11463_v6  ;;  %7452 = vmatpush1.bf16.msra.mxu1 %v11465_v8  ;;  %v4519_v6 = vld [vmem:[#allocation8 + $0xf08] sm:$0xff] }
 0x39e   :  { %7289 = vmatprep.subr.bf16.mxu0 %v11472_v10  ;;  %7453 = vmatprep.subr.bf16.mxu1 %v11474_v11  ;;  %v4523_v8 = vld [vmem:[#allocation8 + $0xf28] sm:$0xff]  ;;  %v11503_v10 = vcombine.low %v4510_v0, %v4514_v48  ;;  %v11505_v11 = vcombine.low %v4511_v23, %v4515_v60  ;;  %v11536_v0 = vcombine.high %v4542_v57, %v4546_v40  ;;  %v4040_v23 = vld [vmem:[#allocation8 + $0x10] sm:$0xff] }
 0x39f   :  { %v11514_v15 = vcombine.high %v4519_v6, %v4523_v8  ;;  %v4044_v60 = vld [vmem:[#allocation8 + $0x30] sm:$0xff] }
 0x3a1   :  { %7290 = vmatpush1.bf16.msra.mxu0 %v11471_v59  ;;  %7454 = vmatpush1.bf16.msra.mxu1 %v11473_v20  ;;  %v4527_v59 = vld [vmem:[#allocation8 + $0xf48] sm:$0xff] }
 0x3a2   :  { %7291 = vmatprep.subr.bf16.mxu0 %v11480_v22  ;;  %7455 = vmatprep.subr.bf16.mxu1 %v11482_v24  ;;  %v4531_v20 = vld [vmem:[#allocation8 + $0xf68] sm:$0xff]  ;;  %v11511_v22 = vcombine.low %v4518_v55, %v4522_v5  ;;  %v11513_v24 = vcombine.low %v4519_v6, %v4523_v8  ;;  %v11036_v55 = vcombine.high %v4040_v23, %v4044_v60  ;;  %v4048_v6 = vld [vmem:[#allocation8 + $0x50] sm:$0xff] }
 0x3a3   :  { %v11522_v27 = vcombine.high %v4527_v59, %v4531_v20  ;;  %v4052_v8 = vld [vmem:[#allocation8 + $0x70] sm:$0xff] }
 0x3a5   :  { %7292 = vmatpush1.bf16.msra.mxu0 %v11479_v32  ;;  %7456 = vmatpush1.bf16.msra.mxu1 %v11481_v56  ;;  %v4535_v32 = vld [vmem:[#allocation8 + $0xf88] sm:$0xff] }
 0x3a6   :  { %7293 = vmatprep.subr.bf16.mxu0 %v11488_v34  ;;  %7457 = vmatprep.subr.bf16.mxu1 %v11490_v63  ;;  %v4539_v56 = vld [vmem:[#allocation8 + $0xfa8] sm:$0xff]  ;;  %v11519_v34 = vcombine.low %v4526_v18, %v4530_v19  ;;  %v11521_v63 = vcombine.low %v4527_v59, %v4531_v20  ;;  %v11044_v19 = vcombine.high %v4048_v6, %v4052_v8  ;;  %v4056_v20 = vld [vmem:[#allocation8 + $0x90] sm:$0xff] }
 0x3a7   :  { %v11530_v38 = vcombine.high %v4535_v32, %v4539_v56 }
 0x3a9   :  { %7294 = vmatpush1.bf16.msra.mxu0 %v11487_v42  ;;  %7458 = vmatpush1.bf16.msra.mxu1 %v11489_v49  ;;  %v4543_v42 = vld [vmem:[#allocation8 + $0xfc8] sm:$0xff] }
 0x3aa   :  { %7295 = vmatprep.subr.bf16.mxu0 %v11496_v46  ;;  %7459 = vmatprep.subr.bf16.mxu1 %v11498_v47  ;;  %v4547_v49 = vld [vmem:[#allocation8 + $0xfe8] sm:$0xff]  ;;  %v11527_v46 = vcombine.low %v4534_v29, %v4538_v30  ;;  %v11529_v47 = vcombine.low %v4535_v32, %v4539_v56  ;;  %v4064_v32 = vld [vmem:[#allocation8 + $0xd0] sm:$0xff] }
 0x3ab   :  { %v11538_v48 = vcombine.high %v4543_v42, %v4547_v49  ;;  %v4068_v56 = vld [vmem:[#allocation8 + $0xf0] sm:$0xff] }
 0x3ad   :  { %7296 = vmatpush1.bf16.msra.mxu0 %v11495_v61  ;;  %7460 = vmatpush1.bf16.msra.mxu1 %v11497_v62  ;;  %v4041_v61 = vld [vmem:[#allocation8 + $0x18] sm:$0xff] }
 0x3ae   :  { %7297 = vmatprep.subr.bf16.mxu0 %v11504_v50  ;;  %7461 = vmatprep.subr.bf16.mxu1 %v11506_v16  ;;  %v4045_v62 = vld [vmem:[#allocation8 + $0x38] sm:$0xff]  ;;  %v11535_v50 = vcombine.low %v4542_v57, %v4546_v40  ;;  %v11537_v16 = vcombine.low %v4543_v42, %v4547_v49  ;;  %v11060_v57 = vcombine.high %v4064_v32, %v4068_v56  ;;  %v4072_v42 = vld [vmem:[#allocation8 + $0x110] sm:$0xff] }
 0x3af   :  { %v11038_v5 = vcombine.high %v4041_v61, %v4045_v62  ;;  %v11037_v18 = vcombine.low %v4041_v61, %v4045_v62  ;;  %v4076_v49 = vld [vmem:[#allocation8 + $0x130] sm:$0xff]  ;;  %v4081_v62 = vld [vmem:[#allocation8 + $0x158] sm:$0xff] }
 0x3b0   :  { %v4084_v61 = vld [vmem:[#allocation8 + $0x170] sm:$0xff] }
 0x3b1   :  { %7298 = vmatpush1.bf16.msra.mxu0 %v11503_v10  ;;  %7462 = vmatpush1.bf16.msra.mxu1 %v11505_v11  ;;  %v4049_v10 = vld [vmem:[#allocation8 + $0x58] sm:$0xff] }
 0x3b2   :  { %7299 = vmatprep.subr.bf16.mxu0 %v11512_v12  ;;  %7463 = vmatprep.subr.bf16.mxu1 %v11514_v15  ;;  %v4053_v11 = vld [vmem:[#allocation8 + $0x78] sm:$0xff]  ;;  %v11035_v12 = vcombine.low %v4040_v23, %v4044_v60  ;;  %v13246_v15 = vpack.c.bf16 %v13224_v31, %v13224_v31  ;;  %v4080_v60 = vld [vmem:[#allocation8 + $0x150] sm:$0xff] }
 0x3b3   :  { %v11046_v59 = vcombine.high %v4049_v10, %v4053_v11  ;;  %v11045_v31 = vcombine.low %v4049_v10, %v4053_v11  ;;  %v4092_v10 = vld [vmem:[#allocation8 + $0x1b0] sm:$0xff]  ;;  %v4089_v11 = vld [vmem:[#allocation8 + $0x198] sm:$0xff] }
 0x3b5   :  { %7300 = vmatpush1.bf16.msra.mxu0 %v11511_v22  ;;  %7464 = vmatpush1.bf16.msra.mxu1 %v11513_v24  ;;  %v4060_v22 = vld [vmem:[#allocation8 + $0xb0] sm:$0xff]  ;;  %v4057_v24 = vld [vmem:[#allocation8 + $0x98] sm:$0xff] }
 0x3b6   :  { %7301 = vmatprep.subr.bf16.mxu0 %v11520_v26  ;;  %7465 = vmatprep.subr.bf16.mxu1 %v11522_v27  ;;  %v4061_v26 = vld [vmem:[#allocation8 + $0xb8] sm:$0xff]  ;;  %v11043_v27 = vcombine.low %v4048_v6, %v4052_v8  ;;  %v11052_v29 = vcombine.high %v4056_v20, %v4060_v22  ;;  %v4088_v8 = vld [vmem:[#allocation8 + $0x190] sm:$0xff] }
 0x3b7   :  { %v11054_v30 = vcombine.high %v4057_v24, %v4061_v26 }
 0x3b9   :  { %7302 = vmatpush1.bf16.msra.mxu0 %v11519_v34  ;;  %7466 = vmatpush1.bf16.msra.mxu1 %v11521_v63  ;;  %v4065_v34 = vld [vmem:[#allocation8 + $0xd8] sm:$0xff] }
 0x3ba   :  { %7303 = vmatprep.subr.bf16.mxu0 %v11528_v37  ;;  %7467 = vmatprep.subr.bf16.mxu1 %v11530_v38  ;;  %v4069_v63 = vld [vmem:[#allocation8 + $0xf8] sm:$0xff]  ;;  %v11051_v37 = vcombine.low %v4056_v20, %v4060_v22  ;;  %v11053_v38 = vcombine.low %v4057_v24, %v4061_v26  ;;  %v4096_v22 = vld [vmem:[#allocation8 + $0x1d0] sm:$0xff] }
 0x3bb   :  { %v11062_v40 = vcombine.high %v4065_v34, %v4069_v63  ;;  %v4100_v24 = vld [vmem:[#allocation8 + $0x1f0] sm:$0xff]  ;;  %v4097_v26 = vld [vmem:[#allocation8 + $0x1d8] sm:$0xff] }
 0x3bd   :  { %7304 = vmatpush1.bf16.msra.mxu0 %v11527_v46  ;;  %7468 = vmatpush1.bf16.msra.mxu1 %v11529_v47  ;;  %v4077_v46 = vld [vmem:[#allocation8 + $0x138] sm:$0xff]  ;;  %v11059_v47 = vcombine.low %v4064_v32, %v4068_v56  ;;  %v4104_v56 = vld [vmem:[#allocation8 + $0x210] sm:$0xff] }
 0x3be   :  { %7305 = vmatprep.subr.bf16.mxu0 %v11536_v0  ;;  %7469 = vmatprep.subr.bf16.mxu1 %v11538_v48  ;;  %v11061_v0 = vcombine.low %v4065_v34, %v4069_v63  ;;  %v11068_v48 = vcombine.high %v4072_v42, %v4076_v49  ;;  %v4108_v34 = vld [vmem:[#allocation8 + $0x230] sm:$0xff]  ;;  %v4105_v63 = vld [vmem:[#allocation8 + $0x218] sm:$0xff] }
 0x3c1   :  { %7306 = vmatpush1.bf16.msra.mxu0 %v11535_v50  ;;  %7470 = vmatpush1.bf16.msra.mxu1 %v11537_v16  ;;  %v4085_v50 = vld [vmem:[#allocation8 + $0x178] sm:$0xff]  ;;  %v11067_v16 = vcombine.low %v4072_v42, %v4076_v49  ;;  %v4112_v49 = vld [vmem:[#allocation8 + $0x250] sm:$0xff] }
 0x3c2   :  { %7480 = vmatprep.subr.bf16.mxu0 %v11036_v55  ;;  %7644 = vmatprep.subr.bf16.mxu1 %v11038_v5  ;;  %v11076_v5 = vcombine.high %v4080_v60, %v4084_v61  ;;  %v11078_v6 = vcombine.high %v4081_v62, %v4085_v50 }
 0x3c4   :  { %7308 = vmatmul.mubr.bf16.vlgmr.msra.gmra.mrb[8].mxu0 %v13246_v15  ;;  %7472 = vmatmul.mubr.bf16.vlgmr.msra.gmra.mrb[8].mxu1 %v13246_v15 }
 0x3c5   :  { %7481 = vmatpush1.bf16.msra.mxu0 %v11035_v12  ;;  %7512 = vmatprep.mubr.bf16.mxu0 %v13179_v51  ;;  %v4093_v12 = vld [vmem:[#allocation8 + $0x1b8] sm:$0xff] }
 0x3c6   :  { %7645 = vmatpush1.bf16.msra.mxu1 %v11037_v18  ;;  %7676 = vmatprep.mubr.bf16.mxu1 %v13179_v51  ;;  %v4073_v51 = vld [vmem:[#allocation8 + $0x118] sm:$0xff]  ;;  %v11075_v18 = vcombine.low %v4080_v60, %v4084_v61  ;;  %v11086_v20 = vcombine.high %v4089_v11, %v4093_v12  ;;  %v4120_v61 = vld [vmem:[#allocation8 + $0x290] sm:$0xff] }
 0x3c7   :  { %7482 = vmatprep.subr.bf16.mxu0 %v11044_v19  ;;  %7646 = vmatprep.subr.bf16.mxu1 %v11046_v59  ;;  %v11070_v23 = vcombine.high %v4073_v51, %v4077_v46  ;;  %v11069_v55 = vcombine.low %v4073_v51, %v4077_v46  ;;  %v11077_v19 = vcombine.low %v4081_v62, %v4085_v50  ;;  %v4116_v51 = vld [vmem:[#allocation8 + $0x270] sm:$0xff]  ;;  %v4113_v46 = vld [vmem:[#allocation8 + $0x258] sm:$0xff] }
 0x3c8   :  { %v11084_v59 = vcombine.high %v4088_v8, %v4092_v10  ;;  %v4124_v62 = vld [vmem:[#allocation8 + $0x2b0] sm:$0xff]  ;;  %v4121_v50 = vld [vmem:[#allocation8 + $0x298] sm:$0xff] }
 0x3c9   :  { %7483 = vmatpush1.bf16.msra.mxu0 %v11043_v27  ;;  %v4101_v27 = vld [vmem:[#allocation8 + $0x1f8] sm:$0xff] }
 0x3ca   :  { %7647 = vmatpush1.bf16.msra.mxu1 %v11045_v31  ;;  %7484 = vmatprep.subr.bf16.mxu0 %v11052_v29  ;;  %v11083_v31 = vcombine.low %v4088_v8, %v4092_v10  ;;  %v11085_v29 = vcombine.low %v4089_v11, %v4093_v12  ;;  %v11094_v32 = vcombine.high %v4097_v26, %v4101_v27  ;;  %v4128_v10 = vld [vmem:[#allocation8 + $0x2d0] sm:$0xff]  ;;  %v4129_v12 = vld [vmem:[#allocation8 + $0x2d8] sm:$0xff] }
 0x3cb   :  { %7648 = vmatprep.subr.bf16.mxu1 %v11054_v30  ;;  %v11092_v30 = vcombine.high %v4096_v22, %v4100_v24  ;;  %v4132_v11 = vld [vmem:[#allocation8 + $0x2f0] sm:$0xff] }
 0x3cd   :  { %7485 = vmatpush1.bf16.msra.mxu0 %v11051_v37  ;;  %v4109_v37 = vld [vmem:[#allocation8 + $0x238] sm:$0xff] }
 0x3ce   :  { %7649 = vmatpush1.bf16.msra.mxu1 %v11053_v38  ;;  %7486 = vmatprep.subr.bf16.mxu0 %v11060_v57  ;;  %v11091_v38 = vcombine.low %v4096_v22, %v4100_v24  ;;  %v11093_v57 = vcombine.low %v4097_v26, %v4101_v27  ;;  %v11102_v42 = vcombine.high %v4105_v63, %v4109_v37  ;;  %v4136_v24 = vld [vmem:[#allocation8 + $0x310] sm:$0xff]  ;;  %v4137_v27 = vld [vmem:[#allocation8 + $0x318] sm:$0xff] }
 0x3cf   :  { %7650 = vmatprep.subr.bf16.mxu1 %v11062_v40  ;;  %v11100_v40 = vcombine.high %v4104_v56, %v4108_v34  ;;  %v4140_v26 = vld [vmem:[#allocation8 + $0x330] sm:$0xff] }
 0x3d1   :  { %7487 = vmatpush1.bf16.msra.mxu0 %v11059_v47  ;;  %v4117_v47 = vld [vmem:[#allocation8 + $0x278] sm:$0xff] }
 0x3d2   :  { %7651 = vmatpush1.bf16.msra.mxu1 %v11061_v0  ;;  %7488 = vmatprep.subr.bf16.mxu0 %v11068_v48  ;;  %v11099_v0 = vcombine.low %v4104_v56, %v4108_v34  ;;  %v11101_v48 = vcombine.low %v4105_v63, %v4109_v37  ;;  %v11110_v60 = vcombine.high %v4113_v46, %v4117_v47  ;;  %v4144_v34 = vld [vmem:[#allocation8 + $0x350] sm:$0xff]  ;;  %v4145_v37 = vld [vmem:[#allocation8 + $0x358] sm:$0xff] }
 0x3d3   :  { %7652 = vmatprep.subr.bf16.mxu1 %v11070_v23  ;;  %v11108_v23 = vcombine.high %v4112_v49, %v4116_v51  ;;  %v4148_v63 = vld [vmem:[#allocation8 + $0x370] sm:$0xff] }
 0x3d5   :  { %7489 = vmatpush1.bf16.msra.mxu0 %v11067_v16  ;;  %v4125_v16 = vld [vmem:[#allocation8 + $0x2b8] sm:$0xff] }
 0x3d6   :  { %7653 = vmatpush1.bf16.msra.mxu1 %v11069_v55  ;;  %7490 = vmatprep.subr.bf16.mxu0 %v11076_v5  ;;  %v11107_v55 = vcombine.low %v4112_v49, %v4116_v51  ;;  %v11109_v5 = vcombine.low %v4113_v46, %v4117_v47  ;;  %v11118_v8 = vcombine.high %v4121_v50, %v4125_v16  ;;  %v4152_v51 = vld [vmem:[#allocation8 + $0x390] sm:$0xff]  ;;  %v4153_v47 = vld [vmem:[#allocation8 + $0x398] sm:$0xff] }
 0x3d7   :  { %7654 = vmatprep.subr.bf16.mxu1 %v11078_v6  ;;  %v11116_v6 = vcombine.high %v4120_v61, %v4124_v62  ;;  %v4156_v46 = vld [vmem:[#allocation8 + $0x3b0] sm:$0xff] }
 0x3d9   :  { %7491 = vmatpush1.bf16.msra.mxu0 %v11075_v18  ;;  %v4133_v18 = vld [vmem:[#allocation8 + $0x2f8] sm:$0xff] }
 0x3da   :  { %7655 = vmatpush1.bf16.msra.mxu1 %v11077_v19  ;;  %7492 = vmatprep.subr.bf16.mxu0 %v11084_v59  ;;  %v11115_v19 = vcombine.low %v4120_v61, %v4124_v62  ;;  %v11117_v59 = vcombine.low %v4121_v50, %v4125_v16  ;;  %v11126_v22 = vcombine.high %v4129_v12, %v4133_v18  ;;  %v4160_v62 = vld [vmem:[#allocation8 + $0x3d0] sm:$0xff]  ;;  %v4161_v16 = vld [vmem:[#allocation8 + $0x3d8] sm:$0xff] }
 0x3db   :  { %7656 = vmatprep.subr.bf16.mxu1 %v11086_v20  ;;  %v11124_v20 = vcombine.high %v4128_v10, %v4132_v11  ;;  %v4164_v50 = vld [vmem:[#allocation8 + $0x3f0] sm:$0xff] }
 0x3dd   :  { %7493 = vmatpush1.bf16.msra.mxu0 %v11083_v31  ;;  %v4141_v31 = vld [vmem:[#allocation8 + $0x338] sm:$0xff] }
 0x3de   :  { %7657 = vmatpush1.bf16.msra.mxu1 %v11085_v29  ;;  %7494 = vmatprep.subr.bf16.mxu0 %v11092_v30  ;;  %v11123_v29 = vcombine.low %v4128_v10, %v4132_v11  ;;  %v11125_v30 = vcombine.low %v4129_v12, %v4133_v18  ;;  %v11134_v56 = vcombine.high %v4137_v27, %v4141_v31  ;;  %v4168_v11 = vld [vmem:[#allocation8 + $0x410] sm:$0xff]  ;;  %v4169_v18 = vld [vmem:[#allocation8 + $0x418] sm:$0xff] }
 0x3df   :  { %7658 = vmatprep.subr.bf16.mxu1 %v11094_v32  ;;  %v11132_v32 = vcombine.high %v4136_v24, %v4140_v26  ;;  %v4172_v12 = vld [vmem:[#allocation8 + $0x430] sm:$0xff] }
 0x3e1   :  { %7495 = vmatpush1.bf16.msra.mxu0 %v11091_v38  ;;  %v4149_v38 = vld [vmem:[#allocation8 + $0x378] sm:$0xff] }
 0x3e2   :  { %7659 = vmatpush1.bf16.msra.mxu1 %v11093_v57  ;;  %7496 = vmatprep.subr.bf16.mxu0 %v11100_v40  ;;  %v11131_v57 = vcombine.low %v4136_v24, %v4140_v26  ;;  %v11133_v40 = vcombine.low %v4137_v27, %v4141_v31  ;;  %v11142_v49 = vcombine.high %v4145_v37, %v4149_v38  ;;  %v4176_v26 = vld [vmem:[#allocation8 + $0x450] sm:$0xff] }
 0x3e3   :  { %7660 = vmatprep.subr.bf16.mxu1 %v11102_v42  ;;  %v11140_v42 = vcombine.high %v4144_v34, %v4148_v63  ;;  %v4180_v27 = vld [vmem:[#allocation8 + $0x470] sm:$0xff]  ;;  %v11163_v31 = vcombine.low %v4168_v11, %v4172_v12 }
 0x3e5   :  { %7497 = vmatpush1.bf16.msra.mxu0 %v11099_v0  ;;  %v4157_v0 = vld [vmem:[#allocation8 + $0x3b8] sm:$0xff] }
 0x3e6   :  { %7661 = vmatpush1.bf16.msra.mxu1 %v11101_v48  ;;  %7498 = vmatprep.subr.bf16.mxu0 %v11108_v23  ;;  %v11139_v48 = vcombine.low %v4144_v34, %v4148_v63  ;;  %v11141_v23 = vcombine.low %v4145_v37, %v4149_v38  ;;  %v11150_v61 = vcombine.high %v4153_v47, %v4157_v0  ;;  %v4184_v34 = vld [vmem:[#allocation8 + $0x490] sm:$0xff]  ;;  %v4185_v38 = vld [vmem:[#allocation8 + $0x498] sm:$0xff] }
 0x3e7   :  { %7662 = vmatprep.subr.bf16.mxu1 %v11110_v60  ;;  %v11148_v60 = vcombine.high %v4152_v51, %v4156_v46  ;;  %v4188_v63 = vld [vmem:[#allocation8 + $0x4b0] sm:$0xff] }
 0x3e9   :  { %7499 = vmatpush1.bf16.msra.mxu0 %v11107_v55  ;;  %v4165_v55 = vld [vmem:[#allocation8 + $0x3f8] sm:$0xff] }
 0x3ea   :  { %7663 = vmatpush1.bf16.msra.mxu1 %v11109_v5  ;;  %7500 = vmatprep.subr.bf16.mxu0 %v11116_v6  ;;  %v11147_v5 = vcombine.low %v4152_v51, %v4156_v46  ;;  %v11149_v6 = vcombine.low %v4153_v47, %v4157_v0  ;;  %v11158_v10 = vcombine.high %v4161_v16, %v4165_v55  ;;  %v4192_v46 = vld [vmem:[#allocation8 + $0x4d0] sm:$0xff]  ;;  %v4193_v0 = vld [vmem:[#allocation8 + $0x4d8] sm:$0xff] }
 0x3eb   :  { %7664 = vmatprep.subr.bf16.mxu1 %v11118_v8  ;;  %v11156_v8 = vcombine.high %v4160_v62, %v4164_v50  ;;  %v4196_v47 = vld [vmem:[#allocation8 + $0x4f0] sm:$0xff] }
 0x3ed   :  { %7501 = vmatpush1.bf16.msra.mxu0 %v11115_v19  ;;  %v4173_v19 = vld [vmem:[#allocation8 + $0x438] sm:$0xff] }
 0x3ee   :  { %7665 = vmatpush1.bf16.msra.mxu1 %v11117_v59  ;;  %7502 = vmatprep.subr.bf16.mxu0 %v11124_v20  ;;  %v11155_v59 = vcombine.low %v4160_v62, %v4164_v50  ;;  %v11157_v20 = vcombine.low %v4161_v16, %v4165_v55  ;;  %v11166_v24 = vcombine.high %v4169_v18, %v4173_v19  ;;  %v4200_v62 = vld [vmem:[#allocation8 + $0x510] sm:$0xff]  ;;  %v4201_v16 = vld [vmem:[#allocation8 + $0x518] sm:$0xff] }
 0x3ef   :  { %7666 = vmatprep.subr.bf16.mxu1 %v11126_v22  ;;  %v11164_v22 = vcombine.high %v4168_v11, %v4172_v12  ;;  %v4204_v50 = vld [vmem:[#allocation8 + $0x530] sm:$0xff]  ;;  %v4205_v55 = vld [vmem:[#allocation8 + $0x538] sm:$0xff] }
 0x3f0   :  { %v4212_v11 = vld [vmem:[#allocation8 + $0x570] sm:$0xff]  ;;  %v4209_v12 = vld [vmem:[#allocation8 + $0x558] sm:$0xff] }
 0x3f1   :  { %7503 = vmatpush1.bf16.msra.mxu0 %v11123_v29  ;;  %v4177_v29 = vld [vmem:[#allocation8 + $0x458] sm:$0xff] }
 0x3f2   :  { %7667 = vmatpush1.bf16.msra.mxu1 %v11125_v30  ;;  %7504 = vmatprep.subr.bf16.mxu0 %v11132_v32  ;;  %v4181_v30 = vld [vmem:[#allocation8 + $0x478] sm:$0xff]  ;;  %v11165_v32 = vcombine.low %v4169_v18, %v4173_v19  ;;  %v11195_v19 = vcombine.low %v4200_v62, %v4204_v50 }
 0x3f3   :  { %7668 = vmatprep.subr.bf16.mxu1 %v11134_v56  ;;  %v11172_v56 = vcombine.high %v4176_v26, %v4180_v27  ;;  %v11174_v37 = vcombine.high %v4177_v29, %v4181_v30  ;;  %v4213_v18 = vld [vmem:[#allocation8 + $0x578] sm:$0xff] }
 0x3f5   :  { %7505 = vmatpush1.bf16.msra.mxu0 %v11131_v57  ;;  %v4189_v57 = vld [vmem:[#allocation8 + $0x4b8] sm:$0xff] }
 0x3f6   :  { %7669 = vmatpush1.bf16.msra.mxu1 %v11133_v40  ;;  %7506 = vmatprep.subr.bf16.mxu0 %v11140_v42  ;;  %v11171_v40 = vcombine.low %v4176_v26, %v4180_v27  ;;  %v11173_v42 = vcombine.low %v4177_v29, %v4181_v30  ;;  %v11182_v51 = vcombine.high %v4185_v38, %v4189_v57  ;;  %v4220_v26 = vld [vmem:[#allocation8 + $0x5b0] sm:$0xff]  ;;  %v4217_v27 = vld [vmem:[#allocation8 + $0x598] sm:$0xff] }
 0x3f7   :  { %7670 = vmatprep.subr.bf16.mxu1 %v11142_v49  ;;  %v11180_v49 = vcombine.high %v4184_v34, %v4188_v63  ;;  %v11205_v30 = vcombine.low %v4209_v12, %v4213_v18 }
 0x3f9   :  { %7507 = vmatpush1.bf16.msra.mxu0 %v11139_v48  ;;  %v4197_v48 = vld [vmem:[#allocation8 + $0x4f8] sm:$0xff] }
 0x3fa   :  { %7671 = vmatpush1.bf16.msra.mxu1 %v11141_v23  ;;  %7508 = vmatprep.subr.bf16.mxu0 %v11148_v60  ;;  %v11179_v23 = vcombine.low %v4184_v34, %v4188_v63  ;;  %v11188_v60 = vcombine.high %v4192_v46, %v4196_v47  ;;  %v4224_v34 = vld [vmem:[#allocation8 + $0x5d0] sm:$0xff] }
 0x3fb   :  { %7672 = vmatprep.subr.bf16.mxu1 %v11150_v61  ;;  %v11190_v61 = vcombine.high %v4193_v0, %v4197_v48  ;;  %v4228_v63 = vld [vmem:[#allocation8 + $0x5f0] sm:$0xff] }
 0x3fd   :  { %7509 = vmatpush1.bf16.msra.mxu0 %v11147_v5  ;;  %v11189_v5 = vcombine.low %v4193_v0, %v4197_v48  ;;  %v4237_v0 = vld [vmem:[#allocation8 + $0x638] sm:$0xff]  ;;  %v11219_v48 = vcombine.low %v4224_v34, %v4228_v63 }
 0x3fe   :  { %7673 = vmatpush1.bf16.msra.mxu1 %v11149_v6  ;;  %7510 = vmatprep.subr.bf16.mxu0 %v11156_v8  ;;  %v11196_v6 = vcombine.high %v4200_v62, %v4204_v50  ;;  %v11198_v8 = vcombine.high %v4201_v16, %v4205_v55  ;;  %v4244_v62 = vld [vmem:[#allocation8 + $0x670] sm:$0xff]  ;;  %v4241_v50 = vld [vmem:[#allocation8 + $0x658] sm:$0xff] }
 0x3ff   :  { %7674 = vmatprep.subr.bf16.mxu1 %v11158_v10  ;;  %v4208_v10 = vld [vmem:[#allocation8 + $0x550] sm:$0xff] }
 0x400   :  { %v11203_v29 = vcombine.low %v4208_v10, %v4212_v11 }
 0x401   :  { %7511 = vmatpush1.bf16.msra.mxu0 %v11155_v59  ;;  %v11197_v59 = vcombine.low %v4201_v16, %v4205_v55  ;;  %v4245_v16 = vld [vmem:[#allocation8 + $0x678] sm:$0xff] }
 0x402   :  { %7675 = vmatpush1.bf16.msra.mxu1 %v11157_v20  ;;  %7521 = vmatprep.subr.bf16.mxu0 %v11164_v22  ;;  %v11204_v20 = vcombine.high %v4208_v10, %v4212_v11  ;;  %v11206_v22 = vcombine.high %v4209_v12, %v4213_v18  ;;  %v4252_v10 = vld [vmem:[#allocation8 + $0x6b0] sm:$0xff]  ;;  %v4249_v11 = vld [vmem:[#allocation8 + $0x698] sm:$0xff] }
 0x403   :  { %7685 = vmatprep.subr.bf16.mxu1 %v11166_v24  ;;  %v4216_v24 = vld [vmem:[#allocation8 + $0x590] sm:$0xff]  ;;  %v4253_v12 = vld [vmem:[#allocation8 + $0x6b8] sm:$0xff] }
 0x404   :  { %7513 = vmatmul.mubr.bf16.vlgmr.msra.gmra.mrb[12].mxu0 %v13187_v35 }
 0x405   :  { %7677 = vmatmul.mubr.bf16.vlgmr.msra.gmra.mrb[12].mxu1 %v13187_v35  ;;  %7522 = vmatpush1.bf16.msra.mxu0 %v11163_v31  ;;  %v11181_v35 = vcombine.low %v4185_v38, %v4189_v57  ;;  %v4221_v31 = vld [vmem:[#allocation8 + $0x5b8] sm:$0xff]  ;;  %v11211_v57 = vcombine.low %v4216_v24, %v4220_v26 }
 0x406   :  { %7553 = vmatprep.mubr.bf16.mxu0 %v13191_v39  ;;  %7686 = vmatpush1.bf16.msra.mxu1 %v11165_v32  ;;  %v11212_v32 = vcombine.high %v4216_v24, %v4220_v26  ;;  %v4229_v38 = vld [vmem:[#allocation8 + $0x5f8] sm:$0xff]  ;;  %v4260_v24 = vld [vmem:[#allocation8 + $0x6f0] sm:$0xff] }
 0x407   :  { %7717 = vmatprep.mubr.bf16.mxu1 %v13191_v39  ;;  %7523 = vmatprep.subr.bf16.mxu0 %v11172_v56  ;;  %v11187_v39 = vcombine.low %v4192_v46, %v4196_v47  ;;  %v11214_v56 = vcombine.high %v4217_v27, %v4221_v31  ;;  %v4236_v46 = vld [vmem:[#allocation8 + $0x630] sm:$0xff]  ;;  %v4233_v47 = vld [vmem:[#allocation8 + $0x618] sm:$0xff] }
 0x408   :  { %7687 = vmatprep.subr.bf16.mxu1 %v11174_v37  ;;  %v4225_v37 = vld [vmem:[#allocation8 + $0x5d8] sm:$0xff] }
 0x409   :  { %7524 = vmatpush1.bf16.msra.mxu0 %v11171_v40  ;;  %v11213_v40 = vcombine.low %v4217_v27, %v4221_v31  ;;  %v4257_v26 = vld [vmem:[#allocation8 + $0x6d8] sm:$0xff] }
 0x40a   :  { %7688 = vmatpush1.bf16.msra.mxu1 %v11173_v42  ;;  %7525 = vmatprep.subr.bf16.mxu0 %v11180_v49  ;;  %v11220_v42 = vcombine.high %v4224_v34, %v4228_v63  ;;  %v11222_v49 = vcombine.high %v4225_v37, %v4229_v38  ;;  %v4261_v27 = vld [vmem:[#allocation8 + $0x6f8] sm:$0xff]  ;;  %v4268_v34 = vld [vmem:[#allocation8 + $0x730] sm:$0xff] }
 0x40b   :  { %7689 = vmatprep.subr.bf16.mxu1 %v11182_v51  ;;  %v4232_v51 = vld [vmem:[#allocation8 + $0x610] sm:$0xff]  ;;  %v4265_v63 = vld [vmem:[#allocation8 + $0x718] sm:$0xff] }
 0x40c   :  { %v11227_v55 = vcombine.low %v4232_v51, %v4236_v46 }
 0x40d   :  { %7526 = vmatpush1.bf16.msra.mxu0 %v11179_v23  ;;  %v11221_v23 = vcombine.low %v4225_v37, %v4229_v38  ;;  %v4269_v37 = vld [vmem:[#allocation8 + $0x738] sm:$0xff] }
 0x40e   :  { %7690 = vmatpush1.bf16.msra.mxu1 %v11181_v35  ;;  %7527 = vmatprep.subr.bf16.mxu0 %v11188_v60  ;;  %v11228_v35 = vcombine.high %v4232_v51, %v4236_v46  ;;  %v11230_v60 = vcombine.high %v4233_v47, %v4237_v0  ;;  %v4276_v51 = vld [vmem:[#allocation8 + $0x770] sm:$0xff]  ;;  %v4273_v46 = vld [vmem:[#allocation8 + $0x758] sm:$0xff] }
 0x40f   :  { %7691 = vmatprep.subr.bf16.mxu1 %v11190_v61  ;;  %v4240_v61 = vld [vmem:[#allocation8 + $0x650] sm:$0xff] }
 0x410   :  { %v11235_v18 = vcombine.low %v4240_v61, %v4244_v62 }
 0x411   :  { %7528 = vmatpush1.bf16.msra.mxu0 %v11187_v39  ;;  %v11229_v39 = vcombine.low %v4233_v47, %v4237_v0  ;;  %v4277_v47 = vld [vmem:[#allocation8 + $0x778] sm:$0xff] }
 0x412   :  { %7692 = vmatpush1.bf16.msra.mxu1 %v11189_v5  ;;  %7529 = vmatprep.subr.bf16.mxu0 %v11196_v6  ;;  %v11236_v5 = vcombine.high %v4240_v61, %v4244_v62  ;;  %v11238_v6 = vcombine.high %v4241_v50, %v4245_v16  ;;  %v4284_v61 = vld [vmem:[#allocation8 + $0x7b0] sm:$0xff]  ;;  %v4281_v62 = vld [vmem:[#allocation8 + $0x798] sm:$0xff] }
 0x413   :  { %7693 = vmatprep.subr.bf16.mxu1 %v11198_v8  ;;  %v4248_v8 = vld [vmem:[#allocation8 + $0x690] sm:$0xff] }
 0x414   :  { %v11243_v31 = vcombine.low %v4248_v8, %v4252_v10 }
 0x415   :  { %7530 = vmatpush1.bf16.msra.mxu0 %v11195_v19  ;;  %v11237_v19 = vcombine.low %v4241_v50, %v4245_v16  ;;  %v4285_v50 = vld [vmem:[#allocation8 + $0x7b8] sm:$0xff] }
 0x416   :  { %7694 = vmatpush1.bf16.msra.mxu1 %v11197_v59  ;;  %7531 = vmatprep.subr.bf16.mxu0 %v11204_v20  ;;  %v11244_v59 = vcombine.high %v4248_v8, %v4252_v10  ;;  %v11246_v20 = vcombine.high %v4249_v11, %v4253_v12  ;;  %v4292_v8 = vld [vmem:[#allocation8 + $0x7f0] sm:$0xff]  ;;  %v4289_v10 = vld [vmem:[#allocation8 + $0x7d8] sm:$0xff] }
 0x417   :  { %7695 = vmatprep.subr.bf16.mxu1 %v11206_v22  ;;  %v4256_v22 = vld [vmem:[#allocation8 + $0x6d0] sm:$0xff] }
 0x418   :  { %v11251_v38 = vcombine.low %v4256_v22, %v4260_v24 }
 0x419   :  { %7532 = vmatpush1.bf16.msra.mxu0 %v11203_v29  ;;  %v11245_v29 = vcombine.low %v4249_v11, %v4253_v12  ;;  %v4293_v11 = vld [vmem:[#allocation8 + $0x7f8] sm:$0xff] }
 0x41a   :  { %7696 = vmatpush1.bf16.msra.mxu1 %v11205_v30  ;;  %7533 = vmatprep.subr.bf16.mxu0 %v11212_v32  ;;  %v11252_v30 = vcombine.high %v4256_v22, %v4260_v24  ;;  %v11254_v32 = vcombine.high %v4257_v26, %v4261_v27  ;;  %v4300_v22 = vld [vmem:[#allocation8 + $0x830] sm:$0xff]  ;;  %v4297_v24 = vld [vmem:[#allocation8 + $0x818] sm:$0xff] }
 0x41b   :  { %7697 = vmatprep.subr.bf16.mxu1 %v11214_v56  ;;  %v4264_v56 = vld [vmem:[#allocation8 + $0x710] sm:$0xff] }
 0x41c   :  { %v11259_v0 = vcombine.low %v4264_v56, %v4268_v34 }
 0x41d   :  { %7534 = vmatpush1.bf16.msra.mxu0 %v11211_v57  ;;  %v11253_v57 = vcombine.low %v4257_v26, %v4261_v27  ;;  %v4301_v26 = vld [vmem:[#allocation8 + $0x838] sm:$0xff] }
 0x41e   :  { %7698 = vmatpush1.bf16.msra.mxu1 %v11213_v40  ;;  %7535 = vmatprep.subr.bf16.mxu0 %v11220_v42  ;;  %v11260_v40 = vcombine.high %v4264_v56, %v4268_v34  ;;  %v11262_v42 = vcombine.high %v4265_v63, %v4269_v37  ;;  %v4308_v56 = vld [vmem:[#allocation8 + $0x870] sm:$0xff] }
 0x41f   :  { %7699 = vmatprep.subr.bf16.mxu1 %v11222_v49  ;;  %v4272_v49 = vld [vmem:[#allocation8 + $0x750] sm:$0xff] }
 0x420   :  { %v11267_v16 = vcombine.low %v4272_v49, %v4276_v51 }
 0x421   :  { %7536 = vmatpush1.bf16.msra.mxu0 %v11219_v48  ;;  %v11261_v48 = vcombine.low %v4265_v63, %v4269_v37  ;;  %v4305_v63 = vld [vmem:[#allocation8 + $0x858] sm:$0xff] }
 0x422   :  { %7700 = vmatpush1.bf16.msra.mxu1 %v11221_v23  ;;  %7537 = vmatprep.subr.bf16.mxu0 %v11228_v35  ;;  %v11268_v23 = vcombine.high %v4272_v49, %v4276_v51  ;;  %v11270_v35 = vcombine.high %v4273_v46, %v4277_v47  ;;  %v4309_v37 = vld [vmem:[#allocation8 + $0x878] sm:$0xff] }
 0x423   :  { %7701 = vmatprep.subr.bf16.mxu1 %v11230_v60  ;;  %v4280_v60 = vld [vmem:[#allocation8 + $0x790] sm:$0xff]  ;;  %v11302_v49 = vcombine.high %v4305_v63, %v4309_v37  ;;  %v4313_v51 = vld [vmem:[#allocation8 + $0x898] sm:$0xff] }
 0x424   :  { %v11275_v12 = vcombine.low %v4280_v60, %v4284_v61 }
 0x425   :  { %7538 = vmatpush1.bf16.msra.mxu0 %v11227_v55  ;;  %v11269_v55 = vcombine.low %v4273_v46, %v4277_v47  ;;  %v4317_v46 = vld [vmem:[#allocation8 + $0x8b8] sm:$0xff] }
 0x426   :  { %7702 = vmatpush1.bf16.msra.mxu1 %v11229_v39  ;;  %7539 = vmatprep.subr.bf16.mxu0 %v11236_v5  ;;  %v11276_v39 = vcombine.high %v4280_v60, %v4284_v61  ;;  %v11278_v5 = vcombine.high %v4281_v62, %v4285_v50  ;;  %v4324_v60 = vld [vmem:[#allocation8 + $0x8f0] sm:$0xff]  ;;  %v4321_v61 = vld [vmem:[#allocation8 + $0x8d8] sm:$0xff] }
 0x427   :  { %7703 = vmatprep.subr.bf16.mxu1 %v11238_v6  ;;  %v4288_v6 = vld [vmem:[#allocation8 + $0x7d0] sm:$0xff] }
 0x428   :  { %v11283_v27 = vcombine.low %v4288_v6, %v4292_v8 }
 0x429   :  { %7540 = vmatpush1.bf16.msra.mxu0 %v11235_v18  ;;  %v11277_v18 = vcombine.low %v4281_v62, %v4285_v50  ;;  %v4325_v62 = vld [vmem:[#allocation8 + $0x8f8] sm:$0xff] }
 0x42a   :  { %7704 = vmatpush1.bf16.msra.mxu1 %v11237_v19  ;;  %7541 = vmatprep.subr.bf16.mxu0 %v11244_v59  ;;  %v11284_v19 = vcombine.high %v4288_v6, %v4292_v8  ;;  %v11286_v59 = vcombine.high %v4289_v10, %v4293_v11  ;;  %v4329_v6 = vld [vmem:[#allocation8 + $0x918] sm:$0xff] }
 0x42b   :  { %7705 = vmatprep.subr.bf16.mxu1 %v11246_v20  ;;  %v4296_v20 = vld [vmem:[#allocation8 + $0x810] sm:$0xff]  ;;  %v4333_v8 = vld [vmem:[#allocation8 + $0x938] sm:$0xff] }
 0x42c   :  { %v11291_v34 = vcombine.low %v4296_v20, %v4300_v22 }
 0x42d   :  { %7542 = vmatpush1.bf16.msra.mxu0 %v11243_v31  ;;  %v11285_v31 = vcombine.low %v4289_v10, %v4293_v11  ;;  %v11317_v10 = vcombine.low %v4321_v61, %v4325_v62 }
 0x42e   :  { %7706 = vmatpush1.bf16.msra.mxu1 %v11245_v29  ;;  %7543 = vmatprep.subr.bf16.mxu0 %v11252_v30  ;;  %v11292_v29 = vcombine.high %v4296_v20, %v4300_v22  ;;  %v11294_v30 = vcombine.high %v4297_v24, %v4301_v26  ;;  %v4341_v20 = vld [vmem:[#allocation8 + $0x978] sm:$0xff] }
 0x42f   :  { %7707 = vmatprep.subr.bf16.mxu1 %v11254_v32  ;;  %v4304_v32 = vld [vmem:[#allocation8 + $0x850] sm:$0xff] }
 0x430   :  { %v11299_v47 = vcombine.low %v4304_v32, %v4308_v56 }
 0x431   :  { %7544 = vmatpush1.bf16.msra.mxu0 %v11251_v38  ;;  %v11293_v38 = vcombine.low %v4297_v24, %v4301_v26  ;;  %v11325_v24 = vcombine.low %v4329_v6, %v4333_v8 }
 0x432   :  { %7708 = vmatpush1.bf16.msra.mxu1 %v11253_v57  ;;  %7545 = vmatprep.subr.bf16.mxu0 %v11260_v40  ;;  %v11300_v57 = vcombine.high %v4304_v32, %v4308_v56  ;;  %v4312_v40 = vld [vmem:[#allocation8 + $0x890] sm:$0xff]  ;;  %v4349_v32 = vld [vmem:[#allocation8 + $0x9b8] sm:$0xff] }
 0x433   :  { %7709 = vmatprep.subr.bf16.mxu1 %v11262_v42  ;;  %v4316_v42 = vld [vmem:[#allocation8 + $0x8b0] sm:$0xff] }
 0x434   :  { %v11307_v50 = vcombine.low %v4312_v40, %v4316_v42 }
 0x435   :  { %7546 = vmatpush1.bf16.msra.mxu0 %v11259_v0  ;;  %v11301_v0 = vcombine.low %v4305_v63, %v4309_v37 }
 0x436   :  { %7710 = vmatpush1.bf16.msra.mxu1 %v11261_v48  ;;  %7547 = vmatprep.subr.bf16.mxu0 %v11268_v23  ;;  %v11308_v48 = vcombine.high %v4312_v40, %v4316_v42  ;;  %v11310_v23 = vcombine.high %v4313_v51, %v4317_v46  ;;  %v4353_v40 = vld [vmem:[#allocation8 + $0x9d8] sm:$0xff] }
 0x437   :  { %7711 = vmatprep.subr.bf16.mxu1 %v11270_v35  ;;  %v4320_v35 = vld [vmem:[#allocation8 + $0x8d0] sm:$0xff]  ;;  %v4357_v42 = vld [vmem:[#allocation8 + $0x9f8] sm:$0xff] }
 0x439   :  { %7548 = vmatpush1.bf16.msra.mxu0 %v11267_v16  ;;  %v11316_v16 = vcombine.high %v4320_v35, %v4324_v60 }
 0x43a   :  { %7712 = vmatpush1.bf16.msra.mxu1 %v11269_v55  ;;  %7549 = vmatprep.subr.bf16.mxu0 %v11276_v39  ;;  %v11318_v55 = vcombine.high %v4321_v61, %v4325_v62  ;;  %v4328_v39 = vld [vmem:[#allocation8 + $0x910] sm:$0xff]  ;;  %v11349_v61 = vcombine.low %v4353_v40, %v4357_v42 }
 0x43b   :  { %7713 = vmatprep.subr.bf16.mxu1 %v11278_v5  ;;  %v4332_v5 = vld [vmem:[#allocation8 + $0x930] sm:$0xff] }
 0x43c   :  { %v11324_v11 = vcombine.high %v4328_v39, %v4332_v5  ;;  %v11323_v22 = vcombine.low %v4328_v39, %v4332_v5  ;;  %v4373_v39 = vld [vmem:[#allocation8 + $0xa78] sm:$0xff] }
 0x43d   :  { %7550 = vmatpush1.bf16.msra.mxu0 %v11275_v12  ;;  %v11326_v12 = vcombine.high %v4329_v6, %v4333_v8 }
 0x43e   :  { %7714 = vmatpush1.bf16.msra.mxu1 %v11277_v18  ;;  %7551 = vmatprep.subr.bf16.mxu0 %v11284_v19  ;;  %v4336_v18 = vld [vmem:[#allocation8 + $0x950] sm:$0xff] }
 0x43f   :  { %7715 = vmatprep.subr.bf16.mxu1 %v11286_v59  ;;  %v4340_v19 = vld [vmem:[#allocation8 + $0x970] sm:$0xff]  ;;  %v4337_v59 = vld [vmem:[#allocation8 + $0x958] sm:$0xff] }
 0x440   :  { %v11332_v26 = vcombine.high %v4336_v18, %v4340_v19  ;;  %v11331_v56 = vcombine.low %v4336_v18, %v4340_v19  ;;  %v4381_v18 = vld [vmem:[#allocation8 + $0xab8] sm:$0xff] }
 0x441   :  { %7552 = vmatpush1.bf16.msra.mxu0 %v11283_v27  ;;  %v11334_v27 = vcombine.high %v4337_v59, %v4341_v20 }
 0x442   :  { %7716 = vmatpush1.bf16.msra.mxu1 %v11285_v31  ;;  %7562 = vmatprep.subr.bf16.mxu0 %v11292_v29  ;;  %v4344_v31 = vld [vmem:[#allocation8 + $0x990] sm:$0xff] }
 0x443   :  { %7726 = vmatprep.subr.bf16.mxu1 %v11294_v30  ;;  %v4348_v29 = vld [vmem:[#allocation8 + $0x9b0] sm:$0xff]  ;;  %v4345_v30 = vld [vmem:[#allocation8 + $0x998] sm:$0xff] }
 0x444   :  { %7554 = vmatmul.mubr.bf16.vlgmr.msra.gmra.mrb[12].mxu0 %v13199_v21  ;;  %v11340_v63 = vcombine.high %v4344_v31, %v4348_v29  ;;  %v11342_v37 = vcombine.high %v4345_v30, %v4349_v32 }
 0x445   :  { %7718 = vmatmul.mubr.bf16.vlgmr.msra.gmra.mrb[12].mxu1 %v13199_v21  ;;  %7563 = vmatpush1.bf16.msra.mxu0 %v11291_v34  ;;  %v11309_v21 = vcombine.low %v4313_v51, %v4317_v46  ;;  %v11333_v34 = vcombine.low %v4337_v59, %v4341_v20  ;;  %v11341_v51 = vcombine.low %v4345_v30, %v4349_v32 }
 0x446   :  { %7594 = vmatprep.mubr.bf16.mxu0 %v13226_v41  ;;  %7727 = vmatpush1.bf16.msra.mxu1 %v11293_v38  ;;  %v4352_v38 = vld [vmem:[#allocation8 + $0x9d0] sm:$0xff] }
 0x447   :  { %7758 = vmatprep.mubr.bf16.mxu1 %v13226_v41  ;;  %7564 = vmatprep.subr.bf16.mxu0 %v11300_v57  ;;  %v11315_v41 = vcombine.low %v4320_v35, %v4324_v60  ;;  %v4356_v57 = vld [vmem:[#allocation8 + $0x9f0] sm:$0xff]  ;;  %v4365_v35 = vld [vmem:[#allocation8 + $0xa38] sm:$0xff] }
 0x448   :  { %7728 = vmatprep.subr.bf16.mxu1 %v11302_v49  ;;  %v11339_v49 = vcombine.low %v4344_v31, %v4348_v29  ;;  %v11348_v46 = vcombine.high %v4352_v38, %v4356_v57  ;;  %v11347_v60 = vcombine.low %v4352_v38, %v4356_v57  ;;  %v4389_v31 = vld [vmem:[#allocation8 + $0xaf8] sm:$0xff] }
 0x449   :  { %7565 = vmatpush1.bf16.msra.mxu0 %v11299_v47  ;;  %v11350_v47 = vcombine.high %v4353_v40, %v4357_v42  ;;  %v4397_v38 = vld [vmem:[#allocation8 + $0xb38] sm:$0xff] }
 0x44a   :  { %7729 = vmatpush1.bf16.msra.mxu1 %v11301_v0  ;;  %7566 = vmatprep.subr.bf16.mxu0 %v11308_v48  ;;  %v4360_v0 = vld [vmem:[#allocation8 + $0xa10] sm:$0xff] }
 0x44b   :  { %7730 = vmatprep.subr.bf16.mxu1 %v11310_v23  ;;  %v4364_v48 = vld [vmem:[#allocation8 + $0xa30] sm:$0xff]  ;;  %v4361_v23 = vld [vmem:[#allocation8 + $0xa18] sm:$0xff] }
 0x44c   :  { %v11356_v62 = vcombine.high %v4360_v0, %v4364_v48  ;;  %v11355_v5 = vcombine.low %v4360_v0, %v4364_v48  ;;  %v11357_v6 = vcombine.low %v4361_v23, %v4365_v35  ;;  %v4405_v0 = vld [vmem:[#allocation8 + $0xb78] sm:$0xff] }
 0x44d   :  { %7567 = vmatpush1.bf16.msra.mxu0 %v11307_v50  ;;  %v11358_v50 = vcombine.high %v4361_v23, %v4365_v35 }
 0x44e   :  { %7731 = vmatpush1.bf16.msra.mxu1 %v11309_v21  ;;  %7568 = vmatprep.subr.bf16.mxu0 %v11316_v16  ;;  %v4368_v21 = vld [vmem:[#allocation8 + $0xa50] sm:$0xff] }
 0x44f   :  { %7732 = vmatprep.subr.bf16.mxu1 %v11318_v55  ;;  %v4372_v16 = vld [vmem:[#allocation8 + $0xa70] sm:$0xff]  ;;  %v4369_v55 = vld [vmem:[#allocation8 + $0xa58] sm:$0xff] }
 0x450   :  { %v11364_v8 = vcombine.high %v4368_v21, %v4372_v16  ;;  %v11363_v19 = vcombine.low %v4368_v21, %v4372_v16  ;;  %v11365_v59 = vcombine.low %v4369_v55, %v4373_v39  ;;  %v4413_v21 = vld [vmem:[#allocation8 + $0xbb8] sm:$0xff] }
 0x451   :  { %7569 = vmatpush1.bf16.msra.mxu0 %v11315_v41  ;;  %v11366_v41 = vcombine.high %v4369_v55, %v4373_v39 }
 0x452   :  { %7733 = vmatpush1.bf16.msra.mxu1 %v11317_v10  ;;  %7570 = vmatprep.subr.bf16.mxu0 %v11324_v11  ;;  %v4376_v10 = vld [vmem:[#allocation8 + $0xa90] sm:$0xff] }
 0x453   :  { %7734 = vmatprep.subr.bf16.mxu1 %v11326_v12  ;;  %v4380_v11 = vld [vmem:[#allocation8 + $0xab0] sm:$0xff]  ;;  %v4377_v12 = vld [vmem:[#allocation8 + $0xa98] sm:$0xff] }
 0x454   :  { %v11372_v20 = vcombine.high %v4376_v10, %v4380_v11  ;;  %v11371_v29 = vcombine.low %v4376_v10, %v4380_v11  ;;  %v11373_v30 = vcombine.low %v4377_v12, %v4381_v18  ;;  %v4421_v10 = vld [vmem:[#allocation8 + $0xbf8] sm:$0xff] }
 0x455   :  { %7571 = vmatpush1.bf16.msra.mxu0 %v11323_v22  ;;  %v11374_v22 = vcombine.high %v4377_v12, %v4381_v18 }
 0x456   :  { %7735 = vmatpush1.bf16.msra.mxu1 %v11325_v24  ;;  %7572 = vmatprep.subr.bf16.mxu0 %v11332_v26  ;;  %v4384_v24 = vld [vmem:[#allocation8 + $0xad0] sm:$0xff] }
 0x457   :  { %7736 = vmatprep.subr.bf16.mxu1 %v11334_v27  ;;  %v4388_v26 = vld [vmem:[#allocation8 + $0xaf0] sm:$0xff]  ;;  %v4385_v27 = vld [vmem:[#allocation8 + $0xad8] sm:$0xff] }
 0x458   :  { %v11380_v32 = vcombine.high %v4384_v24, %v4388_v26  ;;  %v11379_v57 = vcombine.low %v4384_v24, %v4388_v26  ;;  %v11381_v40 = vcombine.low %v4385_v27, %v4389_v31  ;;  %v4429_v24 = vld [vmem:[#allocation8 + $0xc38] sm:$0xff] }
 0x459   :  { %7573 = vmatpush1.bf16.msra.mxu0 %v11331_v56  ;;  %v11382_v56 = vcombine.high %v4385_v27, %v4389_v31 }
 0x45a   :  { %7737 = vmatpush1.bf16.msra.mxu1 %v11333_v34  ;;  %7574 = vmatprep.subr.bf16.mxu0 %v11340_v63  ;;  %v4392_v34 = vld [vmem:[#allocation8 + $0xb10] sm:$0xff] }
 0x45b   :  { %7738 = vmatprep.subr.bf16.mxu1 %v11342_v37  ;;  %v4396_v63 = vld [vmem:[#allocation8 + $0xb30] sm:$0xff]  ;;  %v4393_v37 = vld [vmem:[#allocation8 + $0xb18] sm:$0xff] }
 0x45c   :  { %v11388_v42 = vcombine.high %v4392_v34, %v4396_v63  ;;  %v11387_v48 = vcombine.low %v4392_v34, %v4396_v63  ;;  %v11389_v23 = vcombine.low %v4393_v37, %v4397_v38  ;;  %v4433_v34 = vld [vmem:[#allocation8 + $0xc58] sm:$0xff] }
 0x45d   :  { %7575 = vmatpush1.bf16.msra.mxu0 %v11339_v49  ;;  %v11390_v49 = vcombine.high %v4393_v37, %v4397_v38  ;;  %v4437_v63 = vld [vmem:[#allocation8 + $0xc78] sm:$0xff] }
 0x45e   :  { %7739 = vmatpush1.bf16.msra.mxu1 %v11341_v51  ;;  %7576 = vmatprep.subr.bf16.mxu0 %v11348_v46  ;;  %v4400_v51 = vld [vmem:[#allocation8 + $0xb50] sm:$0xff] }
 0x45f   :  { %7740 = vmatprep.subr.bf16.mxu1 %v11350_v47  ;;  %v4404_v46 = vld [vmem:[#allocation8 + $0xb70] sm:$0xff]  ;;  %v4401_v47 = vld [vmem:[#allocation8 + $0xb58] sm:$0xff] }
 0x460   :  { %v11396_v35 = vcombine.high %v4400_v51, %v4404_v46  ;;  %v11395_v16 = vcombine.low %v4400_v51, %v4404_v46  ;;  %v11397_v55 = vcombine.low %v4401_v47, %v4405_v0  ;;  %v4445_v51 = vld [vmem:[#allocation8 + $0xcb8] sm:$0xff] }
 0x461   :  { %7577 = vmatpush1.bf16.msra.mxu0 %v11347_v60  ;;  %v11398_v60 = vcombine.high %v4401_v47, %v4405_v0  ;;  %v11429_v47 = vcombine.low %v4433_v34, %v4437_v63 }
 0x462   :  { %7741 = vmatpush1.bf16.msra.mxu1 %v11349_v61  ;;  %7578 = vmatprep.subr.bf16.mxu0 %v11356_v62  ;;  %v4408_v61 = vld [vmem:[#allocation8 + $0xb90] sm:$0xff] }
 0x463   :  { %7742 = vmatprep.subr.bf16.mxu1 %v11358_v50  ;;  %v4412_v62 = vld [vmem:[#allocation8 + $0xbb0] sm:$0xff]  ;;  %v4409_v50 = vld [vmem:[#allocation8 + $0xb98] sm:$0xff] }
 0x464   :  { %v11404_v39 = vcombine.high %v4408_v61, %v4412_v62  ;;  %v11403_v11 = vcombine.low %v4408_v61, %v4412_v62  ;;  %v11405_v12 = vcombine.low %v4409_v50, %v4413_v21  ;;  %v4453_v61 = vld [vmem:[#allocation8 + $0xcf8] sm:$0xff] }
 0x465   :  { %7579 = vmatpush1.bf16.msra.mxu0 %v11355_v5  ;;  %v11406_v5 = vcombine.high %v4409_v50, %v4413_v21 }
 0x466   :  { %7743 = vmatpush1.bf16.msra.mxu1 %v11357_v6  ;;  %7580 = vmatprep.subr.bf16.mxu0 %v11364_v8  ;;  %v4416_v6 = vld [vmem:[#allocation8 + $0xbd0] sm:$0xff] }
 0x467   :  { %7744 = vmatprep.subr.bf16.mxu1 %v11366_v41  ;;  %v4420_v8 = vld [vmem:[#allocation8 + $0xbf0] sm:$0xff]  ;;  %v4417_v41 = vld [vmem:[#allocation8 + $0xbd8] sm:$0xff] }
 0x468   :  { %v11412_v18 = vcombine.high %v4416_v6, %v4420_v8  ;;  %v11411_v26 = vcombine.low %v4416_v6, %v4420_v8  ;;  %v11413_v27 = vcombine.low %v4417_v41, %v4421_v10 }
 0x469   :  { %7581 = vmatpush1.bf16.msra.mxu0 %v11363_v19  ;;  %v11414_v19 = vcombine.high %v4417_v41, %v4421_v10  ;;  %v4464_v10 = vld [vmem:[#allocation8 + $0xd50] sm:$0xff] }
 0x46a   :  { %7745 = vmatpush1.bf16.msra.mxu1 %v11365_v59  ;;  %7582 = vmatprep.subr.bf16.mxu0 %v11372_v20  ;;  %v4424_v59 = vld [vmem:[#allocation8 + $0xc10] sm:$0xff] }
 0x46b   :  { %7746 = vmatprep.subr.bf16.mxu1 %v11374_v22  ;;  %v4428_v20 = vld [vmem:[#allocation8 + $0xc30] sm:$0xff]  ;;  %v4425_v22 = vld [vmem:[#allocation8 + $0xc18] sm:$0xff] }
 0x46c   :  { %v11420_v31 = vcombine.high %v4424_v59, %v4428_v20  ;;  %v11421_v37 = vcombine.low %v4425_v22, %v4429_v24 }
 0x46d   :  { %7583 = vmatpush1.bf16.msra.mxu0 %v11371_v29  ;;  %v11422_v29 = vcombine.high %v4425_v22, %v4429_v24 }
 0x46e   :  { %7747 = vmatpush1.bf16.msra.mxu1 %v11373_v30  ;;  %7584 = vmatprep.subr.bf16.mxu0 %v11380_v32  ;;  %v4432_v30 = vld [vmem:[#allocation8 + $0xc50] sm:$0xff] }
 0x46f   :  { %7748 = vmatprep.subr.bf16.mxu1 %v11382_v56  ;;  %v4436_v32 = vld [vmem:[#allocation8 + $0xc70] sm:$0xff]  ;;  %v11419_v56 = vcombine.low %v4424_v59, %v4428_v20  ;;  %v13264_v59 = vld [vmem:[#allocation10] sm:$0xff] }
 0x470   :  { %v11428_v38 = vcombine.high %v4432_v30, %v4436_v32  ;;  %v11427_v46 = vcombine.low %v4432_v30, %v4436_v32  ;;  %v4473_v30 = vld [vmem:[#allocation8 + $0xd98] sm:$0xff] }
 0x471   :  { %7585 = vmatpush1.bf16.msra.mxu0 %v11379_v57  ;;  %v4440_v57 = vld [vmem:[#allocation8 + $0xc90] sm:$0xff]  ;;  %v4477_v32 = vld [vmem:[#allocation8 + $0xdb8] sm:$0xff] }
 0x472   :  { %7749 = vmatpush1.bf16.msra.mxu1 %v11381_v40  ;;  %7586 = vmatprep.subr.bf16.mxu0 %v11388_v42  ;;  %v4444_v40 = vld [vmem:[#allocation8 + $0xcb0] sm:$0xff]  ;;  %v11430_v42 = vcombine.high %v4433_v34, %v4437_v63  ;;  %v4567_v34 = vrot.slane %v13264_v59, %v13157_v17 }
 0x473   :  { %7750 = vmatprep.subr.bf16.mxu1 %v11390_v49  ;;  %v4441_v49 = vld [vmem:[#allocation8 + $0xc98] sm:$0xff]  ;;  %v11436_v0 = vcombine.high %v4440_v57, %v4444_v40  ;;  %v11435_v62 = vcombine.low %v4440_v57, %v4444_v40 }
 0x475   :  { %7587 = vmatpush1.bf16.msra.mxu0 %v11387_v48  ;;  %v11438_v48 = vcombine.high %v4441_v49, %v4445_v51 }
 0x476   :  { %7751 = vmatpush1.bf16.msra.mxu1 %v11389_v23  ;;  %7588 = vmatprep.subr.bf16.mxu0 %v11396_v35  ;;  %v4448_v23 = vld [vmem:[#allocation8 + $0xcd0] sm:$0xff] }
 0x477   :  { %7752 = vmatprep.subr.bf16.mxu1 %v11398_v60  ;;  %v4452_v35 = vld [vmem:[#allocation8 + $0xcf0] sm:$0xff]  ;;  %v4449_v60 = vld [vmem:[#allocation8 + $0xcd8] sm:$0xff] }
 0x478   :  { %v11444_v50 = vcombine.high %v4448_v23, %v4452_v35  ;;  %v11446_v21 = vcombine.high %v4449_v60, %v4453_v61  ;;  %v11445_v6 = vcombine.low %v4449_v60, %v4453_v61 }
 0x479   :  { %7589 = vmatpush1.bf16.msra.mxu0 %v11395_v16  ;;  %v4456_v16 = vld [vmem:[#allocation8 + $0xd10] sm:$0xff] }
 0x47a   :  { %7753 = vmatpush1.bf16.msra.mxu1 %v11397_v55  ;;  %7590 = vmatprep.subr.bf16.mxu0 %v11404_v39  ;;  %v4460_v55 = vld [vmem:[#allocation8 + $0xd30] sm:$0xff]  ;;  %v4457_v39 = vld [vmem:[#allocation8 + $0xd18] sm:$0xff] }
 0x47b   :  { %7754 = vmatprep.subr.bf16.mxu1 %v11406_v5  ;;  %v4461_v5 = vld [vmem:[#allocation8 + $0xd38] sm:$0xff]  ;;  %v11452_v8 = vcombine.high %v4456_v16, %v4460_v55 }
 0x47c   :  { %v11454_v41 = vcombine.high %v4457_v39, %v4461_v5  ;;  %v11453_v20 = vcombine.low %v4457_v39, %v4461_v5  ;;  %v11469_v5 = vcombine.low %v4473_v30, %v4477_v32 }
 0x47d   :  { %7591 = vmatpush1.bf16.msra.mxu0 %v11403_v11  ;;  %v4468_v11 = vld [vmem:[#allocation8 + $0xd70] sm:$0xff] }
 0x47e   :  { %7755 = vmatpush1.bf16.msra.mxu1 %v11405_v12  ;;  %7592 = vmatprep.subr.bf16.mxu0 %v11412_v18  ;;  %v4465_v12 = vld [vmem:[#allocation8 + $0xd58] sm:$0xff]  ;;  %v11460_v22 = vcombine.high %v4464_v10, %v4468_v11  ;;  %v11459_v63 = vcombine.low %v4464_v10, %v4468_v11  ;;  %v4488_v10 = vld [vmem:[#allocation8 + $0xe10] sm:$0xff] }
 0x47f   :  { %7756 = vmatprep.subr.bf16.mxu1 %v11414_v19  ;;  %v4469_v18 = vld [vmem:[#allocation8 + $0xd78] sm:$0xff]  ;;  %v11451_v19 = vcombine.low %v4456_v16, %v4460_v55  ;;  %v4492_v11 = vld [vmem:[#allocation8 + $0xe30] sm:$0xff] }
 0x480   :  { %v11462_v24 = vcombine.high %v4465_v12, %v4469_v18 }
 0x481   :  { %7593 = vmatpush1.bf16.msra.mxu0 %v11411_v26  ;;  %v4472_v26 = vld [vmem:[#allocation8 + $0xd90] sm:$0xff] }
 0x482   :  { %7757 = vmatpush1.bf16.msra.mxu1 %v11413_v27  ;;  %7603 = vmatprep.subr.bf16.mxu0 %v11420_v31  ;;  %v4476_v27 = vld [vmem:[#allocation8 + $0xdb0] sm:$0xff]  ;;  %v4555_v31 = vrot.slane %v13264_v59, %v13148_v7 }
 0x483   :  { %7767 = vmatprep.subr.bf16.mxu1 %v11422_v29  ;;  %v4563_v29 = vrot.slane %v13264_v59, %v13151_v13 }
 0x484   :  { %7595 = vmatmul.mubr.bf16.vlgmr.msra.gmra.mrb[12].mxu0 %v13231_v45 }
 0x485   :  { %7759 = vmatmul.mubr.bf16.vlgmr.msra.gmra.mrb[12].mxu1 %v13231_v45  ;;  %7604 = vmatpush1.bf16.msra.mxu0 %v11419_v56  ;;  %v11437_v45 = vcombine.low %v4441_v49, %v4445_v51  ;;  %v4559_v56 = vrot.slane %v13264_v59, %v13154_v33  ;;  %v4480_v49 = vld [vmem:[#allocation8 + $0xdd0] sm:$0xff] }
 0x486   :  { %7635 = vmatprep.mubr.bf16.mxu0 %v13238_v52  ;;  %7768 = vmatpush1.bf16.msra.mxu1 %v11421_v37  ;;  %v11461_v37 = vcombine.low %v4465_v12, %v4469_v18  ;;  %v4484_v51 = vld [vmem:[#allocation8 + $0xdf0] sm:$0xff]  ;;  %v4489_v12 = vld [vmem:[#allocation8 + $0xe18] sm:$0xff] }
 0x487   :  { %7799 = vmatprep.mubr.bf16.mxu1 %v13238_v52  ;;  %7605 = vmatprep.subr.bf16.mxu0 %v11428_v38  ;;  %v11443_v52 = vcombine.low %v4448_v23, %v4452_v35  ;;  %v11468_v38 = vcombine.high %v4472_v26, %v4476_v27  ;;  %v4481_v23 = vld [vmem:[#allocation8 + $0xdd8] sm:$0xff] }
 0x488   :  { %7769 = vmatprep.subr.bf16.mxu1 %v11430_v42  ;;  %v11470_v42 = vcombine.high %v4473_v30, %v4477_v32  ;;  %v4485_v35 = vld [vmem:[#allocation8 + $0xdf8] sm:$0xff]  ;;  %v4496_v30 = vld [vmem:[#allocation8 + $0xe50] sm:$0xff] }
 0x489   :  { %7606 = vmatpush1.bf16.msra.mxu0 %v11427_v46  ;;  %v4493_v18 = vld [vmem:[#allocation8 + $0xe38] sm:$0xff]  ;;  %v4500_v32 = vld [vmem:[#allocation8 + $0xe70] sm:$0xff] }
 0x48a   :  { %7770 = vmatpush1.bf16.msra.mxu1 %v11429_v47  ;;  %7607 = vmatprep.subr.bf16.mxu0 %v11436_v0 }
 0x48b   :  { %7771 = vmatprep.subr.bf16.mxu1 %v11438_v48 }
 0x48d   :  { %7608 = vmatpush1.bf16.msra.mxu0 %v11435_v62 }
 0x48e   :  { %7772 = vmatpush1.bf16.msra.mxu1 %v11437_v45  ;;  %7609 = vmatprep.subr.bf16.mxu0 %v11444_v50  ;;  %v11467_v50 = vcombine.low %v4472_v26, %v4476_v27  ;;  %v11484_v26 = vcombine.high %v4488_v10, %v4492_v11 }
 0x48f   :  { %7773 = vmatprep.subr.bf16.mxu1 %v11446_v21 }
 0x491   :  { %7610 = vmatpush1.bf16.msra.mxu0 %v11443_v52  ;;  %v11476_v52 = vcombine.high %v4480_v49, %v4484_v51 }
 0x492   :  { %7774 = vmatpush1.bf16.msra.mxu1 %v11445_v6  ;;  %7611 = vmatprep.subr.bf16.mxu0 %v11452_v8 }
 0x493   :  { %7775 = vmatprep.subr.bf16.mxu1 %v11454_v41  ;;  %v11478_v41 = vcombine.high %v4481_v23, %v4485_v35 }
 0x495   :  { %7612 = vmatpush1.bf16.msra.mxu0 %v11451_v19 }
 0x496   :  { %7776 = vmatpush1.bf16.msra.mxu1 %v11453_v20  ;;  %7613 = vmatprep.subr.bf16.mxu0 %v11460_v22  ;;  %v11475_v22 = vcombine.low %v4480_v49, %v4484_v51  ;;  %v4508_v49 = vld [vmem:[#allocation8 + $0xeb0] sm:$0xff]  ;;  %v4505_v51 = vld [vmem:[#allocation8 + $0xe98] sm:$0xff] }
 0x497   :  { %v7309_v57 = vpop.f32.mrb[8].mxu0  ;;  %v7473_v40 = vpop.f32.mrb[8].mxu1  ;;  %7777 = vmatprep.subr.bf16.mxu1 %v11462_v24  ;;  %v11477_v24 = vcombine.low %v4481_v23, %v4485_v35  ;;  %v4512_v35 = vld [vmem:[#allocation8 + $0xed0] sm:$0xff] }
 0x498   :  { %v11960_v46 = vadd.f32 %v7309_v57, %v4555_v31  ;;  %v11962_v47 = vadd.f32 %v7473_v40, %v4563_v29  ;;  %v7311_v0 = vpop.f32.mrb[9].mxu0  ;;  %v7475_v48 = vpop.f32.mrb[9].mxu1  ;;  %v11486_v29 = vcombine.high %v4489_v12, %v4493_v18  ;;  %v11492_v57 = vcombine.high %v4496_v30, %v4500_v32 }
 0x499   :  { %v11961_v60 = vadd.f32 %v7311_v0, %v4559_v56  ;;  %v11963_v61 = vadd.f32 %v7475_v48, %v4567_v34  ;;  %v7313_v62 = vpop.f32.mrb[10].mxu0  ;;  %v7477_v45 = vpop.f32.mrb[10].mxu1  ;;  %7614 = vmatpush1.bf16.msra.mxu0 %v11459_v63  ;;  %v4497_v56 = vld [vmem:[#allocation8 + $0xe58] sm:$0xff]  ;;  %v11483_v63 = vcombine.low %v4488_v10, %v4492_v11 }
 0x49a   :  { %v13274_v21 = vmax.f32 %v11960_v46, 0.0  ;;  %v13276_v16 = vmax.f32 %v11962_v47, 0.0  ;;  %7778 = vmatpush1.bf16.msra.mxu1 %v11461_v37  ;;  %v7314_v55 = vpop.f32.mrb[11].mxu0  ;;  %v7478_v39 = vpop.f32.mrb[11].mxu1  ;;  %7615 = vmatprep.subr.bf16.mxu0 %v11468_v38  ;;  %v4501_v34 = vld [vmem:[#allocation8 + $0xe78] sm:$0xff]  ;;  %v11485_v38 = vcombine.low %v4489_v12, %v4493_v18  ;;  %v11491_v47 = vcombine.low %v4496_v30, %v4500_v32  ;;  %v4536_v32 = vld [vmem:[#allocation8 + $0xf90] sm:$0xff] }
 0x49b   :  { %v13278_v6 = vmax.f32 %v11961_v60, 0.0  ;;  %v13280_v8 = vmax.f32 %v11963_v61, 0.0  ;;  %7779 = vmatprep.subr.bf16.mxu1 %v11470_v42  ;;  %v11494_v40 = vcombine.high %v4497_v56, %v4501_v34  ;;  %v4504_v42 = vld [vmem:[#allocation8 + $0xe90] sm:$0xff]  ;;  %v4509_v46 = vld [vmem:[#allocation8 + $0xeb8] sm:$0xff]  ;;  %v11493_v0 = vcombine.low %v4497_v56, %v4501_v34 }
 0x49c   :  { %v11500_v48 = vcombine.high %v4504_v42, %v4508_v49  ;;  %v11502_v23 = vcombine.high %v4505_v51, %v4509_v46  ;;  %v4516_v60 = vld [vmem:[#allocation8 + $0xef0] sm:$0xff]  ;;  %v4513_v61 = vld [vmem:[#allocation8 + $0xed8] sm:$0xff]  ;;  %v11499_v45 = vcombine.low %v4504_v42, %v4508_v49 }
 0x49d   :  { %v7824_v19 = vcombine.low %v13274_v21, %v13278_v6  ;;  %v7825_v20 = vcombine.low %v13276_v16, %v13280_v8  ;;  %7616 = vmatpush1.bf16.msra.mxu0 %v11467_v50  ;;  %v4517_v62 = vld [vmem:[#allocation8 + $0xef8] sm:$0xff]  ;;  %v11501_v50 = vcombine.low %v4505_v51, %v4509_v46  ;;  %v11508_v55 = vcombine.high %v4512_v35, %v4516_v60  ;;  %v4540_v56 = vld [vmem:[#allocation8 + $0xfb0] sm:$0xff] }
 0x49e   :  { %7780 = vmatpush1.bf16.msra.mxu1 %v11469_v5  ;;  %7617 = vmatprep.subr.bf16.mxu0 %v11476_v52  ;;  %v11510_v39 = vcombine.high %v4513_v61, %v4517_v62  ;;  %v4520_v5 = vld [vmem:[#allocation8 + $0xf10] sm:$0xff]  ;;  %v4525_v10 = vld [vmem:[#allocation8 + $0xf38] sm:$0xff]  ;;  %v11507_v11 = vcombine.low %v4512_v35, %v4516_v60  ;;  %v11509_v12 = vcombine.low %v4513_v61, %v4517_v62  ;;  %v12114_v61 = vld [vmem:[#allocation11 + $0x40] sm:$0xff]  }
 0x49f   :  { %v7832_v27 = vrot.slane %v7824_v19, %v13061_v53  ;;  %v7839_v31 = vrot.slane %v7825_v20, %v13061_v53  ;;  %7781 = vmatprep.subr.bf16.mxu1 %v11478_v41  ;;  %v4524_v52 = vld [vmem:[#allocation8 + $0xf30] sm:$0xff]  ;;  %v4521_v41 = vld [vmem:[#allocation8 + $0xf18] sm:$0xff]  ;;  %v12115_v62 = vld [vmem:[#allocation11 + $0xc0] sm:$0xff]  }
 0x4a0   :  { %v11516_v18 = vcombine.high %v4520_v5, %v4524_v52  ;;  %v11518_v19 = vcombine.high %v4521_v41, %v4525_v10  ;;  %v4528_v20 = vld [vmem:[#allocation8 + $0xf50] sm:$0xff]  ;;  %v4537_v34 = vld [vmem:[#allocation8 + $0xf98] sm:$0xff] }
 0x4a1   :  { %7618 = vmatpush1.bf16.msra.mxu0 %v11475_v22  ;;  %v7840_v37 = vcombine.low %v7832_v27, %v7839_v31  ;;  %v4532_v22 = vld [vmem:[#allocation8 + $0xf70] sm:$0xff]  ;;  %v11515_v27 = vcombine.low %v4520_v5, %v4524_v52  ;;  %v11517_v31 = vcombine.low %v4521_v41, %v4525_v10  ;;  %v4545_v51 = vld [vmem:[#allocation8 + $0xfd8] sm:$0xff]  ;;  %v7865_v52 = vpack.c.bf16 %v13280_v8, %v13280_v8  ;;  %v12127_v8 = vld [vmem:[#allocation11 + $0xd8] sm:$0xff]  }
 0x4a2   :  { %7782 = vmatpush1.bf16.msra.mxu1 %v11477_v24  ;;  %7619 = vmatprep.subr.bf16.mxu0 %v11484_v26  ;;  %v4529_v24 = vld [vmem:[#allocation8 + $0xf58] sm:$0xff]  ;;  %v4544_v42 = vld [vmem:[#allocation8 + $0xfd0] sm:$0xff] }
 0x4a3   :  { %7783 = vmatprep.subr.bf16.mxu1 %v11486_v29  ;;  %7860 = vst [vmem:[#allocation18] sm:$0xff] %v7840_v37  ;;  %v4533_v26 = vld [vmem:[#allocation8 + $0xf78] sm:$0xff]  ;;  %v11524_v29 = vcombine.high %v4528_v20, %v4532_v22  ;;  %v11523_v37 = vcombine.low %v4528_v20, %v4532_v22  ;;  %v4548_v49 = vld [vmem:[#allocation8 + $0xff0] sm:$0xff]  ;;  %v12129_v20 = vld [vmem:[#allocation11 + $0x98] sm:$0xff]  }
 0x4a4   :  { %v11526_v30 = vcombine.high %v4529_v24, %v4533_v26  ;;  %v4549_v46 = vld [vmem:[#allocation8 + $0xff8] sm:$0xff]  ;;  %v11539_v35 = vcombine.low %v4544_v42, %v4548_v49  ;;  %v12119_v5 = vld [vmem:[#allocation11 + $0xc8] sm:$0xff]   ;;  %v12130_v22 = vld [vmem:[#allocation11 + $0x60] sm:$0xff]  }
 0x4a5   :  { %7620 = vmatpush1.bf16.msra.mxu0 %v11483_v63  ;;  %v4541_v63 = vld [vmem:[#allocation8 + $0xfb8] sm:$0xff]  ;;  %v11541_v60 = vcombine.low %v4545_v51, %v4549_v46  ;;  %v12120_v41 = vld [vmem:[#allocation11 + $0x8] sm:$0xff]  }
 0x4a6   :  { %7784 = vmatpush1.bf16.msra.mxu1 %v11485_v38  ;;  %7621 = vmatprep.subr.bf16.mxu0 %v11492_v57  ;;  %v11525_v38 = vcombine.low %v4529_v24, %v4533_v26  ;;  %v11532_v57 = vcombine.high %v4536_v32, %v4540_v56  ;;  %v12121_v10 = vld [vmem:[#allocation11 + $0x88] sm:$0xff]   ;;  %v12131_v24 = vld [vmem:[#allocation11 + $0xe0] sm:$0xff]  }
 0x4a7   :  { %7785 = vmatprep.subr.bf16.mxu1 %v11494_v40  ;;  %v11534_v40 = vcombine.high %v4537_v34, %v4541_v63  ;;  %v12132_v26 = vld [vmem:[#allocation11 + $0x20] sm:$0xff]  }
 0x4a9   :  { %7622 = vmatpush1.bf16.msra.mxu0 %v11491_v47  ;;  %v11531_v47 = vcombine.low %v4536_v32, %v4540_v56  ;;  %v12137_v32 = vld [vmem:[#allocation11 + $0xa8] sm:$0xff]   ;;  %v12138_v56 = vld [vmem:[#allocation11 + $0x70] sm:$0xff]  }
 0x4aa   :  { %7786 = vmatpush1.bf16.msra.mxu1 %v11493_v0  ;;  %7623 = vmatprep.subr.bf16.mxu0 %v11500_v48  ;;  %v11533_v0 = vcombine.low %v4537_v34, %v4541_v63  ;;  %v11540_v48 = vcombine.high %v4544_v42, %v4548_v49  ;;  %v12139_v34 = vld [vmem:[#allocation11 + $0xf0] sm:$0xff]   ;;  %v12145_v42 = vld [vmem:[#allocation11 + $0xb8] sm:$0xff]   ;;  %v12146_v49 = vld [vmem:[#allocation11 + $0x140] sm:$0xff]  }
 0x4ab   :  { %7787 = vmatprep.subr.bf16.mxu1 %v11502_v23  ;;  %v11542_v23 = vcombine.high %v4545_v51, %v4549_v46  ;;  %v12140_v63 = vld [vmem:[#allocation11 + $0x30] sm:$0xff]   ;;  %v12147_v51 = vld [vmem:[#allocation11 + $0x1c0] sm:$0xff]  }
 0x4ac   :  { %v12148_v46 = vld [vmem:[#allocation11 + $0x100] sm:$0xff]  }
 0x4ad   :  { %7624 = vmatpush1.bf16.msra.mxu0 %v11499_v45  ;;  %v12116_v45 = vld [vmem:[#allocation11] sm:$0xff]  }
 0x4ae   :  { %7788 = vmatpush1.bf16.msra.mxu1 %v11501_v50  ;;  %7625 = vmatprep.subr.bf16.mxu0 %v11508_v55  ;;  %v12117_v50 = vld [vmem:[#allocation11 + $0x80] sm:$0xff]   ;;  %v12118_v55 = vld [vmem:[#allocation11 + $0x48] sm:$0xff]  }
 0x4af   :  { %7789 = vmatprep.subr.bf16.mxu1 %v11510_v39  ;;  %v7863_v39 = vpack.c.bf16 %v13278_v6, %v13278_v6  ;;  %v12124_v6 = vld [vmem:[#allocation11 + $0x10] sm:$0xff]  }
 0x4b1   :  { %7626 = vmatpush1.bf16.msra.mxu0 %v11507_v11  ;;  %v12122_v11 = vld [vmem:[#allocation11 + $0x50] sm:$0xff]  }
 0x4b2   :  { %7790 = vmatpush1.bf16.msra.mxu1 %v11509_v12  ;;  %7627 = vmatprep.subr.bf16.mxu0 %v11516_v18  ;;  %v12123_v12 = vld [vmem:[#allocation11 + $0xd0] sm:$0xff]  }
 0x4b3   :  { %7791 = vmatprep.subr.bf16.mxu1 %v11518_v19  ;;  %v12125_v18 = vld [vmem:[#allocation11 + $0x90] sm:$0xff]   ;;  %v12126_v19 = vld [vmem:[#allocation11 + $0x58] sm:$0xff]  }
 0x4b5   :  { %7628 = vmatpush1.bf16.msra.mxu0 %v11515_v27  ;;  %v12133_v27 = vld [vmem:[#allocation11 + $0xa0] sm:$0xff]  }
 0x4b6   :  { %7792 = vmatpush1.bf16.msra.mxu1 %v11517_v31  ;;  %7629 = vmatprep.subr.bf16.mxu0 %v11524_v29  ;;  %v12134_v31 = vld [vmem:[#allocation11 + $0x68] sm:$0xff]  }
 0x4b7   :  { %7793 = vmatprep.subr.bf16.mxu1 %v11526_v30  ;;  %v12135_v29 = vld [vmem:[#allocation11 + $0xe8] sm:$0xff]  }
 0x4b8   :  { %v12136_v30 = vld [vmem:[#allocation11 + $0x28] sm:$0xff]  }
 0x4b9   :  { %7630 = vmatpush1.bf16.msra.mxu0 %v11523_v37  ;;  %v12141_v37 = vld [vmem:[#allocation11 + $0xb0] sm:$0xff]  }
 0x4ba   :  { %7794 = vmatpush1.bf16.msra.mxu1 %v11525_v38  ;;  %7631 = vmatprep.subr.bf16.mxu0 %v11532_v57  ;;  %v12142_v38 = vld [vmem:[#allocation11 + $0x78] sm:$0xff]  }
 0x4bb   :  { %7795 = vmatprep.subr.bf16.mxu1 %v11534_v40  ;;  %v12143_v57 = vld [vmem:[#allocation11 + $0xf8] sm:$0xff]  }
 0x4bc   :  { %v12144_v40 = vld [vmem:[#allocation11 + $0x38] sm:$0xff]  }
 0x4bd   :  { %7632 = vmatpush1.bf16.msra.mxu0 %v11531_v47  ;;  %v7862_v47 = vpack.c.bf16 %v13274_v21, %v13274_v21  ;;  %v12156_v21 = vld [vmem:[#allocation11 + $0x110] sm:$0xff]  }
 0x4be   :  { %7796 = vmatpush1.bf16.msra.mxu1 %v11533_v0  ;;  %7633 = vmatprep.subr.bf16.mxu0 %v11540_v48  ;;  %v12149_v0 = vld [vmem:[#allocation11 + $0x180] sm:$0xff]   ;;  %v12150_v48 = vld [vmem:[#allocation11 + $0x148] sm:$0xff]  }
 0x4bf   :  { %7797 = vmatprep.subr.bf16.mxu1 %v11542_v23  ;;  %v7864_v23 = vpack.c.bf16 %v13276_v16, %v13276_v16  ;;  %v12159_v16 = vld [vmem:[#allocation11 + $0x1d8] sm:$0xff]  }
 0x4c1   :  { %7634 = vmatpush1.bf16.msra.mxu0 %v11539_v35  ;;  %v12151_v35 = vld [vmem:[#allocation11 + $0x1c8] sm:$0xff]  }
 0x4c2   :  { %7798 = vmatpush1.bf16.msra.mxu1 %v11541_v60  ;;  %11864 = vmatprep.subr.bf16.mxu0 %v12114_v61  ;;  %v12152_v60 = vld [vmem:[#allocation11 + $0x108] sm:$0xff]  }
 0x4c3   :  { %11886 = vmatprep.subr.bf16.mxu1 %v12115_v62  ;;  %v12153_v61 = vld [vmem:[#allocation11 + $0x188] sm:$0xff]   ;;  %v12154_v62 = vld [vmem:[#allocation11 + $0x150] sm:$0xff]  }
 0x4c4   :  { %7636 = vmatmul.mubr.bf16.vlgmr.msra.gmra.mrb[12].mxu0 %v13246_v15 }
 0x4c5   :  { %7800 = vmatmul.mubr.bf16.vlgmr.msra.gmra.mrb[12].mxu1 %v13246_v15  ;;  %11865 = vmatpush3.bf16.msra.mxu0 %v12116_v45  ;;  %v12128_v15 = vld [vmem:[#allocation11 + $0x18] sm:$0xff]   ;;  %v12155_v45 = vld [vmem:[#allocation11 + $0x1d0] sm:$0xff]  }
 0x4c6   :  { %8421 = vmatprep.mubr.bf16.mxu0 %v7863_v39  ;;  %11887 = vmatpush3.bf16.msra.mxu1 %v12117_v50  ;;  %v12157_v50 = vld [vmem:[#allocation11 + $0x190] sm:$0xff]   ;;  %v12160_v39 = vld [vmem:[#allocation11 + $0x118] sm:$0xff]  }
 0x4c7   :  { %8461 = vmatprep.mubr.bf16.mxu1 %v7865_v52  ;;  %11866 = vmatprep.subr.bf16.mxu0 %v12118_v55  ;;  %v12158_v55 = vld [vmem:[#allocation11 + $0x158] sm:$0xff]   ;;  %v12162_v52 = vld [vmem:[#allocation11 + $0x160] sm:$0xff]  }
 0x4c8   :  { %11888 = vmatprep.subr.bf16.mxu1 %v12119_v5  ;;  %v12161_v5 = vld [vmem:[#allocation11 + $0x198] sm:$0xff]  }
 0x4c9   :  { %11867 = vmatpush3.bf16.msra.mxu0 %v12120_v41  ;;  %v12163_v41 = vld [vmem:[#allocation11 + $0x1e0] sm:$0xff]  }
 0x4ca   :  { %11889 = vmatpush3.bf16.msra.mxu1 %v12121_v10  ;;  %11868 = vmatprep.subr.bf16.mxu0 %v12122_v11  ;;  %v12164_v10 = vld [vmem:[#allocation11 + $0x120] sm:$0xff]  }
 0x4cb   :  { %11890 = vmatprep.subr.bf16.mxu1 %v12123_v12  ;;  %v12165_v11 = vld [vmem:[#allocation11 + $0x1a0] sm:$0xff]   ;;  %v12166_v12 = vld [vmem:[#allocation11 + $0x168] sm:$0xff]  }
 0x4cd   :  { %11869 = vmatpush3.bf16.msra.mxu0 %v12124_v6  ;;  %v12167_v6 = vld [vmem:[#allocation11 + $0x1e8] sm:$0xff]  }
 0x4ce   :  { %11891 = vmatpush3.bf16.msra.mxu1 %v12125_v18  ;;  %11870 = vmatprep.subr.bf16.mxu0 %v12126_v19  ;;  %v12168_v18 = vld [vmem:[#allocation11 + $0x128] sm:$0xff]  }
 0x4cf   :  { %11892 = vmatprep.subr.bf16.mxu1 %v12127_v8  ;;  %v12169_v19 = vld [vmem:[#allocation11 + $0x1a8] sm:$0xff]   ;;  %v12170_v8 = vld [vmem:[#allocation11 + $0x170] sm:$0xff]  }
 0x4d1   :  { %11871 = vmatpush3.bf16.msra.mxu0 %v12128_v15  ;;  %v12171_v15 = vld [vmem:[#allocation11 + $0x1f0] sm:$0xff]  }
 0x4d2   :  { %11893 = vmatpush3.bf16.msra.mxu1 %v12129_v20  ;;  %11872 = vmatprep.subr.bf16.mxu0 %v12130_v22  ;;  %v12172_v20 = vld [vmem:[#allocation11 + $0x130] sm:$0xff]  }
 0x4d3   :  { %11894 = vmatprep.subr.bf16.mxu1 %v12131_v24  ;;  %v12173_v22 = vld [vmem:[#allocation11 + $0x1b0] sm:$0xff]   ;;  %v12174_v24 = vld [vmem:[#allocation11 + $0x178] sm:$0xff]  }
 0x4d5   :  { %11873 = vmatpush3.bf16.msra.mxu0 %v12132_v26  ;;  %v12175_v26 = vld [vmem:[#allocation11 + $0x1f8] sm:$0xff]  }
 0x4d6   :  { %11895 = vmatpush3.bf16.msra.mxu1 %v12133_v27  ;;  %11874 = vmatprep.subr.bf16.mxu0 %v12134_v31  ;;  %v12176_v27 = vld [vmem:[#allocation11 + $0x138] sm:$0xff]  }
 0x4d7   :  { %11896 = vmatprep.subr.bf16.mxu1 %v12135_v29  ;;  %v12177_v31 = vld [vmem:[#allocation11 + $0x1b8] sm:$0xff]  }
 0x4d8   :  { %v12180_v29 = vld [vmem:[#allocation14 + $0x4] ss:$16 sps:$4 sm:$0xff]  }
 0x4d9   :  { %11875 = vmatpush3.bf16.msra.mxu0 %v12136_v30  ;;  %v12183_v30 = vld [vmem:[#allocation14 + $0xc] ss:$16 sps:$4 sm:$0xff]  }
 0x4da   :  { %11897 = vmatpush3.bf16.msra.mxu1 %v12137_v32  ;;  %11876 = vmatprep.subr.bf16.mxu0 %v12138_v56  ;;  %v4571_v32 = vrot.slane %v13264_v59, %v738_v58  ;;  %v4579_v56 = vrot.slane %v13264_v59, %v746_v1 }
 0x4db   :  { %11898 = vmatprep.subr.bf16.mxu1 %v12139_v34  ;;  %v4575_v34 = vrot.slane %v13264_v59, %v742_v2 }
 0x4dd   :  { %11877 = vmatpush3.bf16.msra.mxu0 %v12140_v63  ;;  %v4583_v63 = vrot.slane %v13264_v59, %v750_v3 }
 0x4de   :  { %11899 = vmatpush3.bf16.msra.mxu1 %v12141_v37  ;;  %11878 = vmatprep.subr.bf16.mxu0 %v12142_v38 }
 0x4df   :  { %11900 = vmatprep.subr.bf16.mxu1 %v12143_v57 }
 0x4e1   :  { %11879 = vmatpush3.bf16.msra.mxu0 %v12144_v40 }
 0x4e2   :  { %11901 = vmatpush3.bf16.msra.mxu1 %v12145_v42  ;;  %11908 = vmatprep.subr.bf16.mxu0 %v12146_v49 }
 0x4e3   :  { %11930 = vmatprep.subr.bf16.mxu1 %v12147_v51 }
 0x4e4   :  { %8422 = vmatmul.mubr.bf16.vlgmr.msra.gmra.mrb[16].mxu0 %v7862_v47 }
 0x4e5   :  { %8462 = vmatmul.mubr.bf16.vlgmr.msra.gmra.mrb[16].mxu1 %v7864_v23  ;;  %11909 = vmatpush3.bf16.msra.mxu0 %v12148_v46 }
 0x4e6   :  { %11931 = vmatpush3.bf16.msra.mxu1 %v12149_v0  ;;  %11910 = vmatprep.subr.bf16.mxu0 %v12150_v48 }
 0x4e7   :  { %11932 = vmatprep.subr.bf16.mxu1 %v12151_v35 }
 0x4e9   :  { %11911 = vmatpush3.bf16.msra.mxu0 %v12152_v60 }
 0x4ea   :  { %11933 = vmatpush3.bf16.msra.mxu1 %v12153_v61  ;;  %11912 = vmatprep.subr.bf16.mxu0 %v12154_v62  ;;  %v12178_v61 = vld [vmem:[#allocation14] ss:$16 sps:$4 sm:$0xff]  }
 0x4eb   :  { %11934 = vmatprep.subr.bf16.mxu1 %v12155_v45  ;;  %v12181_v45 = vld [vmem:[#allocation14 + $0x8] ss:$16 sps:$4 sm:$0xff]  }
 0x4ed   :  { %11913 = vmatpush3.bf16.msra.mxu0 %v12156_v21  ;;  %v12186_v21 = vld [vmem:[#allocation14 + $0x24] ss:$16 sps:$4 sm:$0xff]  }
 0x4ee   :  { %11935 = vmatpush3.bf16.msra.mxu1 %v12157_v50  ;;  %11914 = vmatprep.subr.bf16.mxu0 %v12158_v55 }
 0x4ef   :  { %11936 = vmatprep.subr.bf16.mxu1 %v12159_v16  ;;  %v12189_v16 = vld [vmem:[#allocation14 + $0x2c] ss:$16 sps:$4 sm:$0xff]  }
 0x4f1   :  { %11915 = vmatpush3.bf16.msra.mxu0 %v12160_v39 }
 0x4f2   :  { %11937 = vmatpush3.bf16.msra.mxu1 %v12161_v5  ;;  %11916 = vmatprep.subr.bf16.mxu0 %v12162_v52  ;;  %v12184_v5 = vld [vmem:[#allocation14 + $0x20] ss:$16 sps:$4 sm:$0xff]   ;;  %v12187_v52 = vld [vmem:[#allocation14 + $0x28] ss:$16 sps:$4 sm:$0xff]  }
 0x4f3   :  { %11938 = vmatprep.subr.bf16.mxu1 %v12163_v41  ;;  %v12192_v41 = vld [vmem:[#allocation14 + $0x44] ss:$16 sps:$4 sm:$0xff]  }
 0x4f5   :  { %11917 = vmatpush3.bf16.msra.mxu0 %v12164_v10 }
 0x4f6   :  { %11939 = vmatpush3.bf16.msra.mxu1 %v12165_v11  ;;  %11918 = vmatprep.subr.bf16.mxu0 %v12166_v12  ;;  %v12195_v11 = vld [vmem:[#allocation14 + $0x4c] ss:$16 sps:$4 sm:$0xff]   ;;  %v12190_v12 = vld [vmem:[#allocation14 + $0x40] ss:$16 sps:$4 sm:$0xff]  }
 0x4f7   :  { %11940 = vmatprep.subr.bf16.mxu1 %v12167_v6  ;;  %v12193_v6 = vld [vmem:[#allocation14 + $0x48] ss:$16 sps:$4 sm:$0xff]  }
 0x4f9   :  { %11919 = vmatpush3.bf16.msra.mxu0 %v12168_v18  ;;  %v12198_v18 = vld [vmem:[#allocation14 + $0x64] ss:$16 sps:$4 sm:$0xff]  }
 0x4fa   :  { %11941 = vmatpush3.bf16.msra.mxu1 %v12169_v19  ;;  %11920 = vmatprep.subr.bf16.mxu0 %v12170_v8  ;;  %v12201_v19 = vld [vmem:[#allocation14 + $0x6c] ss:$16 sps:$4 sm:$0xff]   ;;  %v12196_v8 = vld [vmem:[#allocation14 + $0x60] ss:$16 sps:$4 sm:$0xff]  }
 0x4fb   :  { %11942 = vmatprep.subr.bf16.mxu1 %v12171_v15  ;;  %v12199_v15 = vld [vmem:[#allocation14 + $0x68] ss:$16 sps:$4 sm:$0xff]  }
 0x4fd   :  { %11921 = vmatpush3.bf16.msra.mxu0 %v12172_v20  ;;  %v12204_v20 = vld [vmem:[#allocation14 + $0x84] ss:$16 sps:$4 sm:$0xff]  }
 0x4fe   :  { %11943 = vmatpush3.bf16.msra.mxu1 %v12173_v22  ;;  %11922 = vmatprep.subr.bf16.mxu0 %v12174_v24  ;;  %v12207_v22 = vld [vmem:[#allocation14 + $0x8c] ss:$16 sps:$4 sm:$0xff]   ;;  %v12202_v24 = vld [vmem:[#allocation14 + $0x80] ss:$16 sps:$4 sm:$0xff]  }
 0x4ff   :  { %11944 = vmatprep.subr.bf16.mxu1 %v12175_v26  ;;  %v12210_v26 = vld [vmem:[#allocation14 + $0xa4] ss:$16 sps:$4 sm:$0xff]  }
 0x501   :  { %11923 = vmatpush3.bf16.msra.mxu0 %v12176_v27  ;;  %v12213_v27 = vld [vmem:[#allocation14 + $0xac] ss:$16 sps:$4 sm:$0xff]  }
 0x502   :  { %11945 = vmatpush3.bf16.msra.mxu1 %v12177_v31  ;;  %10108 = vmatprep.subr.bf16.mxu0 %v12180_v29  ;;  %v12208_v31 = vld [vmem:[#allocation14 + $0xa0] ss:$16 sps:$4 sm:$0xff]   ;;  %v12211_v29 = vld [vmem:[#allocation14 + $0xa8] ss:$16 sps:$4 sm:$0xff]  }
 0x503   :  { %10272 = vmatprep.subr.bf16.mxu1 %v12183_v30  ;;  %v12216_v30 = vld [vmem:[#allocation14 + $0xc4] ss:$16 sps:$4 sm:$0xff]  }
 0x597   :  { %v7637_v37 = vpop.f32.mrb[12].mxu0 }
 0x598   :  { %v11964_v38 = vadd.f32 %v7637_v37, %v4571_v32  ;;  %v7801_v57 = vpop.f32.mrb[12].mxu1  ;;  %v7639_v40 = vpop.f32.mrb[13].mxu0  ;;  %v12219_v32 = vld [vmem:[#allocation14 + $0xcc] ss:$16 sps:$4 sm:$0xff]  }
 0x599   :  { %v11966_v42 = vadd.f32 %v7801_v57, %v4579_v56  ;;  %v11965_v49 = vadd.f32 %v7639_v40, %v4575_v34  ;;  %v7803_v51 = vpop.f32.mrb[13].mxu1  ;;  %v7641_v58 = vpop.f32.mrb[14].mxu0  ;;  %v12214_v56 = vld [vmem:[#allocation14 + $0xc0] ss:$16 sps:$4 sm:$0xff]   ;;  %v12217_v34 = vld [vmem:[#allocation14 + $0xc8] ss:$16 sps:$4 sm:$0xff]  }
 0x59a   :  { %v7812_v46 = vmax.f32 %v11964_v38, 0.0  ;;  %v11967_v47 = vadd.f32 %v7803_v51, %v4583_v63  ;;  %v7805_v0 = vpop.f32.mrb[14].mxu1  ;;  %v7642_v1 = vpop.f32.mrb[15].mxu0  ;;  %v12222_v63 = vld [vmem:[#allocation14 + $0xe4] ss:$16 sps:$4 sm:$0xff]  }
 0x59b   :  { %v7814_v48 = vmax.f32 %v11966_v42, 0.0  ;;  %v7813_v23 = vmax.f32 %v11965_v49, 0.0  ;;  %v7806_v35 = vpop.f32.mrb[15].mxu1  ;;  %v12225_v38 = vld [vmem:[#allocation14 + $0xec] ss:$16 sps:$4 sm:$0xff]  }
 0x59c   :  { %v7815_v2 = vmax.f32 %v11967_v47, 0.0  ;;  %v7866_v3 = vpack.c.bf16 %v7812_v46, %v7812_v46  ;;  %v11543_v40 = vld [vmem:[#allocation13] ss:$0 sm:$0xff] }
 0x59d   :  { %v7841_v60 = vcombine.low %v7812_v46, %v7813_v23  ;;  %v7867_v44 = vpack.c.bf16 %v7813_v23, %v7813_v23  ;;  %v7868_v50 = vpack.c.bf16 %v7814_v48, %v7814_v48  ;;  %v12220_v46 = vld [vmem:[#allocation14 + $0xe0] ss:$16 sps:$4 sm:$0xff]   ;;  %v12228_v23 = vld [vmem:[#allocation14 + $0x104] ss:$16 sps:$4 sm:$0xff]  }
 0x59e   :  { %v7842_v59 = vcombine.low %v7814_v48, %v7815_v2  ;;  %v7869_v62 = vpack.c.bf16 %v7815_v2, %v7815_v2  ;;  %v12223_v48 = vld [vmem:[#allocation14 + $0xe8] ss:$16 sps:$4 sm:$0xff]  }
 0x59f   :  { %v7849_v55 = vrot.slane %v7841_v60, %v13061_v53  ;;  %8501 = vmatprep.mubr.bf16.mxu0 %v7867_v44  ;;  %v12231_v60 = vld [vmem:[#allocation14 + $0x10c] ss:$16 sps:$4 sm:$0xff]  }
 0x5a0   :  { %v7856_v39 = vrot.slane %v7842_v59, %v13061_v53  ;;  %8541 = vmatprep.mubr.bf16.mxu1 %v7869_v62  ;;  %8502 = vmatmul.mubr.bf16.vlgmr.msra.gmra.mrb[20].mxu0 %v7866_v3  ;;  %v12229_v3 = vld [vmem:[#allocation14 + $0x108] ss:$16 sps:$4 sm:$0xff]   ;;  %v12234_v59 = vld [vmem:[#allocation14 + $0x124] ss:$16 sps:$4 sm:$0xff]   ;;  %v12237_v62 = vld [vmem:[#allocation14 + $0x12c] ss:$16 sps:$4 sm:$0xff]  }
 0x5a1   :  { %8542 = vmatmul.mubr.bf16.vlgmr.msra.gmra.mrb[20].mxu1 %v7868_v50  ;;  %10109 = vmatpush1.bf16.msra.mxu0 %v12178_v61  ;;  %v12226_v61 = vld [vmem:[#allocation14 + $0x100] ss:$16 sps:$4 sm:$0xff]   ;;  %v12240_v50 = vld [vmem:[#allocation14 + $0x144] ss:$16 sps:$4 sm:$0xff]  }
 0x5a2   :  { %10273 = vmatpush1.bf16.msra.mxu1 %v12181_v45  ;;  %10110 = vmatprep.subr.bf16.mxu0 %v12186_v21  ;;  %v7857_v10 = vcombine.low %v7849_v55, %v7856_v39  ;;  %v12232_v45 = vld [vmem:[#allocation14 + $0x120] ss:$16 sps:$4 sm:$0xff]   ;;  %v12235_v21 = vld [vmem:[#allocation14 + $0x128] ss:$16 sps:$4 sm:$0xff]   ;;  %v12243_v55 = vld [vmem:[#allocation14 + $0x14c] ss:$16 sps:$4 sm:$0xff]  }
 0x5a3   :  { %10274 = vmatprep.subr.bf16.mxu1 %v12189_v16  ;;  %10140 = vmatprep.mubr.bf16.mxu0 %v13071_v9  ;;  %v12238_v16 = vld [vmem:[#allocation14 + $0x140] ss:$16 sps:$4 sm:$0xff]   ;;  %v12241_v39 = vld [vmem:[#allocation14 + $0x148] ss:$16 sps:$4 sm:$0xff]  }
 0x5a4   :  { %10304 = vmatprep.mubr.bf16.mxu1 %v13071_v9  ;;  %7861 = vst [vmem:[#allocation18 + $0x8] sm:$0xff] %v7857_v10  ;;  %v12205_v9 = vld [vmem:[#allocation14 + $0x88] ss:$16 sps:$4 sm:$0xff]  }
 0x5a5   :  { %10111 = vmatpush1.bf16.msra.mxu0 %v12184_v5  ;;  %v12246_v5 = vld [vmem:[#allocation14 + $0x164] ss:$16 sps:$4 sm:$0xff]   ;;  %v12247_v10 = vld [vmem:[#allocation14 + $0x168] ss:$16 sps:$4 sm:$0xff]  }
 0x5a6   :  { %10275 = vmatpush1.bf16.msra.mxu1 %v12187_v52  ;;  %10112 = vmatprep.subr.bf16.mxu0 %v12192_v41  ;;  %v12249_v52 = vld [vmem:[#allocation14 + $0x16c] ss:$16 sps:$4 sm:$0xff]   ;;  %v12244_v41 = vld [vmem:[#allocation14 + $0x160] ss:$16 sps:$4 sm:$0xff]  }
 0x5a7   :  { %10276 = vmatprep.subr.bf16.mxu1 %v12195_v11  ;;  %v12252_v11 = vld [vmem:[#allocation14 + $0x184] ss:$16 sps:$4 sm:$0xff]  }
 0x5a9   :  { %10113 = vmatpush1.bf16.msra.mxu0 %v12190_v12  ;;  %v12255_v12 = vld [vmem:[#allocation14 + $0x18c] ss:$16 sps:$4 sm:$0xff]  }
 0x5aa   :  { %10277 = vmatpush1.bf16.msra.mxu1 %v12193_v6  ;;  %10114 = vmatprep.subr.bf16.mxu0 %v12198_v18  ;;  %v12250_v6 = vld [vmem:[#allocation14 + $0x180] ss:$16 sps:$4 sm:$0xff]   ;;  %v12253_v18 = vld [vmem:[#allocation14 + $0x188] ss:$16 sps:$4 sm:$0xff]  }
 0x5ab   :  { %10278 = vmatprep.subr.bf16.mxu1 %v12201_v19  ;;  %v12258_v19 = vld [vmem:[#allocation14 + $0x1a4] ss:$16 sps:$4 sm:$0xff]  }
 0x5ad   :  { %10115 = vmatpush1.bf16.msra.mxu0 %v12196_v8  ;;  %v12261_v8 = vld [vmem:[#allocation14 + $0x1ac] ss:$16 sps:$4 sm:$0xff]  }
 0x5ae   :  { %10279 = vmatpush1.bf16.msra.mxu1 %v12199_v15  ;;  %10116 = vmatprep.subr.bf16.mxu0 %v12204_v20  ;;  %v12256_v15 = vld [vmem:[#allocation14 + $0x1a0] ss:$16 sps:$4 sm:$0xff]   ;;  %v12259_v20 = vld [vmem:[#allocation14 + $0x1a8] ss:$16 sps:$4 sm:$0xff]  }
 0x5af   :  { %10280 = vmatprep.subr.bf16.mxu1 %v12207_v22  ;;  %v12264_v22 = vld [vmem:[#allocation14 + $0x1c4] ss:$16 sps:$4 sm:$0xff]  }
 0x5b1   :  { %10117 = vmatpush1.bf16.msra.mxu0 %v12202_v24  ;;  %v12267_v24 = vld [vmem:[#allocation14 + $0x1cc] ss:$16 sps:$4 sm:$0xff]  }
 0x5b2   :  { %10281 = vmatpush1.bf16.msra.mxu1 %v12205_v9  ;;  %10118 = vmatprep.subr.bf16.mxu0 %v12210_v26  ;;  %v12262_v9 = vld [vmem:[#allocation14 + $0x1c0] ss:$16 sps:$4 sm:$0xff]   ;;  %v12265_v26 = vld [vmem:[#allocation14 + $0x1c8] ss:$16 sps:$4 sm:$0xff]  }
 0x5b3   :  { %10282 = vmatprep.subr.bf16.mxu1 %v12213_v27  ;;  %v12270_v27 = vld [vmem:[#allocation14 + $0x1e4] ss:$16 sps:$4 sm:$0xff]  }
 0x5b5   :  { %10119 = vmatpush1.bf16.msra.mxu0 %v12208_v31  ;;  %v12273_v31 = vld [vmem:[#allocation14 + $0x1ec] ss:$16 sps:$4 sm:$0xff]  }
 0x5b6   :  { %10283 = vmatpush1.bf16.msra.mxu1 %v12211_v29  ;;  %10120 = vmatprep.subr.bf16.mxu0 %v12216_v30  ;;  %v12268_v29 = vld [vmem:[#allocation14 + $0x1e0] ss:$16 sps:$4 sm:$0xff]   ;;  %v12271_v30 = vld [vmem:[#allocation14 + $0x1e8] ss:$16 sps:$4 sm:$0xff]  }
 0x5b7   :  { %v11880_v37 = vpop.f32.mrb[16].mxu0  ;;  %10284 = vmatprep.subr.bf16.mxu1 %v12219_v32  ;;  %v12276_v32 = vld [vmem:[#allocation14 + $0x204] ss:$16 sps:$4 sm:$0xff]  }
 0x5b8   :  { %v11902_v57 = vpop.f32.mrb[16].mxu1  ;;  %v11881_v42 = vpop.f32.mrb[17].mxu0 }
 0x5b9   :  { %v11882_v49 = vadd.f32 %v11881_v42, %v11880_v37  ;;  %v11903_v51 = vpop.f32.mrb[17].mxu1  ;;  %10121 = vmatpush1.bf16.msra.mxu0 %v12214_v56  ;;  %v11883_v58 = vpop.f32.mrb[18].mxu0  ;;  %v12279_v56 = vld [vmem:[#allocation14 + $0x20c] ss:$16 sps:$4 sm:$0xff]   ;;  %v12282_v37 = vld [vmem:[#allocation14 + $0x224] ss:$16 sps:$4 sm:$0xff]  }
 0x5ba   :  { %v11904_v47 = vadd.f32 %v11903_v51, %v11902_v57  ;;  %10285 = vmatpush1.bf16.msra.mxu1 %v12217_v34  ;;  %v11905_v0 = vpop.f32.mrb[18].mxu1  ;;  %v11884_v1 = vpop.f32.mrb[19].mxu0  ;;  %10122 = vmatprep.subr.bf16.mxu0 %v12222_v63  ;;  %v12274_v34 = vld [vmem:[#allocation14 + $0x200] ss:$16 sps:$4 sm:$0xff]   ;;  %v12277_v63 = vld [vmem:[#allocation14 + $0x208] ss:$16 sps:$4 sm:$0xff]  }
 0x5bb   :  { %v8424_v35 = vadd.f32 %v11882_v49, %v11543_v40  ;;  %v11906_v2 = vpop.f32.mrb[19].mxu1  ;;  %10286 = vmatprep.subr.bf16.mxu1 %v12225_v38  ;;  %v12285_v38 = vld [vmem:[#allocation14 + $0x22c] ss:$16 sps:$4 sm:$0xff]   ;;  %v12280_v57 = vld [vmem:[#allocation14 + $0x220] ss:$16 sps:$4 sm:$0xff]  }
 0x5bc   :  { %v12283_v40 = vld [vmem:[#allocation14 + $0x228] ss:$16 sps:$4 sm:$0xff]   ;;  %v12288_v42 = vld [vmem:[#allocation14 + $0x244] ss:$16 sps:$4 sm:$0xff]   ;;  %v12291_v49 = vld [vmem:[#allocation14 + $0x24c] ss:$16 sps:$4 sm:$0xff]  }
 0x5bd   :  { %v13314_v44 = vadd.f32 %v11904_v47, %v8424_v35  ;;  %10123 = vmatpush1.bf16.msra.mxu0 %v12220_v46  ;;  %v12286_v51 = vld [vmem:[#allocation14 + $0x240] ss:$16 sps:$4 sm:$0xff]   ;;  %v12289_v58 = vld [vmem:[#allocation14 + $0x248] ss:$16 sps:$4 sm:$0xff]   ;;  %v12294_v46 = vld [vmem:[#allocation14 + $0x264] ss:$16 sps:$4 sm:$0xff]  }
 0x5be   :  { %10287 = vmatpush1.bf16.msra.mxu1 %v12223_v48  ;;  %10124 = vmatprep.subr.bf16.mxu0 %v12228_v23  ;;  %v12297_v47 = vld [vmem:[#allocation14 + $0x26c] ss:$16 sps:$4 sm:$0xff]   ;;  %v12295_v0 = vld [vmem:[#allocation14 + $0x268] ss:$16 sps:$4 sm:$0xff]   ;;  %v12300_v1 = vld [vmem:[#allocation14 + $0x284] ss:$16 sps:$4 sm:$0xff]  }
 0x5bf   :  { %10288 = vmatprep.subr.bf16.mxu1 %v12231_v60  ;;  %v12303_v48 = vld [vmem:[#allocation14 + $0x28c] ss:$16 sps:$4 sm:$0xff]   ;;  %v12298_v23 = vld [vmem:[#allocation14 + $0x280] ss:$16 sps:$4 sm:$0xff]   ;;  %v12306_v35 = vld [vmem:[#allocation14 + $0x2a4] ss:$16 sps:$4 sm:$0xff]  }
 0x5c0   :  { %v12309_v2 = vld [vmem:[#allocation14 + $0x2ac] ss:$16 sps:$4 sm:$0xff]   ;;  %v12304_v60 = vld [vmem:[#allocation14 + $0x2a0] ss:$16 sps:$4 sm:$0xff]  }
 0x5c1   :  { %10125 = vmatpush1.bf16.msra.mxu0 %v12226_v61  ;;  %v12307_v61 = vld [vmem:[#allocation14 + $0x2a8] ss:$16 sps:$4 sm:$0xff]  }
 0x5c2   :  { %10289 = vmatpush1.bf16.msra.mxu1 %v12229_v3  ;;  %10126 = vmatprep.subr.bf16.mxu0 %v12234_v59  ;;  %v12312_v3 = vld [vmem:[#allocation14 + $0x2c4] ss:$16 sps:$4 sm:$0xff]   ;;  %v12315_v59 = vld [vmem:[#allocation14 + $0x2cc] ss:$16 sps:$4 sm:$0xff]  }
 0x5c3   :  { %10290 = vmatprep.subr.bf16.mxu1 %v12237_v62  ;;  %v12310_v62 = vld [vmem:[#allocation14 + $0x2c0] ss:$16 sps:$4 sm:$0xff]  }
 0x5c5   :  { %10127 = vmatpush1.bf16.msra.mxu0 %v12232_v45  ;;  %v12313_v45 = vld [vmem:[#allocation14 + $0x2c8] ss:$16 sps:$4 sm:$0xff]  }
 0x5c6   :  { %10291 = vmatpush1.bf16.msra.mxu1 %v12235_v21  ;;  %10128 = vmatprep.subr.bf16.mxu0 %v12240_v50  ;;  %v12318_v21 = vld [vmem:[#allocation14 + $0x2e4] ss:$16 sps:$4 sm:$0xff]   ;;  %v12321_v50 = vld [vmem:[#allocation14 + $0x2ec] ss:$16 sps:$4 sm:$0xff]  }
 0x5c7   :  { %10292 = vmatprep.subr.bf16.mxu1 %v12243_v55  ;;  %v12316_v55 = vld [vmem:[#allocation14 + $0x2e0] ss:$16 sps:$4 sm:$0xff]  }
 0x5c9   :  { %10129 = vmatpush1.bf16.msra.mxu0 %v12238_v16  ;;  %v12319_v16 = vld [vmem:[#allocation14 + $0x2e8] ss:$16 sps:$4 sm:$0xff]  }
 0x5ca   :  { %10293 = vmatpush1.bf16.msra.mxu1 %v12241_v39  ;;  %10130 = vmatprep.subr.bf16.mxu0 %v12246_v5  ;;  %v12324_v39 = vld [vmem:[#allocation14 + $0x304] ss:$16 sps:$4 sm:$0xff]   ;;  %v12327_v5 = vld [vmem:[#allocation14 + $0x30c] ss:$16 sps:$4 sm:$0xff]  }
 0x5cb   :  { %10294 = vmatprep.subr.bf16.mxu1 %v12249_v52  ;;  %v12322_v52 = vld [vmem:[#allocation14 + $0x300] ss:$16 sps:$4 sm:$0xff]  }
 0x5cd   :  { %10131 = vmatpush1.bf16.msra.mxu0 %v12244_v41  ;;  %v12325_v41 = vld [vmem:[#allocation14 + $0x308] ss:$16 sps:$4 sm:$0xff]  }
 0x5ce   :  { %10295 = vmatpush1.bf16.msra.mxu1 %v12247_v10  ;;  %10132 = vmatprep.subr.bf16.mxu0 %v12252_v11  ;;  %v12330_v10 = vld [vmem:[#allocation14 + $0x324] ss:$16 sps:$4 sm:$0xff]   ;;  %v12333_v11 = vld [vmem:[#allocation14 + $0x32c] ss:$16 sps:$4 sm:$0xff]  }
 0x5cf   :  { %10296 = vmatprep.subr.bf16.mxu1 %v12255_v12  ;;  %v12328_v12 = vld [vmem:[#allocation14 + $0x320] ss:$16 sps:$4 sm:$0xff]  }
 0x5d1   :  { %10133 = vmatpush1.bf16.msra.mxu0 %v12250_v6  ;;  %v12331_v6 = vld [vmem:[#allocation14 + $0x328] ss:$16 sps:$4 sm:$0xff]  }
 0x5d2   :  { %10297 = vmatpush1.bf16.msra.mxu1 %v12253_v18  ;;  %10134 = vmatprep.subr.bf16.mxu0 %v12258_v19  ;;  %v12336_v18 = vld [vmem:[#allocation14 + $0x344] ss:$16 sps:$4 sm:$0xff]   ;;  %v12339_v19 = vld [vmem:[#allocation14 + $0x34c] ss:$16 sps:$4 sm:$0xff]  }
 0x5d3   :  { %10298 = vmatprep.subr.bf16.mxu1 %v12261_v8  ;;  %v12334_v8 = vld [vmem:[#allocation14 + $0x340] ss:$16 sps:$4 sm:$0xff]  }
 0x5d5   :  { %10135 = vmatpush1.bf16.msra.mxu0 %v12256_v15  ;;  %v12337_v15 = vld [vmem:[#allocation14 + $0x348] ss:$16 sps:$4 sm:$0xff]  }
 0x5d6   :  { %10299 = vmatpush1.bf16.msra.mxu1 %v12259_v20  ;;  %10136 = vmatprep.subr.bf16.mxu0 %v12264_v22  ;;  %v12342_v20 = vld [vmem:[#allocation14 + $0x364] ss:$16 sps:$4 sm:$0xff]   ;;  %v12345_v22 = vld [vmem:[#allocation14 + $0x36c] ss:$16 sps:$4 sm:$0xff]  }
 0x5d7   :  { %10300 = vmatprep.subr.bf16.mxu1 %v12267_v24  ;;  %v12340_v24 = vld [vmem:[#allocation14 + $0x360] ss:$16 sps:$4 sm:$0xff]  }
 0x5d9   :  { %10137 = vmatpush1.bf16.msra.mxu0 %v12262_v9  ;;  %v12343_v9 = vld [vmem:[#allocation14 + $0x368] ss:$16 sps:$4 sm:$0xff]  }
 0x5da   :  { %10301 = vmatpush1.bf16.msra.mxu1 %v12265_v26  ;;  %10138 = vmatprep.subr.bf16.mxu0 %v12270_v27  ;;  %v12348_v26 = vld [vmem:[#allocation14 + $0x384] ss:$16 sps:$4 sm:$0xff]   ;;  %v12351_v27 = vld [vmem:[#allocation14 + $0x38c] ss:$16 sps:$4 sm:$0xff]  }
 0x5db   :  { %10302 = vmatprep.subr.bf16.mxu1 %v12273_v31  ;;  %v12346_v31 = vld [vmem:[#allocation14 + $0x380] ss:$16 sps:$4 sm:$0xff]  }
 0x5dd   :  { %10139 = vmatpush1.bf16.msra.mxu0 %v12268_v29  ;;  %v12349_v29 = vld [vmem:[#allocation14 + $0x388] ss:$16 sps:$4 sm:$0xff]  }
 0x5de   :  { %10303 = vmatpush1.bf16.msra.mxu1 %v12271_v30  ;;  %10149 = vmatprep.subr.bf16.mxu0 %v12276_v32  ;;  %v12354_v30 = vld [vmem:[#allocation14 + $0x3a4] ss:$16 sps:$4 sm:$0xff]   ;;  %v12357_v32 = vld [vmem:[#allocation14 + $0x3ac] ss:$16 sps:$4 sm:$0xff]  }
 0x5df   :  { %10313 = vmatprep.subr.bf16.mxu1 %v12279_v56  ;;  %v12352_v56 = vld [vmem:[#allocation14 + $0x3a0] ss:$16 sps:$4 sm:$0xff]  }
 0x5e0   :  { %10141 = vmatmul.mubr.bf16.vlgmr.msra.gmra.mrb[24].mxu0 %v13084_v25 }
 0x5e1   :  { %10150 = vmatpush1.bf16.msra.mxu0 %v12274_v34  ;;  %10305 = vmatmul.mubr.bf16.vlgmr.msra.gmra.mrb[24].mxu1 %v13084_v25  ;;  %v12292_v25 = vld [vmem:[#allocation14 + $0x260] ss:$16 sps:$4 sm:$0xff]   ;;  %v12355_v34 = vld [vmem:[#allocation14 + $0x3a8] ss:$16 sps:$4 sm:$0xff]  }
 0x5e2   :  { %10314 = vmatpush1.bf16.msra.mxu1 %v12277_v63  ;;  %10151 = vmatprep.subr.bf16.mxu0 %v12282_v37  ;;  %v12360_v63 = vld [vmem:[#allocation14 + $0x3c4] ss:$16 sps:$4 sm:$0xff]   ;;  %v12363_v37 = vld [vmem:[#allocation14 + $0x3cc] ss:$16 sps:$4 sm:$0xff]  }
 0x5e3   :  { %10315 = vmatprep.subr.bf16.mxu1 %v12285_v38  ;;  %10181 = vmatprep.mubr.bf16.mxu0 %v13086_v36  ;;  %v12358_v38 = vld [vmem:[#allocation14 + $0x3c0] ss:$16 sps:$4 sm:$0xff]  }
 0x5e4   :  { %10345 = vmatprep.mubr.bf16.mxu1 %v13086_v36  ;;  %v12301_v36 = vld [vmem:[#allocation14 + $0x288] ss:$16 sps:$4 sm:$0xff]  }
 0x5e5   :  { %10152 = vmatpush1.bf16.msra.mxu0 %v12280_v57  ;;  %v12361_v57 = vld [vmem:[#allocation14 + $0x3c8] ss:$16 sps:$4 sm:$0xff]  }
 0x5e6   :  { %10316 = vmatpush1.bf16.msra.mxu1 %v12283_v40  ;;  %10153 = vmatprep.subr.bf16.mxu0 %v12288_v42  ;;  %v12366_v40 = vld [vmem:[#allocation14 + $0x3e4] ss:$16 sps:$4 sm:$0xff]   ;;  %v12369_v42 = vld [vmem:[#allocation14 + $0x3ec] ss:$16 sps:$4 sm:$0xff]  }
 0x5e7   :  { %10317 = vmatprep.subr.bf16.mxu1 %v12291_v49  ;;  %v12364_v49 = vld [vmem:[#allocation14 + $0x3e0] ss:$16 sps:$4 sm:$0xff]  }
 0x5e9   :  { %10154 = vmatpush1.bf16.msra.mxu0 %v12286_v51  ;;  %v12367_v51 = vld [vmem:[#allocation14 + $0x3e8] ss:$16 sps:$4 sm:$0xff]  }
 0x5ea   :  { %10318 = vmatpush1.bf16.msra.mxu1 %v12289_v58  ;;  %10155 = vmatprep.subr.bf16.mxu0 %v12294_v46  ;;  %v12372_v58 = vld [vmem:[#allocation14 + $0x404] ss:$16 sps:$4 sm:$0xff]   ;;  %v12375_v46 = vld [vmem:[#allocation14 + $0x40c] ss:$16 sps:$4 sm:$0xff]  }
 0x5eb   :  { %10319 = vmatprep.subr.bf16.mxu1 %v12297_v47  ;;  %v12370_v47 = vld [vmem:[#allocation14 + $0x400] ss:$16 sps:$4 sm:$0xff]  }
 0x5ed   :  { %10156 = vmatpush1.bf16.msra.mxu0 %v12292_v25  ;;  %v12373_v25 = vld [vmem:[#allocation14 + $0x408] ss:$16 sps:$4 sm:$0xff]  }
 0x5ee   :  { %10320 = vmatpush1.bf16.msra.mxu1 %v12295_v0  ;;  %10157 = vmatprep.subr.bf16.mxu0 %v12300_v1  ;;  %v12378_v0 = vld [vmem:[#allocation14 + $0x424] ss:$16 sps:$4 sm:$0xff]   ;;  %v12381_v1 = vld [vmem:[#allocation14 + $0x42c] ss:$16 sps:$4 sm:$0xff]  }
 0x5ef   :  { %10321 = vmatprep.subr.bf16.mxu1 %v12303_v48  ;;  %v12376_v48 = vld [vmem:[#allocation14 + $0x420] ss:$16 sps:$4 sm:$0xff]  }
 0x5f1   :  { %10158 = vmatpush1.bf16.msra.mxu0 %v12298_v23  ;;  %v12379_v23 = vld [vmem:[#allocation14 + $0x428] ss:$16 sps:$4 sm:$0xff]  }
 0x5f2   :  { %10322 = vmatpush1.bf16.msra.mxu1 %v12301_v36  ;;  %10159 = vmatprep.subr.bf16.mxu0 %v12306_v35  ;;  %v12384_v36 = vld [vmem:[#allocation14 + $0x444] ss:$16 sps:$4 sm:$0xff]   ;;  %v12387_v35 = vld [vmem:[#allocation14 + $0x44c] ss:$16 sps:$4 sm:$0xff]  }
 0x5f3   :  { %10323 = vmatprep.subr.bf16.mxu1 %v12309_v2  ;;  %v12382_v2 = vld [vmem:[#allocation14 + $0x440] ss:$16 sps:$4 sm:$0xff]  }
 0x5f5   :  { %10160 = vmatpush1.bf16.msra.mxu0 %v12304_v60  ;;  %v12385_v60 = vld [vmem:[#allocation14 + $0x448] ss:$16 sps:$4 sm:$0xff]  }
 0x5f6   :  { %10324 = vmatpush1.bf16.msra.mxu1 %v12307_v61  ;;  %10161 = vmatprep.subr.bf16.mxu0 %v12312_v3  ;;  %v12390_v61 = vld [vmem:[#allocation14 + $0x464] ss:$16 sps:$4 sm:$0xff]   ;;  %v12393_v3 = vld [vmem:[#allocation14 + $0x46c] ss:$16 sps:$4 sm:$0xff]  }
 0x5f7   :  { %10325 = vmatprep.subr.bf16.mxu1 %v12315_v59  ;;  %v12391_v59 = vld [vmem:[#allocation14 + $0x468] ss:$16 sps:$4 sm:$0xff]  }
 0x5f9   :  { %10162 = vmatpush1.bf16.msra.mxu0 %v12310_v62  ;;  %v12396_v62 = vld [vmem:[#allocation14 + $0x484] ss:$16 sps:$4 sm:$0xff]  }
 0x5fa   :  { %10326 = vmatpush1.bf16.msra.mxu1 %v12313_v45  ;;  %10163 = vmatprep.subr.bf16.mxu0 %v12318_v21  ;;  %v12399_v45 = vld [vmem:[#allocation14 + $0x48c] ss:$16 sps:$4 sm:$0xff]   ;;  %v12394_v21 = vld [vmem:[#allocation14 + $0x480] ss:$16 sps:$4 sm:$0xff]  }
 0x5fb   :  { %10327 = vmatprep.subr.bf16.mxu1 %v12321_v50  ;;  %v12402_v50 = vld [vmem:[#allocation14 + $0x4a4] ss:$16 sps:$4 sm:$0xff]  }
 0x5fd   :  { %10164 = vmatpush1.bf16.msra.mxu0 %v12316_v55  ;;  %v12405_v55 = vld [vmem:[#allocation14 + $0x4ac] ss:$16 sps:$4 sm:$0xff]  }
 0x5fe   :  { %10328 = vmatpush1.bf16.msra.mxu1 %v12319_v16  ;;  %10165 = vmatprep.subr.bf16.mxu0 %v12324_v39  ;;  %v12400_v16 = vld [vmem:[#allocation14 + $0x4a0] ss:$16 sps:$4 sm:$0xff]   ;;  %v12403_v39 = vld [vmem:[#allocation14 + $0x4a8] ss:$16 sps:$4 sm:$0xff]  }
 0x5ff   :  { %10329 = vmatprep.subr.bf16.mxu1 %v12327_v5  ;;  %v12408_v5 = vld [vmem:[#allocation14 + $0x4c4] ss:$16 sps:$4 sm:$0xff]  }
 0x601   :  { %10166 = vmatpush1.bf16.msra.mxu0 %v12322_v52  ;;  %v12411_v52 = vld [vmem:[#allocation14 + $0x4cc] ss:$16 sps:$4 sm:$0xff]  }
 0x602   :  { %10330 = vmatpush1.bf16.msra.mxu1 %v12325_v41  ;;  %10167 = vmatprep.subr.bf16.mxu0 %v12330_v10  ;;  %v12406_v41 = vld [vmem:[#allocation14 + $0x4c0] ss:$16 sps:$4 sm:$0xff]   ;;  %v12409_v10 = vld [vmem:[#allocation14 + $0x4c8] ss:$16 sps:$4 sm:$0xff]  }
 0x603   :  { %10331 = vmatprep.subr.bf16.mxu1 %v12333_v11  ;;  %v12414_v11 = vld [vmem:[#allocation14 + $0x4e4] ss:$16 sps:$4 sm:$0xff]  }
 0x605   :  { %10168 = vmatpush1.bf16.msra.mxu0 %v12328_v12  ;;  %v12417_v12 = vld [vmem:[#allocation14 + $0x4ec] ss:$16 sps:$4 sm:$0xff]  }
 0x606   :  { %10332 = vmatpush1.bf16.msra.mxu1 %v12331_v6  ;;  %10169 = vmatprep.subr.bf16.mxu0 %v12336_v18  ;;  %v12412_v6 = vld [vmem:[#allocation14 + $0x4e0] ss:$16 sps:$4 sm:$0xff]   ;;  %v12415_v18 = vld [vmem:[#allocation14 + $0x4e8] ss:$16 sps:$4 sm:$0xff]  }
 0x607   :  { %10333 = vmatprep.subr.bf16.mxu1 %v12339_v19  ;;  %v12420_v19 = vld [vmem:[#allocation14 + $0x504] ss:$16 sps:$4 sm:$0xff]  }
 0x609   :  { %10170 = vmatpush1.bf16.msra.mxu0 %v12334_v8  ;;  %v12423_v8 = vld [vmem:[#allocation14 + $0x50c] ss:$16 sps:$4 sm:$0xff]  }
 0x60a   :  { %10334 = vmatpush1.bf16.msra.mxu1 %v12337_v15  ;;  %10171 = vmatprep.subr.bf16.mxu0 %v12342_v20  ;;  %v12418_v15 = vld [vmem:[#allocation14 + $0x500] ss:$16 sps:$4 sm:$0xff]   ;;  %v12421_v20 = vld [vmem:[#allocation14 + $0x508] ss:$16 sps:$4 sm:$0xff]  }
 0x60b   :  { %10335 = vmatprep.subr.bf16.mxu1 %v12345_v22  ;;  %v12426_v22 = vld [vmem:[#allocation14 + $0x524] ss:$16 sps:$4 sm:$0xff]  }
 0x60d   :  { %10172 = vmatpush1.bf16.msra.mxu0 %v12340_v24  ;;  %v12429_v24 = vld [vmem:[#allocation14 + $0x52c] ss:$16 sps:$4 sm:$0xff]  }
 0x60e   :  { %10336 = vmatpush1.bf16.msra.mxu1 %v12343_v9  ;;  %10173 = vmatprep.subr.bf16.mxu0 %v12348_v26  ;;  %v12424_v9 = vld [vmem:[#allocation14 + $0x520] ss:$16 sps:$4 sm:$0xff]   ;;  %v12427_v26 = vld [vmem:[#allocation14 + $0x528] ss:$16 sps:$4 sm:$0xff]  }
 0x60f   :  { %10337 = vmatprep.subr.bf16.mxu1 %v12351_v27  ;;  %v12432_v27 = vld [vmem:[#allocation14 + $0x544] ss:$16 sps:$4 sm:$0xff]  }
 0x611   :  { %10174 = vmatpush1.bf16.msra.mxu0 %v12346_v31  ;;  %v12435_v31 = vld [vmem:[#allocation14 + $0x54c] ss:$16 sps:$4 sm:$0xff]  }
 0x612   :  { %10338 = vmatpush1.bf16.msra.mxu1 %v12349_v29  ;;  %10175 = vmatprep.subr.bf16.mxu0 %v12354_v30  ;;  %v12430_v29 = vld [vmem:[#allocation14 + $0x540] ss:$16 sps:$4 sm:$0xff]   ;;  %v12433_v30 = vld [vmem:[#allocation14 + $0x548] ss:$16 sps:$4 sm:$0xff]  }
 0x613   :  { %10339 = vmatprep.subr.bf16.mxu1 %v12357_v32  ;;  %v12438_v32 = vld [vmem:[#allocation14 + $0x564] ss:$16 sps:$4 sm:$0xff]  }
 0x615   :  { %10176 = vmatpush1.bf16.msra.mxu0 %v12352_v56  ;;  %v12441_v56 = vld [vmem:[#allocation14 + $0x56c] ss:$16 sps:$4 sm:$0xff]  }
 0x616   :  { %10340 = vmatpush1.bf16.msra.mxu1 %v12355_v34  ;;  %10177 = vmatprep.subr.bf16.mxu0 %v12360_v63  ;;  %v12436_v34 = vld [vmem:[#allocation14 + $0x560] ss:$16 sps:$4 sm:$0xff]   ;;  %v12439_v63 = vld [vmem:[#allocation14 + $0x568] ss:$16 sps:$4 sm:$0xff]  }
 0x617   :  { %10341 = vmatprep.subr.bf16.mxu1 %v12363_v37  ;;  %v12444_v37 = vld [vmem:[#allocation14 + $0x584] ss:$16 sps:$4 sm:$0xff]  }
 0x619   :  { %10178 = vmatpush1.bf16.msra.mxu0 %v12358_v38  ;;  %v12447_v38 = vld [vmem:[#allocation14 + $0x58c] ss:$16 sps:$4 sm:$0xff]  }
 0x61a   :  { %10342 = vmatpush1.bf16.msra.mxu1 %v12361_v57  ;;  %10179 = vmatprep.subr.bf16.mxu0 %v12366_v40  ;;  %v12442_v57 = vld [vmem:[#allocation14 + $0x580] ss:$16 sps:$4 sm:$0xff]   ;;  %v12445_v40 = vld [vmem:[#allocation14 + $0x588] ss:$16 sps:$4 sm:$0xff]  }
 0x61b   :  { %10343 = vmatprep.subr.bf16.mxu1 %v12369_v42  ;;  %v12450_v42 = vld [vmem:[#allocation14 + $0x5a4] ss:$16 sps:$4 sm:$0xff]  }
 0x61d   :  { %10180 = vmatpush1.bf16.msra.mxu0 %v12364_v49  ;;  %v12453_v49 = vld [vmem:[#allocation14 + $0x5ac] ss:$16 sps:$4 sm:$0xff]  }
 0x61e   :  { %10344 = vmatpush1.bf16.msra.mxu1 %v12367_v51  ;;  %10190 = vmatprep.subr.bf16.mxu0 %v12372_v58  ;;  %v12448_v51 = vld [vmem:[#allocation14 + $0x5a0] ss:$16 sps:$4 sm:$0xff]   ;;  %v12451_v58 = vld [vmem:[#allocation14 + $0x5a8] ss:$16 sps:$4 sm:$0xff]  }
 0x61f   :  { %10354 = vmatprep.subr.bf16.mxu1 %v12375_v46  ;;  %v12456_v46 = vld [vmem:[#allocation14 + $0x5c4] ss:$16 sps:$4 sm:$0xff]  }
 0x620   :  { %10182 = vmatmul.mubr.bf16.vlgmr.msra.gmra.mrb[24].mxu0 %v13102_v43 }
 0x621   :  { %10191 = vmatpush1.bf16.msra.mxu0 %v12370_v47  ;;  %10346 = vmatmul.mubr.bf16.vlgmr.msra.gmra.mrb[24].mxu1 %v13102_v43  ;;  %v12388_v43 = vld [vmem:[#allocation14 + $0x460] ss:$16 sps:$4 sm:$0xff]   ;;  %v12459_v47 = vld [vmem:[#allocation14 + $0x5cc] ss:$16 sps:$4 sm:$0xff]  }
 0x622   :  { %10355 = vmatpush1.bf16.msra.mxu1 %v12373_v25  ;;  %10192 = vmatprep.subr.bf16.mxu0 %v12378_v0  ;;  %v12454_v25 = vld [vmem:[#allocation14 + $0x5c0] ss:$16 sps:$4 sm:$0xff]   ;;  %v12457_v0 = vld [vmem:[#allocation14 + $0x5c8] ss:$16 sps:$4 sm:$0xff]  }
 0x623   :  { %10356 = vmatprep.subr.bf16.mxu1 %v12381_v1  ;;  %10222 = vmatprep.mubr.bf16.mxu0 %v13104_v54  ;;  %v12462_v1 = vld [vmem:[#allocation14 + $0x5e4] ss:$16 sps:$4 sm:$0xff]  }
 0x624   :  { %10386 = vmatprep.mubr.bf16.mxu1 %v13104_v54  ;;  %v12397_v54 = vld [vmem:[#allocation14 + $0x488] ss:$16 sps:$4 sm:$0xff]  }
 0x625   :  { %10193 = vmatpush1.bf16.msra.mxu0 %v12376_v48  ;;  %v12465_v48 = vld [vmem:[#allocation14 + $0x5ec] ss:$16 sps:$4 sm:$0xff]  }
 0x626   :  { %10357 = vmatpush1.bf16.msra.mxu1 %v12379_v23  ;;  %10194 = vmatprep.subr.bf16.mxu0 %v12384_v36  ;;  %v12460_v23 = vld [vmem:[#allocation14 + $0x5e0] ss:$16 sps:$4 sm:$0xff]   ;;  %v12463_v36 = vld [vmem:[#allocation14 + $0x5e8] ss:$16 sps:$4 sm:$0xff]  }
 0x627   :  { %10358 = vmatprep.subr.bf16.mxu1 %v12387_v35  ;;  %v12468_v35 = vld [vmem:[#allocation14 + $0x604] ss:$16 sps:$4 sm:$0xff]  }
 0x629   :  { %10195 = vmatpush1.bf16.msra.mxu0 %v12382_v2  ;;  %v12471_v2 = vld [vmem:[#allocation14 + $0x60c] ss:$16 sps:$4 sm:$0xff]  }
 0x62a   :  { %10359 = vmatpush1.bf16.msra.mxu1 %v12385_v60  ;;  %10196 = vmatprep.subr.bf16.mxu0 %v12390_v61  ;;  %v12466_v60 = vld [vmem:[#allocation14 + $0x600] ss:$16 sps:$4 sm:$0xff]   ;;  %v12469_v61 = vld [vmem:[#allocation14 + $0x608] ss:$16 sps:$4 sm:$0xff]  }
 0x62b   :  { %10360 = vmatprep.subr.bf16.mxu1 %v12393_v3  ;;  %v12474_v3 = vld [vmem:[#allocation14 + $0x624] ss:$16 sps:$4 sm:$0xff]  }
 0x62d   :  { %10197 = vmatpush1.bf16.msra.mxu0 %v12388_v43  ;;  %v12477_v43 = vld [vmem:[#allocation14 + $0x62c] ss:$16 sps:$4 sm:$0xff]  }
 0x62e   :  { %10361 = vmatpush1.bf16.msra.mxu1 %v12391_v59  ;;  %10198 = vmatprep.subr.bf16.mxu0 %v12396_v62  ;;  %v12472_v59 = vld [vmem:[#allocation14 + $0x620] ss:$16 sps:$4 sm:$0xff]   ;;  %v12475_v62 = vld [vmem:[#allocation14 + $0x628] ss:$16 sps:$4 sm:$0xff]  }
 0x62f   :  { %10362 = vmatprep.subr.bf16.mxu1 %v12399_v45  ;;  %v12480_v45 = vld [vmem:[#allocation14 + $0x644] ss:$16 sps:$4 sm:$0xff]  }
 0x631   :  { %10199 = vmatpush1.bf16.msra.mxu0 %v12394_v21  ;;  %v12483_v21 = vld [vmem:[#allocation14 + $0x64c] ss:$16 sps:$4 sm:$0xff]  }
 0x632   :  { %10363 = vmatpush1.bf16.msra.mxu1 %v12397_v54  ;;  %10200 = vmatprep.subr.bf16.mxu0 %v12402_v50  ;;  %v12478_v54 = vld [vmem:[#allocation14 + $0x640] ss:$16 sps:$4 sm:$0xff]   ;;  %v12481_v50 = vld [vmem:[#allocation14 + $0x648] ss:$16 sps:$4 sm:$0xff]  }
 0x633   :  { %10364 = vmatprep.subr.bf16.mxu1 %v12405_v55  ;;  %v12486_v55 = vld [vmem:[#allocation14 + $0x664] ss:$16 sps:$4 sm:$0xff]  }
 0x635   :  { %10201 = vmatpush1.bf16.msra.mxu0 %v12400_v16  ;;  %v12489_v16 = vld [vmem:[#allocation14 + $0x66c] ss:$16 sps:$4 sm:$0xff]  }
 0x636   :  { %10365 = vmatpush1.bf16.msra.mxu1 %v12403_v39  ;;  %10202 = vmatprep.subr.bf16.mxu0 %v12408_v5  ;;  %v12487_v39 = vld [vmem:[#allocation14 + $0x668] ss:$16 sps:$4 sm:$0xff]   ;;  %v12492_v5 = vld [vmem:[#allocation14 + $0x684] ss:$16 sps:$4 sm:$0xff]  }
 0x637   :  { %10366 = vmatprep.subr.bf16.mxu1 %v12411_v52  ;;  %v12495_v52 = vld [vmem:[#allocation14 + $0x68c] ss:$16 sps:$4 sm:$0xff]  }
 0x639   :  { %10203 = vmatpush1.bf16.msra.mxu0 %v12406_v41  ;;  %v12490_v41 = vld [vmem:[#allocation14 + $0x680] ss:$16 sps:$4 sm:$0xff]  }
 0x63a   :  { %10367 = vmatpush1.bf16.msra.mxu1 %v12409_v10  ;;  %10204 = vmatprep.subr.bf16.mxu0 %v12414_v11  ;;  %v12498_v10 = vld [vmem:[#allocation14 + $0x6a4] ss:$16 sps:$4 sm:$0xff]   ;;  %v12501_v11 = vld [vmem:[#allocation14 + $0x6ac] ss:$16 sps:$4 sm:$0xff]  }
 0x63b   :  { %10368 = vmatprep.subr.bf16.mxu1 %v12417_v12  ;;  %v12496_v12 = vld [vmem:[#allocation14 + $0x6a0] ss:$16 sps:$4 sm:$0xff]  }
 0x63d   :  { %10205 = vmatpush1.bf16.msra.mxu0 %v12412_v6  ;;  %v12499_v6 = vld [vmem:[#allocation14 + $0x6a8] ss:$16 sps:$4 sm:$0xff]  }
 0x63e   :  { %10369 = vmatpush1.bf16.msra.mxu1 %v12415_v18  ;;  %10206 = vmatprep.subr.bf16.mxu0 %v12420_v19  ;;  %v12504_v18 = vld [vmem:[#allocation14 + $0x6c4] ss:$16 sps:$4 sm:$0xff]  }
 0x63f   :  { %10370 = vmatprep.subr.bf16.mxu1 %v12423_v8  ;;  %v12507_v8 = vld [vmem:[#allocation14 + $0x6cc] ss:$16 sps:$4 sm:$0xff]  }
 0x641   :  { %10207 = vmatpush1.bf16.msra.mxu0 %v12418_v15 }
 0x642   :  { %10371 = vmatpush1.bf16.msra.mxu1 %v12421_v20  ;;  %10208 = vmatprep.subr.bf16.mxu0 %v12426_v22 }
 0x643   :  { %10372 = vmatprep.subr.bf16.mxu1 %v12429_v24 }
 0x645   :  { %10209 = vmatpush1.bf16.msra.mxu0 %v12424_v9 }
 0x646   :  { %10373 = vmatpush1.bf16.msra.mxu1 %v12427_v26  ;;  %10210 = vmatprep.subr.bf16.mxu0 %v12432_v27  ;;  %v12502_v26 = vld [vmem:[#allocation14 + $0x6c0] ss:$16 sps:$4 sm:$0xff]  }
 0x647   :  { %10374 = vmatprep.subr.bf16.mxu1 %v12435_v31 }
 0x649   :  { %10211 = vmatpush1.bf16.msra.mxu0 %v12430_v29 }
 0x64a   :  { %10375 = vmatpush1.bf16.msra.mxu1 %v12433_v30  ;;  %10212 = vmatprep.subr.bf16.mxu0 %v12438_v32  ;;  %v12505_v30 = vld [vmem:[#allocation14 + $0x6c8] ss:$16 sps:$4 sm:$0xff]   ;;  %v12510_v32 = vld [vmem:[#allocation14 + $0x6e4] ss:$16 sps:$4 sm:$0xff]  }
 0x64b   :  { %10376 = vmatprep.subr.bf16.mxu1 %v12441_v56 }
 0x64d   :  { %10213 = vmatpush1.bf16.msra.mxu0 %v12436_v34 }
 0x64e   :  { %10377 = vmatpush1.bf16.msra.mxu1 %v12439_v63  ;;  %10214 = vmatprep.subr.bf16.mxu0 %v12444_v37  ;;  %v12513_v63 = vld [vmem:[#allocation14 + $0x6ec] ss:$16 sps:$4 sm:$0xff]  }
 0x64f   :  { %10378 = vmatprep.subr.bf16.mxu1 %v12447_v38  ;;  %v12508_v38 = vld [vmem:[#allocation14 + $0x6e0] ss:$16 sps:$4 sm:$0xff]  }
 0x651   :  { %10215 = vmatpush1.bf16.msra.mxu0 %v12442_v57  ;;  %v12511_v57 = vld [vmem:[#allocation14 + $0x6e8] ss:$16 sps:$4 sm:$0xff]  }
 0x652   :  { %10379 = vmatpush1.bf16.msra.mxu1 %v12445_v40  ;;  %10216 = vmatprep.subr.bf16.mxu0 %v12450_v42  ;;  %v12516_v40 = vld [vmem:[#allocation14 + $0x704] ss:$16 sps:$4 sm:$0xff]   ;;  %v12519_v42 = vld [vmem:[#allocation14 + $0x70c] ss:$16 sps:$4 sm:$0xff]  }
 0x653   :  { %10380 = vmatprep.subr.bf16.mxu1 %v12453_v49  ;;  %v12514_v49 = vld [vmem:[#allocation14 + $0x700] ss:$16 sps:$4 sm:$0xff]  }
 0x655   :  { %10217 = vmatpush1.bf16.msra.mxu0 %v12448_v51  ;;  %v12517_v51 = vld [vmem:[#allocation14 + $0x708] ss:$16 sps:$4 sm:$0xff]  }
 0x656   :  { %10381 = vmatpush1.bf16.msra.mxu1 %v12451_v58  ;;  %10218 = vmatprep.subr.bf16.mxu0 %v12456_v46  ;;  %v12522_v58 = vld [vmem:[#allocation14 + $0x724] ss:$16 sps:$4 sm:$0xff]   ;;  %v12520_v46 = vld [vmem:[#allocation14 + $0x720] ss:$16 sps:$4 sm:$0xff]  }
 0x657   :  { %10382 = vmatprep.subr.bf16.mxu1 %v12459_v47  ;;  %v12523_v47 = vld [vmem:[#allocation14 + $0x728] ss:$16 sps:$4 sm:$0xff]  }
 0x659   :  { %10219 = vmatpush1.bf16.msra.mxu0 %v12454_v25  ;;  %v12528_v25 = vld [vmem:[#allocation14 + $0x744] ss:$16 sps:$4 sm:$0xff]  }
 0x65a   :  { %10383 = vmatpush1.bf16.msra.mxu1 %v12457_v0  ;;  %10220 = vmatprep.subr.bf16.mxu0 %v12462_v1  ;;  %v12531_v0 = vld [vmem:[#allocation14 + $0x74c] ss:$16 sps:$4 sm:$0xff]   ;;  %v12526_v1 = vld [vmem:[#allocation14 + $0x740] ss:$16 sps:$4 sm:$0xff]  }
 0x65b   :  { %10384 = vmatprep.subr.bf16.mxu1 %v12465_v48  ;;  %v12529_v48 = vld [vmem:[#allocation14 + $0x748] ss:$16 sps:$4 sm:$0xff]  }
 0x65d   :  { %10221 = vmatpush1.bf16.msra.mxu0 %v12460_v23  ;;  %v12534_v23 = vld [vmem:[#allocation14 + $0x764] ss:$16 sps:$4 sm:$0xff]  }
 0x65e   :  { %10385 = vmatpush1.bf16.msra.mxu1 %v12463_v36  ;;  %10231 = vmatprep.subr.bf16.mxu0 %v12468_v35  ;;  %v12537_v36 = vld [vmem:[#allocation14 + $0x76c] ss:$16 sps:$4 sm:$0xff]   ;;  %v12532_v35 = vld [vmem:[#allocation14 + $0x760] ss:$16 sps:$4 sm:$0xff]  }
 0x65f   :  { %10395 = vmatprep.subr.bf16.mxu1 %v12471_v2  ;;  %v12535_v2 = vld [vmem:[#allocation14 + $0x768] ss:$16 sps:$4 sm:$0xff]  }
 0x660   :  { %10223 = vmatmul.mubr.bf16.vlgmr.msra.gmra.mrb[24].mxu0 %v13119_v4 }
 0x661   :  { %10232 = vmatpush1.bf16.msra.mxu0 %v12466_v60  ;;  %10387 = vmatmul.mubr.bf16.vlgmr.msra.gmra.mrb[24].mxu1 %v13119_v4  ;;  %v12484_v4 = vld [vmem:[#allocation14 + $0x660] ss:$16 sps:$4 sm:$0xff]   ;;  %v12540_v60 = vld [vmem:[#allocation14 + $0x784] ss:$16 sps:$4 sm:$0xff]  }
 0x662   :  { %10396 = vmatpush1.bf16.msra.mxu1 %v12469_v61  ;;  %10233 = vmatprep.subr.bf16.mxu0 %v12474_v3  ;;  %v12543_v61 = vld [vmem:[#allocation14 + $0x78c] ss:$16 sps:$4 sm:$0xff]   ;;  %v12538_v3 = vld [vmem:[#allocation14 + $0x780] ss:$16 sps:$4 sm:$0xff]  }
 0x663   :  { %10397 = vmatprep.subr.bf16.mxu1 %v12477_v43  ;;  %10263 = vmatprep.mubr.bf16.mxu0 %v13121_v14  ;;  %v12541_v43 = vld [vmem:[#allocation14 + $0x788] ss:$16 sps:$4 sm:$0xff]  }
 0x664   :  { %10427 = vmatprep.mubr.bf16.mxu1 %v13121_v14  ;;  %v12493_v14 = vld [vmem:[#allocation14 + $0x688] ss:$16 sps:$4 sm:$0xff]  }
 0x665   :  { %10234 = vmatpush1.bf16.msra.mxu0 %v12472_v59  ;;  %v12546_v59 = vld [vmem:[#allocation14 + $0x7a4] ss:$16 sps:$4 sm:$0xff]  }
 0x666   :  { %10398 = vmatpush1.bf16.msra.mxu1 %v12475_v62  ;;  %10235 = vmatprep.subr.bf16.mxu0 %v12480_v45  ;;  %v12549_v62 = vld [vmem:[#allocation14 + $0x7ac] ss:$16 sps:$4 sm:$0xff]   ;;  %v12544_v45 = vld [vmem:[#allocation14 + $0x7a0] ss:$16 sps:$4 sm:$0xff]  }
 0x667   :  { %10399 = vmatprep.subr.bf16.mxu1 %v12483_v21  ;;  %v12547_v21 = vld [vmem:[#allocation14 + $0x7a8] ss:$16 sps:$4 sm:$0xff]  }
 0x669   :  { %10236 = vmatpush1.bf16.msra.mxu0 %v12478_v54  ;;  %v12552_v54 = vld [vmem:[#allocation14 + $0x7c4] ss:$16 sps:$4 sm:$0xff]  }
 0x66a   :  { %10400 = vmatpush1.bf16.msra.mxu1 %v12481_v50  ;;  %10237 = vmatprep.subr.bf16.mxu0 %v12486_v55  ;;  %v12555_v50 = vld [vmem:[#allocation14 + $0x7cc] ss:$16 sps:$4 sm:$0xff]   ;;  %v12550_v55 = vld [vmem:[#allocation14 + $0x7c0] ss:$16 sps:$4 sm:$0xff]  }
 0x66b   :  { %10401 = vmatprep.subr.bf16.mxu1 %v12489_v16  ;;  %v12553_v16 = vld [vmem:[#allocation14 + $0x7c8] ss:$16 sps:$4 sm:$0xff]  }
 0x66d   :  { %10238 = vmatpush1.bf16.msra.mxu0 %v12484_v4  ;;  %v12558_v4 = vld [vmem:[#allocation14 + $0x7e4] ss:$16 sps:$4 sm:$0xff]  }
 0x66e   :  { %10402 = vmatpush1.bf16.msra.mxu1 %v12487_v39  ;;  %10239 = vmatprep.subr.bf16.mxu0 %v12492_v5  ;;  %v12561_v39 = vld [vmem:[#allocation14 + $0x7ec] ss:$16 sps:$4 sm:$0xff]   ;;  %v12556_v5 = vld [vmem:[#allocation14 + $0x7e0] ss:$16 sps:$4 sm:$0xff]  }
 0x66f   :  { %10403 = vmatprep.subr.bf16.mxu1 %v12495_v52  ;;  %v12559_v52 = vld [vmem:[#allocation14 + $0x7e8] ss:$16 sps:$4 sm:$0xff]  }
 0x671   :  { %10240 = vmatpush1.bf16.msra.mxu0 %v12490_v41 }
 0x672   :  { %10404 = vmatpush1.bf16.msra.mxu1 %v12493_v14  ;;  %10241 = vmatprep.subr.bf16.mxu0 %v12498_v10 }
 0x673   :  { %v11924_v19 = vpop.f32.mrb[20].mxu0  ;;  %10405 = vmatprep.subr.bf16.mxu1 %v12501_v11 }
 0x674   :  { %v11946_v15 = vpop.f32.mrb[20].mxu1  ;;  %v11925_v20 = vpop.f32.mrb[21].mxu0 }
 0x675   :  { %v11926_v22 = vadd.f32 %v11925_v20, %v11924_v19  ;;  %v11947_v24 = vpop.f32.mrb[21].mxu1  ;;  %10242 = vmatpush1.bf16.msra.mxu0 %v12496_v12  ;;  %v11927_v9 = vpop.f32.mrb[22].mxu0 }
 0x676   :  { %v11948_v27 = vadd.f32 %v11947_v24, %v11946_v15  ;;  %10406 = vmatpush1.bf16.msra.mxu1 %v12499_v6  ;;  %v11949_v31 = vpop.f32.mrb[22].mxu1  ;;  %v11928_v29 = vpop.f32.mrb[23].mxu0  ;;  %10243 = vmatprep.subr.bf16.mxu0 %v12504_v18 }
 0x677   :  { %v8504_v56 = vadd.f32 %v11926_v22, %v13314_v44  ;;  %v11950_v34 = vpop.f32.mrb[23].mxu1  ;;  %10407 = vmatprep.subr.bf16.mxu1 %v12507_v8  ;;  %v12525_v44 = vld [vmem:[#allocation14 + $0x72c] ss:$16 sps:$4 sm:$0xff]  }
 0x679   :  { %v8544_v37 = vadd.f32 %v11948_v27, %v8504_v56  ;;  %10244 = vmatpush1.bf16.msra.mxu0 %v12502_v26 }
 0x67a   :  { %10408 = vmatpush1.bf16.msra.mxu1 %v12505_v30  ;;  %10245 = vmatprep.subr.bf16.mxu0 %v12510_v32 }
 0x67b   :  { %8549 = vst [vmem:[#allocation20] sm:$0x3] %v8544_v37  ;;  %10409 = vmatprep.subr.bf16.mxu1 %v12513_v63 }
 0x67d   :  { %10246 = vmatpush1.bf16.msra.mxu0 %v12508_v38 }
 0x67e   :  { %10410 = vmatpush1.bf16.msra.mxu1 %v12511_v57  ;;  %10247 = vmatprep.subr.bf16.mxu0 %v12516_v40 }
 0x67f   :  { %10411 = vmatprep.subr.bf16.mxu1 %v12519_v42 }
 0x681   :  { %10248 = vmatpush1.bf16.msra.mxu0 %v12514_v49 }
 0x682   :  { %10412 = vmatpush1.bf16.msra.mxu1 %v12517_v51  ;;  %10249 = vmatprep.subr.bf16.mxu0 %v12522_v58 }
 0x683   :  { %10413 = vmatprep.subr.bf16.mxu1 %v12525_v44 }
 0x685   :  { %10250 = vmatpush1.bf16.msra.mxu0 %v12520_v46 }
 0x686   :  { %10414 = vmatpush1.bf16.msra.mxu1 %v12523_v47  ;;  %10251 = vmatprep.subr.bf16.mxu0 %v12528_v25 }
 0x687   :  { %10415 = vmatprep.subr.bf16.mxu1 %v12531_v0 }
 0x689   :  { %10252 = vmatpush1.bf16.msra.mxu0 %v12526_v1 }
 0x68a   :  { %10416 = vmatpush1.bf16.msra.mxu1 %v12529_v48  ;;  %10253 = vmatprep.subr.bf16.mxu0 %v12534_v23 }
 0x68b   :  { %10417 = vmatprep.subr.bf16.mxu1 %v12537_v36 }
 0x68d   :  { %10254 = vmatpush1.bf16.msra.mxu0 %v12532_v35 }
 0x68e   :  { %10418 = vmatpush1.bf16.msra.mxu1 %v12535_v2  ;;  %10255 = vmatprep.subr.bf16.mxu0 %v12540_v60 }
 0x68f   :  { %10419 = vmatprep.subr.bf16.mxu1 %v12543_v61 }
 0x691   :  { %10256 = vmatpush1.bf16.msra.mxu0 %v12538_v3 }
 0x692   :  { %10420 = vmatpush1.bf16.msra.mxu1 %v12541_v43  ;;  %10257 = vmatprep.subr.bf16.mxu0 %v12546_v59 }
 0x693   :  { %10421 = vmatprep.subr.bf16.mxu1 %v12549_v62 }
 0x695   :  { %10258 = vmatpush1.bf16.msra.mxu0 %v12544_v45 }
 0x696   :  { %10422 = vmatpush1.bf16.msra.mxu1 %v12547_v21  ;;  %10259 = vmatprep.subr.bf16.mxu0 %v12552_v54 }
 0x697   :  { %10423 = vmatprep.subr.bf16.mxu1 %v12555_v50 }
 0x699   :  { %10260 = vmatpush1.bf16.msra.mxu0 %v12550_v55 }
 0x69a   :  { %10424 = vmatpush1.bf16.msra.mxu1 %v12553_v16  ;;  %10261 = vmatprep.subr.bf16.mxu0 %v12558_v4 }
 0x69b   :  { %10425 = vmatprep.subr.bf16.mxu1 %v12561_v39 }
 0x69d   :  { %10262 = vmatpush1.bf16.msra.mxu0 %v12556_v5 }
 0x69e   :  { %10426 = vmatpush1.bf16.msra.mxu1 %v12559_v52 }
 0x6a0   :  { %10264 = vmatmul.mubr.bf16.vlgmr.msra.gmra.mrb[24].mxu0 %v13129_v28 }
 0x6a1   :  { %10428 = vmatmul.mubr.bf16.vlgmr.msra.gmra.mrb[24].mxu1 %v13129_v28 }
 0x6a2   :  { %12772 = shalt.err (!%p12769_p6)
}
 0x6a3   :  { %s12773_s16 = scalar_lea.hbm %s13395_s10, 256 }
 0x6a4   :  { %p12774_p7 = scmp.ne.s32.totalorder %s13395_s10, %s12773_s16  ;;  %p12777_p8 = scmp.lt.u32.totalorder %s12773_s16, %s13395_s10 }
 0x6a6   :  { %p12779_p9 = pnand %p12777_p8, %p12774_p7 }
 0x6a8   :  { %12782 = shalt.err (!%p12779_p9)
}
 0x6a9   :  { %10478 = dma.vmem_to_hbm [thread:$0]  %s10476_s2, 256, %s13395_s10, [#allocation19]  }
 0x6aa   :  { %s12783_s21 = scalar_lea.vmem %s10466_s22, 256  ;;  %p12788_p11 = scmp.lt.s32.totalorder %s10466_s22, %s10466_s22 }
 0x6ab   :  { %p12784_p10 = scmp.ne.s32.totalorder %s10466_s22, %s12783_s21  ;;  %p12789_p12 = scmp.lt.s32.totalorder %s12783_s21, %s12783_s21 }
 0x6ad   :  { %p12790_p13 = por %p12789_p12, %p12788_p11 }
 0x6af   :  { %p12791_p0 = pnand %p12790_p13, %p12784_p10 }
 0x6b1   :  { %12794 = shalt.err (!%p12791_p0)
}
 0x6b2   :  { %s12795_s13 = scalar_lea.hbm %s13394_s9, 256 }
 0x6b3   :  { %p12796_p1 = scmp.ne.s32.totalorder %s13394_s9, %s12795_s13  ;;  %p12799_p2 = scmp.lt.u32.totalorder %s12795_s13, %s13394_s9 }
 0x6b5   :  { %p12801_p3 = pnand %p12799_p2, %p12796_p1 }
 0x6b7   :  { %12804 = shalt.err (!%p12801_p3)
}
 0x6b8   :  { %10468 = dma.vmem_to_hbm [thread:$0]  %s10466_s22, 256, %s13394_s9, [#allocation4]  }
 0x6b9   :  { %s12883_s7 = smov [#allocation20]  }
 0x6ba   :  { %s10485_s26 = sshll.u32 %s12883_s7, 4  ;;  %s10486_s26 = int_to_ptr.vmem [resolvable:$true] %s10485_s26 }
 0x6bb   :  { %s12805_s6 = scalar_lea.vmem %s10486_s26, 32  ;;  %p12810_p5 = scmp.lt.s32.totalorder %s10486_s26, %s10486_s26 }
 0x6bc   :  { %p12806_p4 = scmp.ne.s32.totalorder %s10486_s26, %s12805_s6  ;;  %p12811_p6 = scmp.lt.s32.totalorder %s12805_s6, %s12805_s6 }
 0x6be   :  { %p12812_p7 = por %p12811_p6, %p12810_p5 }
 0x6c0   :  { %p12813_p8 = pnand %p12812_p7, %p12806_p4 }
 0x6c2   :  { %12816 = shalt.err (!%p12813_p8)
}
 0x6c3   :  { %s12817_s2 = scalar_lea.hbm %s13396_s11, 32 }
 0x6c4   :  { %p12818_p9 = scmp.ne.s32.totalorder %s13396_s11, %s12817_s2  ;;  %p12821_p10 = scmp.lt.u32.totalorder %s12817_s2, %s13396_s11 }
 0x6c6   :  { %p12823_p11 = pnand %p12821_p10, %p12818_p9 }
 0x6c8   :  { %12826 = shalt.err (!%p12823_p11)
}
 0x6c9   :  { %10488 = dma.vmem_to_hbm [thread:$0]  %s10486_s26, 32, %s13396_s11, [#allocation19]   ;;  %v8806_v28 = vld [vmem:[#allocation16] sm:$0xf] }
 0x6ca   :  { %v8811_v41 = vrot.slane %v8806_v28, %v13148_v7  ;;  %v8819_v14 = vrot.slane %v8806_v28, %v13151_v13  ;;  %v8815_v10 = vrot.slane %v8806_v28, %v13154_v33  ;;  %v8823_v11 = vrot.slane %v8806_v28, %v13157_v17  ;;  %s12884_s11 = smov [#allocation21]  }
 0x6cb   :  { %s10495_s16 = sshll.u32 %s12884_s11, 4  ;;  %s10496_s16 = int_to_ptr.vmem [resolvable:$true] %s10495_s16 }
 0x6cc   :  { %s12827_s5 = scalar_lea.vmem %s10496_s16, 128  ;;  %p12832_p13 = scmp.lt.s32.totalorder %s10496_s16, %s10496_s16 }
 0x6cd   :  { %p12828_p12 = scmp.ne.s32.totalorder %s10496_s16, %s12827_s5  ;;  %p12833_p0 = scmp.lt.s32.totalorder %s12827_s5, %s12827_s5 }
 0x6cf   :  { %p12834_p1 = por %p12833_p0, %p12832_p13 }
 0x6d1   :  { %p12835_p2 = pnand %p12834_p1, %p12828_p12 }
 0x773   :  { %v10265_v12 = vpop.f32.mrb[24].mxu0 }
 0x774   :  { %v11968_v6 = vadd.f32 %v10265_v12, %v8811_v41  ;;  %v10429_v18 = vpop.f32.mrb[24].mxu1  ;;  %v10267_v19 = vpop.f32.mrb[25].mxu0 }
 0x775   :  { %v11970_v8 = vadd.f32 %v10429_v18, %v8819_v14  ;;  %v11969_v15 = vadd.f32 %v10267_v19, %v8815_v10  ;;  %v10431_v20 = vpop.f32.mrb[25].mxu1  ;;  %v10269_v22 = vpop.f32.mrb[26].mxu0 }
 0x776   :  { %v11971_v24 = vadd.f32 %v10431_v20, %v8823_v11  ;;  %v10433_v9 = vpop.f32.mrb[26].mxu1  ;;  %v10270_v26 = vpop.f32.mrb[27].mxu0 }
 0x777   :  { %v10440_v27 = vcombine.low %v11968_v6, %v11969_v15  ;;  %v10434_v31 = vpop.f32.mrb[27].mxu1 }
 0x778   :  { %v10441_v7 = vcombine.low %v11970_v8, %v11971_v24 }
 0x779   :  { %v10448_v13 = vrot.slane %v10440_v27, %v13061_v53 }
 0x77a   :  { %v10455_v33 = vrot.slane %v10441_v7, %v13061_v53 }
 0x77c   :  { %v10456_v17 = vcombine.low %v10448_v13, %v10455_v33 }
 0x77e   :  { %10458 = vst [vmem:[#allocation21] sm:$0xff] %v10456_v17 }
 0x77f   :  { %12838 = shalt.err (!%p12835_p2)
}
 0x780   :  { %s12839_s19 = scalar_lea.hbm %s13397_s12, 128 }
 0x781   :  { %p12840_p3 = scmp.ne.s32.totalorder %s13397_s12, %s12839_s19  ;;  %p12843_p4 = scmp.lt.u32.totalorder %s12839_s19, %s13397_s12 }
 0x783   :  { %p12845_p5 = pnand %p12843_p4, %p12840_p3 }
 0x785   :  { %12848 = shalt.err (!%p12845_p5)
}
 0x786   :  { %10498 = dma.vmem_to_hbm [thread:$0]  %s10496_s16, 128, %s13397_s12, [#allocation22]  }
 0x787   :  { %12859 = dma.done.wait [#allocation4], 256  }
 0x788   :  { %12860 = vsyncadd [#allocation4], 4294967040 }
 0x789   :  { %12861 = dma.done.wait [#allocation19], 288  }
 0x78a   :  { %12862 = vsyncadd [#allocation19], 4294967008 }
 0x78b   :  { %12863 = dma.done.wait [#allocation22], 128  }
 0x78c   :  { %12864 = vsyncadd [#allocation22], 4294967168 }
 0x78d   :  { %10511 = vsyncpa [#allocation3], 1 }
 0x78e   :  { %10512 = vsyncpa [#allocation6], 1 }
 0x78f   :  { %10513 = vsyncpa [#allocation9], 1 }
 0x790   :  { %10514 = vsyncpa [#allocation12], 1 }
 0x791   :  { %10515 = vsyncpa [#allocation15], 1 }
 0x792   :  { %10516 = vsyncpa [#allocation4], 1 }
 0x793   :  { %10517 = vsyncpa [#allocation19], 1 }
 0x794   :  { %10518 = vsyncpa [#allocation22], 1 }

</bundles_post_ra>
